<compile_context>
chip_gen: v7x
topology: tpu7x:2x2x1
jax: 0.10.0
libtpu: 0.0.40
codegen_flags: <defaults>
</compile_context>

<pallas_src>
import numpy as np
import jax
import jax.numpy as jnp
from jax.experimental import pallas as pl
from jax.experimental.pallas import tpu as pltpu

_BN_EPS = 1e-5


# ---------------------------------------------------------------------------
# In-kernel helpers (pure jnp on VMEM-resident values; all shapes static)
# ---------------------------------------------------------------------------
def _iota2(shape, dim):
    return jax.lax.broadcasted_iota(jnp.int32, shape, dim)


def _pad_rows(x):
    """(H, L) -> (H+2, L) bf16 with zero first/last rows (tiny 0/1 matmul)."""
    h = x.shape[0]
    r = _iota2((h + 2, h), 0)
    c = _iota2((h + 2, h), 1)
    p = jnp.where(r == c + 1, 1.0, 0.0).astype(jnp.bfloat16)
    xp = jnp.dot(p, x.astype(jnp.bfloat16), preferred_element_type=jnp.float32)
    return xp.astype(jnp.bfloat16)


def _conv_taps(xp, m_ref):
    """Banded-matmul 3x3 conv in row-flat layout.

    xp:    (H+2, W*Ci) bf16, rows zero-padded by 1 on each side.
    m_ref: (3, W*Ci, W*Co) bf16 ref; m_ref[ky] encodes kernel row ky, all dx
           taps, the W-direction zero padding and the folded BN scale.
    Returns the f32 accumulator (H, W*Co).
    """
    h = xp.shape[0] - 2
    acc = jnp.dot(xp[0:h], m_ref[0], preferred_element_type=jnp.float32)
    acc = acc + jnp.dot(xp[1:h + 1], m_ref[1], preferred_element_type=jnp.float32)
    acc = acc + jnp.dot(xp[2:h + 2], m_ref[2], preferred_element_type=jnp.float32)
    return acc


def _double_conv(x, lvl):
    """Conv3x3+BN+ReLU -> Conv3x3+BN+ReLU, fully VMEM-resident."""
    y1 = jnp.maximum(_conv_taps(_pad_rows(x), lvl["m1"]) + lvl["b1"][...], 0.0)
    return jnp.maximum(_conv_taps(_pad_rows(y1), lvl["m2"]) + lvl["b2"][...], 0.0)


def _sel_rows(h, parity):
    """(h//2, h) f32 selection matrix: out[i] = in[2*i + parity]."""
    r = _iota2((h // 2, h), 0)
    c = _iota2((h // 2, h), 1)
    return jnp.where(c == 2 * r + parity, 1.0, 0.0)


def _sel_col_groups(l, cch, parity):
    """(l, l//2) f32 selection: out lane w2*C+c <- in lane (2*w2+parity)*C+c."""
    r = _iota2((l, l // 2), 0)
    d = _iota2((l, l // 2), 1)
    base = jnp.bitwise_and(d, -cch)          # (d // C) * C, C is a power of two
    src = d + base + parity * cch
    return jnp.where(r == src, 1.0, 0.0)


def _maxpool2(x, cch):
    """2x2/2 max pool in row-flat layout: (H, W*C) f32 -> (H/2, (W/2)*C)."""
    assert cch & (cch - 1) == 0, "channel count must be a power of two"
    h, l = x.shape
    xr = jnp.maximum(
        jnp.dot(_sel_rows(h, 0), x, preferred_element_type=jnp.float32),
        jnp.dot(_sel_rows(h, 1), x, preferred_element_type=jnp.float32))
    return jnp.maximum(
        jnp.dot(xr, _sel_col_groups(l, cch, 0), preferred_element_type=jnp.float32),
        jnp.dot(xr, _sel_col_groups(l, cch, 1), preferred_element_type=jnp.float32))


def _upsample(xlow, r_ref, bc_ref):
    """Separable bilinear 2x upsample (+F.pad placement): two bf16 matmuls."""
    ur = jnp.dot(r_ref[...], xlow.astype(jnp.bfloat16),
                 preferred_element_type=jnp.float32)
    return jnp.dot(ur.astype(jnp.bfloat16), bc_ref[...],
                   preferred_element_type=jnp.float32)


def _up_block(xlow, xskip, lvl):
    """Upsample + (implicit) channel concat + DoubleConv.

    The torch.cat([skip, up], C) is removed by splitting conv1's weights into
    a skip part (ms) and an upsample part (mu) and summing the contributions.
    """
    up = _upsample(xlow, lvl["r"], lvl["bc"])
    a1 = (_conv_taps(_pad_rows(xskip), lvl["ms"]) +
          _conv_taps(_pad_rows(up), lvl["mu"]))
    y1 = jnp.maximum(a1 + lvl["b1"][...], 0.0)
    return jnp.maximum(_conv_taps(_pad_rows(y1), lvl["m2"]) + lvl["b2"][...], 0.0)


def _make_unet_kernel(treedef, base_c):
    def kernel(*refs):
        x_ref, o_ref = refs[0], refs[-1]
        p = jax.tree_util.tree_unflatten(treedef, refs[1:-1])
        x = x_ref[0]                                          # (H, W*Cin) f32
        # ---- Encoder -------------------------------------------------------
        x1 = _double_conv(x, p["in_conv"])                    # (H,    W*C )
        x2 = _double_conv(_maxpool2(x1, base_c), p["down1"])  # (H/2,  W*C )
        x3 = _double_conv(_maxpool2(x2, base_c * 2), p["down2"])
        x4 = _double_conv(_maxpool2(x3, base_c * 4), p["down3"])
        x5 = _double_conv(_maxpool2(x4, base_c * 8), p["down4"])
        # ---- Decoder -------------------------------------------------------
        y = _up_block(x5, x4, p["up1"])
        y = _up_block(y, x3, p["up2"])
        y = _up_block(y, x2, p["up3"])
        y = _up_block(y, x1, p["up4"])
        # ---- OutConv (1x1), fused as one matmul vs kron(I_W, w_out) --------
        logits = jnp.dot(y, p["out_conv"]["w"][...],
                         preferred_element_type=jnp.float32) + p["out_conv"]["b"][...]
        o_ref[0] = logits                                     # (H, W*classes)
    return kernel


# ---------------------------------------------------------------------------
# Host-side parameter construction (synthetic, deterministic; eval-mode BN
# folded; conv weights baked into row-flat banded matrices)
# ---------------------------------------------------------------------------
def _bn_fold(c):
    scale = np.full((c,), 1.0 / np.sqrt(1.0 + _BN_EPS), np.float32)
    bias = np.zeros((c,), np.float32)
    return scale, bias


def _conv_flat_mats(w, width, scale):
    """(3,3,Ci,Co) HWIO conv weight -> (3, width*Ci, width*Co) bf16 banded mats."""
    cin, cout = w.shape[2], w.shape[3]
    w = w * scale[None, None, None, :]          # fold BN scale into the weights
    m = np.zeros((3, width * cin, width * cout), np.float32)
    for ky in range(3):
        for wy in range(width):
            for kx in range(3):
                wx = wy + kx - 1
                if 0 <= wx < width:
                    m[ky, wx * cin:(wx + 1) * cin,
                      wy * cout:(wy + 1) * cout] = w[ky, kx]
    return jnp.asarray(m, jnp.bfloat16)


def _rand_conv_w(key, cin, cout):
    return np.asarray(jax.random.normal(key, (3, 3, cin, cout), jnp.float32)
                      ) / np.sqrt(9.0 * cin)


def _double_conv_level(key, cin, cout, width, cmid=None):
    if cmid is None:
        cmid = cout
    k1, k2 = jax.random.split(key)
    w1, w2 = _rand_conv_w(k1, cin, cmid), _rand_conv_w(k2, cmid, cout)
    s1, b1 = _bn_fold(cmid)
    s2, b2 = _bn_fold(cout)
    return {
        "m1": _conv_flat_mats(w1, width, s1),
        "b1": jnp.asarray(np.tile(b1, width)[None, :], jnp.float32),
        "m2": _conv_flat_mats(w2, width, s2),
        "b2": jnp.asarray(np.tile(b2, width)[None, :], jnp.float32),
    }


def _bilinear_matrix(in_size, out_size):
    """nn.Upsample(mode='bilinear', align_corners=True) interpolation matrix."""
    m = np.zeros((out_size, in_size), np.float32)
    if in_size == 1:
        m[:, 0] = 1.0
        return m
    for i in range(out_size):
        src = i * (in_size - 1) / (out_size - 1)
        lo = int(np.floor(src))
        hi = min(lo + 1, in_size - 1)
        frac = src - lo
        m[i, lo] += 1.0 - frac
        m[i, hi] += frac
    return m


def _placed_interp(skip_size, in_size):
    """2x bilinear interp + torch F.pad centering onto the skip's size."""
    up = 2 * in_size
    diff = skip_size - up
    # TODO(synk): negative F.pad (crop when upsampled > skip) not implemented.
    assert diff >= 0, "upsampled size larger than skip not supported"
    out = np.zeros((skip_size, in_size), np.float32)
    off = diff // 2
    out[off:off + up, :] = _bilinear_matrix(in_size, up)
    return out


def _up_level(key, cskip, cup, cmid, cout, hs, ws, h0, w0):
    k1, k2 = jax.random.split(key)
    w1 = _rand_conv_w(k1, cskip + cup, cmid)
    w2 = _rand_conv_w(k2, cmid, cout)
    s1, b1 = _bn_fold(cmid)
    s2, b2 = _bn_fold(cout)
    rmat = _placed_interp(hs, h0)                         # (Hs, H0) row interp
    cmat = _placed_interp(ws, w0)                         # (Ws, W0) col interp
    bc = np.kron(cmat.T, np.eye(cup, dtype=np.float32))   # (W0*Cu, Ws*Cu)
    return {
        "r": jnp.asarray(rmat, jnp.bfloat16),
        "bc": jnp.asarray(bc, jnp.bfloat16),
        "ms": _conv_flat_mats(w1[:, :, :cskip, :], ws, s1),   # skip channels
        "mu": _conv_flat_mats(w1[:, :, cskip:, :], ws, s1),   # upsampled channels
        "b1": jnp.asarray(np.tile(b1, ws)[None, :], jnp.float32),
        "m2": _conv_flat_mats(w2, ws, s2),
        "b2": jnp.asarray(np.tile(b2, ws)[None, :], jnp.float32),
    }


def init_unet_kernel_params(key, in_channels=1, num_classes=2, base_c=8,
                            height=16, width=16, bilinear=True):
    assert bilinear, "TODO(synk): ConvTranspose2d (bilinear=False) not implemented"
    assert height % 16 == 0 and width % 16 == 0, "4 even pooling levels required"
    keys = jax.random.split(key, 10)
    f = 2
    p = {}
    p["in_conv"] = _double_conv_level(keys[0], in_channels, base_c, width)
    p["down1"] = _double_conv_level(keys[1], base_c, base_c * 2, width // 2)
    p["down2"] = _double_conv_level(keys[2], base_c * 2, base_c * 4, width // 4)
    p["down3"] = _double_conv_level(keys[3], base_c * 4, base_c * 8, width // 8)
    p["down4"] = _double_conv_level(keys[4], base_c * 8, base_c * 16 // f, width // 16)
    p["up1"] = _up_level(keys[5], base_c * 8, base_c * 16 // f, base_c * 16 // 2,
                         base_c * 8 // f, height // 8, width // 8,
                         height // 16, width // 16)
    p["up2"] = _up_level(keys[6], base_c * 4, base_c * 8 // f, base_c * 8 // 2,
                         base_c * 4 // f, height // 4, width // 4,
                         height // 8, width // 8)
    p["up3"] = _up_level(keys[7], base_c * 2, base_c * 4 // f, base_c * 4 // 2,
                         base_c * 2 // f, height // 2, width // 2,
                         height // 4, width // 4)
    p["up4"] = _up_level(keys[8], base_c, base_c * 2 // f, base_c * 2 // 2,
                         base_c, height, width, height // 2, width // 2)
    w_out = np.asarray(jax.random.normal(keys[9], (base_c, num_classes),
                                         jnp.float32)) / np.sqrt(base_c)
    p["out_conv"] = {
        "w": jnp.asarray(np.kron(np.eye(width, dtype=np.float32), w_out), jnp.float32),
        "b": jnp.zeros((1, width * num_classes), jnp.float32),
    }
    return p


# ---------------------------------------------------------------------------
# Forward pass (single pallas_call; NCHW in / NCHW out)
# ---------------------------------------------------------------------------
def unet_forward(kparams, x_nchw):
    n, cin, h, w = x_nchw.shape
    base_c = kparams["in_conv"]["b1"].shape[1] // w
    num_classes = kparams["out_conv"]["b"].shape[1] // w
    x_flat = jnp.transpose(x_nchw, (0, 2, 3, 1)).reshape(n, h, w * cin)

    leaves, treedef = jax.tree_util.tree_flatten(kparams)
    kernel = _make_unet_kernel(treedef, base_c)

    in_specs = [pl.BlockSpec((1, h, w * cin), lambda i: (i, 0, 0))]
    for leaf in leaves:
        in_specs.append(pl.BlockSpec(leaf.shape, lambda i, nd=leaf.ndim: (0,) * nd))

    out_flat = pl.pallas_call(
        kernel,
        grid=(n,),
        in_specs=in_specs,
        out_specs=pl.BlockSpec((1, h, w * num_classes), lambda i: (i, 0, 0)),
        out_shape=jax.ShapeDtypeStruct((n, h, w * num_classes), jnp.float32),
        compiler_params=pltpu.CompilerParams(
            dimension_semantics=("parallel",)),   # one image per TensorCore on v7x
    )(x_flat, *leaves)

    logits = out_flat.reshape(n, h, w, num_classes).transpose(0, 3, 1, 2)
    return {"out": logits}


# ---------------------------------------------------------------------------
# Main
# ---------------------------------------------------------------------------
if __name__ == "__main__":
    key = jax.random.PRNGKey(0)
    k_x, k_p = jax.random.split(key)

    N, C_IN, HEIGHT, WIDTH = 2, 1, 16, 16
    NUM_CLASSES, BASE_C = 2, 8

    x = jax.random.normal(k_x, (N, C_IN, HEIGHT, WIDTH), jnp.float32)
    params = init_unet_kernel_params(k_p, in_channels=C_IN, num_classes=NUM_CLASSES,
                                     base_c=BASE_C, height=HEIGHT, width=WIDTH,
                                     bilinear=True)

    fwd = jax.jit(unet_forward)
    out = fwd(params, x)
    logits = jax.block_until_ready(out["out"])

    assert logits.shape == (N, NUM_CLASSES, HEIGHT, WIDTH), logits.shape
    assert logits.dtype == jnp.float32
    assert bool(jnp.isfinite(logits).all())
    print("KERNEL_OK")
</pallas_src>

<mosaic_0001>
module attributes {stable_mosaic.version = 11 : i64} {
  func.func @kernel(%arg0: i32, %arg1: memref<1x16x16xf32, #tpu.memory_space<vmem>>, %arg2: memref<1x128xf32, #tpu.memory_space<vmem>>, %arg3: memref<1x128xf32, #tpu.memory_space<vmem>>, %arg4: memref<3x64x128xbf16, #tpu.memory_space<vmem>>, %arg5: memref<3x128x128xbf16, #tpu.memory_space<vmem>>, %arg6: memref<1x128xf32, #tpu.memory_space<vmem>>, %arg7: memref<1x128xf32, #tpu.memory_space<vmem>>, %arg8: memref<3x64x128xbf16, #tpu.memory_space<vmem>>, %arg9: memref<3x128x128xbf16, #tpu.memory_space<vmem>>, %arg10: memref<1x128xf32, #tpu.memory_space<vmem>>, %arg11: memref<1x128xf32, #tpu.memory_space<vmem>>, %arg12: memref<3x64x128xbf16, #tpu.memory_space<vmem>>, %arg13: memref<3x128x128xbf16, #tpu.memory_space<vmem>>, %arg14: memref<1x64xf32, #tpu.memory_space<vmem>>, %arg15: memref<1x64xf32, #tpu.memory_space<vmem>>, %arg16: memref<3x64x64xbf16, #tpu.memory_space<vmem>>, %arg17: memref<3x64x64xbf16, #tpu.memory_space<vmem>>, %arg18: memref<1x128xf32, #tpu.memory_space<vmem>>, %arg19: memref<1x128xf32, #tpu.memory_space<vmem>>, %arg20: memref<3x16x128xbf16, #tpu.memory_space<vmem>>, %arg21: memref<3x128x128xbf16, #tpu.memory_space<vmem>>, %arg22: memref<1x32xf32, #tpu.memory_space<vmem>>, %arg23: memref<128x32xf32, #tpu.memory_space<vmem>>, %arg24: memref<1x128xf32, #tpu.memory_space<vmem>>, %arg25: memref<1x64xf32, #tpu.memory_space<vmem>>, %arg26: memref<64x128xbf16, #tpu.memory_space<vmem>>, %arg27: memref<3x128x64xbf16, #tpu.memory_space<vmem>>, %arg28: memref<3x128x128xbf16, #tpu.memory_space<vmem>>, %arg29: memref<3x128x128xbf16, #tpu.memory_space<vmem>>, %arg30: memref<2x1xbf16, #tpu.memory_space<vmem>>, %arg31: memref<1x128xf32, #tpu.memory_space<vmem>>, %arg32: memref<1x64xf32, #tpu.memory_space<vmem>>, %arg33: memref<64x128xbf16, #tpu.memory_space<vmem>>, %arg34: memref<3x128x64xbf16, #tpu.memory_space<vmem>>, %arg35: memref<3x128x128xbf16, #tpu.memory_space<vmem>>, %arg36: memref<3x128x128xbf16, #tpu.memory_space<vmem>>, %arg37: memref<4x2xbf16, #tpu.memory_space<vmem>>, %arg38: memref<1x128xf32, #tpu.memory_space<vmem>>, %arg39: memref<1x64xf32, #tpu.memory_space<vmem>>, %arg40: memref<64x128xbf16, #tpu.memory_space<vmem>>, %arg41: memref<3x128x64xbf16, #tpu.memory_space<vmem>>, %arg42: memref<3x128x128xbf16, #tpu.memory_space<vmem>>, %arg43: memref<3x128x128xbf16, #tpu.memory_space<vmem>>, %arg44: memref<8x4xbf16, #tpu.memory_space<vmem>>, %arg45: memref<1x128xf32, #tpu.memory_space<vmem>>, %arg46: memref<1x128xf32, #tpu.memory_space<vmem>>, %arg47: memref<64x128xbf16, #tpu.memory_space<vmem>>, %arg48: memref<3x128x128xbf16, #tpu.memory_space<vmem>>, %arg49: memref<3x128x128xbf16, #tpu.memory_space<vmem>>, %arg50: memref<3x128x128xbf16, #tpu.memory_space<vmem>>, %arg51: memref<16x8xbf16, #tpu.memory_space<vmem>>, %arg52: memref<1x16x32xf32, #tpu.memory_space<vmem>>) attributes {dimension_semantics = [#tpu.dimension_semantics<parallel>], iteration_bounds = array<i64: 2>, scalar_prefetch = 0 : i64, scratch_operands = 0 : i64, tpu.core_type = #tpu.core_type<tc>, window_params = [{transform_indices = @transform_0, window_bounds = array<i64: 1, 16, 16>}, {pipeline_mode = #tpu.pipeline_mode<synchronous>, transform_indices = @transform_1, window_bounds = array<i64: 1, 128>}, {pipeline_mode = #tpu.pipeline_mode<synchronous>, transform_indices = @transform_2, window_bounds = array<i64: 1, 128>}, {pipeline_mode = #tpu.pipeline_mode<synchronous>, transform_indices = @transform_3, window_bounds = array<i64: 3, 64, 128>}, {pipeline_mode = #tpu.pipeline_mode<synchronous>, transform_indices = @transform_4, window_bounds = array<i64: 3, 128, 128>}, {pipeline_mode = #tpu.pipeline_mode<synchronous>, transform_indices = @transform_5, window_bounds = array<i64: 1, 128>}, {pipeline_mode = #tpu.pipeline_mode<synchronous>, transform_indices = @transform_6, window_bounds = array<i64: 1, 128>}, {pipeline_mode = #tpu.pipeline_mode<synchronous>, transform_indices = @transform_7, window_bounds = array<i64: 3, 64, 128>}, {pipeline_mode = #tpu.pipeline_mode<synchronous>, transform_indices = @transform_8, window_bounds = array<i64: 3, 128, 128>}, {pipeline_mode = #tpu.pipeline_mode<synchronous>, transform_indices = @transform_9, window_bounds = array<i64: 1, 128>}, {pipeline_mode = #tpu.pipeline_mode<synchronous>, transform_indices = @transform_10, window_bounds = array<i64: 1, 128>}, {pipeline_mode = #tpu.pipeline_mode<synchronous>, transform_indices = @transform_11, window_bounds = array<i64: 3, 64, 128>}, {pipeline_mode = #tpu.pipeline_mode<synchronous>, transform_indices = @transform_12, window_bounds = array<i64: 3, 128, 128>}, {pipeline_mode = #tpu.pipeline_mode<synchronous>, transform_indices = @transform_13, window_bounds = array<i64: 1, 64>}, {pipeline_mode = #tpu.pipeline_mode<synchronous>, transform_indices = @transform_14, window_bounds = array<i64: 1, 64>}, {pipeline_mode = #tpu.pipeline_mode<synchronous>, transform_indices = @transform_15, window_bounds = array<i64: 3, 64, 64>}, {pipeline_mode = #tpu.pipeline_mode<synchronous>, transform_indices = @transform_16, window_bounds = array<i64: 3, 64, 64>}, {pipeline_mode = #tpu.pipeline_mode<synchronous>, transform_indices = @transform_17, window_bounds = array<i64: 1, 128>}, {pipeline_mode = #tpu.pipeline_mode<synchronous>, transform_indices = @transform_18, window_bounds = array<i64: 1, 128>}, {pipeline_mode = #tpu.pipeline_mode<synchronous>, transform_indices = @transform_19, window_bounds = array<i64: 3, 16, 128>}, {pipeline_mode = #tpu.pipeline_mode<synchronous>, transform_indices = @transform_20, window_bounds = array<i64: 3, 128, 128>}, {pipeline_mode = #tpu.pipeline_mode<synchronous>, transform_indices = @transform_21, window_bounds = array<i64: 1, 32>}, {pipeline_mode = #tpu.pipeline_mode<synchronous>, transform_indices = @transform_22, window_bounds = array<i64: 128, 32>}, {pipeline_mode = #tpu.pipeline_mode<synchronous>, transform_indices = @transform_23, window_bounds = array<i64: 1, 128>}, {pipeline_mode = #tpu.pipeline_mode<synchronous>, transform_indices = @transform_24, window_bounds = array<i64: 1, 64>}, {pipeline_mode = #tpu.pipeline_mode<synchronous>, transform_indices = @transform_25, window_bounds = array<i64: 64, 128>}, {pipeline_mode = #tpu.pipeline_mode<synchronous>, transform_indices = @transform_26, window_bounds = array<i64: 3, 128, 64>}, {pipeline_mode = #tpu.pipeline_mode<synchronous>, transform_indices = @transform_27, window_bounds = array<i64: 3, 128, 128>}, {pipeline_mode = #tpu.pipeline_mode<synchronous>, transform_indices = @transform_28, window_bounds = array<i64: 3, 128, 128>}, {pipeline_mode = #tpu.pipeline_mode<synchronous>, transform_indices = @transform_29, window_bounds = array<i64: 2, 1>}, {pipeline_mode = #tpu.pipeline_mode<synchronous>, transform_indices = @transform_30, window_bounds = array<i64: 1, 128>}, {pipeline_mode = #tpu.pipeline_mode<synchronous>, transform_indices = @transform_31, window_bounds = array<i64: 1, 64>}, {pipeline_mode = #tpu.pipeline_mode<synchronous>, transform_indices = @transform_32, window_bounds = array<i64: 64, 128>}, {pipeline_mode = #tpu.pipeline_mode<synchronous>, transform_indices = @transform_33, window_bounds = array<i64: 3, 128, 64>}, {pipeline_mode = #tpu.pipeline_mode<synchronous>, transform_indices = @transform_34, window_bounds = array<i64: 3, 128, 128>}, {pipeline_mode = #tpu.pipeline_mode<synchronous>, transform_indices = @transform_35, window_bounds = array<i64: 3, 128, 128>}, {pipeline_mode = #tpu.pipeline_mode<synchronous>, transform_indices = @transform_36, window_bounds = array<i64: 4, 2>}, {pipeline_mode = #tpu.pipeline_mode<synchronous>, transform_indices = @transform_37, window_bounds = array<i64: 1, 128>}, {pipeline_mode = #tpu.pipeline_mode<synchronous>, transform_indices = @transform_38, window_bounds = array<i64: 1, 64>}, {pipeline_mode = #tpu.pipeline_mode<synchronous>, transform_indices = @transform_39, window_bounds = array<i64: 64, 128>}, {pipeline_mode = #tpu.pipeline_mode<synchronous>, transform_indices = @transform_40, window_bounds = array<i64: 3, 128, 64>}, {pipeline_mode = #tpu.pipeline_mode<synchronous>, transform_indices = @transform_41, window_bounds = array<i64: 3, 128, 128>}, {pipeline_mode = #tpu.pipeline_mode<synchronous>, transform_indices = @transform_42, window_bounds = array<i64: 3, 128, 128>}, {pipeline_mode = #tpu.pipeline_mode<synchronous>, transform_indices = @transform_43, window_bounds = array<i64: 8, 4>}, {pipeline_mode = #tpu.pipeline_mode<synchronous>, transform_indices = @transform_44, window_bounds = array<i64: 1, 128>}, {pipeline_mode = #tpu.pipeline_mode<synchronous>, transform_indices = @transform_45, window_bounds = array<i64: 1, 128>}, {pipeline_mode = #tpu.pipeline_mode<synchronous>, transform_indices = @transform_46, window_bounds = array<i64: 64, 128>}, {pipeline_mode = #tpu.pipeline_mode<synchronous>, transform_indices = @transform_47, window_bounds = array<i64: 3, 128, 128>}, {pipeline_mode = #tpu.pipeline_mode<synchronous>, transform_indices = @transform_48, window_bounds = array<i64: 3, 128, 128>}, {pipeline_mode = #tpu.pipeline_mode<synchronous>, transform_indices = @transform_49, window_bounds = array<i64: 3, 128, 128>}, {pipeline_mode = #tpu.pipeline_mode<synchronous>, transform_indices = @transform_50, window_bounds = array<i64: 16, 8>}, {transform_indices = @transform_51, window_bounds = array<i64: 1, 16, 32>}]} {
    %c0 = arith.constant 0 : index
    %c0_0 = arith.constant 0 : index
    %c0_1 = arith.constant 0 : index
    %0 = vector.load %arg1[%c0, %c0_0, %c0_1] : memref<1x16x16xf32, #tpu.memory_space<vmem>>, vector<1x16x16xf32>
    %1 = vector.shape_cast %0 : vector<1x16x16xf32> to vector<16x16xf32>
    %2 = tpu.iota {dimensions = array<i32: 0>} : vector<18x16xi32>
    %3 = tpu.iota {dimensions = array<i32: 1>} : vector<18x16xi32>
    %c1_i32 = arith.constant 1 : i32
    %4 = vector.broadcast %c1_i32 : i32 to vector<18x16xi32>
    %5 = arith.addi %3, %4 : vector<18x16xi32>
    %6 = arith.cmpi eq, %2, %5 : vector<18x16xi32>
    %cst = arith.constant 1.000000e+00 : f32
    %cst_2 = arith.constant 0.000000e+00 : f32
    %7 = vector.broadcast %cst : f32 to vector<18x16xf32>
    %8 = vector.broadcast %cst_2 : f32 to vector<18x16xf32>
    %9 = arith.select %6, %7, %8 : vector<18x16xi1>, vector<18x16xf32>
    %10 = arith.truncf %9 : vector<18x16xf32> to vector<18x16xbf16>
    %11 = arith.truncf %1 : vector<16x16xf32> to vector<16x16xbf16>
    %cst_3 = arith.constant dense<0.000000e+00> : vector<18x16xf32>
    %12 = tpu.matmul %10, %11, %cst_3 {dimension_numbers = #tpu.dot_dimension_numbers<[1], [0], [0], [1], [0, 0, 1, 1], [], []>} : vector<18x16xbf16>, vector<16x16xbf16>, vector<18x16xf32> -> vector<18x16xf32>
    %13 = arith.truncf %12 : vector<18x16xf32> to vector<18x16xbf16>
    %14 = vector.extract_strided_slice %13 {offsets = [0, 0], sizes = [16, 16], strides = [1, 1]} : vector<18x16xbf16> to vector<16x16xbf16>
    %c0_4 = arith.constant 0 : index
    %c0_5 = arith.constant 0 : index
    %c0_6 = arith.constant 0 : index
    %15 = vector.load %arg20[%c0_4, %c0_5, %c0_6] : memref<3x16x128xbf16, #tpu.memory_space<vmem>>, vector<1x16x128xbf16>
    %16 = vector.shape_cast %15 : vector<1x16x128xbf16> to vector<16x128xbf16>
    %cst_7 = arith.constant dense<0.000000e+00> : vector<16x128xf32>
    %17 = tpu.matmul %14, %16, %cst_7 {dimension_numbers = #tpu.dot_dimension_numbers<[1], [0], [0], [1], [0, 0, 1, 1], [], []>} : vector<16x16xbf16>, vector<16x128xbf16>, vector<16x128xf32> -> vector<16x128xf32>
    %18 = vector.extract_strided_slice %13 {offsets = [1, 0], sizes = [16, 16], strides = [1, 1]} : vector<18x16xbf16> to vector<16x16xbf16>
    %c1 = arith.constant 1 : index
    %c0_8 = arith.constant 0 : index
    %c0_9 = arith.constant 0 : index
    %19 = vector.load %arg20[%c1, %c0_8, %c0_9] : memref<3x16x128xbf16, #tpu.memory_space<vmem>>, vector<1x16x128xbf16>
    %20 = vector.shape_cast %19 : vector<1x16x128xbf16> to vector<16x128xbf16>
    %cst_10 = arith.constant dense<0.000000e+00> : vector<16x128xf32>
    %21 = tpu.matmul %18, %20, %cst_10 {dimension_numbers = #tpu.dot_dimension_numbers<[1], [0], [0], [1], [0, 0, 1, 1], [], []>} : vector<16x16xbf16>, vector<16x128xbf16>, vector<16x128xf32> -> vector<16x128xf32>
    %22 = arith.addf %17, %21 : vector<16x128xf32>
    %23 = vector.extract_strided_slice %13 {offsets = [2, 0], sizes = [16, 16], strides = [1, 1]} : vector<18x16xbf16> to vector<16x16xbf16>
    %c2 = arith.constant 2 : index
    %c0_11 = arith.constant 0 : index
    %c0_12 = arith.constant 0 : index
    %24 = vector.load %arg20[%c2, %c0_11, %c0_12] : memref<3x16x128xbf16, #tpu.memory_space<vmem>>, vector<1x16x128xbf16>
    %25 = vector.shape_cast %24 : vector<1x16x128xbf16> to vector<16x128xbf16>
    %cst_13 = arith.constant dense<0.000000e+00> : vector<16x128xf32>
    %26 = tpu.matmul %23, %25, %cst_13 {dimension_numbers = #tpu.dot_dimension_numbers<[1], [0], [0], [1], [0, 0, 1, 1], [], []>} : vector<16x16xbf16>, vector<16x128xbf16>, vector<16x128xf32> -> vector<16x128xf32>
    %27 = arith.addf %22, %26 : vector<16x128xf32>
    %c0_14 = arith.constant 0 : index
    %c0_15 = arith.constant 0 : index
    %28 = vector.load %arg18[%c0_14, %c0_15] : memref<1x128xf32, #tpu.memory_space<vmem>>, vector<1x128xf32>
    %29 = vector.broadcast %28 : vector<1x128xf32> to vector<16x128xf32>
    %30 = arith.addf %27, %29 : vector<16x128xf32>
    %cst_16 = arith.constant 0.000000e+00 : f32
    %31 = vector.broadcast %cst_16 : f32 to vector<16x128xf32>
    %32 = arith.maximumf %30, %31 : vector<16x128xf32>
    %33 = tpu.iota {dimensions = array<i32: 0>} : vector<18x16xi32>
    %34 = tpu.iota {dimensions = array<i32: 1>} : vector<18x16xi32>
    %c1_i32_17 = arith.constant 1 : i32
    %35 = vector.broadcast %c1_i32_17 : i32 to vector<18x16xi32>
    %36 = arith.addi %34, %35 : vector<18x16xi32>
    %37 = arith.cmpi eq, %33, %36 : vector<18x16xi32>
    %cst_18 = arith.constant 1.000000e+00 : f32
    %cst_19 = arith.constant 0.000000e+00 : f32
    %38 = vector.broadcast %cst_18 : f32 to vector<18x16xf32>
    %39 = vector.broadcast %cst_19 : f32 to vector<18x16xf32>
    %40 = arith.select %37, %38, %39 : vector<18x16xi1>, vector<18x16xf32>
    %41 = arith.truncf %40 : vector<18x16xf32> to vector<18x16xbf16>
    %42 = arith.truncf %32 : vector<16x128xf32> to vector<16x128xbf16>
    %cst_20 = arith.constant dense<0.000000e+00> : vector<18x128xf32>
    %43 = tpu.matmul %41, %42, %cst_20 {dimension_numbers = #tpu.dot_dimension_numbers<[1], [0], [0], [1], [0, 0, 1, 1], [], []>} : vector<18x16xbf16>, vector<16x128xbf16>, vector<18x128xf32> -> vector<18x128xf32>
    %44 = arith.truncf %43 : vector<18x128xf32> to vector<18x128xbf16>
    %45 = vector.extract_strided_slice %44 {offsets = [0, 0], sizes = [16, 128], strides = [1, 1]} : vector<18x128xbf16> to vector<16x128xbf16>
    %c0_21 = arith.constant 0 : index
    %c0_22 = arith.constant 0 : index
    %c0_23 = arith.constant 0 : index
    %46 = vector.load %arg21[%c0_21, %c0_22, %c0_23] : memref<3x128x128xbf16, #tpu.memory_space<vmem>>, vector<1x128x128xbf16>
    %47 = vector.shape_cast %46 : vector<1x128x128xbf16> to vector<128x128xbf16>
    %cst_24 = arith.constant dense<0.000000e+00> : vector<16x128xf32>
    %48 = tpu.matmul %45, %47, %cst_24 {dimension_numbers = #tpu.dot_dimension_numbers<[1], [0], [0], [1], [0, 0, 1, 1], [], []>} : vector<16x128xbf16>, vector<128x128xbf16>, vector<16x128xf32> -> vector<16x128xf32>
    %49 = vector.extract_strided_slice %44 {offsets = [1, 0], sizes = [16, 128], strides = [1, 1]} : vector<18x128xbf16> to vector<16x128xbf16>
    %c1_25 = arith.constant 1 : index
    %c0_26 = arith.constant 0 : index
    %c0_27 = arith.constant 0 : index
    %50 = vector.load %arg21[%c1_25, %c0_26, %c0_27] : memref<3x128x128xbf16, #tpu.memory_space<vmem>>, vector<1x128x128xbf16>
    %51 = vector.shape_cast %50 : vector<1x128x128xbf16> to vector<128x128xbf16>
    %cst_28 = arith.constant dense<0.000000e+00> : vector<16x128xf32>
    %52 = tpu.matmul %49, %51, %cst_28 {dimension_numbers = #tpu.dot_dimension_numbers<[1], [0], [0], [1], [0, 0, 1, 1], [], []>} : vector<16x128xbf16>, vector<128x128xbf16>, vector<16x128xf32> -> vector<16x128xf32>
    %53 = arith.addf %48, %52 : vector<16x128xf32>
    %54 = vector.extract_strided_slice %44 {offsets = [2, 0], sizes = [16, 128], strides = [1, 1]} : vector<18x128xbf16> to vector<16x128xbf16>
    %c2_29 = arith.constant 2 : index
    %c0_30 = arith.constant 0 : index
    %c0_31 = arith.constant 0 : index
    %55 = vector.load %arg21[%c2_29, %c0_30, %c0_31] : memref<3x128x128xbf16, #tpu.memory_space<vmem>>, vector<1x128x128xbf16>
    %56 = vector.shape_cast %55 : vector<1x128x128xbf16> to vector<128x128xbf16>
    %cst_32 = arith.constant dense<0.000000e+00> : vector<16x128xf32>
    %57 = tpu.matmul %54, %56, %cst_32 {dimension_numbers = #tpu.dot_dimension_numbers<[1], [0], [0], [1], [0, 0, 1, 1], [], []>} : vector<16x128xbf16>, vector<128x128xbf16>, vector<16x128xf32> -> vector<16x128xf32>
    %58 = arith.addf %53, %57 : vector<16x128xf32>
    %c0_33 = arith.constant 0 : index
    %c0_34 = arith.constant 0 : index
    %59 = vector.load %arg19[%c0_33, %c0_34] : memref<1x128xf32, #tpu.memory_space<vmem>>, vector<1x128xf32>
    %60 = vector.broadcast %59 : vector<1x128xf32> to vector<16x128xf32>
    %61 = arith.addf %58, %60 : vector<16x128xf32>
    %cst_35 = arith.constant 0.000000e+00 : f32
    %62 = vector.broadcast %cst_35 : f32 to vector<16x128xf32>
    %63 = arith.maximumf %61, %62 : vector<16x128xf32>
    %64 = tpu.iota {dimensions = array<i32: 0>} : vector<8x16xi32>
    %65 = tpu.iota {dimensions = array<i32: 1>} : vector<8x16xi32>
    %c2_i32 = arith.constant 2 : i32
    %66 = vector.broadcast %c2_i32 : i32 to vector<8x16xi32>
    %67 = arith.muli %66, %64 : vector<8x16xi32>
    %c0_i32 = arith.constant 0 : i32
    %68 = vector.broadcast %c0_i32 : i32 to vector<8x16xi32>
    %69 = arith.addi %67, %68 : vector<8x16xi32>
    %70 = arith.cmpi eq, %65, %69 : vector<8x16xi32>
    %cst_36 = arith.constant 1.000000e+00 : f32
    %cst_37 = arith.constant 0.000000e+00 : f32
    %71 = vector.broadcast %cst_36 : f32 to vector<8x16xf32>
    %72 = vector.broadcast %cst_37 : f32 to vector<8x16xf32>
    %73 = arith.select %70, %71, %72 : vector<8x16xi1>, vector<8x16xf32>
    %cst_38 = arith.constant dense<0.000000e+00> : vector<8x128xf32>
    %74 = tpu.matmul %73, %63, %cst_38 {dimension_numbers = #tpu.dot_dimension_numbers<[1], [0], [0], [1], [0, 0, 1, 1], [], []>} : vector<8x16xf32>, vector<16x128xf32>, vector<8x128xf32> -> vector<8x128xf32>
    %75 = tpu.iota {dimensions = array<i32: 0>} : vector<8x16xi32>
    %76 = tpu.iota {dimensions = array<i32: 1>} : vector<8x16xi32>
    %c2_i32_39 = arith.constant 2 : i32
    %77 = vector.broadcast %c2_i32_39 : i32 to vector<8x16xi32>
    %78 = arith.muli %77, %75 : vector<8x16xi32>
    %c1_i32_40 = arith.constant 1 : i32
    %79 = vector.broadcast %c1_i32_40 : i32 to vector<8x16xi32>
    %80 = arith.addi %78, %79 : vector<8x16xi32>
    %81 = arith.cmpi eq, %76, %80 : vector<8x16xi32>
    %cst_41 = arith.constant 1.000000e+00 : f32
    %cst_42 = arith.constant 0.000000e+00 : f32
    %82 = vector.broadcast %cst_41 : f32 to vector<8x16xf32>
    %83 = vector.broadcast %cst_42 : f32 to vector<8x16xf32>
    %84 = arith.select %81, %82, %83 : vector<8x16xi1>, vector<8x16xf32>
    %cst_43 = arith.constant dense<0.000000e+00> : vector<8x128xf32>
    %85 = tpu.matmul %84, %63, %cst_43 {dimension_numbers = #tpu.dot_dimension_numbers<[1], [0], [0], [1], [0, 0, 1, 1], [], []>} : vector<8x16xf32>, vector<16x128xf32>, vector<8x128xf32> -> vector<8x128xf32>
    %86 = arith.maximumf %74, %85 : vector<8x128xf32>
    %87 = tpu.iota {dimensions = array<i32: 0>} : vector<128x64xi32>
    %88 = tpu.iota {dimensions = array<i32: 1>} : vector<128x64xi32>
    %c-8_i32 = arith.constant -8 : i32
    %89 = vector.broadcast %c-8_i32 : i32 to vector<128x64xi32>
    %90 = arith.andi %88, %89 : vector<128x64xi32>
    %91 = arith.addi %88, %90 : vector<128x64xi32>
    %c0_i32_44 = arith.constant 0 : i32
    %92 = vector.broadcast %c0_i32_44 : i32 to vector<128x64xi32>
    %93 = arith.addi %91, %92 : vector<128x64xi32>
    %94 = arith.cmpi eq, %87, %93 : vector<128x64xi32>
    %cst_45 = arith.constant 1.000000e+00 : f32
    %cst_46 = arith.constant 0.000000e+00 : f32
    %95 = vector.broadcast %cst_45 : f32 to vector<128x64xf32>
    %96 = vector.broadcast %cst_46 : f32 to vector<128x64xf32>
    %97 = arith.select %94, %95, %96 : vector<128x64xi1>, vector<128x64xf32>
    %cst_47 = arith.constant dense<0.000000e+00> : vector<8x64xf32>
    %98 = tpu.matmul %86, %97, %cst_47 {dimension_numbers = #tpu.dot_dimension_numbers<[1], [0], [0], [1], [0, 0, 1, 1], [], []>} : vector<8x128xf32>, vector<128x64xf32>, vector<8x64xf32> -> vector<8x64xf32>
    %99 = tpu.iota {dimensions = array<i32: 0>} : vector<128x64xi32>
    %100 = tpu.iota {dimensions = array<i32: 1>} : vector<128x64xi32>
    %c-8_i32_48 = arith.constant -8 : i32
    %101 = vector.broadcast %c-8_i32_48 : i32 to vector<128x64xi32>
    %102 = arith.andi %100, %101 : vector<128x64xi32>
    %103 = arith.addi %100, %102 : vector<128x64xi32>
    %c8_i32 = arith.constant 8 : i32
    %104 = vector.broadcast %c8_i32 : i32 to vector<128x64xi32>
    %105 = arith.addi %103, %104 : vector<128x64xi32>
    %106 = arith.cmpi eq, %99, %105 : vector<128x64xi32>
    %cst_49 = arith.constant 1.000000e+00 : f32
    %cst_50 = arith.constant 0.000000e+00 : f32
    %107 = vector.broadcast %cst_49 : f32 to vector<128x64xf32>
    %108 = vector.broadcast %cst_50 : f32 to vector<128x64xf32>
    %109 = arith.select %106, %107, %108 : vector<128x64xi1>, vector<128x64xf32>
    %cst_51 = arith.constant dense<0.000000e+00> : vector<8x64xf32>
    %110 = tpu.matmul %86, %109, %cst_51 {dimension_numbers = #tpu.dot_dimension_numbers<[1], [0], [0], [1], [0, 0, 1, 1], [], []>} : vector<8x128xf32>, vector<128x64xf32>, vector<8x64xf32> -> vector<8x64xf32>
    %111 = arith.maximumf %98, %110 : vector<8x64xf32>
    %112 = tpu.iota {dimensions = array<i32: 0>} : vector<10x8xi32>
    %113 = tpu.iota {dimensions = array<i32: 1>} : vector<10x8xi32>
    %c1_i32_52 = arith.constant 1 : i32
    %114 = vector.broadcast %c1_i32_52 : i32 to vector<10x8xi32>
    %115 = arith.addi %113, %114 : vector<10x8xi32>
    %116 = arith.cmpi eq, %112, %115 : vector<10x8xi32>
    %cst_53 = arith.constant 1.000000e+00 : f32
    %cst_54 = arith.constant 0.000000e+00 : f32
    %117 = vector.broadcast %cst_53 : f32 to vector<10x8xf32>
    %118 = vector.broadcast %cst_54 : f32 to vector<10x8xf32>
    %119 = arith.select %116, %117, %118 : vector<10x8xi1>, vector<10x8xf32>
    %120 = arith.truncf %119 : vector<10x8xf32> to vector<10x8xbf16>
    %121 = arith.truncf %111 : vector<8x64xf32> to vector<8x64xbf16>
    %cst_55 = arith.constant dense<0.000000e+00> : vector<10x64xf32>
    %122 = tpu.matmul %120, %121, %cst_55 {dimension_numbers = #tpu.dot_dimension_numbers<[1], [0], [0], [1], [0, 0, 1, 1], [], []>} : vector<10x8xbf16>, vector<8x64xbf16>, vector<10x64xf32> -> vector<10x64xf32>
    %123 = arith.truncf %122 : vector<10x64xf32> to vector<10x64xbf16>
    %124 = vector.extract_strided_slice %123 {offsets = [0, 0], sizes = [8, 64], strides = [1, 1]} : vector<10x64xbf16> to vector<8x64xbf16>
    %c0_56 = arith.constant 0 : index
    %c0_57 = arith.constant 0 : index
    %c0_58 = arith.constant 0 : index
    %125 = vector.load %arg4[%c0_56, %c0_57, %c0_58] : memref<3x64x128xbf16, #tpu.memory_space<vmem>>, vector<1x64x128xbf16>
    %126 = vector.shape_cast %125 : vector<1x64x128xbf16> to vector<64x128xbf16>
    %cst_59 = arith.constant dense<0.000000e+00> : vector<8x128xf32>
    %127 = tpu.matmul %124, %126, %cst_59 {dimension_numbers = #tpu.dot_dimension_numbers<[1], [0], [0], [1], [0, 0, 1, 1], [], []>} : vector<8x64xbf16>, vector<64x128xbf16>, vector<8x128xf32> -> vector<8x128xf32>
    %128 = vector.extract_strided_slice %123 {offsets = [1, 0], sizes = [8, 64], strides = [1, 1]} : vector<10x64xbf16> to vector<8x64xbf16>
    %c1_60 = arith.constant 1 : index
    %c0_61 = arith.constant 0 : index
    %c0_62 = arith.constant 0 : index
    %129 = vector.load %arg4[%c1_60, %c0_61, %c0_62] : memref<3x64x128xbf16, #tpu.memory_space<vmem>>, vector<1x64x128xbf16>
    %130 = vector.shape_cast %129 : vector<1x64x128xbf16> to vector<64x128xbf16>
    %cst_63 = arith.constant dense<0.000000e+00> : vector<8x128xf32>
    %131 = tpu.matmul %128, %130, %cst_63 {dimension_numbers = #tpu.dot_dimension_numbers<[1], [0], [0], [1], [0, 0, 1, 1], [], []>} : vector<8x64xbf16>, vector<64x128xbf16>, vector<8x128xf32> -> vector<8x128xf32>
    %132 = arith.addf %127, %131 : vector<8x128xf32>
    %133 = vector.extract_strided_slice %123 {offsets = [2, 0], sizes = [8, 64], strides = [1, 1]} : vector<10x64xbf16> to vector<8x64xbf16>
    %c2_64 = arith.constant 2 : index
    %c0_65 = arith.constant 0 : index
    %c0_66 = arith.constant 0 : index
    %134 = vector.load %arg4[%c2_64, %c0_65, %c0_66] : memref<3x64x128xbf16, #tpu.memory_space<vmem>>, vector<1x64x128xbf16>
    %135 = vector.shape_cast %134 : vector<1x64x128xbf16> to vector<64x128xbf16>
    %cst_67 = arith.constant dense<0.000000e+00> : vector<8x128xf32>
    %136 = tpu.matmul %133, %135, %cst_67 {dimension_numbers = #tpu.dot_dimension_numbers<[1], [0], [0], [1], [0, 0, 1, 1], [], []>} : vector<8x64xbf16>, vector<64x128xbf16>, vector<8x128xf32> -> vector<8x128xf32>
    %137 = arith.addf %132, %136 : vector<8x128xf32>
    %c0_68 = arith.constant 0 : index
    %c0_69 = arith.constant 0 : index
    %138 = vector.load %arg2[%c0_68, %c0_69] : memref<1x128xf32, #tpu.memory_space<vmem>>, vector<1x128xf32>
    %139 = vector.broadcast %138 : vector<1x128xf32> to vector<8x128xf32>
    %140 = arith.addf %137, %139 : vector<8x128xf32>
    %cst_70 = arith.constant 0.000000e+00 : f32
    %141 = vector.broadcast %cst_70 : f32 to vector<8x128xf32>
    %142 = arith.maximumf %140, %141 : vector<8x128xf32>
    %143 = tpu.iota {dimensions = array<i32: 0>} : vector<10x8xi32>
    %144 = tpu.iota {dimensions = array<i32: 1>} : vector<10x8xi32>
    %c1_i32_71 = arith.constant 1 : i32
    %145 = vector.broadcast %c1_i32_71 : i32 to vector<10x8xi32>
    %146 = arith.addi %144, %145 : vector<10x8xi32>
    %147 = arith.cmpi eq, %143, %146 : vector<10x8xi32>
    %cst_72 = arith.constant 1.000000e+00 : f32
    %cst_73 = arith.constant 0.000000e+00 : f32
    %148 = vector.broadcast %cst_72 : f32 to vector<10x8xf32>
    %149 = vector.broadcast %cst_73 : f32 to vector<10x8xf32>
    %150 = arith.select %147, %148, %149 : vector<10x8xi1>, vector<10x8xf32>
    %151 = arith.truncf %150 : vector<10x8xf32> to vector<10x8xbf16>
    %152 = arith.truncf %142 : vector<8x128xf32> to vector<8x128xbf16>
    %cst_74 = arith.constant dense<0.000000e+00> : vector<10x128xf32>
    %153 = tpu.matmul %151, %152, %cst_74 {dimension_numbers = #tpu.dot_dimension_numbers<[1], [0], [0], [1], [0, 0, 1, 1], [], []>} : vector<10x8xbf16>, vector<8x128xbf16>, vector<10x128xf32> -> vector<10x128xf32>
    %154 = arith.truncf %153 : vector<10x128xf32> to vector<10x128xbf16>
    %155 = vector.extract_strided_slice %154 {offsets = [0, 0], sizes = [8, 128], strides = [1, 1]} : vector<10x128xbf16> to vector<8x128xbf16>
    %c0_75 = arith.constant 0 : index
    %c0_76 = arith.constant 0 : index
    %c0_77 = arith.constant 0 : index
    %156 = vector.load %arg5[%c0_75, %c0_76, %c0_77] : memref<3x128x128xbf16, #tpu.memory_space<vmem>>, vector<1x128x128xbf16>
    %157 = vector.shape_cast %156 : vector<1x128x128xbf16> to vector<128x128xbf16>
    %cst_78 = arith.constant dense<0.000000e+00> : vector<8x128xf32>
    %158 = tpu.matmul %155, %157, %cst_78 {dimension_numbers = #tpu.dot_dimension_numbers<[1], [0], [0], [1], [0, 0, 1, 1], [], []>} : vector<8x128xbf16>, vector<128x128xbf16>, vector<8x128xf32> -> vector<8x128xf32>
    %159 = vector.extract_strided_slice %154 {offsets = [1, 0], sizes = [8, 128], strides = [1, 1]} : vector<10x128xbf16> to vector<8x128xbf16>
    %c1_79 = arith.constant 1 : index
    %c0_80 = arith.constant 0 : index
    %c0_81 = arith.constant 0 : index
    %160 = vector.load %arg5[%c1_79, %c0_80, %c0_81] : memref<3x128x128xbf16, #tpu.memory_space<vmem>>, vector<1x128x128xbf16>
    %161 = vector.shape_cast %160 : vector<1x128x128xbf16> to vector<128x128xbf16>
    %cst_82 = arith.constant dense<0.000000e+00> : vector<8x128xf32>
    %162 = tpu.matmul %159, %161, %cst_82 {dimension_numbers = #tpu.dot_dimension_numbers<[1], [0], [0], [1], [0, 0, 1, 1], [], []>} : vector<8x128xbf16>, vector<128x128xbf16>, vector<8x128xf32> -> vector<8x128xf32>
    %163 = arith.addf %158, %162 : vector<8x128xf32>
    %164 = vector.extract_strided_slice %154 {offsets = [2, 0], sizes = [8, 128], strides = [1, 1]} : vector<10x128xbf16> to vector<8x128xbf16>
    %c2_83 = arith.constant 2 : index
    %c0_84 = arith.constant 0 : index
    %c0_85 = arith.constant 0 : index
    %165 = vector.load %arg5[%c2_83, %c0_84, %c0_85] : memref<3x128x128xbf16, #tpu.memory_space<vmem>>, vector<1x128x128xbf16>
    %166 = vector.shape_cast %165 : vector<1x128x128xbf16> to vector<128x128xbf16>
    %cst_86 = arith.constant dense<0.000000e+00> : vector<8x128xf32>
    %167 = tpu.matmul %164, %166, %cst_86 {dimension_numbers = #tpu.dot_dimension_numbers<[1], [0], [0], [1], [0, 0, 1, 1], [], []>} : vector<8x128xbf16>, vector<128x128xbf16>, vector<8x128xf32> -> vector<8x128xf32>
    %168 = arith.addf %163, %167 : vector<8x128xf32>
    %c0_87 = arith.constant 0 : index
    %c0_88 = arith.constant 0 : index
    %169 = vector.load %arg3[%c0_87, %c0_88] : memref<1x128xf32, #tpu.memory_space<vmem>>, vector<1x128xf32>
    %170 = vector.broadcast %169 : vector<1x128xf32> to vector<8x128xf32>
    %171 = arith.addf %168, %170 : vector<8x128xf32>
    %cst_89 = arith.constant 0.000000e+00 : f32
    %172 = vector.broadcast %cst_89 : f32 to vector<8x128xf32>
    %173 = arith.maximumf %171, %172 : vector<8x128xf32>
    %174 = tpu.iota {dimensions = array<i32: 0>} : vector<4x8xi32>
    %175 = tpu.iota {dimensions = array<i32: 1>} : vector<4x8xi32>
    %c2_i32_90 = arith.constant 2 : i32
    %176 = vector.broadcast %c2_i32_90 : i32 to vector<4x8xi32>
    %177 = arith.muli %176, %174 : vector<4x8xi32>
    %c0_i32_91 = arith.constant 0 : i32
    %178 = vector.broadcast %c0_i32_91 : i32 to vector<4x8xi32>
    %179 = arith.addi %177, %178 : vector<4x8xi32>
    %180 = arith.cmpi eq, %175, %179 : vector<4x8xi32>
    %cst_92 = arith.constant 1.000000e+00 : f32
    %cst_93 = arith.constant 0.000000e+00 : f32
    %181 = vector.broadcast %cst_92 : f32 to vector<4x8xf32>
    %182 = vector.broadcast %cst_93 : f32 to vector<4x8xf32>
    %183 = arith.select %180, %181, %182 : vector<4x8xi1>, vector<4x8xf32>
    %cst_94 = arith.constant dense<0.000000e+00> : vector<4x128xf32>
    %184 = tpu.matmul %183, %173, %cst_94 {dimension_numbers = #tpu.dot_dimension_numbers<[1], [0], [0], [1], [0, 0, 1, 1], [], []>} : vector<4x8xf32>, vector<8x128xf32>, vector<4x128xf32> -> vector<4x128xf32>
    %185 = tpu.iota {dimensions = array<i32: 0>} : vector<4x8xi32>
    %186 = tpu.iota {dimensions = array<i32: 1>} : vector<4x8xi32>
    %c2_i32_95 = arith.constant 2 : i32
    %187 = vector.broadcast %c2_i32_95 : i32 to vector<4x8xi32>
    %188 = arith.muli %187, %185 : vector<4x8xi32>
    %c1_i32_96 = arith.constant 1 : i32
    %189 = vector.broadcast %c1_i32_96 : i32 to vector<4x8xi32>
    %190 = arith.addi %188, %189 : vector<4x8xi32>
    %191 = arith.cmpi eq, %186, %190 : vector<4x8xi32>
    %cst_97 = arith.constant 1.000000e+00 : f32
    %cst_98 = arith.constant 0.000000e+00 : f32
    %192 = vector.broadcast %cst_97 : f32 to vector<4x8xf32>
    %193 = vector.broadcast %cst_98 : f32 to vector<4x8xf32>
    %194 = arith.select %191, %192, %193 : vector<4x8xi1>, vector<4x8xf32>
    %cst_99 = arith.constant dense<0.000000e+00> : vector<4x128xf32>
    %195 = tpu.matmul %194, %173, %cst_99 {dimension_numbers = #tpu.dot_dimension_numbers<[1], [0], [0], [1], [0, 0, 1, 1], [], []>} : vector<4x8xf32>, vector<8x128xf32>, vector<4x128xf32> -> vector<4x128xf32>
    %196 = arith.maximumf %184, %195 : vector<4x128xf32>
    %197 = tpu.iota {dimensions = array<i32: 0>} : vector<128x64xi32>
    %198 = tpu.iota {dimensions = array<i32: 1>} : vector<128x64xi32>
    %c-16_i32 = arith.constant -16 : i32
    %199 = vector.broadcast %c-16_i32 : i32 to vector<128x64xi32>
    %200 = arith.andi %198, %199 : vector<128x64xi32>
    %201 = arith.addi %198, %200 : vector<128x64xi32>
    %c0_i32_100 = arith.constant 0 : i32
    %202 = vector.broadcast %c0_i32_100 : i32 to vector<128x64xi32>
    %203 = arith.addi %201, %202 : vector<128x64xi32>
    %204 = arith.cmpi eq, %197, %203 : vector<128x64xi32>
    %cst_101 = arith.constant 1.000000e+00 : f32
    %cst_102 = arith.constant 0.000000e+00 : f32
    %205 = vector.broadcast %cst_101 : f32 to vector<128x64xf32>
    %206 = vector.broadcast %cst_102 : f32 to vector<128x64xf32>
    %207 = arith.select %204, %205, %206 : vector<128x64xi1>, vector<128x64xf32>
    %cst_103 = arith.constant dense<0.000000e+00> : vector<4x64xf32>
    %208 = tpu.matmul %196, %207, %cst_103 {dimension_numbers = #tpu.dot_dimension_numbers<[1], [0], [0], [1], [0, 0, 1, 1], [], []>} : vector<4x128xf32>, vector<128x64xf32>, vector<4x64xf32> -> vector<4x64xf32>
    %209 = tpu.iota {dimensions = array<i32: 0>} : vector<128x64xi32>
    %210 = tpu.iota {dimensions = array<i32: 1>} : vector<128x64xi32>
    %c-16_i32_104 = arith.constant -16 : i32
    %211 = vector.broadcast %c-16_i32_104 : i32 to vector<128x64xi32>
    %212 = arith.andi %210, %211 : vector<128x64xi32>
    %213 = arith.addi %210, %212 : vector<128x64xi32>
    %c16_i32 = arith.constant 16 : i32
    %214 = vector.broadcast %c16_i32 : i32 to vector<128x64xi32>
    %215 = arith.addi %213, %214 : vector<128x64xi32>
    %216 = arith.cmpi eq, %209, %215 : vector<128x64xi32>
    %cst_105 = arith.constant 1.000000e+00 : f32
    %cst_106 = arith.constant 0.000000e+00 : f32
    %217 = vector.broadcast %cst_105 : f32 to vector<128x64xf32>
    %218 = vector.broadcast %cst_106 : f32 to vector<128x64xf32>
    %219 = arith.select %216, %217, %218 : vector<128x64xi1>, vector<128x64xf32>
    %cst_107 = arith.constant dense<0.000000e+00> : vector<4x64xf32>
    %220 = tpu.matmul %196, %219, %cst_107 {dimension_numbers = #tpu.dot_dimension_numbers<[1], [0], [0], [1], [0, 0, 1, 1], [], []>} : vector<4x128xf32>, vector<128x64xf32>, vector<4x64xf32> -> vector<4x64xf32>
    %221 = arith.maximumf %208, %220 : vector<4x64xf32>
    %222 = tpu.iota {dimensions = array<i32: 0>} : vector<6x4xi32>
    %223 = tpu.iota {dimensions = array<i32: 1>} : vector<6x4xi32>
    %c1_i32_108 = arith.constant 1 : i32
    %224 = vector.broadcast %c1_i32_108 : i32 to vector<6x4xi32>
    %225 = arith.addi %223, %224 : vector<6x4xi32>
    %226 = arith.cmpi eq, %222, %225 : vector<6x4xi32>
    %cst_109 = arith.constant 1.000000e+00 : f32
    %cst_110 = arith.constant 0.000000e+00 : f32
    %227 = vector.broadcast %cst_109 : f32 to vector<6x4xf32>
    %228 = vector.broadcast %cst_110 : f32 to vector<6x4xf32>
    %229 = arith.select %226, %227, %228 : vector<6x4xi1>, vector<6x4xf32>
    %230 = arith.truncf %229 : vector<6x4xf32> to vector<6x4xbf16>
    %231 = arith.truncf %221 : vector<4x64xf32> to vector<4x64xbf16>
    %cst_111 = arith.constant dense<0.000000e+00> : vector<6x64xf32>
    %232 = tpu.matmul %230, %231, %cst_111 {dimension_numbers = #tpu.dot_dimension_numbers<[1], [0], [0], [1], [0, 0, 1, 1], [], []>} : vector<6x4xbf16>, vector<4x64xbf16>, vector<6x64xf32> -> vector<6x64xf32>
    %233 = arith.truncf %232 : vector<6x64xf32> to vector<6x64xbf16>
    %234 = vector.extract_strided_slice %233 {offsets = [0, 0], sizes = [4, 64], strides = [1, 1]} : vector<6x64xbf16> to vector<4x64xbf16>
    %c0_112 = arith.constant 0 : index
    %c0_113 = arith.constant 0 : index
    %c0_114 = arith.constant 0 : index
    %235 = vector.load %arg8[%c0_112, %c0_113, %c0_114] : memref<3x64x128xbf16, #tpu.memory_space<vmem>>, vector<1x64x128xbf16>
    %236 = vector.shape_cast %235 : vector<1x64x128xbf16> to vector<64x128xbf16>
    %cst_115 = arith.constant dense<0.000000e+00> : vector<4x128xf32>
    %237 = tpu.matmul %234, %236, %cst_115 {dimension_numbers = #tpu.dot_dimension_numbers<[1], [0], [0], [1], [0, 0, 1, 1], [], []>} : vector<4x64xbf16>, vector<64x128xbf16>, vector<4x128xf32> -> vector<4x128xf32>
    %238 = vector.extract_strided_slice %233 {offsets = [1, 0], sizes = [4, 64], strides = [1, 1]} : vector<6x64xbf16> to vector<4x64xbf16>
    %c1_116 = arith.constant 1 : index
    %c0_117 = arith.constant 0 : index
    %c0_118 = arith.constant 0 : index
    %239 = vector.load %arg8[%c1_116, %c0_117, %c0_118] : memref<3x64x128xbf16, #tpu.memory_space<vmem>>, vector<1x64x128xbf16>
    %240 = vector.shape_cast %239 : vector<1x64x128xbf16> to vector<64x128xbf16>
    %cst_119 = arith.constant dense<0.000000e+00> : vector<4x128xf32>
    %241 = tpu.matmul %238, %240, %cst_119 {dimension_numbers = #tpu.dot_dimension_numbers<[1], [0], [0], [1], [0, 0, 1, 1], [], []>} : vector<4x64xbf16>, vector<64x128xbf16>, vector<4x128xf32> -> vector<4x128xf32>
    %242 = arith.addf %237, %241 : vector<4x128xf32>
    %243 = vector.extract_strided_slice %233 {offsets = [2, 0], sizes = [4, 64], strides = [1, 1]} : vector<6x64xbf16> to vector<4x64xbf16>
    %c2_120 = arith.constant 2 : index
    %c0_121 = arith.constant 0 : index
    %c0_122 = arith.constant 0 : index
    %244 = vector.load %arg8[%c2_120, %c0_121, %c0_122] : memref<3x64x128xbf16, #tpu.memory_space<vmem>>, vector<1x64x128xbf16>
    %245 = vector.shape_cast %244 : vector<1x64x128xbf16> to vector<64x128xbf16>
    %cst_123 = arith.constant dense<0.000000e+00> : vector<4x128xf32>
    %246 = tpu.matmul %243, %245, %cst_123 {dimension_numbers = #tpu.dot_dimension_numbers<[1], [0], [0], [1], [0, 0, 1, 1], [], []>} : vector<4x64xbf16>, vector<64x128xbf16>, vector<4x128xf32> -> vector<4x128xf32>
    %247 = arith.addf %242, %246 : vector<4x128xf32>
    %c0_124 = arith.constant 0 : index
    %c0_125 = arith.constant 0 : index
    %248 = vector.load %arg6[%c0_124, %c0_125] : memref<1x128xf32, #tpu.memory_space<vmem>>, vector<1x128xf32>
    %249 = vector.broadcast %248 : vector<1x128xf32> to vector<4x128xf32>
    %250 = arith.addf %247, %249 : vector<4x128xf32>
    %cst_126 = arith.constant 0.000000e+00 : f32
    %251 = vector.broadcast %cst_126 : f32 to vector<4x128xf32>
    %252 = arith.maximumf %250, %251 : vector<4x128xf32>
    %253 = tpu.iota {dimensions = array<i32: 0>} : vector<6x4xi32>
    %254 = tpu.iota {dimensions = array<i32: 1>} : vector<6x4xi32>
    %c1_i32_127 = arith.constant 1 : i32
    %255 = vector.broadcast %c1_i32_127 : i32 to vector<6x4xi32>
    %256 = arith.addi %254, %255 : vector<6x4xi32>
    %257 = arith.cmpi eq, %253, %256 : vector<6x4xi32>
    %cst_128 = arith.constant 1.000000e+00 : f32
    %cst_129 = arith.constant 0.000000e+00 : f32
    %258 = vector.broadcast %cst_128 : f32 to vector<6x4xf32>
    %259 = vector.broadcast %cst_129 : f32 to vector<6x4xf32>
    %260 = arith.select %257, %258, %259 : vector<6x4xi1>, vector<6x4xf32>
    %261 = arith.truncf %260 : vector<6x4xf32> to vector<6x4xbf16>
    %262 = arith.truncf %252 : vector<4x128xf32> to vector<4x128xbf16>
    %cst_130 = arith.constant dense<0.000000e+00> : vector<6x128xf32>
    %263 = tpu.matmul %261, %262, %cst_130 {dimension_numbers = #tpu.dot_dimension_numbers<[1], [0], [0], [1], [0, 0, 1, 1], [], []>} : vector<6x4xbf16>, vector<4x128xbf16>, vector<6x128xf32> -> vector<6x128xf32>
    %264 = arith.truncf %263 : vector<6x128xf32> to vector<6x128xbf16>
    %265 = vector.extract_strided_slice %264 {offsets = [0, 0], sizes = [4, 128], strides = [1, 1]} : vector<6x128xbf16> to vector<4x128xbf16>
    %c0_131 = arith.constant 0 : index
    %c0_132 = arith.constant 0 : index
    %c0_133 = arith.constant 0 : index
    %266 = vector.load %arg9[%c0_131, %c0_132, %c0_133] : memref<3x128x128xbf16, #tpu.memory_space<vmem>>, vector<1x128x128xbf16>
    %267 = vector.shape_cast %266 : vector<1x128x128xbf16> to vector<128x128xbf16>
    %cst_134 = arith.constant dense<0.000000e+00> : vector<4x128xf32>
    %268 = tpu.matmul %265, %267, %cst_134 {dimension_numbers = #tpu.dot_dimension_numbers<[1], [0], [0], [1], [0, 0, 1, 1], [], []>} : vector<4x128xbf16>, vector<128x128xbf16>, vector<4x128xf32> -> vector<4x128xf32>
    %269 = vector.extract_strided_slice %264 {offsets = [1, 0], sizes = [4, 128], strides = [1, 1]} : vector<6x128xbf16> to vector<4x128xbf16>
    %c1_135 = arith.constant 1 : index
    %c0_136 = arith.constant 0 : index
    %c0_137 = arith.constant 0 : index
    %270 = vector.load %arg9[%c1_135, %c0_136, %c0_137] : memref<3x128x128xbf16, #tpu.memory_space<vmem>>, vector<1x128x128xbf16>
    %271 = vector.shape_cast %270 : vector<1x128x128xbf16> to vector<128x128xbf16>
    %cst_138 = arith.constant dense<0.000000e+00> : vector<4x128xf32>
    %272 = tpu.matmul %269, %271, %cst_138 {dimension_numbers = #tpu.dot_dimension_numbers<[1], [0], [0], [1], [0, 0, 1, 1], [], []>} : vector<4x128xbf16>, vector<128x128xbf16>, vector<4x128xf32> -> vector<4x128xf32>
    %273 = arith.addf %268, %272 : vector<4x128xf32>
    %274 = vector.extract_strided_slice %264 {offsets = [2, 0], sizes = [4, 128], strides = [1, 1]} : vector<6x128xbf16> to vector<4x128xbf16>
    %c2_139 = arith.constant 2 : index
    %c0_140 = arith.constant 0 : index
    %c0_141 = arith.constant 0 : index
    %275 = vector.load %arg9[%c2_139, %c0_140, %c0_141] : memref<3x128x128xbf16, #tpu.memory_space<vmem>>, vector<1x128x128xbf16>
    %276 = vector.shape_cast %275 : vector<1x128x128xbf16> to vector<128x128xbf16>
    %cst_142 = arith.constant dense<0.000000e+00> : vector<4x128xf32>
    %277 = tpu.matmul %274, %276, %cst_142 {dimension_numbers = #tpu.dot_dimension_numbers<[1], [0], [0], [1], [0, 0, 1, 1], [], []>} : vector<4x128xbf16>, vector<128x128xbf16>, vector<4x128xf32> -> vector<4x128xf32>
    %278 = arith.addf %273, %277 : vector<4x128xf32>
    %c0_143 = arith.constant 0 : index
    %c0_144 = arith.constant 0 : index
    %279 = vector.load %arg7[%c0_143, %c0_144] : memref<1x128xf32, #tpu.memory_space<vmem>>, vector<1x128xf32>
    %280 = vector.broadcast %279 : vector<1x128xf32> to vector<4x128xf32>
    %281 = arith.addf %278, %280 : vector<4x128xf32>
    %cst_145 = arith.constant 0.000000e+00 : f32
    %282 = vector.broadcast %cst_145 : f32 to vector<4x128xf32>
    %283 = arith.maximumf %281, %282 : vector<4x128xf32>
    %284 = tpu.iota {dimensions = array<i32: 0>} : vector<2x4xi32>
    %285 = tpu.iota {dimensions = array<i32: 1>} : vector<2x4xi32>
    %c2_i32_146 = arith.constant 2 : i32
    %286 = vector.broadcast %c2_i32_146 : i32 to vector<2x4xi32>
    %287 = arith.muli %286, %284 : vector<2x4xi32>
    %c0_i32_147 = arith.constant 0 : i32
    %288 = vector.broadcast %c0_i32_147 : i32 to vector<2x4xi32>
    %289 = arith.addi %287, %288 : vector<2x4xi32>
    %290 = arith.cmpi eq, %285, %289 : vector<2x4xi32>
    %cst_148 = arith.constant 1.000000e+00 : f32
    %cst_149 = arith.constant 0.000000e+00 : f32
    %291 = vector.broadcast %cst_148 : f32 to vector<2x4xf32>
    %292 = vector.broadcast %cst_149 : f32 to vector<2x4xf32>
    %293 = arith.select %290, %291, %292 : vector<2x4xi1>, vector<2x4xf32>
    %cst_150 = arith.constant dense<0.000000e+00> : vector<2x128xf32>
    %294 = tpu.matmul %293, %283, %cst_150 {dimension_numbers = #tpu.dot_dimension_numbers<[1], [0], [0], [1], [0, 0, 1, 1], [], []>} : vector<2x4xf32>, vector<4x128xf32>, vector<2x128xf32> -> vector<2x128xf32>
    %295 = tpu.iota {dimensions = array<i32: 0>} : vector<2x4xi32>
    %296 = tpu.iota {dimensions = array<i32: 1>} : vector<2x4xi32>
    %c2_i32_151 = arith.constant 2 : i32
    %297 = vector.broadcast %c2_i32_151 : i32 to vector<2x4xi32>
    %298 = arith.muli %297, %295 : vector<2x4xi32>
    %c1_i32_152 = arith.constant 1 : i32
    %299 = vector.broadcast %c1_i32_152 : i32 to vector<2x4xi32>
    %300 = arith.addi %298, %299 : vector<2x4xi32>
    %301 = arith.cmpi eq, %296, %300 : vector<2x4xi32>
    %cst_153 = arith.constant 1.000000e+00 : f32
    %cst_154 = arith.constant 0.000000e+00 : f32
    %302 = vector.broadcast %cst_153 : f32 to vector<2x4xf32>
    %303 = vector.broadcast %cst_154 : f32 to vector<2x4xf32>
    %304 = arith.select %301, %302, %303 : vector<2x4xi1>, vector<2x4xf32>
    %cst_155 = arith.constant dense<0.000000e+00> : vector<2x128xf32>
    %305 = tpu.matmul %304, %283, %cst_155 {dimension_numbers = #tpu.dot_dimension_numbers<[1], [0], [0], [1], [0, 0, 1, 1], [], []>} : vector<2x4xf32>, vector<4x128xf32>, vector<2x128xf32> -> vector<2x128xf32>
    %306 = arith.maximumf %294, %305 : vector<2x128xf32>
    %307 = tpu.iota {dimensions = array<i32: 0>} : vector<128x64xi32>
    %308 = tpu.iota {dimensions = array<i32: 1>} : vector<128x64xi32>
    %c-32_i32 = arith.constant -32 : i32
    %309 = vector.broadcast %c-32_i32 : i32 to vector<128x64xi32>
    %310 = arith.andi %308, %309 : vector<128x64xi32>
    %311 = arith.addi %308, %310 : vector<128x64xi32>
    %c0_i32_156 = arith.constant 0 : i32
    %312 = vector.broadcast %c0_i32_156 : i32 to vector<128x64xi32>
    %313 = arith.addi %311, %312 : vector<128x64xi32>
    %314 = arith.cmpi eq, %307, %313 : vector<128x64xi32>
    %cst_157 = arith.constant 1.000000e+00 : f32
    %cst_158 = arith.constant 0.000000e+00 : f32
    %315 = vector.broadcast %cst_157 : f32 to vector<128x64xf32>
    %316 = vector.broadcast %cst_158 : f32 to vector<128x64xf32>
    %317 = arith.select %314, %315, %316 : vector<128x64xi1>, vector<128x64xf32>
    %cst_159 = arith.constant dense<0.000000e+00> : vector<2x64xf32>
    %318 = tpu.matmul %306, %317, %cst_159 {dimension_numbers = #tpu.dot_dimension_numbers<[1], [0], [0], [1], [0, 0, 1, 1], [], []>} : vector<2x128xf32>, vector<128x64xf32>, vector<2x64xf32> -> vector<2x64xf32>
    %319 = tpu.iota {dimensions = array<i32: 0>} : vector<128x64xi32>
    %320 = tpu.iota {dimensions = array<i32: 1>} : vector<128x64xi32>
    %c-32_i32_160 = arith.constant -32 : i32
    %321 = vector.broadcast %c-32_i32_160 : i32 to vector<128x64xi32>
    %322 = arith.andi %320, %321 : vector<128x64xi32>
    %323 = arith.addi %320, %322 : vector<128x64xi32>
    %c32_i32 = arith.constant 32 : i32
    %324 = vector.broadcast %c32_i32 : i32 to vector<128x64xi32>
    %325 = arith.addi %323, %324 : vector<128x64xi32>
    %326 = arith.cmpi eq, %319, %325 : vector<128x64xi32>
    %cst_161 = arith.constant 1.000000e+00 : f32
    %cst_162 = arith.constant 0.000000e+00 : f32
    %327 = vector.broadcast %cst_161 : f32 to vector<128x64xf32>
    %328 = vector.broadcast %cst_162 : f32 to vector<128x64xf32>
    %329 = arith.select %326, %327, %328 : vector<128x64xi1>, vector<128x64xf32>
    %cst_163 = arith.constant dense<0.000000e+00> : vector<2x64xf32>
    %330 = tpu.matmul %306, %329, %cst_163 {dimension_numbers = #tpu.dot_dimension_numbers<[1], [0], [0], [1], [0, 0, 1, 1], [], []>} : vector<2x128xf32>, vector<128x64xf32>, vector<2x64xf32> -> vector<2x64xf32>
    %331 = arith.maximumf %318, %330 : vector<2x64xf32>
    %332 = tpu.iota {dimensions = array<i32: 0>} : vector<4x2xi32>
    %333 = tpu.iota {dimensions = array<i32: 1>} : vector<4x2xi32>
    %c1_i32_164 = arith.constant 1 : i32
    %334 = vector.broadcast %c1_i32_164 : i32 to vector<4x2xi32>
    %335 = arith.addi %333, %334 : vector<4x2xi32>
    %336 = arith.cmpi eq, %332, %335 : vector<4x2xi32>
    %cst_165 = arith.constant 1.000000e+00 : f32
    %cst_166 = arith.constant 0.000000e+00 : f32
    %337 = vector.broadcast %cst_165 : f32 to vector<4x2xf32>
    %338 = vector.broadcast %cst_166 : f32 to vector<4x2xf32>
    %339 = arith.select %336, %337, %338 : vector<4x2xi1>, vector<4x2xf32>
    %340 = arith.truncf %339 : vector<4x2xf32> to vector<4x2xbf16>
    %341 = arith.truncf %331 : vector<2x64xf32> to vector<2x64xbf16>
    %cst_167 = arith.constant dense<0.000000e+00> : vector<4x64xf32>
    %342 = tpu.matmul %340, %341, %cst_167 {dimension_numbers = #tpu.dot_dimension_numbers<[1], [0], [0], [1], [0, 0, 1, 1], [], []>} : vector<4x2xbf16>, vector<2x64xbf16>, vector<4x64xf32> -> vector<4x64xf32>
    %343 = arith.truncf %342 : vector<4x64xf32> to vector<4x64xbf16>
    %344 = vector.extract_strided_slice %343 {offsets = [0, 0], sizes = [2, 64], strides = [1, 1]} : vector<4x64xbf16> to vector<2x64xbf16>
    %c0_168 = arith.constant 0 : index
    %c0_169 = arith.constant 0 : index
    %c0_170 = arith.constant 0 : index
    %345 = vector.load %arg12[%c0_168, %c0_169, %c0_170] : memref<3x64x128xbf16, #tpu.memory_space<vmem>>, vector<1x64x128xbf16>
    %346 = vector.shape_cast %345 : vector<1x64x128xbf16> to vector<64x128xbf16>
    %cst_171 = arith.constant dense<0.000000e+00> : vector<2x128xf32>
    %347 = tpu.matmul %344, %346, %cst_171 {dimension_numbers = #tpu.dot_dimension_numbers<[1], [0], [0], [1], [0, 0, 1, 1], [], []>} : vector<2x64xbf16>, vector<64x128xbf16>, vector<2x128xf32> -> vector<2x128xf32>
    %348 = vector.extract_strided_slice %343 {offsets = [1, 0], sizes = [2, 64], strides = [1, 1]} : vector<4x64xbf16> to vector<2x64xbf16>
    %c1_172 = arith.constant 1 : index
    %c0_173 = arith.constant 0 : index
    %c0_174 = arith.constant 0 : index
    %349 = vector.load %arg12[%c1_172, %c0_173, %c0_174] : memref<3x64x128xbf16, #tpu.memory_space<vmem>>, vector<1x64x128xbf16>
    %350 = vector.shape_cast %349 : vector<1x64x128xbf16> to vector<64x128xbf16>
    %cst_175 = arith.constant dense<0.000000e+00> : vector<2x128xf32>
    %351 = tpu.matmul %348, %350, %cst_175 {dimension_numbers = #tpu.dot_dimension_numbers<[1], [0], [0], [1], [0, 0, 1, 1], [], []>} : vector<2x64xbf16>, vector<64x128xbf16>, vector<2x128xf32> -> vector<2x128xf32>
    %352 = arith.addf %347, %351 : vector<2x128xf32>
    %353 = vector.extract_strided_slice %343 {offsets = [2, 0], sizes = [2, 64], strides = [1, 1]} : vector<4x64xbf16> to vector<2x64xbf16>
    %c2_176 = arith.constant 2 : index
    %c0_177 = arith.constant 0 : index
    %c0_178 = arith.constant 0 : index
    %354 = vector.load %arg12[%c2_176, %c0_177, %c0_178] : memref<3x64x128xbf16, #tpu.memory_space<vmem>>, vector<1x64x128xbf16>
    %355 = vector.shape_cast %354 : vector<1x64x128xbf16> to vector<64x128xbf16>
    %cst_179 = arith.constant dense<0.000000e+00> : vector<2x128xf32>
    %356 = tpu.matmul %353, %355, %cst_179 {dimension_numbers = #tpu.dot_dimension_numbers<[1], [0], [0], [1], [0, 0, 1, 1], [], []>} : vector<2x64xbf16>, vector<64x128xbf16>, vector<2x128xf32> -> vector<2x128xf32>
    %357 = arith.addf %352, %356 : vector<2x128xf32>
    %c0_180 = arith.constant 0 : index
    %c0_181 = arith.constant 0 : index
    %358 = vector.load %arg10[%c0_180, %c0_181] : memref<1x128xf32, #tpu.memory_space<vmem>>, vector<1x128xf32>
    %359 = vector.broadcast %358 : vector<1x128xf32> to vector<2x128xf32>
    %360 = arith.addf %357, %359 : vector<2x128xf32>
    %cst_182 = arith.constant 0.000000e+00 : f32
    %361 = vector.broadcast %cst_182 : f32 to vector<2x128xf32>
    %362 = arith.maximumf %360, %361 : vector<2x128xf32>
    %363 = tpu.iota {dimensions = array<i32: 0>} : vector<4x2xi32>
    %364 = tpu.iota {dimensions = array<i32: 1>} : vector<4x2xi32>
    %c1_i32_183 = arith.constant 1 : i32
    %365 = vector.broadcast %c1_i32_183 : i32 to vector<4x2xi32>
    %366 = arith.addi %364, %365 : vector<4x2xi32>
    %367 = arith.cmpi eq, %363, %366 : vector<4x2xi32>
    %cst_184 = arith.constant 1.000000e+00 : f32
    %cst_185 = arith.constant 0.000000e+00 : f32
    %368 = vector.broadcast %cst_184 : f32 to vector<4x2xf32>
    %369 = vector.broadcast %cst_185 : f32 to vector<4x2xf32>
    %370 = arith.select %367, %368, %369 : vector<4x2xi1>, vector<4x2xf32>
    %371 = arith.truncf %370 : vector<4x2xf32> to vector<4x2xbf16>
    %372 = arith.truncf %362 : vector<2x128xf32> to vector<2x128xbf16>
    %cst_186 = arith.constant dense<0.000000e+00> : vector<4x128xf32>
    %373 = tpu.matmul %371, %372, %cst_186 {dimension_numbers = #tpu.dot_dimension_numbers<[1], [0], [0], [1], [0, 0, 1, 1], [], []>} : vector<4x2xbf16>, vector<2x128xbf16>, vector<4x128xf32> -> vector<4x128xf32>
    %374 = arith.truncf %373 : vector<4x128xf32> to vector<4x128xbf16>
    %375 = vector.extract_strided_slice %374 {offsets = [0, 0], sizes = [2, 128], strides = [1, 1]} : vector<4x128xbf16> to vector<2x128xbf16>
    %c0_187 = arith.constant 0 : index
    %c0_188 = arith.constant 0 : index
    %c0_189 = arith.constant 0 : index
    %376 = vector.load %arg13[%c0_187, %c0_188, %c0_189] : memref<3x128x128xbf16, #tpu.memory_space<vmem>>, vector<1x128x128xbf16>
    %377 = vector.shape_cast %376 : vector<1x128x128xbf16> to vector<128x128xbf16>
    %cst_190 = arith.constant dense<0.000000e+00> : vector<2x128xf32>
    %378 = tpu.matmul %375, %377, %cst_190 {dimension_numbers = #tpu.dot_dimension_numbers<[1], [0], [0], [1], [0, 0, 1, 1], [], []>} : vector<2x128xbf16>, vector<128x128xbf16>, vector<2x128xf32> -> vector<2x128xf32>
    %379 = vector.extract_strided_slice %374 {offsets = [1, 0], sizes = [2, 128], strides = [1, 1]} : vector<4x128xbf16> to vector<2x128xbf16>
    %c1_191 = arith.constant 1 : index
    %c0_192 = arith.constant 0 : index
    %c0_193 = arith.constant 0 : index
    %380 = vector.load %arg13[%c1_191, %c0_192, %c0_193] : memref<3x128x128xbf16, #tpu.memory_space<vmem>>, vector<1x128x128xbf16>
    %381 = vector.shape_cast %380 : vector<1x128x128xbf16> to vector<128x128xbf16>
    %cst_194 = arith.constant dense<0.000000e+00> : vector<2x128xf32>
    %382 = tpu.matmul %379, %381, %cst_194 {dimension_numbers = #tpu.dot_dimension_numbers<[1], [0], [0], [1], [0, 0, 1, 1], [], []>} : vector<2x128xbf16>, vector<128x128xbf16>, vector<2x128xf32> -> vector<2x128xf32>
    %383 = arith.addf %378, %382 : vector<2x128xf32>
    %384 = vector.extract_strided_slice %374 {offsets = [2, 0], sizes = [2, 128], strides = [1, 1]} : vector<4x128xbf16> to vector<2x128xbf16>
    %c2_195 = arith.constant 2 : index
    %c0_196 = arith.constant 0 : index
    %c0_197 = arith.constant 0 : index
    %385 = vector.load %arg13[%c2_195, %c0_196, %c0_197] : memref<3x128x128xbf16, #tpu.memory_space<vmem>>, vector<1x128x128xbf16>
    %386 = vector.shape_cast %385 : vector<1x128x128xbf16> to vector<128x128xbf16>
    %cst_198 = arith.constant dense<0.000000e+00> : vector<2x128xf32>
    %387 = tpu.matmul %384, %386, %cst_198 {dimension_numbers = #tpu.dot_dimension_numbers<[1], [0], [0], [1], [0, 0, 1, 1], [], []>} : vector<2x128xbf16>, vector<128x128xbf16>, vector<2x128xf32> -> vector<2x128xf32>
    %388 = arith.addf %383, %387 : vector<2x128xf32>
    %c0_199 = arith.constant 0 : index
    %c0_200 = arith.constant 0 : index
    %389 = vector.load %arg11[%c0_199, %c0_200] : memref<1x128xf32, #tpu.memory_space<vmem>>, vector<1x128xf32>
    %390 = vector.broadcast %389 : vector<1x128xf32> to vector<2x128xf32>
    %391 = arith.addf %388, %390 : vector<2x128xf32>
    %cst_201 = arith.constant 0.000000e+00 : f32
    %392 = vector.broadcast %cst_201 : f32 to vector<2x128xf32>
    %393 = arith.maximumf %391, %392 : vector<2x128xf32>
    %394 = tpu.iota {dimensions = array<i32: 0>} : vector<1x2xi32>
    %395 = tpu.iota {dimensions = array<i32: 1>} : vector<1x2xi32>
    %c2_i32_202 = arith.constant 2 : i32
    %396 = vector.broadcast %c2_i32_202 : i32 to vector<1x2xi32>
    %397 = arith.muli %396, %394 : vector<1x2xi32>
    %c0_i32_203 = arith.constant 0 : i32
    %398 = vector.broadcast %c0_i32_203 : i32 to vector<1x2xi32>
    %399 = arith.addi %397, %398 : vector<1x2xi32>
    %400 = arith.cmpi eq, %395, %399 : vector<1x2xi32>
    %cst_204 = arith.constant 1.000000e+00 : f32
    %cst_205 = arith.constant 0.000000e+00 : f32
    %401 = vector.broadcast %cst_204 : f32 to vector<1x2xf32>
    %402 = vector.broadcast %cst_205 : f32 to vector<1x2xf32>
    %403 = arith.select %400, %401, %402 : vector<1x2xi1>, vector<1x2xf32>
    %cst_206 = arith.constant dense<0.000000e+00> : vector<1x128xf32>
    %404 = tpu.matmul %403, %393, %cst_206 {dimension_numbers = #tpu.dot_dimension_numbers<[1], [0], [0], [1], [0, 0, 1, 1], [], []>} : vector<1x2xf32>, vector<2x128xf32>, vector<1x128xf32> -> vector<1x128xf32>
    %405 = tpu.iota {dimensions = array<i32: 0>} : vector<1x2xi32>
    %406 = tpu.iota {dimensions = array<i32: 1>} : vector<1x2xi32>
    %c2_i32_207 = arith.constant 2 : i32
    %407 = vector.broadcast %c2_i32_207 : i32 to vector<1x2xi32>
    %408 = arith.muli %407, %405 : vector<1x2xi32>
    %c1_i32_208 = arith.constant 1 : i32
    %409 = vector.broadcast %c1_i32_208 : i32 to vector<1x2xi32>
    %410 = arith.addi %408, %409 : vector<1x2xi32>
    %411 = arith.cmpi eq, %406, %410 : vector<1x2xi32>
    %cst_209 = arith.constant 1.000000e+00 : f32
    %cst_210 = arith.constant 0.000000e+00 : f32
    %412 = vector.broadcast %cst_209 : f32 to vector<1x2xf32>
    %413 = vector.broadcast %cst_210 : f32 to vector<1x2xf32>
    %414 = arith.select %411, %412, %413 : vector<1x2xi1>, vector<1x2xf32>
    %cst_211 = arith.constant dense<0.000000e+00> : vector<1x128xf32>
    %415 = tpu.matmul %414, %393, %cst_211 {dimension_numbers = #tpu.dot_dimension_numbers<[1], [0], [0], [1], [0, 0, 1, 1], [], []>} : vector<1x2xf32>, vector<2x128xf32>, vector<1x128xf32> -> vector<1x128xf32>
    %416 = arith.maximumf %404, %415 : vector<1x128xf32>
    %417 = tpu.iota {dimensions = array<i32: 0>} : vector<128x64xi32>
    %418 = tpu.iota {dimensions = array<i32: 1>} : vector<128x64xi32>
    %c-64_i32 = arith.constant -64 : i32
    %419 = vector.broadcast %c-64_i32 : i32 to vector<128x64xi32>
    %420 = arith.andi %418, %419 : vector<128x64xi32>
    %421 = arith.addi %418, %420 : vector<128x64xi32>
    %c0_i32_212 = arith.constant 0 : i32
    %422 = vector.broadcast %c0_i32_212 : i32 to vector<128x64xi32>
    %423 = arith.addi %421, %422 : vector<128x64xi32>
    %424 = arith.cmpi eq, %417, %423 : vector<128x64xi32>
    %cst_213 = arith.constant 1.000000e+00 : f32
    %cst_214 = arith.constant 0.000000e+00 : f32
    %425 = vector.broadcast %cst_213 : f32 to vector<128x64xf32>
    %426 = vector.broadcast %cst_214 : f32 to vector<128x64xf32>
    %427 = arith.select %424, %425, %426 : vector<128x64xi1>, vector<128x64xf32>
    %cst_215 = arith.constant dense<0.000000e+00> : vector<1x64xf32>
    %428 = tpu.matmul %416, %427, %cst_215 {dimension_numbers = #tpu.dot_dimension_numbers<[1], [0], [0], [1], [0, 0, 1, 1], [], []>} : vector<1x128xf32>, vector<128x64xf32>, vector<1x64xf32> -> vector<1x64xf32>
    %429 = tpu.iota {dimensions = array<i32: 0>} : vector<128x64xi32>
    %430 = tpu.iota {dimensions = array<i32: 1>} : vector<128x64xi32>
    %c-64_i32_216 = arith.constant -64 : i32
    %431 = vector.broadcast %c-64_i32_216 : i32 to vector<128x64xi32>
    %432 = arith.andi %430, %431 : vector<128x64xi32>
    %433 = arith.addi %430, %432 : vector<128x64xi32>
    %c64_i32 = arith.constant 64 : i32
    %434 = vector.broadcast %c64_i32 : i32 to vector<128x64xi32>
    %435 = arith.addi %433, %434 : vector<128x64xi32>
    %436 = arith.cmpi eq, %429, %435 : vector<128x64xi32>
    %cst_217 = arith.constant 1.000000e+00 : f32
    %cst_218 = arith.constant 0.000000e+00 : f32
    %437 = vector.broadcast %cst_217 : f32 to vector<128x64xf32>
    %438 = vector.broadcast %cst_218 : f32 to vector<128x64xf32>
    %439 = arith.select %436, %437, %438 : vector<128x64xi1>, vector<128x64xf32>
    %cst_219 = arith.constant dense<0.000000e+00> : vector<1x64xf32>
    %440 = tpu.matmul %416, %439, %cst_219 {dimension_numbers = #tpu.dot_dimension_numbers<[1], [0], [0], [1], [0, 0, 1, 1], [], []>} : vector<1x128xf32>, vector<128x64xf32>, vector<1x64xf32> -> vector<1x64xf32>
    %441 = arith.maximumf %428, %440 : vector<1x64xf32>
    %442 = tpu.iota {dimensions = array<i32: 0>} : vector<3x1xi32>
    %443 = tpu.iota {dimensions = array<i32: 1>} : vector<3x1xi32>
    %c1_i32_220 = arith.constant 1 : i32
    %444 = vector.broadcast %c1_i32_220 : i32 to vector<3x1xi32>
    %445 = arith.addi %443, %444 : vector<3x1xi32>
    %446 = arith.cmpi eq, %442, %445 : vector<3x1xi32>
    %cst_221 = arith.constant 1.000000e+00 : f32
    %cst_222 = arith.constant 0.000000e+00 : f32
    %447 = vector.broadcast %cst_221 : f32 to vector<3x1xf32>
    %448 = vector.broadcast %cst_222 : f32 to vector<3x1xf32>
    %449 = arith.select %446, %447, %448 : vector<3x1xi1>, vector<3x1xf32>
    %450 = arith.truncf %449 : vector<3x1xf32> to vector<3x1xbf16>
    %451 = arith.truncf %441 : vector<1x64xf32> to vector<1x64xbf16>
    %cst_223 = arith.constant dense<0.000000e+00> : vector<3x64xf32>
    %452 = tpu.matmul %450, %451, %cst_223 {dimension_numbers = #tpu.dot_dimension_numbers<[1], [0], [0], [1], [0, 0, 1, 1], [], []>} : vector<3x1xbf16>, vector<1x64xbf16>, vector<3x64xf32> -> vector<3x64xf32>
    %453 = arith.truncf %452 : vector<3x64xf32> to vector<3x64xbf16>
    %454 = vector.extract_strided_slice %453 {offsets = [0, 0], sizes = [1, 64], strides = [1, 1]} : vector<3x64xbf16> to vector<1x64xbf16>
    %c0_224 = arith.constant 0 : index
    %c0_225 = arith.constant 0 : index
    %c0_226 = arith.constant 0 : index
    %455 = vector.load %arg16[%c0_224, %c0_225, %c0_226] : memref<3x64x64xbf16, #tpu.memory_space<vmem>>, vector<1x64x64xbf16>
    %456 = vector.shape_cast %455 : vector<1x64x64xbf16> to vector<64x64xbf16>
    %cst_227 = arith.constant dense<0.000000e+00> : vector<1x64xf32>
    %457 = tpu.matmul %454, %456, %cst_227 {dimension_numbers = #tpu.dot_dimension_numbers<[1], [0], [0], [1], [0, 0, 1, 1], [], []>} : vector<1x64xbf16>, vector<64x64xbf16>, vector<1x64xf32> -> vector<1x64xf32>
    %458 = vector.extract_strided_slice %453 {offsets = [1, 0], sizes = [1, 64], strides = [1, 1]} : vector<3x64xbf16> to vector<1x64xbf16>
    %c1_228 = arith.constant 1 : index
    %c0_229 = arith.constant 0 : index
    %c0_230 = arith.constant 0 : index
    %459 = vector.load %arg16[%c1_228, %c0_229, %c0_230] : memref<3x64x64xbf16, #tpu.memory_space<vmem>>, vector<1x64x64xbf16>
    %460 = vector.shape_cast %459 : vector<1x64x64xbf16> to vector<64x64xbf16>
    %cst_231 = arith.constant dense<0.000000e+00> : vector<1x64xf32>
    %461 = tpu.matmul %458, %460, %cst_231 {dimension_numbers = #tpu.dot_dimension_numbers<[1], [0], [0], [1], [0, 0, 1, 1], [], []>} : vector<1x64xbf16>, vector<64x64xbf16>, vector<1x64xf32> -> vector<1x64xf32>
    %462 = arith.addf %457, %461 : vector<1x64xf32>
    %463 = vector.extract_strided_slice %453 {offsets = [2, 0], sizes = [1, 64], strides = [1, 1]} : vector<3x64xbf16> to vector<1x64xbf16>
    %c2_232 = arith.constant 2 : index
    %c0_233 = arith.constant 0 : index
    %c0_234 = arith.constant 0 : index
    %464 = vector.load %arg16[%c2_232, %c0_233, %c0_234] : memref<3x64x64xbf16, #tpu.memory_space<vmem>>, vector<1x64x64xbf16>
    %465 = vector.shape_cast %464 : vector<1x64x64xbf16> to vector<64x64xbf16>
    %cst_235 = arith.constant dense<0.000000e+00> : vector<1x64xf32>
    %466 = tpu.matmul %463, %465, %cst_235 {dimension_numbers = #tpu.dot_dimension_numbers<[1], [0], [0], [1], [0, 0, 1, 1], [], []>} : vector<1x64xbf16>, vector<64x64xbf16>, vector<1x64xf32> -> vector<1x64xf32>
    %467 = arith.addf %462, %466 : vector<1x64xf32>
    %c0_236 = arith.constant 0 : index
    %c0_237 = arith.constant 0 : index
    %468 = vector.load %arg14[%c0_236, %c0_237] : memref<1x64xf32, #tpu.memory_space<vmem>>, vector<1x64xf32>
    %469 = arith.addf %467, %468 : vector<1x64xf32>
    %cst_238 = arith.constant 0.000000e+00 : f32
    %470 = vector.broadcast %cst_238 : f32 to vector<1x64xf32>
    %471 = arith.maximumf %469, %470 : vector<1x64xf32>
    %472 = tpu.iota {dimensions = array<i32: 0>} : vector<3x1xi32>
    %473 = tpu.iota {dimensions = array<i32: 1>} : vector<3x1xi32>
    %c1_i32_239 = arith.constant 1 : i32
    %474 = vector.broadcast %c1_i32_239 : i32 to vector<3x1xi32>
    %475 = arith.addi %473, %474 : vector<3x1xi32>
    %476 = arith.cmpi eq, %472, %475 : vector<3x1xi32>
    %cst_240 = arith.constant 1.000000e+00 : f32
    %cst_241 = arith.constant 0.000000e+00 : f32
    %477 = vector.broadcast %cst_240 : f32 to vector<3x1xf32>
    %478 = vector.broadcast %cst_241 : f32 to vector<3x1xf32>
    %479 = arith.select %476, %477, %478 : vector<3x1xi1>, vector<3x1xf32>
    %480 = arith.truncf %479 : vector<3x1xf32> to vector<3x1xbf16>
    %481 = arith.truncf %471 : vector<1x64xf32> to vector<1x64xbf16>
    %cst_242 = arith.constant dense<0.000000e+00> : vector<3x64xf32>
    %482 = tpu.matmul %480, %481, %cst_242 {dimension_numbers = #tpu.dot_dimension_numbers<[1], [0], [0], [1], [0, 0, 1, 1], [], []>} : vector<3x1xbf16>, vector<1x64xbf16>, vector<3x64xf32> -> vector<3x64xf32>
    %483 = arith.truncf %482 : vector<3x64xf32> to vector<3x64xbf16>
    %484 = vector.extract_strided_slice %483 {offsets = [0, 0], sizes = [1, 64], strides = [1, 1]} : vector<3x64xbf16> to vector<1x64xbf16>
    %c0_243 = arith.constant 0 : index
    %c0_244 = arith.constant 0 : index
    %c0_245 = arith.constant 0 : index
    %485 = vector.load %arg17[%c0_243, %c0_244, %c0_245] : memref<3x64x64xbf16, #tpu.memory_space<vmem>>, vector<1x64x64xbf16>
    %486 = vector.shape_cast %485 : vector<1x64x64xbf16> to vector<64x64xbf16>
    %cst_246 = arith.constant dense<0.000000e+00> : vector<1x64xf32>
    %487 = tpu.matmul %484, %486, %cst_246 {dimension_numbers = #tpu.dot_dimension_numbers<[1], [0], [0], [1], [0, 0, 1, 1], [], []>} : vector<1x64xbf16>, vector<64x64xbf16>, vector<1x64xf32> -> vector<1x64xf32>
    %488 = vector.extract_strided_slice %483 {offsets = [1, 0], sizes = [1, 64], strides = [1, 1]} : vector<3x64xbf16> to vector<1x64xbf16>
    %c1_247 = arith.constant 1 : index
    %c0_248 = arith.constant 0 : index
    %c0_249 = arith.constant 0 : index
    %489 = vector.load %arg17[%c1_247, %c0_248, %c0_249] : memref<3x64x64xbf16, #tpu.memory_space<vmem>>, vector<1x64x64xbf16>
    %490 = vector.shape_cast %489 : vector<1x64x64xbf16> to vector<64x64xbf16>
    %cst_250 = arith.constant dense<0.000000e+00> : vector<1x64xf32>
    %491 = tpu.matmul %488, %490, %cst_250 {dimension_numbers = #tpu.dot_dimension_numbers<[1], [0], [0], [1], [0, 0, 1, 1], [], []>} : vector<1x64xbf16>, vector<64x64xbf16>, vector<1x64xf32> -> vector<1x64xf32>
    %492 = arith.addf %487, %491 : vector<1x64xf32>
    %493 = vector.extract_strided_slice %483 {offsets = [2, 0], sizes = [1, 64], strides = [1, 1]} : vector<3x64xbf16> to vector<1x64xbf16>
    %c2_251 = arith.constant 2 : index
    %c0_252 = arith.constant 0 : index
    %c0_253 = arith.constant 0 : index
    %494 = vector.load %arg17[%c2_251, %c0_252, %c0_253] : memref<3x64x64xbf16, #tpu.memory_space<vmem>>, vector<1x64x64xbf16>
    %495 = vector.shape_cast %494 : vector<1x64x64xbf16> to vector<64x64xbf16>
    %cst_254 = arith.constant dense<0.000000e+00> : vector<1x64xf32>
    %496 = tpu.matmul %493, %495, %cst_254 {dimension_numbers = #tpu.dot_dimension_numbers<[1], [0], [0], [1], [0, 0, 1, 1], [], []>} : vector<1x64xbf16>, vector<64x64xbf16>, vector<1x64xf32> -> vector<1x64xf32>
    %497 = arith.addf %492, %496 : vector<1x64xf32>
    %c0_255 = arith.constant 0 : index
    %c0_256 = arith.constant 0 : index
    %498 = vector.load %arg15[%c0_255, %c0_256] : memref<1x64xf32, #tpu.memory_space<vmem>>, vector<1x64xf32>
    %499 = arith.addf %497, %498 : vector<1x64xf32>
    %cst_257 = arith.constant 0.000000e+00 : f32
    %500 = vector.broadcast %cst_257 : f32 to vector<1x64xf32>
    %501 = arith.maximumf %499, %500 : vector<1x64xf32>
    %c0_258 = arith.constant 0 : index
    %c0_259 = arith.constant 0 : index
    %502 = vector.load %arg30[%c0_258, %c0_259] : memref<2x1xbf16, #tpu.memory_space<vmem>>, vector<2x1xbf16>
    %503 = arith.truncf %501 : vector<1x64xf32> to vector<1x64xbf16>
    %cst_260 = arith.constant dense<0.000000e+00> : vector<2x64xf32>
    %504 = tpu.matmul %502, %503, %cst_260 {dimension_numbers = #tpu.dot_dimension_numbers<[1], [0], [0], [1], [0, 0, 1, 1], [], []>} : vector<2x1xbf16>, vector<1x64xbf16>, vector<2x64xf32> -> vector<2x64xf32>
    %505 = arith.truncf %504 : vector<2x64xf32> to vector<2x64xbf16>
    %c0_261 = arith.constant 0 : index
    %c0_262 = arith.constant 0 : index
    %506 = vector.load %arg26[%c0_261, %c0_262] : memref<64x128xbf16, #tpu.memory_space<vmem>>, vector<64x128xbf16>
    %cst_263 = arith.constant dense<0.000000e+00> : vector<2x128xf32>
    %507 = tpu.matmul %505, %506, %cst_263 {dimension_numbers = #tpu.dot_dimension_numbers<[1], [0], [0], [1], [0, 0, 1, 1], [], []>} : vector<2x64xbf16>, vector<64x128xbf16>, vector<2x128xf32> -> vector<2x128xf32>
    %508 = tpu.iota {dimensions = array<i32: 0>} : vector<4x2xi32>
    %509 = tpu.iota {dimensions = array<i32: 1>} : vector<4x2xi32>
    %c1_i32_264 = arith.constant 1 : i32
    %510 = vector.broadcast %c1_i32_264 : i32 to vector<4x2xi32>
    %511 = arith.addi %509, %510 : vector<4x2xi32>
    %512 = arith.cmpi eq, %508, %511 : vector<4x2xi32>
    %cst_265 = arith.constant 1.000000e+00 : f32
    %cst_266 = arith.constant 0.000000e+00 : f32
    %513 = vector.broadcast %cst_265 : f32 to vector<4x2xf32>
    %514 = vector.broadcast %cst_266 : f32 to vector<4x2xf32>
    %515 = arith.select %512, %513, %514 : vector<4x2xi1>, vector<4x2xf32>
    %516 = arith.truncf %515 : vector<4x2xf32> to vector<4x2xbf16>
    %517 = arith.truncf %393 : vector<2x128xf32> to vector<2x128xbf16>
    %cst_267 = arith.constant dense<0.000000e+00> : vector<4x128xf32>
    %518 = tpu.matmul %516, %517, %cst_267 {dimension_numbers = #tpu.dot_dimension_numbers<[1], [0], [0], [1], [0, 0, 1, 1], [], []>} : vector<4x2xbf16>, vector<2x128xbf16>, vector<4x128xf32> -> vector<4x128xf32>
    %519 = arith.truncf %518 : vector<4x128xf32> to vector<4x128xbf16>
    %520 = vector.extract_strided_slice %519 {offsets = [0, 0], sizes = [2, 128], strides = [1, 1]} : vector<4x128xbf16> to vector<2x128xbf16>
    %c0_268 = arith.constant 0 : index
    %c0_269 = arith.constant 0 : index
    %c0_270 = arith.constant 0 : index
    %521 = vector.load %arg28[%c0_268, %c0_269, %c0_270] : memref<3x128x128xbf16, #tpu.memory_space<vmem>>, vector<1x128x128xbf16>
    %522 = vector.shape_cast %521 : vector<1x128x128xbf16> to vector<128x128xbf16>
    %cst_271 = arith.constant dense<0.000000e+00> : vector<2x128xf32>
    %523 = tpu.matmul %520, %522, %cst_271 {dimension_numbers = #tpu.dot_dimension_numbers<[1], [0], [0], [1], [0, 0, 1, 1], [], []>} : vector<2x128xbf16>, vector<128x128xbf16>, vector<2x128xf32> -> vector<2x128xf32>
    %524 = vector.extract_strided_slice %519 {offsets = [1, 0], sizes = [2, 128], strides = [1, 1]} : vector<4x128xbf16> to vector<2x128xbf16>
    %c1_272 = arith.constant 1 : index
    %c0_273 = arith.constant 0 : index
    %c0_274 = arith.constant 0 : index
    %525 = vector.load %arg28[%c1_272, %c0_273, %c0_274] : memref<3x128x128xbf16, #tpu.memory_space<vmem>>, vector<1x128x128xbf16>
    %526 = vector.shape_cast %525 : vector<1x128x128xbf16> to vector<128x128xbf16>
    %cst_275 = arith.constant dense<0.000000e+00> : vector<2x128xf32>
    %527 = tpu.matmul %524, %526, %cst_275 {dimension_numbers = #tpu.dot_dimension_numbers<[1], [0], [0], [1], [0, 0, 1, 1], [], []>} : vector<2x128xbf16>, vector<128x128xbf16>, vector<2x128xf32> -> vector<2x128xf32>
    %528 = arith.addf %523, %527 : vector<2x128xf32>
    %529 = vector.extract_strided_slice %519 {offsets = [2, 0], sizes = [2, 128], strides = [1, 1]} : vector<4x128xbf16> to vector<2x128xbf16>
    %c2_276 = arith.constant 2 : index
    %c0_277 = arith.constant 0 : index
    %c0_278 = arith.constant 0 : index
    %530 = vector.load %arg28[%c2_276, %c0_277, %c0_278] : memref<3x128x128xbf16, #tpu.memory_space<vmem>>, vector<1x128x128xbf16>
    %531 = vector.shape_cast %530 : vector<1x128x128xbf16> to vector<128x128xbf16>
    %cst_279 = arith.constant dense<0.000000e+00> : vector<2x128xf32>
    %532 = tpu.matmul %529, %531, %cst_279 {dimension_numbers = #tpu.dot_dimension_numbers<[1], [0], [0], [1], [0, 0, 1, 1], [], []>} : vector<2x128xbf16>, vector<128x128xbf16>, vector<2x128xf32> -> vector<2x128xf32>
    %533 = arith.addf %528, %532 : vector<2x128xf32>
    %534 = tpu.iota {dimensions = array<i32: 0>} : vector<4x2xi32>
    %535 = tpu.iota {dimensions = array<i32: 1>} : vector<4x2xi32>
    %c1_i32_280 = arith.constant 1 : i32
    %536 = vector.broadcast %c1_i32_280 : i32 to vector<4x2xi32>
    %537 = arith.addi %535, %536 : vector<4x2xi32>
    %538 = arith.cmpi eq, %534, %537 : vector<4x2xi32>
    %cst_281 = arith.constant 1.000000e+00 : f32
    %cst_282 = arith.constant 0.000000e+00 : f32
    %539 = vector.broadcast %cst_281 : f32 to vector<4x2xf32>
    %540 = vector.broadcast %cst_282 : f32 to vector<4x2xf32>
    %541 = arith.select %538, %539, %540 : vector<4x2xi1>, vector<4x2xf32>
    %542 = arith.truncf %541 : vector<4x2xf32> to vector<4x2xbf16>
    %543 = arith.truncf %507 : vector<2x128xf32> to vector<2x128xbf16>
    %cst_283 = arith.constant dense<0.000000e+00> : vector<4x128xf32>
    %544 = tpu.matmul %542, %543, %cst_283 {dimension_numbers = #tpu.dot_dimension_numbers<[1], [0], [0], [1], [0, 0, 1, 1], [], []>} : vector<4x2xbf16>, vector<2x128xbf16>, vector<4x128xf32> -> vector<4x128xf32>
    %545 = arith.truncf %544 : vector<4x128xf32> to vector<4x128xbf16>
    %546 = vector.extract_strided_slice %545 {offsets = [0, 0], sizes = [2, 128], strides = [1, 1]} : vector<4x128xbf16> to vector<2x128xbf16>
    %c0_284 = arith.constant 0 : index
    %c0_285 = arith.constant 0 : index
    %c0_286 = arith.constant 0 : index
    %547 = vector.load %arg29[%c0_284, %c0_285, %c0_286] : memref<3x128x128xbf16, #tpu.memory_space<vmem>>, vector<1x128x128xbf16>
    %548 = vector.shape_cast %547 : vector<1x128x128xbf16> to vector<128x128xbf16>
    %cst_287 = arith.constant dense<0.000000e+00> : vector<2x128xf32>
    %549 = tpu.matmul %546, %548, %cst_287 {dimension_numbers = #tpu.dot_dimension_numbers<[1], [0], [0], [1], [0, 0, 1, 1], [], []>} : vector<2x128xbf16>, vector<128x128xbf16>, vector<2x128xf32> -> vector<2x128xf32>
    %550 = vector.extract_strided_slice %545 {offsets = [1, 0], sizes = [2, 128], strides = [1, 1]} : vector<4x128xbf16> to vector<2x128xbf16>
    %c1_288 = arith.constant 1 : index
    %c0_289 = arith.constant 0 : index
    %c0_290 = arith.constant 0 : index
    %551 = vector.load %arg29[%c1_288, %c0_289, %c0_290] : memref<3x128x128xbf16, #tpu.memory_space<vmem>>, vector<1x128x128xbf16>
    %552 = vector.shape_cast %551 : vector<1x128x128xbf16> to vector<128x128xbf16>
    %cst_291 = arith.constant dense<0.000000e+00> : vector<2x128xf32>
    %553 = tpu.matmul %550, %552, %cst_291 {dimension_numbers = #tpu.dot_dimension_numbers<[1], [0], [0], [1], [0, 0, 1, 1], [], []>} : vector<2x128xbf16>, vector<128x128xbf16>, vector<2x128xf32> -> vector<2x128xf32>
    %554 = arith.addf %549, %553 : vector<2x128xf32>
    %555 = vector.extract_strided_slice %545 {offsets = [2, 0], sizes = [2, 128], strides = [1, 1]} : vector<4x128xbf16> to vector<2x128xbf16>
    %c2_292 = arith.constant 2 : index
    %c0_293 = arith.constant 0 : index
    %c0_294 = arith.constant 0 : index
    %556 = vector.load %arg29[%c2_292, %c0_293, %c0_294] : memref<3x128x128xbf16, #tpu.memory_space<vmem>>, vector<1x128x128xbf16>
    %557 = vector.shape_cast %556 : vector<1x128x128xbf16> to vector<128x128xbf16>
    %cst_295 = arith.constant dense<0.000000e+00> : vector<2x128xf32>
    %558 = tpu.matmul %555, %557, %cst_295 {dimension_numbers = #tpu.dot_dimension_numbers<[1], [0], [0], [1], [0, 0, 1, 1], [], []>} : vector<2x128xbf16>, vector<128x128xbf16>, vector<2x128xf32> -> vector<2x128xf32>
    %559 = arith.addf %554, %558 : vector<2x128xf32>
    %560 = arith.addf %533, %559 : vector<2x128xf32>
    %c0_296 = arith.constant 0 : index
    %c0_297 = arith.constant 0 : index
    %561 = vector.load %arg24[%c0_296, %c0_297] : memref<1x128xf32, #tpu.memory_space<vmem>>, vector<1x128xf32>
    %562 = vector.broadcast %561 : vector<1x128xf32> to vector<2x128xf32>
    %563 = arith.addf %560, %562 : vector<2x128xf32>
    %cst_298 = arith.constant 0.000000e+00 : f32
    %564 = vector.broadcast %cst_298 : f32 to vector<2x128xf32>
    %565 = arith.maximumf %563, %564 : vector<2x128xf32>
    %566 = tpu.iota {dimensions = array<i32: 0>} : vector<4x2xi32>
    %567 = tpu.iota {dimensions = array<i32: 1>} : vector<4x2xi32>
    %c1_i32_299 = arith.constant 1 : i32
    %568 = vector.broadcast %c1_i32_299 : i32 to vector<4x2xi32>
    %569 = arith.addi %567, %568 : vector<4x2xi32>
    %570 = arith.cmpi eq, %566, %569 : vector<4x2xi32>
    %cst_300 = arith.constant 1.000000e+00 : f32
    %cst_301 = arith.constant 0.000000e+00 : f32
    %571 = vector.broadcast %cst_300 : f32 to vector<4x2xf32>
    %572 = vector.broadcast %cst_301 : f32 to vector<4x2xf32>
    %573 = arith.select %570, %571, %572 : vector<4x2xi1>, vector<4x2xf32>
    %574 = arith.truncf %573 : vector<4x2xf32> to vector<4x2xbf16>
    %575 = arith.truncf %565 : vector<2x128xf32> to vector<2x128xbf16>
    %cst_302 = arith.constant dense<0.000000e+00> : vector<4x128xf32>
    %576 = tpu.matmul %574, %575, %cst_302 {dimension_numbers = #tpu.dot_dimension_numbers<[1], [0], [0], [1], [0, 0, 1, 1], [], []>} : vector<4x2xbf16>, vector<2x128xbf16>, vector<4x128xf32> -> vector<4x128xf32>
    %577 = arith.truncf %576 : vector<4x128xf32> to vector<4x128xbf16>
    %578 = vector.extract_strided_slice %577 {offsets = [0, 0], sizes = [2, 128], strides = [1, 1]} : vector<4x128xbf16> to vector<2x128xbf16>
    %c0_303 = arith.constant 0 : index
    %c0_304 = arith.constant 0 : index
    %c0_305 = arith.constant 0 : index
    %579 = vector.load %arg27[%c0_303, %c0_304, %c0_305] : memref<3x128x64xbf16, #tpu.memory_space<vmem>>, vector<1x128x64xbf16>
    %580 = vector.shape_cast %579 : vector<1x128x64xbf16> to vector<128x64xbf16>
    %cst_306 = arith.constant dense<0.000000e+00> : vector<2x64xf32>
    %581 = tpu.matmul %578, %580, %cst_306 {dimension_numbers = #tpu.dot_dimension_numbers<[1], [0], [0], [1], [0, 0, 1, 1], [], []>} : vector<2x128xbf16>, vector<128x64xbf16>, vector<2x64xf32> -> vector<2x64xf32>
    %582 = vector.extract_strided_slice %577 {offsets = [1, 0], sizes = [2, 128], strides = [1, 1]} : vector<4x128xbf16> to vector<2x128xbf16>
    %c1_307 = arith.constant 1 : index
    %c0_308 = arith.constant 0 : index
    %c0_309 = arith.constant 0 : index
    %583 = vector.load %arg27[%c1_307, %c0_308, %c0_309] : memref<3x128x64xbf16, #tpu.memory_space<vmem>>, vector<1x128x64xbf16>
    %584 = vector.shape_cast %583 : vector<1x128x64xbf16> to vector<128x64xbf16>
    %cst_310 = arith.constant dense<0.000000e+00> : vector<2x64xf32>
    %585 = tpu.matmul %582, %584, %cst_310 {dimension_numbers = #tpu.dot_dimension_numbers<[1], [0], [0], [1], [0, 0, 1, 1], [], []>} : vector<2x128xbf16>, vector<128x64xbf16>, vector<2x64xf32> -> vector<2x64xf32>
    %586 = arith.addf %581, %585 : vector<2x64xf32>
    %587 = vector.extract_strided_slice %577 {offsets = [2, 0], sizes = [2, 128], strides = [1, 1]} : vector<4x128xbf16> to vector<2x128xbf16>
    %c2_311 = arith.constant 2 : index
    %c0_312 = arith.constant 0 : index
    %c0_313 = arith.constant 0 : index
    %588 = vector.load %arg27[%c2_311, %c0_312, %c0_313] : memref<3x128x64xbf16, #tpu.memory_space<vmem>>, vector<1x128x64xbf16>
    %589 = vector.shape_cast %588 : vector<1x128x64xbf16> to vector<128x64xbf16>
    %cst_314 = arith.constant dense<0.000000e+00> : vector<2x64xf32>
    %590 = tpu.matmul %587, %589, %cst_314 {dimension_numbers = #tpu.dot_dimension_numbers<[1], [0], [0], [1], [0, 0, 1, 1], [], []>} : vector<2x128xbf16>, vector<128x64xbf16>, vector<2x64xf32> -> vector<2x64xf32>
    %591 = arith.addf %586, %590 : vector<2x64xf32>
    %c0_315 = arith.constant 0 : index
    %c0_316 = arith.constant 0 : index
    %592 = vector.load %arg25[%c0_315, %c0_316] : memref<1x64xf32, #tpu.memory_space<vmem>>, vector<1x64xf32>
    %593 = vector.broadcast %592 : vector<1x64xf32> to vector<2x64xf32>
    %594 = arith.addf %591, %593 : vector<2x64xf32>
    %cst_317 = arith.constant 0.000000e+00 : f32
    %595 = vector.broadcast %cst_317 : f32 to vector<2x64xf32>
    %596 = arith.maximumf %594, %595 : vector<2x64xf32>
    %c0_318 = arith.constant 0 : index
    %c0_319 = arith.constant 0 : index
    %597 = vector.load %arg37[%c0_318, %c0_319] : memref<4x2xbf16, #tpu.memory_space<vmem>>, vector<4x2xbf16>
    %598 = arith.truncf %596 : vector<2x64xf32> to vector<2x64xbf16>
    %cst_320 = arith.constant dense<0.000000e+00> : vector<4x64xf32>
    %599 = tpu.matmul %597, %598, %cst_320 {dimension_numbers = #tpu.dot_dimension_numbers<[1], [0], [0], [1], [0, 0, 1, 1], [], []>} : vector<4x2xbf16>, vector<2x64xbf16>, vector<4x64xf32> -> vector<4x64xf32>
    %600 = arith.truncf %599 : vector<4x64xf32> to vector<4x64xbf16>
    %c0_321 = arith.constant 0 : index
    %c0_322 = arith.constant 0 : index
    %601 = vector.load %arg33[%c0_321, %c0_322] : memref<64x128xbf16, #tpu.memory_space<vmem>>, vector<64x128xbf16>
    %cst_323 = arith.constant dense<0.000000e+00> : vector<4x128xf32>
    %602 = tpu.matmul %600, %601, %cst_323 {dimension_numbers = #tpu.dot_dimension_numbers<[1], [0], [0], [1], [0, 0, 1, 1], [], []>} : vector<4x64xbf16>, vector<64x128xbf16>, vector<4x128xf32> -> vector<4x128xf32>
    %603 = tpu.iota {dimensions = array<i32: 0>} : vector<6x4xi32>
    %604 = tpu.iota {dimensions = array<i32: 1>} : vector<6x4xi32>
    %c1_i32_324 = arith.constant 1 : i32
    %605 = vector.broadcast %c1_i32_324 : i32 to vector<6x4xi32>
    %606 = arith.addi %604, %605 : vector<6x4xi32>
    %607 = arith.cmpi eq, %603, %606 : vector<6x4xi32>
    %cst_325 = arith.constant 1.000000e+00 : f32
    %cst_326 = arith.constant 0.000000e+00 : f32
    %608 = vector.broadcast %cst_325 : f32 to vector<6x4xf32>
    %609 = vector.broadcast %cst_326 : f32 to vector<6x4xf32>
    %610 = arith.select %607, %608, %609 : vector<6x4xi1>, vector<6x4xf32>
    %611 = arith.truncf %610 : vector<6x4xf32> to vector<6x4xbf16>
    %612 = arith.truncf %283 : vector<4x128xf32> to vector<4x128xbf16>
    %cst_327 = arith.constant dense<0.000000e+00> : vector<6x128xf32>
    %613 = tpu.matmul %611, %612, %cst_327 {dimension_numbers = #tpu.dot_dimension_numbers<[1], [0], [0], [1], [0, 0, 1, 1], [], []>} : vector<6x4xbf16>, vector<4x128xbf16>, vector<6x128xf32> -> vector<6x128xf32>
    %614 = arith.truncf %613 : vector<6x128xf32> to vector<6x128xbf16>
    %615 = vector.extract_strided_slice %614 {offsets = [0, 0], sizes = [4, 128], strides = [1, 1]} : vector<6x128xbf16> to vector<4x128xbf16>
    %c0_328 = arith.constant 0 : index
    %c0_329 = arith.constant 0 : index
    %c0_330 = arith.constant 0 : index
    %616 = vector.load %arg35[%c0_328, %c0_329, %c0_330] : memref<3x128x128xbf16, #tpu.memory_space<vmem>>, vector<1x128x128xbf16>
    %617 = vector.shape_cast %616 : vector<1x128x128xbf16> to vector<128x128xbf16>
    %cst_331 = arith.constant dense<0.000000e+00> : vector<4x128xf32>
    %618 = tpu.matmul %615, %617, %cst_331 {dimension_numbers = #tpu.dot_dimension_numbers<[1], [0], [0], [1], [0, 0, 1, 1], [], []>} : vector<4x128xbf16>, vector<128x128xbf16>, vector<4x128xf32> -> vector<4x128xf32>
    %619 = vector.extract_strided_slice %614 {offsets = [1, 0], sizes = [4, 128], strides = [1, 1]} : vector<6x128xbf16> to vector<4x128xbf16>
    %c1_332 = arith.constant 1 : index
    %c0_333 = arith.constant 0 : index
    %c0_334 = arith.constant 0 : index
    %620 = vector.load %arg35[%c1_332, %c0_333, %c0_334] : memref<3x128x128xbf16, #tpu.memory_space<vmem>>, vector<1x128x128xbf16>
    %621 = vector.shape_cast %620 : vector<1x128x128xbf16> to vector<128x128xbf16>
    %cst_335 = arith.constant dense<0.000000e+00> : vector<4x128xf32>
    %622 = tpu.matmul %619, %621, %cst_335 {dimension_numbers = #tpu.dot_dimension_numbers<[1], [0], [0], [1], [0, 0, 1, 1], [], []>} : vector<4x128xbf16>, vector<128x128xbf16>, vector<4x128xf32> -> vector<4x128xf32>
    %623 = arith.addf %618, %622 : vector<4x128xf32>
    %624 = vector.extract_strided_slice %614 {offsets = [2, 0], sizes = [4, 128], strides = [1, 1]} : vector<6x128xbf16> to vector<4x128xbf16>
    %c2_336 = arith.constant 2 : index
    %c0_337 = arith.constant 0 : index
    %c0_338 = arith.constant 0 : index
    %625 = vector.load %arg35[%c2_336, %c0_337, %c0_338] : memref<3x128x128xbf16, #tpu.memory_space<vmem>>, vector<1x128x128xbf16>
    %626 = vector.shape_cast %625 : vector<1x128x128xbf16> to vector<128x128xbf16>
    %cst_339 = arith.constant dense<0.000000e+00> : vector<4x128xf32>
    %627 = tpu.matmul %624, %626, %cst_339 {dimension_numbers = #tpu.dot_dimension_numbers<[1], [0], [0], [1], [0, 0, 1, 1], [], []>} : vector<4x128xbf16>, vector<128x128xbf16>, vector<4x128xf32> -> vector<4x128xf32>
    %628 = arith.addf %623, %627 : vector<4x128xf32>
    %629 = tpu.iota {dimensions = array<i32: 0>} : vector<6x4xi32>
    %630 = tpu.iota {dimensions = array<i32: 1>} : vector<6x4xi32>
    %c1_i32_340 = arith.constant 1 : i32
    %631 = vector.broadcast %c1_i32_340 : i32 to vector<6x4xi32>
    %632 = arith.addi %630, %631 : vector<6x4xi32>
    %633 = arith.cmpi eq, %629, %632 : vector<6x4xi32>
    %cst_341 = arith.constant 1.000000e+00 : f32
    %cst_342 = arith.constant 0.000000e+00 : f32
    %634 = vector.broadcast %cst_341 : f32 to vector<6x4xf32>
    %635 = vector.broadcast %cst_342 : f32 to vector<6x4xf32>
    %636 = arith.select %633, %634, %635 : vector<6x4xi1>, vector<6x4xf32>
    %637 = arith.truncf %636 : vector<6x4xf32> to vector<6x4xbf16>
    %638 = arith.truncf %602 : vector<4x128xf32> to vector<4x128xbf16>
    %cst_343 = arith.constant dense<0.000000e+00> : vector<6x128xf32>
    %639 = tpu.matmul %637, %638, %cst_343 {dimension_numbers = #tpu.dot_dimension_numbers<[1], [0], [0], [1], [0, 0, 1, 1], [], []>} : vector<6x4xbf16>, vector<4x128xbf16>, vector<6x128xf32> -> vector<6x128xf32>
    %640 = arith.truncf %639 : vector<6x128xf32> to vector<6x128xbf16>
    %641 = vector.extract_strided_slice %640 {offsets = [0, 0], sizes = [4, 128], strides = [1, 1]} : vector<6x128xbf16> to vector<4x128xbf16>
    %c0_344 = arith.constant 0 : index
    %c0_345 = arith.constant 0 : index
    %c0_346 = arith.constant 0 : index
    %642 = vector.load %arg36[%c0_344, %c0_345, %c0_346] : memref<3x128x128xbf16, #tpu.memory_space<vmem>>, vector<1x128x128xbf16>
    %643 = vector.shape_cast %642 : vector<1x128x128xbf16> to vector<128x128xbf16>
    %cst_347 = arith.constant dense<0.000000e+00> : vector<4x128xf32>
    %644 = tpu.matmul %641, %643, %cst_347 {dimension_numbers = #tpu.dot_dimension_numbers<[1], [0], [0], [1], [0, 0, 1, 1], [], []>} : vector<4x128xbf16>, vector<128x128xbf16>, vector<4x128xf32> -> vector<4x128xf32>
    %645 = vector.extract_strided_slice %640 {offsets = [1, 0], sizes = [4, 128], strides = [1, 1]} : vector<6x128xbf16> to vector<4x128xbf16>
    %c1_348 = arith.constant 1 : index
    %c0_349 = arith.constant 0 : index
    %c0_350 = arith.constant 0 : index
    %646 = vector.load %arg36[%c1_348, %c0_349, %c0_350] : memref<3x128x128xbf16, #tpu.memory_space<vmem>>, vector<1x128x128xbf16>
    %647 = vector.shape_cast %646 : vector<1x128x128xbf16> to vector<128x128xbf16>
    %cst_351 = arith.constant dense<0.000000e+00> : vector<4x128xf32>
    %648 = tpu.matmul %645, %647, %cst_351 {dimension_numbers = #tpu.dot_dimension_numbers<[1], [0], [0], [1], [0, 0, 1, 1], [], []>} : vector<4x128xbf16>, vector<128x128xbf16>, vector<4x128xf32> -> vector<4x128xf32>
    %649 = arith.addf %644, %648 : vector<4x128xf32>
    %650 = vector.extract_strided_slice %640 {offsets = [2, 0], sizes = [4, 128], strides = [1, 1]} : vector<6x128xbf16> to vector<4x128xbf16>
    %c2_352 = arith.constant 2 : index
    %c0_353 = arith.constant 0 : index
    %c0_354 = arith.constant 0 : index
    %651 = vector.load %arg36[%c2_352, %c0_353, %c0_354] : memref<3x128x128xbf16, #tpu.memory_space<vmem>>, vector<1x128x128xbf16>
    %652 = vector.shape_cast %651 : vector<1x128x128xbf16> to vector<128x128xbf16>
    %cst_355 = arith.constant dense<0.000000e+00> : vector<4x128xf32>
    %653 = tpu.matmul %650, %652, %cst_355 {dimension_numbers = #tpu.dot_dimension_numbers<[1], [0], [0], [1], [0, 0, 1, 1], [], []>} : vector<4x128xbf16>, vector<128x128xbf16>, vector<4x128xf32> -> vector<4x128xf32>
    %654 = arith.addf %649, %653 : vector<4x128xf32>
    %655 = arith.addf %628, %654 : vector<4x128xf32>
    %c0_356 = arith.constant 0 : index
    %c0_357 = arith.constant 0 : index
    %656 = vector.load %arg31[%c0_356, %c0_357] : memref<1x128xf32, #tpu.memory_space<vmem>>, vector<1x128xf32>
    %657 = vector.broadcast %656 : vector<1x128xf32> to vector<4x128xf32>
    %658 = arith.addf %655, %657 : vector<4x128xf32>
    %cst_358 = arith.constant 0.000000e+00 : f32
    %659 = vector.broadcast %cst_358 : f32 to vector<4x128xf32>
    %660 = arith.maximumf %658, %659 : vector<4x128xf32>
    %661 = tpu.iota {dimensions = array<i32: 0>} : vector<6x4xi32>
    %662 = tpu.iota {dimensions = array<i32: 1>} : vector<6x4xi32>
    %c1_i32_359 = arith.constant 1 : i32
    %663 = vector.broadcast %c1_i32_359 : i32 to vector<6x4xi32>
    %664 = arith.addi %662, %663 : vector<6x4xi32>
    %665 = arith.cmpi eq, %661, %664 : vector<6x4xi32>
    %cst_360 = arith.constant 1.000000e+00 : f32
    %cst_361 = arith.constant 0.000000e+00 : f32
    %666 = vector.broadcast %cst_360 : f32 to vector<6x4xf32>
    %667 = vector.broadcast %cst_361 : f32 to vector<6x4xf32>
    %668 = arith.select %665, %666, %667 : vector<6x4xi1>, vector<6x4xf32>
    %669 = arith.truncf %668 : vector<6x4xf32> to vector<6x4xbf16>
    %670 = arith.truncf %660 : vector<4x128xf32> to vector<4x128xbf16>
    %cst_362 = arith.constant dense<0.000000e+00> : vector<6x128xf32>
    %671 = tpu.matmul %669, %670, %cst_362 {dimension_numbers = #tpu.dot_dimension_numbers<[1], [0], [0], [1], [0, 0, 1, 1], [], []>} : vector<6x4xbf16>, vector<4x128xbf16>, vector<6x128xf32> -> vector<6x128xf32>
    %672 = arith.truncf %671 : vector<6x128xf32> to vector<6x128xbf16>
    %673 = vector.extract_strided_slice %672 {offsets = [0, 0], sizes = [4, 128], strides = [1, 1]} : vector<6x128xbf16> to vector<4x128xbf16>
    %c0_363 = arith.constant 0 : index
    %c0_364 = arith.constant 0 : index
    %c0_365 = arith.constant 0 : index
    %674 = vector.load %arg34[%c0_363, %c0_364, %c0_365] : memref<3x128x64xbf16, #tpu.memory_space<vmem>>, vector<1x128x64xbf16>
    %675 = vector.shape_cast %674 : vector<1x128x64xbf16> to vector<128x64xbf16>
    %cst_366 = arith.constant dense<0.000000e+00> : vector<4x64xf32>
    %676 = tpu.matmul %673, %675, %cst_366 {dimension_numbers = #tpu.dot_dimension_numbers<[1], [0], [0], [1], [0, 0, 1, 1], [], []>} : vector<4x128xbf16>, vector<128x64xbf16>, vector<4x64xf32> -> vector<4x64xf32>
    %677 = vector.extract_strided_slice %672 {offsets = [1, 0], sizes = [4, 128], strides = [1, 1]} : vector<6x128xbf16> to vector<4x128xbf16>
    %c1_367 = arith.constant 1 : index
    %c0_368 = arith.constant 0 : index
    %c0_369 = arith.constant 0 : index
    %678 = vector.load %arg34[%c1_367, %c0_368, %c0_369] : memref<3x128x64xbf16, #tpu.memory_space<vmem>>, vector<1x128x64xbf16>
    %679 = vector.shape_cast %678 : vector<1x128x64xbf16> to vector<128x64xbf16>
    %cst_370 = arith.constant dense<0.000000e+00> : vector<4x64xf32>
    %680 = tpu.matmul %677, %679, %cst_370 {dimension_numbers = #tpu.dot_dimension_numbers<[1], [0], [0], [1], [0, 0, 1, 1], [], []>} : vector<4x128xbf16>, vector<128x64xbf16>, vector<4x64xf32> -> vector<4x64xf32>
    %681 = arith.addf %676, %680 : vector<4x64xf32>
    %682 = vector.extract_strided_slice %672 {offsets = [2, 0], sizes = [4, 128], strides = [1, 1]} : vector<6x128xbf16> to vector<4x128xbf16>
    %c2_371 = arith.constant 2 : index
    %c0_372 = arith.constant 0 : index
    %c0_373 = arith.constant 0 : index
    %683 = vector.load %arg34[%c2_371, %c0_372, %c0_373] : memref<3x128x64xbf16, #tpu.memory_space<vmem>>, vector<1x128x64xbf16>
    %684 = vector.shape_cast %683 : vector<1x128x64xbf16> to vector<128x64xbf16>
    %cst_374 = arith.constant dense<0.000000e+00> : vector<4x64xf32>
    %685 = tpu.matmul %682, %684, %cst_374 {dimension_numbers = #tpu.dot_dimension_numbers<[1], [0], [0], [1], [0, 0, 1, 1], [], []>} : vector<4x128xbf16>, vector<128x64xbf16>, vector<4x64xf32> -> vector<4x64xf32>
    %686 = arith.addf %681, %685 : vector<4x64xf32>
    %c0_375 = arith.constant 0 : index
    %c0_376 = arith.constant 0 : index
    %687 = vector.load %arg32[%c0_375, %c0_376] : memref<1x64xf32, #tpu.memory_space<vmem>>, vector<1x64xf32>
    %688 = vector.broadcast %687 : vector<1x64xf32> to vector<4x64xf32>
    %689 = arith.addf %686, %688 : vector<4x64xf32>
    %cst_377 = arith.constant 0.000000e+00 : f32
    %690 = vector.broadcast %cst_377 : f32 to vector<4x64xf32>
    %691 = arith.maximumf %689, %690 : vector<4x64xf32>
    %c0_378 = arith.constant 0 : index
    %c0_379 = arith.constant 0 : index
    %692 = vector.load %arg44[%c0_378, %c0_379] : memref<8x4xbf16, #tpu.memory_space<vmem>>, vector<8x4xbf16>
    %693 = arith.truncf %691 : vector<4x64xf32> to vector<4x64xbf16>
    %cst_380 = arith.constant dense<0.000000e+00> : vector<8x64xf32>
    %694 = tpu.matmul %692, %693, %cst_380 {dimension_numbers = #tpu.dot_dimension_numbers<[1], [0], [0], [1], [0, 0, 1, 1], [], []>} : vector<8x4xbf16>, vector<4x64xbf16>, vector<8x64xf32> -> vector<8x64xf32>
    %695 = arith.truncf %694 : vector<8x64xf32> to vector<8x64xbf16>
    %c0_381 = arith.constant 0 : index
    %c0_382 = arith.constant 0 : index
    %696 = vector.load %arg40[%c0_381, %c0_382] : memref<64x128xbf16, #tpu.memory_space<vmem>>, vector<64x128xbf16>
    %cst_383 = arith.constant dense<0.000000e+00> : vector<8x128xf32>
    %697 = tpu.matmul %695, %696, %cst_383 {dimension_numbers = #tpu.dot_dimension_numbers<[1], [0], [0], [1], [0, 0, 1, 1], [], []>} : vector<8x64xbf16>, vector<64x128xbf16>, vector<8x128xf32> -> vector<8x128xf32>
    %698 = tpu.iota {dimensions = array<i32: 0>} : vector<10x8xi32>
    %699 = tpu.iota {dimensions = array<i32: 1>} : vector<10x8xi32>
    %c1_i32_384 = arith.constant 1 : i32
    %700 = vector.broadcast %c1_i32_384 : i32 to vector<10x8xi32>
    %701 = arith.addi %699, %700 : vector<10x8xi32>
    %702 = arith.cmpi eq, %698, %701 : vector<10x8xi32>
    %cst_385 = arith.constant 1.000000e+00 : f32
    %cst_386 = arith.constant 0.000000e+00 : f32
    %703 = vector.broadcast %cst_385 : f32 to vector<10x8xf32>
    %704 = vector.broadcast %cst_386 : f32 to vector<10x8xf32>
    %705 = arith.select %702, %703, %704 : vector<10x8xi1>, vector<10x8xf32>
    %706 = arith.truncf %705 : vector<10x8xf32> to vector<10x8xbf16>
    %707 = arith.truncf %173 : vector<8x128xf32> to vector<8x128xbf16>
    %cst_387 = arith.constant dense<0.000000e+00> : vector<10x128xf32>
    %708 = tpu.matmul %706, %707, %cst_387 {dimension_numbers = #tpu.dot_dimension_numbers<[1], [0], [0], [1], [0, 0, 1, 1], [], []>} : vector<10x8xbf16>, vector<8x128xbf16>, vector<10x128xf32> -> vector<10x128xf32>
    %709 = arith.truncf %708 : vector<10x128xf32> to vector<10x128xbf16>
    %710 = vector.extract_strided_slice %709 {offsets = [0, 0], sizes = [8, 128], strides = [1, 1]} : vector<10x128xbf16> to vector<8x128xbf16>
    %c0_388 = arith.constant 0 : index
    %c0_389 = arith.constant 0 : index
    %c0_390 = arith.constant 0 : index
    %711 = vector.load %arg42[%c0_388, %c0_389, %c0_390] : memref<3x128x128xbf16, #tpu.memory_space<vmem>>, vector<1x128x128xbf16>
    %712 = vector.shape_cast %711 : vector<1x128x128xbf16> to vector<128x128xbf16>
    %cst_391 = arith.constant dense<0.000000e+00> : vector<8x128xf32>
    %713 = tpu.matmul %710, %712, %cst_391 {dimension_numbers = #tpu.dot_dimension_numbers<[1], [0], [0], [1], [0, 0, 1, 1], [], []>} : vector<8x128xbf16>, vector<128x128xbf16>, vector<8x128xf32> -> vector<8x128xf32>
    %714 = vector.extract_strided_slice %709 {offsets = [1, 0], sizes = [8, 128], strides = [1, 1]} : vector<10x128xbf16> to vector<8x128xbf16>
    %c1_392 = arith.constant 1 : index
    %c0_393 = arith.constant 0 : index
    %c0_394 = arith.constant 0 : index
    %715 = vector.load %arg42[%c1_392, %c0_393, %c0_394] : memref<3x128x128xbf16, #tpu.memory_space<vmem>>, vector<1x128x128xbf16>
    %716 = vector.shape_cast %715 : vector<1x128x128xbf16> to vector<128x128xbf16>
    %cst_395 = arith.constant dense<0.000000e+00> : vector<8x128xf32>
    %717 = tpu.matmul %714, %716, %cst_395 {dimension_numbers = #tpu.dot_dimension_numbers<[1], [0], [0], [1], [0, 0, 1, 1], [], []>} : vector<8x128xbf16>, vector<128x128xbf16>, vector<8x128xf32> -> vector<8x128xf32>
    %718 = arith.addf %713, %717 : vector<8x128xf32>
    %719 = vector.extract_strided_slice %709 {offsets = [2, 0], sizes = [8, 128], strides = [1, 1]} : vector<10x128xbf16> to vector<8x128xbf16>
    %c2_396 = arith.constant 2 : index
    %c0_397 = arith.constant 0 : index
    %c0_398 = arith.constant 0 : index
    %720 = vector.load %arg42[%c2_396, %c0_397, %c0_398] : memref<3x128x128xbf16, #tpu.memory_space<vmem>>, vector<1x128x128xbf16>
    %721 = vector.shape_cast %720 : vector<1x128x128xbf16> to vector<128x128xbf16>
    %cst_399 = arith.constant dense<0.000000e+00> : vector<8x128xf32>
    %722 = tpu.matmul %719, %721, %cst_399 {dimension_numbers = #tpu.dot_dimension_numbers<[1], [0], [0], [1], [0, 0, 1, 1], [], []>} : vector<8x128xbf16>, vector<128x128xbf16>, vector<8x128xf32> -> vector<8x128xf32>
    %723 = arith.addf %718, %722 : vector<8x128xf32>
    %724 = tpu.iota {dimensions = array<i32: 0>} : vector<10x8xi32>
    %725 = tpu.iota {dimensions = array<i32: 1>} : vector<10x8xi32>
    %c1_i32_400 = arith.constant 1 : i32
    %726 = vector.broadcast %c1_i32_400 : i32 to vector<10x8xi32>
    %727 = arith.addi %725, %726 : vector<10x8xi32>
    %728 = arith.cmpi eq, %724, %727 : vector<10x8xi32>
    %cst_401 = arith.constant 1.000000e+00 : f32
    %cst_402 = arith.constant 0.000000e+00 : f32
    %729 = vector.broadcast %cst_401 : f32 to vector<10x8xf32>
    %730 = vector.broadcast %cst_402 : f32 to vector<10x8xf32>
    %731 = arith.select %728, %729, %730 : vector<10x8xi1>, vector<10x8xf32>
    %732 = arith.truncf %731 : vector<10x8xf32> to vector<10x8xbf16>
    %733 = arith.truncf %697 : vector<8x128xf32> to vector<8x128xbf16>
    %cst_403 = arith.constant dense<0.000000e+00> : vector<10x128xf32>
    %734 = tpu.matmul %732, %733, %cst_403 {dimension_numbers = #tpu.dot_dimension_numbers<[1], [0], [0], [1], [0, 0, 1, 1], [], []>} : vector<10x8xbf16>, vector<8x128xbf16>, vector<10x128xf32> -> vector<10x128xf32>
    %735 = arith.truncf %734 : vector<10x128xf32> to vector<10x128xbf16>
    %736 = vector.extract_strided_slice %735 {offsets = [0, 0], sizes = [8, 128], strides = [1, 1]} : vector<10x128xbf16> to vector<8x128xbf16>
    %c0_404 = arith.constant 0 : index
    %c0_405 = arith.constant 0 : index
    %c0_406 = arith.constant 0 : index
    %737 = vector.load %arg43[%c0_404, %c0_405, %c0_406] : memref<3x128x128xbf16, #tpu.memory_space<vmem>>, vector<1x128x128xbf16>
    %738 = vector.shape_cast %737 : vector<1x128x128xbf16> to vector<128x128xbf16>
    %cst_407 = arith.constant dense<0.000000e+00> : vector<8x128xf32>
    %739 = tpu.matmul %736, %738, %cst_407 {dimension_numbers = #tpu.dot_dimension_numbers<[1], [0], [0], [1], [0, 0, 1, 1], [], []>} : vector<8x128xbf16>, vector<128x128xbf16>, vector<8x128xf32> -> vector<8x128xf32>
    %740 = vector.extract_strided_slice %735 {offsets = [1, 0], sizes = [8, 128], strides = [1, 1]} : vector<10x128xbf16> to vector<8x128xbf16>
    %c1_408 = arith.constant 1 : index
    %c0_409 = arith.constant 0 : index
    %c0_410 = arith.constant 0 : index
    %741 = vector.load %arg43[%c1_408, %c0_409, %c0_410] : memref<3x128x128xbf16, #tpu.memory_space<vmem>>, vector<1x128x128xbf16>
    %742 = vector.shape_cast %741 : vector<1x128x128xbf16> to vector<128x128xbf16>
    %cst_411 = arith.constant dense<0.000000e+00> : vector<8x128xf32>
    %743 = tpu.matmul %740, %742, %cst_411 {dimension_numbers = #tpu.dot_dimension_numbers<[1], [0], [0], [1], [0, 0, 1, 1], [], []>} : vector<8x128xbf16>, vector<128x128xbf16>, vector<8x128xf32> -> vector<8x128xf32>
    %744 = arith.addf %739, %743 : vector<8x128xf32>
    %745 = vector.extract_strided_slice %735 {offsets = [2, 0], sizes = [8, 128], strides = [1, 1]} : vector<10x128xbf16> to vector<8x128xbf16>
    %c2_412 = arith.constant 2 : index
    %c0_413 = arith.constant 0 : index
    %c0_414 = arith.constant 0 : index
    %746 = vector.load %arg43[%c2_412, %c0_413, %c0_414] : memref<3x128x128xbf16, #tpu.memory_space<vmem>>, vector<1x128x128xbf16>
    %747 = vector.shape_cast %746 : vector<1x128x128xbf16> to vector<128x128xbf16>
    %cst_415 = arith.constant dense<0.000000e+00> : vector<8x128xf32>
    %748 = tpu.matmul %745, %747, %cst_415 {dimension_numbers = #tpu.dot_dimension_numbers<[1], [0], [0], [1], [0, 0, 1, 1], [], []>} : vector<8x128xbf16>, vector<128x128xbf16>, vector<8x128xf32> -> vector<8x128xf32>
    %749 = arith.addf %744, %748 : vector<8x128xf32>
    %750 = arith.addf %723, %749 : vector<8x128xf32>
    %c0_416 = arith.constant 0 : index
    %c0_417 = arith.constant 0 : index
    %751 = vector.load %arg38[%c0_416, %c0_417] : memref<1x128xf32, #tpu.memory_space<vmem>>, vector<1x128xf32>
    %752 = vector.broadcast %751 : vector<1x128xf32> to vector<8x128xf32>
    %753 = arith.addf %750, %752 : vector<8x128xf32>
    %cst_418 = arith.constant 0.000000e+00 : f32
    %754 = vector.broadcast %cst_418 : f32 to vector<8x128xf32>
    %755 = arith.maximumf %753, %754 : vector<8x128xf32>
    %756 = tpu.iota {dimensions = array<i32: 0>} : vector<10x8xi32>
    %757 = tpu.iota {dimensions = array<i32: 1>} : vector<10x8xi32>
    %c1_i32_419 = arith.constant 1 : i32
    %758 = vector.broadcast %c1_i32_419 : i32 to vector<10x8xi32>
    %759 = arith.addi %757, %758 : vector<10x8xi32>
    %760 = arith.cmpi eq, %756, %759 : vector<10x8xi32>
    %cst_420 = arith.constant 1.000000e+00 : f32
    %cst_421 = arith.constant 0.000000e+00 : f32
    %761 = vector.broadcast %cst_420 : f32 to vector<10x8xf32>
    %762 = vector.broadcast %cst_421 : f32 to vector<10x8xf32>
    %763 = arith.select %760, %761, %762 : vector<10x8xi1>, vector<10x8xf32>
    %764 = arith.truncf %763 : vector<10x8xf32> to vector<10x8xbf16>
    %765 = arith.truncf %755 : vector<8x128xf32> to vector<8x128xbf16>
    %cst_422 = arith.constant dense<0.000000e+00> : vector<10x128xf32>
    %766 = tpu.matmul %764, %765, %cst_422 {dimension_numbers = #tpu.dot_dimension_numbers<[1], [0], [0], [1], [0, 0, 1, 1], [], []>} : vector<10x8xbf16>, vector<8x128xbf16>, vector<10x128xf32> -> vector<10x128xf32>
    %767 = arith.truncf %766 : vector<10x128xf32> to vector<10x128xbf16>
    %768 = vector.extract_strided_slice %767 {offsets = [0, 0], sizes = [8, 128], strides = [1, 1]} : vector<10x128xbf16> to vector<8x128xbf16>
    %c0_423 = arith.constant 0 : index
    %c0_424 = arith.constant 0 : index
    %c0_425 = arith.constant 0 : index
    %769 = vector.load %arg41[%c0_423, %c0_424, %c0_425] : memref<3x128x64xbf16, #tpu.memory_space<vmem>>, vector<1x128x64xbf16>
    %770 = vector.shape_cast %769 : vector<1x128x64xbf16> to vector<128x64xbf16>
    %cst_426 = arith.constant dense<0.000000e+00> : vector<8x64xf32>
    %771 = tpu.matmul %768, %770, %cst_426 {dimension_numbers = #tpu.dot_dimension_numbers<[1], [0], [0], [1], [0, 0, 1, 1], [], []>} : vector<8x128xbf16>, vector<128x64xbf16>, vector<8x64xf32> -> vector<8x64xf32>
    %772 = vector.extract_strided_slice %767 {offsets = [1, 0], sizes = [8, 128], strides = [1, 1]} : vector<10x128xbf16> to vector<8x128xbf16>
    %c1_427 = arith.constant 1 : index
    %c0_428 = arith.constant 0 : index
    %c0_429 = arith.constant 0 : index
    %773 = vector.load %arg41[%c1_427, %c0_428, %c0_429] : memref<3x128x64xbf16, #tpu.memory_space<vmem>>, vector<1x128x64xbf16>
    %774 = vector.shape_cast %773 : vector<1x128x64xbf16> to vector<128x64xbf16>
    %cst_430 = arith.constant dense<0.000000e+00> : vector<8x64xf32>
    %775 = tpu.matmul %772, %774, %cst_430 {dimension_numbers = #tpu.dot_dimension_numbers<[1], [0], [0], [1], [0, 0, 1, 1], [], []>} : vector<8x128xbf16>, vector<128x64xbf16>, vector<8x64xf32> -> vector<8x64xf32>
    %776 = arith.addf %771, %775 : vector<8x64xf32>
    %777 = vector.extract_strided_slice %767 {offsets = [2, 0], sizes = [8, 128], strides = [1, 1]} : vector<10x128xbf16> to vector<8x128xbf16>
    %c2_431 = arith.constant 2 : index
    %c0_432 = arith.constant 0 : index
    %c0_433 = arith.constant 0 : index
    %778 = vector.load %arg41[%c2_431, %c0_432, %c0_433] : memref<3x128x64xbf16, #tpu.memory_space<vmem>>, vector<1x128x64xbf16>
    %779 = vector.shape_cast %778 : vector<1x128x64xbf16> to vector<128x64xbf16>
    %cst_434 = arith.constant dense<0.000000e+00> : vector<8x64xf32>
    %780 = tpu.matmul %777, %779, %cst_434 {dimension_numbers = #tpu.dot_dimension_numbers<[1], [0], [0], [1], [0, 0, 1, 1], [], []>} : vector<8x128xbf16>, vector<128x64xbf16>, vector<8x64xf32> -> vector<8x64xf32>
    %781 = arith.addf %776, %780 : vector<8x64xf32>
    %c0_435 = arith.constant 0 : index
    %c0_436 = arith.constant 0 : index
    %782 = vector.load %arg39[%c0_435, %c0_436] : memref<1x64xf32, #tpu.memory_space<vmem>>, vector<1x64xf32>
    %783 = vector.broadcast %782 : vector<1x64xf32> to vector<8x64xf32>
    %784 = arith.addf %781, %783 : vector<8x64xf32>
    %cst_437 = arith.constant 0.000000e+00 : f32
    %785 = vector.broadcast %cst_437 : f32 to vector<8x64xf32>
    %786 = arith.maximumf %784, %785 : vector<8x64xf32>
    %c0_438 = arith.constant 0 : index
    %c0_439 = arith.constant 0 : index
    %787 = vector.load %arg51[%c0_438, %c0_439] : memref<16x8xbf16, #tpu.memory_space<vmem>>, vector<16x8xbf16>
    %788 = arith.truncf %786 : vector<8x64xf32> to vector<8x64xbf16>
    %cst_440 = arith.constant dense<0.000000e+00> : vector<16x64xf32>
    %789 = tpu.matmul %787, %788, %cst_440 {dimension_numbers = #tpu.dot_dimension_numbers<[1], [0], [0], [1], [0, 0, 1, 1], [], []>} : vector<16x8xbf16>, vector<8x64xbf16>, vector<16x64xf32> -> vector<16x64xf32>
    %790 = arith.truncf %789 : vector<16x64xf32> to vector<16x64xbf16>
    %c0_441 = arith.constant 0 : index
    %c0_442 = arith.constant 0 : index
    %791 = vector.load %arg47[%c0_441, %c0_442] : memref<64x128xbf16, #tpu.memory_space<vmem>>, vector<64x128xbf16>
    %cst_443 = arith.constant dense<0.000000e+00> : vector<16x128xf32>
    %792 = tpu.matmul %790, %791, %cst_443 {dimension_numbers = #tpu.dot_dimension_numbers<[1], [0], [0], [1], [0, 0, 1, 1], [], []>} : vector<16x64xbf16>, vector<64x128xbf16>, vector<16x128xf32> -> vector<16x128xf32>
    %793 = tpu.iota {dimensions = array<i32: 0>} : vector<18x16xi32>
    %794 = tpu.iota {dimensions = array<i32: 1>} : vector<18x16xi32>
    %c1_i32_444 = arith.constant 1 : i32
    %795 = vector.broadcast %c1_i32_444 : i32 to vector<18x16xi32>
    %796 = arith.addi %794, %795 : vector<18x16xi32>
    %797 = arith.cmpi eq, %793, %796 : vector<18x16xi32>
    %cst_445 = arith.constant 1.000000e+00 : f32
    %cst_446 = arith.constant 0.000000e+00 : f32
    %798 = vector.broadcast %cst_445 : f32 to vector<18x16xf32>
    %799 = vector.broadcast %cst_446 : f32 to vector<18x16xf32>
    %800 = arith.select %797, %798, %799 : vector<18x16xi1>, vector<18x16xf32>
    %801 = arith.truncf %800 : vector<18x16xf32> to vector<18x16xbf16>
    %802 = arith.truncf %63 : vector<16x128xf32> to vector<16x128xbf16>
    %cst_447 = arith.constant dense<0.000000e+00> : vector<18x128xf32>
    %803 = tpu.matmul %801, %802, %cst_447 {dimension_numbers = #tpu.dot_dimension_numbers<[1], [0], [0], [1], [0, 0, 1, 1], [], []>} : vector<18x16xbf16>, vector<16x128xbf16>, vector<18x128xf32> -> vector<18x128xf32>
    %804 = arith.truncf %803 : vector<18x128xf32> to vector<18x128xbf16>
    %805 = vector.extract_strided_slice %804 {offsets = [0, 0], sizes = [16, 128], strides = [1, 1]} : vector<18x128xbf16> to vector<16x128xbf16>
    %c0_448 = arith.constant 0 : index
    %c0_449 = arith.constant 0 : index
    %c0_450 = arith.constant 0 : index
    %806 = vector.load %arg49[%c0_448, %c0_449, %c0_450] : memref<3x128x128xbf16, #tpu.memory_space<vmem>>, vector<1x128x128xbf16>
    %807 = vector.shape_cast %806 : vector<1x128x128xbf16> to vector<128x128xbf16>
    %cst_451 = arith.constant dense<0.000000e+00> : vector<16x128xf32>
    %808 = tpu.matmul %805, %807, %cst_451 {dimension_numbers = #tpu.dot_dimension_numbers<[1], [0], [0], [1], [0, 0, 1, 1], [], []>} : vector<16x128xbf16>, vector<128x128xbf16>, vector<16x128xf32> -> vector<16x128xf32>
    %809 = vector.extract_strided_slice %804 {offsets = [1, 0], sizes = [16, 128], strides = [1, 1]} : vector<18x128xbf16> to vector<16x128xbf16>
    %c1_452 = arith.constant 1 : index
    %c0_453 = arith.constant 0 : index
    %c0_454 = arith.constant 0 : index
    %810 = vector.load %arg49[%c1_452, %c0_453, %c0_454] : memref<3x128x128xbf16, #tpu.memory_space<vmem>>, vector<1x128x128xbf16>
    %811 = vector.shape_cast %810 : vector<1x128x128xbf16> to vector<128x128xbf16>
    %cst_455 = arith.constant dense<0.000000e+00> : vector<16x128xf32>
    %812 = tpu.matmul %809, %811, %cst_455 {dimension_numbers = #tpu.dot_dimension_numbers<[1], [0], [0], [1], [0, 0, 1, 1], [], []>} : vector<16x128xbf16>, vector<128x128xbf16>, vector<16x128xf32> -> vector<16x128xf32>
    %813 = arith.addf %808, %812 : vector<16x128xf32>
    %814 = vector.extract_strided_slice %804 {offsets = [2, 0], sizes = [16, 128], strides = [1, 1]} : vector<18x128xbf16> to vector<16x128xbf16>
    %c2_456 = arith.constant 2 : index
    %c0_457 = arith.constant 0 : index
    %c0_458 = arith.constant 0 : index
    %815 = vector.load %arg49[%c2_456, %c0_457, %c0_458] : memref<3x128x128xbf16, #tpu.memory_space<vmem>>, vector<1x128x128xbf16>
    %816 = vector.shape_cast %815 : vector<1x128x128xbf16> to vector<128x128xbf16>
    %cst_459 = arith.constant dense<0.000000e+00> : vector<16x128xf32>
    %817 = tpu.matmul %814, %816, %cst_459 {dimension_numbers = #tpu.dot_dimension_numbers<[1], [0], [0], [1], [0, 0, 1, 1], [], []>} : vector<16x128xbf16>, vector<128x128xbf16>, vector<16x128xf32> -> vector<16x128xf32>
    %818 = arith.addf %813, %817 : vector<16x128xf32>
    %819 = tpu.iota {dimensions = array<i32: 0>} : vector<18x16xi32>
    %820 = tpu.iota {dimensions = array<i32: 1>} : vector<18x16xi32>
    %c1_i32_460 = arith.constant 1 : i32
    %821 = vector.broadcast %c1_i32_460 : i32 to vector<18x16xi32>
    %822 = arith.addi %820, %821 : vector<18x16xi32>
    %823 = arith.cmpi eq, %819, %822 : vector<18x16xi32>
    %cst_461 = arith.constant 1.000000e+00 : f32
    %cst_462 = arith.constant 0.000000e+00 : f32
    %824 = vector.broadcast %cst_461 : f32 to vector<18x16xf32>
    %825 = vector.broadcast %cst_462 : f32 to vector<18x16xf32>
    %826 = arith.select %823, %824, %825 : vector<18x16xi1>, vector<18x16xf32>
    %827 = arith.truncf %826 : vector<18x16xf32> to vector<18x16xbf16>
    %828 = arith.truncf %792 : vector<16x128xf32> to vector<16x128xbf16>
    %cst_463 = arith.constant dense<0.000000e+00> : vector<18x128xf32>
    %829 = tpu.matmul %827, %828, %cst_463 {dimension_numbers = #tpu.dot_dimension_numbers<[1], [0], [0], [1], [0, 0, 1, 1], [], []>} : vector<18x16xbf16>, vector<16x128xbf16>, vector<18x128xf32> -> vector<18x128xf32>
    %830 = arith.truncf %829 : vector<18x128xf32> to vector<18x128xbf16>
    %831 = vector.extract_strided_slice %830 {offsets = [0, 0], sizes = [16, 128], strides = [1, 1]} : vector<18x128xbf16> to vector<16x128xbf16>
    %c0_464 = arith.constant 0 : index
    %c0_465 = arith.constant 0 : index
    %c0_466 = arith.constant 0 : index
    %832 = vector.load %arg50[%c0_464, %c0_465, %c0_466] : memref<3x128x128xbf16, #tpu.memory_space<vmem>>, vector<1x128x128xbf16>
    %833 = vector.shape_cast %832 : vector<1x128x128xbf16> to vector<128x128xbf16>
    %cst_467 = arith.constant dense<0.000000e+00> : vector<16x128xf32>
    %834 = tpu.matmul %831, %833, %cst_467 {dimension_numbers = #tpu.dot_dimension_numbers<[1], [0], [0], [1], [0, 0, 1, 1], [], []>} : vector<16x128xbf16>, vector<128x128xbf16>, vector<16x128xf32> -> vector<16x128xf32>
    %835 = vector.extract_strided_slice %830 {offsets = [1, 0], sizes = [16, 128], strides = [1, 1]} : vector<18x128xbf16> to vector<16x128xbf16>
    %c1_468 = arith.constant 1 : index
    %c0_469 = arith.constant 0 : index
    %c0_470 = arith.constant 0 : index
    %836 = vector.load %arg50[%c1_468, %c0_469, %c0_470] : memref<3x128x128xbf16, #tpu.memory_space<vmem>>, vector<1x128x128xbf16>
    %837 = vector.shape_cast %836 : vector<1x128x128xbf16> to vector<128x128xbf16>
    %cst_471 = arith.constant dense<0.000000e+00> : vector<16x128xf32>
    %838 = tpu.matmul %835, %837, %cst_471 {dimension_numbers = #tpu.dot_dimension_numbers<[1], [0], [0], [1], [0, 0, 1, 1], [], []>} : vector<16x128xbf16>, vector<128x128xbf16>, vector<16x128xf32> -> vector<16x128xf32>
    %839 = arith.addf %834, %838 : vector<16x128xf32>
    %840 = vector.extract_strided_slice %830 {offsets = [2, 0], sizes = [16, 128], strides = [1, 1]} : vector<18x128xbf16> to vector<16x128xbf16>
    %c2_472 = arith.constant 2 : index
    %c0_473 = arith.constant 0 : index
    %c0_474 = arith.constant 0 : index
    %841 = vector.load %arg50[%c2_472, %c0_473, %c0_474] : memref<3x128x128xbf16, #tpu.memory_space<vmem>>, vector<1x128x128xbf16>
    %842 = vector.shape_cast %841 : vector<1x128x128xbf16> to vector<128x128xbf16>
    %cst_475 = arith.constant dense<0.000000e+00> : vector<16x128xf32>
    %843 = tpu.matmul %840, %842, %cst_475 {dimension_numbers = #tpu.dot_dimension_numbers<[1], [0], [0], [1], [0, 0, 1, 1], [], []>} : vector<16x128xbf16>, vector<128x128xbf16>, vector<16x128xf32> -> vector<16x128xf32>
    %844 = arith.addf %839, %843 : vector<16x128xf32>
    %845 = arith.addf %818, %844 : vector<16x128xf32>
    %c0_476 = arith.constant 0 : index
    %c0_477 = arith.constant 0 : index
    %846 = vector.load %arg45[%c0_476, %c0_477] : memref<1x128xf32, #tpu.memory_space<vmem>>, vector<1x128xf32>
    %847 = vector.broadcast %846 : vector<1x128xf32> to vector<16x128xf32>
    %848 = arith.addf %845, %847 : vector<16x128xf32>
    %cst_478 = arith.constant 0.000000e+00 : f32
    %849 = vector.broadcast %cst_478 : f32 to vector<16x128xf32>
    %850 = arith.maximumf %848, %849 : vector<16x128xf32>
    %851 = tpu.iota {dimensions = array<i32: 0>} : vector<18x16xi32>
    %852 = tpu.iota {dimensions = array<i32: 1>} : vector<18x16xi32>
    %c1_i32_479 = arith.constant 1 : i32
    %853 = vector.broadcast %c1_i32_479 : i32 to vector<18x16xi32>
    %854 = arith.addi %852, %853 : vector<18x16xi32>
    %855 = arith.cmpi eq, %851, %854 : vector<18x16xi32>
    %cst_480 = arith.constant 1.000000e+00 : f32
    %cst_481 = arith.constant 0.000000e+00 : f32
    %856 = vector.broadcast %cst_480 : f32 to vector<18x16xf32>
    %857 = vector.broadcast %cst_481 : f32 to vector<18x16xf32>
    %858 = arith.select %855, %856, %857 : vector<18x16xi1>, vector<18x16xf32>
    %859 = arith.truncf %858 : vector<18x16xf32> to vector<18x16xbf16>
    %860 = arith.truncf %850 : vector<16x128xf32> to vector<16x128xbf16>
    %cst_482 = arith.constant dense<0.000000e+00> : vector<18x128xf32>
    %861 = tpu.matmul %859, %860, %cst_482 {dimension_numbers = #tpu.dot_dimension_numbers<[1], [0], [0], [1], [0, 0, 1, 1], [], []>} : vector<18x16xbf16>, vector<16x128xbf16>, vector<18x128xf32> -> vector<18x128xf32>
    %862 = arith.truncf %861 : vector<18x128xf32> to vector<18x128xbf16>
    %863 = vector.extract_strided_slice %862 {offsets = [0, 0], sizes = [16, 128], strides = [1, 1]} : vector<18x128xbf16> to vector<16x128xbf16>
    %c0_483 = arith.constant 0 : index
    %c0_484 = arith.constant 0 : index
    %c0_485 = arith.constant 0 : index
    %864 = vector.load %arg48[%c0_483, %c0_484, %c0_485] : memref<3x128x128xbf16, #tpu.memory_space<vmem>>, vector<1x128x128xbf16>
    %865 = vector.shape_cast %864 : vector<1x128x128xbf16> to vector<128x128xbf16>
    %cst_486 = arith.constant dense<0.000000e+00> : vector<16x128xf32>
    %866 = tpu.matmul %863, %865, %cst_486 {dimension_numbers = #tpu.dot_dimension_numbers<[1], [0], [0], [1], [0, 0, 1, 1], [], []>} : vector<16x128xbf16>, vector<128x128xbf16>, vector<16x128xf32> -> vector<16x128xf32>
    %867 = vector.extract_strided_slice %862 {offsets = [1, 0], sizes = [16, 128], strides = [1, 1]} : vector<18x128xbf16> to vector<16x128xbf16>
    %c1_487 = arith.constant 1 : index
    %c0_488 = arith.constant 0 : index
    %c0_489 = arith.constant 0 : index
    %868 = vector.load %arg48[%c1_487, %c0_488, %c0_489] : memref<3x128x128xbf16, #tpu.memory_space<vmem>>, vector<1x128x128xbf16>
    %869 = vector.shape_cast %868 : vector<1x128x128xbf16> to vector<128x128xbf16>
    %cst_490 = arith.constant dense<0.000000e+00> : vector<16x128xf32>
    %870 = tpu.matmul %867, %869, %cst_490 {dimension_numbers = #tpu.dot_dimension_numbers<[1], [0], [0], [1], [0, 0, 1, 1], [], []>} : vector<16x128xbf16>, vector<128x128xbf16>, vector<16x128xf32> -> vector<16x128xf32>
    %871 = arith.addf %866, %870 : vector<16x128xf32>
    %872 = vector.extract_strided_slice %862 {offsets = [2, 0], sizes = [16, 128], strides = [1, 1]} : vector<18x128xbf16> to vector<16x128xbf16>
    %c2_491 = arith.constant 2 : index
    %c0_492 = arith.constant 0 : index
    %c0_493 = arith.constant 0 : index
    %873 = vector.load %arg48[%c2_491, %c0_492, %c0_493] : memref<3x128x128xbf16, #tpu.memory_space<vmem>>, vector<1x128x128xbf16>
    %874 = vector.shape_cast %873 : vector<1x128x128xbf16> to vector<128x128xbf16>
    %cst_494 = arith.constant dense<0.000000e+00> : vector<16x128xf32>
    %875 = tpu.matmul %872, %874, %cst_494 {dimension_numbers = #tpu.dot_dimension_numbers<[1], [0], [0], [1], [0, 0, 1, 1], [], []>} : vector<16x128xbf16>, vector<128x128xbf16>, vector<16x128xf32> -> vector<16x128xf32>
    %876 = arith.addf %871, %875 : vector<16x128xf32>
    %c0_495 = arith.constant 0 : index
    %c0_496 = arith.constant 0 : index
    %877 = vector.load %arg46[%c0_495, %c0_496] : memref<1x128xf32, #tpu.memory_space<vmem>>, vector<1x128xf32>
    %878 = vector.broadcast %877 : vector<1x128xf32> to vector<16x128xf32>
    %879 = arith.addf %876, %878 : vector<16x128xf32>
    %cst_497 = arith.constant 0.000000e+00 : f32
    %880 = vector.broadcast %cst_497 : f32 to vector<16x128xf32>
    %881 = arith.maximumf %879, %880 : vector<16x128xf32>
    %c0_498 = arith.constant 0 : index
    %c0_499 = arith.constant 0 : index
    %882 = vector.load %arg23[%c0_498, %c0_499] : memref<128x32xf32, #tpu.memory_space<vmem>>, vector<128x32xf32>
    %cst_500 = arith.constant dense<0.000000e+00> : vector<16x32xf32>
    %883 = tpu.matmul %881, %882, %cst_500 {dimension_numbers = #tpu.dot_dimension_numbers<[1], [0], [0], [1], [0, 0, 1, 1], [], []>} : vector<16x128xf32>, vector<128x32xf32>, vector<16x32xf32> -> vector<16x32xf32>
    %c0_501 = arith.constant 0 : index
    %c0_502 = arith.constant 0 : index
    %884 = vector.load %arg22[%c0_501, %c0_502] : memref<1x32xf32, #tpu.memory_space<vmem>>, vector<1x32xf32>
    %885 = vector.broadcast %884 : vector<1x32xf32> to vector<16x32xf32>
    %886 = arith.addf %883, %885 : vector<16x32xf32>
    %c0_503 = arith.constant 0 : index
    %c0_504 = arith.constant 0 : index
    %c0_505 = arith.constant 0 : index
    %887 = vector.load %arg52[%c0_503, %c0_504, %c0_505] : memref<1x16x32xf32, #tpu.memory_space<vmem>>, vector<1x16x32xf32>
    %888 = vector.shape_cast %887 : vector<1x16x32xf32> to vector<16x32xf32>
    %889 = vector.shape_cast %886 : vector<16x32xf32> to vector<1x16x32xf32>
    tpu.vector_store %arg52[%c0_503, %c0_504, %c0_505], %889 {strides = array<i32>} : memref<1x16x32xf32, #tpu.memory_space<vmem>>, vector<1x16x32xf32>,
    return
  }
  func.func @transform_0(%arg0: i32) -> (i32, i32, i32) {
    %c0_i32 = arith.constant 0 : i32
    %c0_i32_0 = arith.constant 0 : i32
    %c0_i32_1 = arith.constant 0 : i32
    return %arg0, %c0_i32, %c0_i32_0 : i32, i32, i32
  }
  func.func @transform_1(%arg0: i32) -> (i32, i32) {
    %c0_i32 = arith.constant 0 : i32
    %c0_i32_0 = arith.constant 0 : i32
    %c0_i32_1 = arith.constant 0 : i32
    return %c0_i32, %c0_i32_0 : i32, i32
  }
  func.func @transform_2(%arg0: i32) -> (i32, i32) {
    %c0_i32 = arith.constant 0 : i32
    %c0_i32_0 = arith.constant 0 : i32
    %c0_i32_1 = arith.constant 0 : i32
    return %c0_i32, %c0_i32_0 : i32, i32
  }
  func.func @transform_3(%arg0: i32) -> (i32, i32, i32) {
    %c0_i32 = arith.constant 0 : i32
    %c0_i32_0 = arith.constant 0 : i32
    %c0_i32_1 = arith.constant 0 : i32
    %c0_i32_2 = arith.constant 0 : i32
    return %c0_i32, %c0_i32_0, %c0_i32_1 : i32, i32, i32
  }
  func.func @transform_4(%arg0: i32) -> (i32, i32, i32) {
    %c0_i32 = arith.constant 0 : i32
    %c0_i32_0 = arith.constant 0 : i32
    %c0_i32_1 = arith.constant 0 : i32
    %c0_i32_2 = arith.constant 0 : i32
    return %c0_i32, %c0_i32_0, %c0_i32_1 : i32, i32, i32
  }
  func.func @transform_5(%arg0: i32) -> (i32, i32) {
    %c0_i32 = arith.constant 0 : i32
    %c0_i32_0 = arith.constant 0 : i32
    %c0_i32_1 = arith.constant 0 : i32
    return %c0_i32, %c0_i32_0 : i32, i32
  }
  func.func @transform_6(%arg0: i32) -> (i32, i32) {
    %c0_i32 = arith.constant 0 : i32
    %c0_i32_0 = arith.constant 0 : i32
    %c0_i32_1 = arith.constant 0 : i32
    return %c0_i32, %c0_i32_0 : i32, i32
  }
  func.func @transform_7(%arg0: i32) -> (i32, i32, i32) {
    %c0_i32 = arith.constant 0 : i32
    %c0_i32_0 = arith.constant 0 : i32
    %c0_i32_1 = arith.constant 0 : i32
    %c0_i32_2 = arith.constant 0 : i32
    return %c0_i32, %c0_i32_0, %c0_i32_1 : i32, i32, i32
  }
  func.func @transform_8(%arg0: i32) -> (i32, i32, i32) {
    %c0_i32 = arith.constant 0 : i32
    %c0_i32_0 = arith.constant 0 : i32
    %c0_i32_1 = arith.constant 0 : i32
    %c0_i32_2 = arith.constant 0 : i32
    return %c0_i32, %c0_i32_0, %c0_i32_1 : i32, i32, i32
  }
  func.func @transform_9(%arg0: i32) -> (i32, i32) {
    %c0_i32 = arith.constant 0 : i32
    %c0_i32_0 = arith.constant 0 : i32
    %c0_i32_1 = arith.constant 0 : i32
    return %c0_i32, %c0_i32_0 : i32, i32
  }
  func.func @transform_10(%arg0: i32) -> (i32, i32) {
    %c0_i32 = arith.constant 0 : i32
    %c0_i32_0 = arith.constant 0 : i32
    %c0_i32_1 = arith.constant 0 : i32
    return %c0_i32, %c0_i32_0 : i32, i32
  }
  func.func @transform_11(%arg0: i32) -> (i32, i32, i32) {
    %c0_i32 = arith.constant 0 : i32
    %c0_i32_0 = arith.constant 0 : i32
    %c0_i32_1 = arith.constant 0 : i32
    %c0_i32_2 = arith.constant 0 : i32
    return %c0_i32, %c0_i32_0, %c0_i32_1 : i32, i32, i32
  }
  func.func @transform_12(%arg0: i32) -> (i32, i32, i32) {
    %c0_i32 = arith.constant 0 : i32
    %c0_i32_0 = arith.constant 0 : i32
    %c0_i32_1 = arith.constant 0 : i32
    %c0_i32_2 = arith.constant 0 : i32
    return %c0_i32, %c0_i32_0, %c0_i32_1 : i32, i32, i32
  }
  func.func @transform_13(%arg0: i32) -> (i32, i32) {
    %c0_i32 = arith.constant 0 : i32
    %c0_i32_0 = arith.constant 0 : i32
    %c0_i32_1 = arith.constant 0 : i32
    return %c0_i32, %c0_i32_0 : i32, i32
  }
  func.func @transform_14(%arg0: i32) -> (i32, i32) {
    %c0_i32 = arith.constant 0 : i32
    %c0_i32_0 = arith.constant 0 : i32
    %c0_i32_1 = arith.constant 0 : i32
    return %c0_i32, %c0_i32_0 : i32, i32
  }
  func.func @transform_15(%arg0: i32) -> (i32, i32, i32) {
    %c0_i32 = arith.constant 0 : i32
    %c0_i32_0 = arith.constant 0 : i32
    %c0_i32_1 = arith.constant 0 : i32
    %c0_i32_2 = arith.constant 0 : i32
    return %c0_i32, %c0_i32_0, %c0_i32_1 : i32, i32, i32
  }
  func.func @transform_16(%arg0: i32) -> (i32, i32, i32) {
    %c0_i32 = arith.constant 0 : i32
    %c0_i32_0 = arith.constant 0 : i32
    %c0_i32_1 = arith.constant 0 : i32
    %c0_i32_2 = arith.constant 0 : i32
    return %c0_i32, %c0_i32_0, %c0_i32_1 : i32, i32, i32
  }
  func.func @transform_17(%arg0: i32) -> (i32, i32) {
    %c0_i32 = arith.constant 0 : i32
    %c0_i32_0 = arith.constant 0 : i32
    %c0_i32_1 = arith.constant 0 : i32
    return %c0_i32, %c0_i32_0 : i32, i32
  }
  func.func @transform_18(%arg0: i32) -> (i32, i32) {
    %c0_i32 = arith.constant 0 : i32
    %c0_i32_0 = arith.constant 0 : i32
    %c0_i32_1 = arith.constant 0 : i32
    return %c0_i32, %c0_i32_0 : i32, i32
  }
  func.func @transform_19(%arg0: i32) -> (i32, i32, i32) {
    %c0_i32 = arith.constant 0 : i32
    %c0_i32_0 = arith.constant 0 : i32
    %c0_i32_1 = arith.constant 0 : i32
    %c0_i32_2 = arith.constant 0 : i32
    return %c0_i32, %c0_i32_0, %c0_i32_1 : i32, i32, i32
  }
  func.func @transform_20(%arg0: i32) -> (i32, i32, i32) {
    %c0_i32 = arith.constant 0 : i32
    %c0_i32_0 = arith.constant 0 : i32
    %c0_i32_1 = arith.constant 0 : i32
    %c0_i32_2 = arith.constant 0 : i32
    return %c0_i32, %c0_i32_0, %c0_i32_1 : i32, i32, i32
  }
  func.func @transform_21(%arg0: i32) -> (i32, i32) {
    %c0_i32 = arith.constant 0 : i32
    %c0_i32_0 = arith.constant 0 : i32
    %c0_i32_1 = arith.constant 0 : i32
    return %c0_i32, %c0_i32_0 : i32, i32
  }
  func.func @transform_22(%arg0: i32) -> (i32, i32) {
    %c0_i32 = arith.constant 0 : i32
    %c0_i32_0 = arith.constant 0 : i32
    %c0_i32_1 = arith.constant 0 : i32
    return %c0_i32, %c0_i32_0 : i32, i32
  }
  func.func @transform_23(%arg0: i32) -> (i32, i32) {
    %c0_i32 = arith.constant 0 : i32
    %c0_i32_0 = arith.constant 0 : i32
    %c0_i32_1 = arith.constant 0 : i32
    return %c0_i32, %c0_i32_0 : i32, i32
  }
  func.func @transform_24(%arg0: i32) -> (i32, i32) {
    %c0_i32 = arith.constant 0 : i32
    %c0_i32_0 = arith.constant 0 : i32
    %c0_i32_1 = arith.constant 0 : i32
    return %c0_i32, %c0_i32_0 : i32, i32
  }
  func.func @transform_25(%arg0: i32) -> (i32, i32) {
    %c0_i32 = arith.constant 0 : i32
    %c0_i32_0 = arith.constant 0 : i32
    %c0_i32_1 = arith.constant 0 : i32
    return %c0_i32, %c0_i32_0 : i32, i32
  }
  func.func @transform_26(%arg0: i32) -> (i32, i32, i32) {
    %c0_i32 = arith.constant 0 : i32
    %c0_i32_0 = arith.constant 0 : i32
    %c0_i32_1 = arith.constant 0 : i32
    %c0_i32_2 = arith.constant 0 : i32
    return %c0_i32, %c0_i32_0, %c0_i32_1 : i32, i32, i32
  }
  func.func @transform_27(%arg0: i32) -> (i32, i32, i32) {
    %c0_i32 = arith.constant 0 : i32
    %c0_i32_0 = arith.constant 0 : i32
    %c0_i32_1 = arith.constant 0 : i32
    %c0_i32_2 = arith.constant 0 : i32
    return %c0_i32, %c0_i32_0, %c0_i32_1 : i32, i32, i32
  }
  func.func @transform_28(%arg0: i32) -> (i32, i32, i32) {
    %c0_i32 = arith.constant 0 : i32
    %c0_i32_0 = arith.constant 0 : i32
    %c0_i32_1 = arith.constant 0 : i32
    %c0_i32_2 = arith.constant 0 : i32
    return %c0_i32, %c0_i32_0, %c0_i32_1 : i32, i32, i32
  }
  func.func @transform_29(%arg0: i32) -> (i32, i32) {
    %c0_i32 = arith.constant 0 : i32
    %c0_i32_0 = arith.constant 0 : i32
    %c0_i32_1 = arith.constant 0 : i32
    return %c0_i32, %c0_i32_0 : i32, i32
  }
  func.func @transform_30(%arg0: i32) -> (i32, i32) {
    %c0_i32 = arith.constant 0 : i32
    %c0_i32_0 = arith.constant 0 : i32
    %c0_i32_1 = arith.constant 0 : i32
    return %c0_i32, %c0_i32_0 : i32, i32
  }
  func.func @transform_31(%arg0: i32) -> (i32, i32) {
    %c0_i32 = arith.constant 0 : i32
    %c0_i32_0 = arith.constant 0 : i32
    %c0_i32_1 = arith.constant 0 : i32
    return %c0_i32, %c0_i32_0 : i32, i32
  }
  func.func @transform_32(%arg0: i32) -> (i32, i32) {
    %c0_i32 = arith.constant 0 : i32
    %c0_i32_0 = arith.constant 0 : i32
    %c0_i32_1 = arith.constant 0 : i32
    return %c0_i32, %c0_i32_0 : i32, i32
  }
  func.func @transform_33(%arg0: i32) -> (i32, i32, i32) {
    %c0_i32 = arith.constant 0 : i32
    %c0_i32_0 = arith.constant 0 : i32
    %c0_i32_1 = arith.constant 0 : i32
    %c0_i32_2 = arith.constant 0 : i32
    return %c0_i32, %c0_i32_0, %c0_i32_1 : i32, i32, i32
  }
  func.func @transform_34(%arg0: i32) -> (i32, i32, i32) {
    %c0_i32 = arith.constant 0 : i32
    %c0_i32_0 = arith.constant 0 : i32
    %c0_i32_1 = arith.constant 0 : i32
    %c0_i32_2 = arith.constant 0 : i32
    return %c0_i32, %c0_i32_0, %c0_i32_1 : i32, i32, i32
  }
  func.func @transform_35(%arg0: i32) -> (i32, i32, i32) {
    %c0_i32 = arith.constant 0 : i32
    %c0_i32_0 = arith.constant 0 : i32
    %c0_i32_1 = arith.constant 0 : i32
    %c0_i32_2 = arith.constant 0 : i32
    return %c0_i32, %c0_i32_0, %c0_i32_1 : i32, i32, i32
  }
  func.func @transform_36(%arg0: i32) -> (i32, i32) {
    %c0_i32 = arith.constant 0 : i32
    %c0_i32_0 = arith.constant 0 : i32
    %c0_i32_1 = arith.constant 0 : i32
    return %c0_i32, %c0_i32_0 : i32, i32
  }
  func.func @transform_37(%arg0: i32) -> (i32, i32) {
    %c0_i32 = arith.constant 0 : i32
    %c0_i32_0 = arith.constant 0 : i32
    %c0_i32_1 = arith.constant 0 : i32
    return %c0_i32, %c0_i32_0 : i32, i32
  }
  func.func @transform_38(%arg0: i32) -> (i32, i32) {
    %c0_i32 = arith.constant 0 : i32
    %c0_i32_0 = arith.constant 0 : i32
    %c0_i32_1 = arith.constant 0 : i32
    return %c0_i32, %c0_i32_0 : i32, i32
  }
  func.func @transform_39(%arg0: i32) -> (i32, i32) {
    %c0_i32 = arith.constant 0 : i32
    %c0_i32_0 = arith.constant 0 : i32
    %c0_i32_1 = arith.constant 0 : i32
    return %c0_i32, %c0_i32_0 : i32, i32
  }
  func.func @transform_40(%arg0: i32) -> (i32, i32, i32) {
    %c0_i32 = arith.constant 0 : i32
    %c0_i32_0 = arith.constant 0 : i32
    %c0_i32_1 = arith.constant 0 : i32
    %c0_i32_2 = arith.constant 0 : i32
    return %c0_i32, %c0_i32_0, %c0_i32_1 : i32, i32, i32
  }
  func.func @transform_41(%arg0: i32) -> (i32, i32, i32) {
    %c0_i32 = arith.constant 0 : i32
    %c0_i32_0 = arith.constant 0 : i32
    %c0_i32_1 = arith.constant 0 : i32
    %c0_i32_2 = arith.constant 0 : i32
    return %c0_i32, %c0_i32_0, %c0_i32_1 : i32, i32, i32
  }
  func.func @transform_42(%arg0: i32) -> (i32, i32, i32) {
    %c0_i32 = arith.constant 0 : i32
    %c0_i32_0 = arith.constant 0 : i32
    %c0_i32_1 = arith.constant 0 : i32
    %c0_i32_2 = arith.constant 0 : i32
    return %c0_i32, %c0_i32_0, %c0_i32_1 : i32, i32, i32
  }
  func.func @transform_43(%arg0: i32) -> (i32, i32) {
    %c0_i32 = arith.constant 0 : i32
    %c0_i32_0 = arith.constant 0 : i32
    %c0_i32_1 = arith.constant 0 : i32
    return %c0_i32, %c0_i32_0 : i32, i32
  }
  func.func @transform_44(%arg0: i32) -> (i32, i32) {
    %c0_i32 = arith.constant 0 : i32
    %c0_i32_0 = arith.constant 0 : i32
    %c0_i32_1 = arith.constant 0 : i32
    return %c0_i32, %c0_i32_0 : i32, i32
  }
  func.func @transform_45(%arg0: i32) -> (i32, i32) {
    %c0_i32 = arith.constant 0 : i32
    %c0_i32_0 = arith.constant 0 : i32
    %c0_i32_1 = arith.constant 0 : i32
    return %c0_i32, %c0_i32_0 : i32, i32
  }
  func.func @transform_46(%arg0: i32) -> (i32, i32) {
    %c0_i32 = arith.constant 0 : i32
    %c0_i32_0 = arith.constant 0 : i32
    %c0_i32_1 = arith.constant 0 : i32
    return %c0_i32, %c0_i32_0 : i32, i32
  }
  func.func @transform_47(%arg0: i32) -> (i32, i32, i32) {
    %c0_i32 = arith.constant 0 : i32
    %c0_i32_0 = arith.constant 0 : i32
    %c0_i32_1 = arith.constant 0 : i32
    %c0_i32_2 = arith.constant 0 : i32
    return %c0_i32, %c0_i32_0, %c0_i32_1 : i32, i32, i32
  }
  func.func @transform_48(%arg0: i32) -> (i32, i32, i32) {
    %c0_i32 = arith.constant 0 : i32
    %c0_i32_0 = arith.constant 0 : i32
    %c0_i32_1 = arith.constant 0 : i32
    %c0_i32_2 = arith.constant 0 : i32
    return %c0_i32, %c0_i32_0, %c0_i32_1 : i32, i32, i32
  }
  func.func @transform_49(%arg0: i32) -> (i32, i32, i32) {
    %c0_i32 = arith.constant 0 : i32
    %c0_i32_0 = arith.constant 0 : i32
    %c0_i32_1 = arith.constant 0 : i32
    %c0_i32_2 = arith.constant 0 : i32
    return %c0_i32, %c0_i32_0, %c0_i32_1 : i32, i32, i32
  }
  func.func @transform_50(%arg0: i32) -> (i32, i32) {
    %c0_i32 = arith.constant 0 : i32
    %c0_i32_0 = arith.constant 0 : i32
    %c0_i32_1 = arith.constant 0 : i32
    return %c0_i32, %c0_i32_0 : i32, i32
  }
  func.func @transform_51(%arg0: i32) -> (i32, i32, i32) {
    %c0_i32 = arith.constant 0 : i32
    %c0_i32_0 = arith.constant 0 : i32
    %c0_i32_1 = arith.constant 0 : i32
    return %arg0, %c0_i32, %c0_i32_0 : i32, i32, i32
  }
}

</mosaic_0001>

<bundles_post_ra>
// kernel: unet_forward.1
= control target key start
LH: loop header
LB: loop body
LE: loop exit
PB: predicated region body
PF: predicated region fallthrough
CT: control target
= control target key end

     0   :  { %s17539_s6 = smov 1   ;;  %s17540_s10 = smov 2   ;;  %s19875_s0 = inlined_call_operand.smem [shape: u32[52], index: -1, kind: input, shape index: {}] }
   0x1   :  { %s17639_s5 = sld [smem:[%s19875_s0]]   ;;  %s17541_s14 = smov 3  }
   0x2   :  { %s17644_s9 = sld [smem:[%s19875_s0 + %s17539_s6]]   ;;  %s17542_s18 = smov 4  }
   0x3   :  { %s17649_s13 = sld [smem:[%s19875_s0 + %s17540_s10]]   ;;  %s17543_s22 = smov 5  }
   0x4   :  { %s17654_s17 = sld [smem:[%s19875_s0 + %s17541_s14]]   ;;  %s17544_s26 = smov 6  }
   0x5   :  { %s17659_s21 = sld [smem:[%s19875_s0 + %s17542_s18]]   ;;  %s17545_s30 = smov 7  }
   0x6   :  { %s17664_s25 = sld [smem:[%s19875_s0 + %s17543_s22]]   ;;  %s17546_s4 = smov 8  }
   0x7   :  { %19930 = sst [smem:[#allocation68_spill]] %s17639_s5  ;;  %s17547_s10 = smov 9  }
   0x8   :  { %19931 = sst [smem:[#allocation69_spill]] %s17644_s9  ;;  %s17548_s15 = smov 10  }
   0x9   :  { %19932 = sst [smem:[#allocation70_spill]] %s17649_s13  ;;  %s17549_s20 = smov 11  }
   0xa   :  { %s17669_s29 = sld [smem:[%s19875_s0 + %s17544_s26]]   ;;  %s17550_s26 = smov 12  }
   0xb   :  { %19933 = sst [smem:[#allocation71_spill]] %s17659_s21  ;;  %s17551_s1 = smov 13  }
   0xc   :  { %19934 = sst [smem:[#allocation72_spill]] %s17664_s25  ;;  %s17552_s7 = smov 14  }
   0xd   :  { %s17674_s3 = sld [smem:[%s19875_s0 + %s17545_s30]]   ;;  %s17554_s22 = smov 16  }
   0xe   :  { %s17679_s8 = sld [smem:[%s19875_s0 + %s17546_s4]]   ;;  %s17555_s28 = smov 17  }
   0xf   :  { %s17684_s14 = sld [smem:[%s19875_s0 + %s17547_s10]]  }
  0x10   :  { %s17689_s19 = sld [smem:[%s19875_s0 + %s17548_s15]]   ;;  %s17553_s15 = smov 15  }
  0x11   :  { %s17694_s24 = sld [smem:[%s19875_s0 + %s17549_s20]]  }
  0x12   :  { %s17699_s30 = sld [smem:[%s19875_s0 + %s17550_s26]]  }
  0x13   :  { %19935 = sst [smem:[#allocation73_spill]] %s17674_s3 }
  0x14   :  { %19936 = sst [smem:[#allocation74_spill]] %s17679_s8 }
  0x15   :  { %19937 = sst [smem:[#allocation75_spill]] %s17684_s14 }
  0x16   :  { %19938 = sst [smem:[#allocation76_spill]] %s17689_s19 }
  0x17   :  { %s17704_s6 = sld [smem:[%s19875_s0 + %s17551_s1]]  }
  0x18   :  { %19939 = sst [smem:[#allocation77_spill]] %s17699_s30 }
  0x19   :  { %s17709_s12 = sld [smem:[%s19875_s0 + %s17552_s7]]   ;;  %s17556_s7 = smov 18  }
  0x1a   :  { %s17714_s20 = sld [smem:[%s19875_s0 + %s17553_s15]]   ;;  %s17557_s15 = smov 19  }
  0x1b   :  { %s17719_s27 = sld [smem:[%s19875_s0 + %s17554_s22]]   ;;  %s17558_s22 = smov 20  }
  0x1c   :  { %s17724_s4 = sld [smem:[%s19875_s0 + %s17555_s28]]   ;;  %s17559_s28 = smov 21  }
  0x1d   :  { %19940 = sst [smem:[#allocation78_spill]] %s17704_s6 }
  0x1e   :  { %s17729_s30 = sld [smem:[%s19875_s0 + %s17556_s7]]   ;;  %s17560_s7 = smov 22  }
  0x1f   :  { %19941 = sst [smem:[#allocation79_spill]] %s17709_s12 }
  0x20   :  { %19942 = sst [smem:[#allocation80_spill]] %s17714_s20 }
  0x21   :  { %s17734_s8 = sld [smem:[%s19875_s0 + %s17557_s15]]   ;;  %s17561_s15 = smov 23  }
  0x22   :  { %19943 = sst [smem:[#allocation81_spill]] %s17724_s4 }
  0x23   :  { %s17739_s9 = sld [smem:[%s19875_s0 + %s17558_s22]]   ;;  %s17562_s22 = smov 24  }
  0x24   :  { %s17744_s21 = sld [smem:[%s19875_s0 + %s17559_s28]]   ;;  %s17563_s28 = smov 25  }
  0x25   :  { %s17749_s5 = sld [smem:[%s19875_s0 + %s17560_s7]]   ;;  %s17564_s7 = smov 26  }
  0x26   :  { %s17764_s4 = sld [smem:[%s19875_s0 + %s17563_s28]]   ;;  %s17567_s28 = smov 29  }
  0x27   :  { %19944 = sst [smem:[#allocation82_spill]] %s17734_s8 }
  0x28   :  { %s17754_s8 = sld [smem:[%s19875_s0 + %s17561_s15]]   ;;  %s17565_s15 = smov 27  }
  0x29   :  { %19945 = sst [smem:[#allocation83_spill]] %s17739_s9 }
  0x2a   :  { %s17759_s9 = sld [smem:[%s19875_s0 + %s17562_s22]]   ;;  %s17566_s22 = smov 28  }
  0x2b   :  { %19946 = sst [smem:[#allocation84_spill]] %s17749_s5 }
  0x2c   :  { %19949 = sst [smem:[#allocation87_spill]] %s17764_s4 }
  0x2d   :  { %s17769_s5 = sld [smem:[%s19875_s0 + %s17564_s7]]   ;;  %s17568_s7 = smov 30  }
  0x2e   :  { %19947 = sst [smem:[#allocation85_spill]] %s17754_s8 }
  0x2f   :  { %s17774_s8 = sld [smem:[%s19875_s0 + %s17565_s15]]   ;;  %s17569_s15 = smov 31  }
  0x30   :  { %19948 = sst [smem:[#allocation86_spill]] %s17759_s9 }
  0x31   :  { %s17779_s20 = sld [smem:[%s19875_s0 + %s17566_s22]]   ;;  %s17570_s22 = smov 32  }
  0x32   :  { %s17784_s4 = sld [smem:[%s19875_s0 + %s17567_s28]]   ;;  %s17571_s28 = smov 33  }
  0x33   :  { %19950 = sst [smem:[#allocation88_spill]] %s17769_s5 }
  0x34   :  { %s17789_s5 = sld [smem:[%s19875_s0 + %s17568_s7]]   ;;  %s17572_s7 = smov 34  }
  0x35   :  { %19951 = sst [smem:[#allocation89_spill]] %s17774_s8 }
  0x36   :  { %s17794_s8 = sld [smem:[%s19875_s0 + %s17569_s15]]   ;;  %s17573_s15 = smov 35  }
  0x37   :  { %s17799_s6 = sld [smem:[%s19875_s0 + %s17570_s22]]   ;;  %s17574_s22 = smov 36  }
  0x38   :  { %19952 = sst [smem:[#allocation90_spill]] %s17784_s4 }
  0x39   :  { %s17804_s4 = sld [smem:[%s19875_s0 + %s17571_s28]]   ;;  %s17575_s28 = smov 37  }
  0x3a   :  { %19953 = sst [smem:[#allocation91_spill]] %s17789_s5 }
  0x3b   :  { %s17809_s19 = sld [smem:[%s19875_s0 + %s17572_s7]]   ;;  %s17576_s7 = smov 38  }
  0x3c   :  { %19954 = sst [smem:[#allocation92_spill]] %s17794_s8 }
  0x3d   :  { %19955 = sst [smem:[#allocation93_spill]] %s17799_s6 }
  0x3e   :  { %s17814_s8 = sld [smem:[%s19875_s0 + %s17573_s15]]   ;;  %s17577_s15 = smov 39  }
  0x3f   :  { %19956 = sst [smem:[#allocation94_spill]] %s17804_s4 }
  0x40   :  { %s17819_s3 = sld [smem:[%s19875_s0 + %s17574_s22]]   ;;  %s17578_s22 = smov 40  }
  0x41   :  { %19957 = sst [smem:[#allocation95_spill]] %s17809_s19 }
  0x42   :  { %s17824_s4 = sld [smem:[%s19875_s0 + %s17575_s28]]   ;;  %s17579_s28 = smov 41  }
  0x43   :  { %s17829_s19 = sld [smem:[%s19875_s0 + %s17576_s7]]   ;;  %s17580_s7 = smov 42  }
  0x44   :  { %19958 = sst [smem:[#allocation96_spill]] %s17814_s8 }
  0x45   :  { %s17834_s8 = sld [smem:[%s19875_s0 + %s17577_s15]]   ;;  %s17581_s15 = smov 43  }
  0x46   :  { %19959 = sst [smem:[#allocation97_spill]] %s17819_s3 }
  0x47   :  { %s17839_s3 = sld [smem:[%s19875_s0 + %s17578_s22]]   ;;  %s17582_s22 = smov 44  }
  0x48   :  { %19960 = sst [smem:[#allocation98_spill]] %s17824_s4 }
  0x49   :  { %19961 = sst [smem:[#allocation99_spill]] %s17829_s19 }
  0x4a   :  { %s17844_s4 = sld [smem:[%s19875_s0 + %s17579_s28]]   ;;  %s17583_s28 = smov 45  }
  0x4b   :  { %19962 = sst [smem:[#allocation100_spill]] %s17834_s8 }
  0x4c   :  { %s17849_s19 = sld [smem:[%s19875_s0 + %s17580_s7]]   ;;  %s17584_s7 = smov 46  }
  0x4d   :  { %19963 = sst [smem:[#allocation101_spill]] %s17839_s3 }
  0x4e   :  { %s17854_s25 = sld [smem:[%s19875_s0 + %s17581_s15]]   ;;  %s17585_s15 = smov 47  }
  0x4f   :  { %s17859_s3 = sld [smem:[%s19875_s0 + %s17582_s22]]   ;;  %s17586_s22 = smov 48  }
  0x50   :  { %19964 = sst [smem:[#allocation102_spill]] %s17844_s4 }
  0x51   :  { %s17864_s4 = sld [smem:[%s19875_s0 + %s17583_s28]]   ;;  %s17587_s28 = smov 49  }
  0x52   :  { %s17869_s13 = sld [smem:[%s19875_s0 + %s17584_s7]]   ;;  %s17588_s7 = smov 50  }
  0x54   :  { %19965 = sst [smem:[#allocation103_spill]] %s17854_s25 }
  0x55   :  { %19966 = sst [smem:[#allocation104_spill]] %s17859_s3 }
  0x56   :  { %s17874_s25 = sld [smem:[%s19875_s0 + %s17585_s15]]   ;;  %s17589_s15 = smov 51  }
  0x57   :  { %19967 = sst [smem:[#allocation105_spill]] %s17864_s4 }
  0x58   :  { %19968 = sst [smem:[#allocation106_spill]] %s17869_s13 }
  0x59   :  { %s17879_s3 = sld [smem:[%s19875_s0 + %s17586_s22]]  }
  0x5a   :  { %s17884_s4 = sld [smem:[%s19875_s0 + %s17587_s28]]  }
  0x5b   :  { %s17889_s13 = sld [smem:[%s19875_s0 + %s17588_s7]]  }
  0x5c   :  { %19969 = sst [smem:[#allocation107_spill]] %s17874_s25 }
  0x5d   :  { %s17894_s25 = sld [smem:[%s19875_s0 + %s17589_s15]]  }
  0x5f   :  { %19970 = sst [smem:[#allocation108_spill]] %s17879_s3 }
  0x60   :  { %108 = vsyncpa [#allocation3], 0 }
  0x61   :  { %109 = vsyncpa [#allocation5], 0 }
  0x62   :  { %110 = vsyncpa [#allocation8], 0 }
  0x63   :  { %111 = vsyncpa [#allocation11], 0 }
  0x64   :  { %112 = vsyncpa [#allocation14], 0 }
  0x65   :  { %113 = vsyncpa [#allocation17], 0 }
  0x66   :  { %114 = vsyncpa [#allocation20], 0 }
  0x67   :  { %115 = vsyncpa [#allocation23], 0 }
  0x68   :  { %116 = vsyncpa [#allocation26], 0 }
  0x69   :  { %117 = vsyncpa [#allocation29], 0 }
  0x6a   :  { %118 = vsyncpa [#allocation32], 0 }
  0x6b   :  { %119 = vsyncpa [#allocation35], 0 }
  0x6c   :  { %120 = vsyncpa [#allocation38], 0 }
  0x6d   :  { %121 = vsyncpa [#allocation41], 0 }
  0x6e   :  { %122 = vsyncpa [#allocation44], 0 }
  0x6f   :  { %123 = vsyncpa [#allocation47], 0 }
  0x70   :  { %124 = vsyncpa [#allocation50], 0  ;;  %s17896_s22 = smov 0  }
  0x71 LB: > { %s19971_s3 = sld [smem:[#allocation108_spill]]  ;;  %s19972_s14 = sld [smem:[#allocation75_spill]]  ;;  %s17537_s22 = sphi %s17896_s22, %s130_s22  }
  0x72   : > { %s19973_s12 = sld [smem:[#allocation79_spill]]  ;;  %s19974_s9 = sld [smem:[#allocation86_spill]] }
  0x73   : > { %s19975_s8 = sld [smem:[#allocation100_spill]]  ;;  %s19976_s6 = sld [smem:[#allocation93_spill]] }
  0x74   : > { %s19977_s5 = sld [smem:[#allocation91_spill]]  ;;  %s17902_s0 = sadd.s32 4294967295, %s17537_s22  }
  0x75   : > { %p12260_p0 = scmp.ge.s32.totalorder %s17537_s22, 1  ;;  %p1237_p1 = scmp.lt.s32.totalorder %s17537_s22, 3 }
  0x77   : > { %p17906_p2 = pnand %p12260_p0, %p1237_p1 }
  0x78   : > { %p16003_p3 = scmp.eq.s32.totalorder (!%p17906_p2), %s17902_s0, 0  ;;  %s17590_s26 = smov (!%p17906_p2), [#allocation4]  }
  0x79   : > { %1241 = sbr.rel (%p17906_p2) target bundleno = 890 (0x37a), region = 12  ;;  %s1263_s28 = sshll.u32 (!%p17906_p2), %s17590_s26, 4  ;;  %s1264_s28 = int_to_ptr.vmem [resolvable:$true] %s1263_s28 }
  0x7a   : > { %s16631_s1 = scalar_lea.hbm (!%p17906_p2), %s17654_s17, 1536 }
  0x7b   : > { %p16632_p4 = scmp.ne.s32.totalorder (!%p17906_p2), %s17654_s17, %s16631_s1  ;;  %p16637_p7 = scmp.lt.u32.totalorder (!%p17906_p2), %s16631_s1, %s17654_s17 }
  0x7d   : > { %p16633_p5 = pnand (!%p17906_p2), %p16632_p4, %p16003_p3 }
  0x7f   : > { %p16634_p6 = pneg (!%p17906_p2), %p16633_p5 }
  0x81   : > { %p16639_p8 = pnand %p16637_p7, %p16634_p6 }
  0x83   : > { %16642 = shalt.err (!%p16639_p8)
}
  0x84   : > { %s16643_s2 = scalar_lea.vmem %s1264_s28, 1536  ;;  %p16650_p12 = scmp.lt.s32.totalorder %s1264_s28, %s1264_s28 }
  0x85   : > { %p16644_p9 = scmp.ne.s32.totalorder %s1264_s28, %s16643_s2  ;;  %p16651_p13 = scmp.lt.s32.totalorder %s16643_s2, %s16643_s2 }
  0x87   : > { %p16645_p10 = pnand %p16644_p9, %p16003_p3  ;;  %p16652_p0 = por %p16651_p13, %p16650_p12 }
  0x89   : > { %p16646_p11 = pneg %p16645_p10 }
  0x8b   : > { %p16653_p1 = pnand %p16652_p0, %p16646_p11 }
  0x8d   : > { %16656 = shalt.err (!%p16653_p1)
}
  0x8e   : > { %s19903_s7 = smov 64   ;;  %s19905_s10 = smov 4  }
  0x8f   : > { %15878 = dma.hbm_to_vmem [thread:$0]  (%p16003_p3), %s17654_s17, 1536, %s1264_s28, [#allocation5], %s19903_s7, %s19903_s7, %s19905_s10  }
  0x90   : > { %s17593_s11 = smov [#allocation7]   ;;  %s17594_s16 = smov [#allocation10]  }
  0x91   : > { %s1291_s15 = sshll.u32 %s17593_s11, 4  ;;  %s1318_s18 = sshll.u32 %s17594_s16, 4  ;;  %s1292_s15 = int_to_ptr.vmem [resolvable:$true] %s1291_s15  ;;  %s17926_s18 = int_to_ptr.vmem [resolvable:$true] %s1318_s18 }
  0x92   : > { %s16657_s26 = scalar_lea.hbm %s17669_s29, 16 }
  0x93   : > { %p16658_p4 = scmp.ne.s32.totalorder %s17669_s29, %s16657_s26  ;;  %p16663_p7 = scmp.lt.u32.totalorder %s16657_s26, %s17669_s29 }
  0x95   : > { %p16659_p5 = pnand %p16658_p4, %p16003_p3 }
  0x97   : > { %p16660_p6 = pneg %p16659_p5 }
  0x99   : > { %p16665_p8 = pnand %p16663_p7, %p16660_p6 }
  0x9b   : > { %16668 = shalt.err (!%p16665_p8)
}
  0x9c   : > { %s16669_s1 = scalar_lea.vmem %s1292_s15, 16  ;;  %s16675_s28 = scalar_lea.vmem %s1292_s15, 32 }
  0x9d   : > { %p16670_p9 = scmp.ne.s32.totalorder %s1292_s15, %s16669_s1  ;;  %p16676_p12 = scmp.lt.s32.totalorder %s1292_s15, %s1292_s15 }
  0x9e   : > { %p16677_p13 = scmp.lt.s32.totalorder %s16675_s28, %s16669_s1 }
  0x9f   : > { %p16671_p10 = pnand %p16670_p9, %p16003_p3 }
  0xa0   : > { %p16678_p0 = por %p16677_p13, %p16676_p12 }
  0xa1   : > { %p16672_p11 = pneg %p16671_p10 }
  0xa3   : > { %p16679_p1 = pnand %p16678_p0, %p16672_p11 }
  0xa5   : > { %16682 = shalt.err (!%p16679_p1)
}
  0xa6   : > { %15882 = dma.hbm_to_vmem [thread:$0]  (%p16003_p3), %s17669_s29, 16, %s1292_s15, [#allocation8]  }
  0xa7   : > { %s16683_s2 = scalar_lea.hbm %s19972_s14, 16 }
  0xa8   : > { %p16684_p4 = scmp.ne.s32.totalorder %s19972_s14, %s16683_s2  ;;  %p16689_p7 = scmp.lt.u32.totalorder %s16683_s2, %s19972_s14 }
  0xaa   : > { %p16685_p5 = pnand %p16684_p4, %p16003_p3 }
  0xac   : > { %p16686_p6 = pneg %p16685_p5 }
  0xae   : > { %p16691_p8 = pnand %p16689_p7, %p16686_p6 }
  0xb0   : > { %16694 = shalt.err (!%p16691_p8)
}
  0xb1   : > { %s16695_s11 = scalar_lea.vmem %s17926_s18, 16  ;;  %s16701_s16 = scalar_lea.vmem %s17926_s18, 32 }
  0xb2   : > { %p16696_p9 = scmp.ne.s32.totalorder %s17926_s18, %s16695_s11  ;;  %p16702_p12 = scmp.lt.s32.totalorder %s17926_s18, %s17926_s18 }
  0xb3   : > { %p16703_p13 = scmp.lt.s32.totalorder %s16701_s16, %s16695_s11 }
  0xb4   : > { %p16697_p10 = pnand %p16696_p9, %p16003_p3 }
  0xb5   : > { %p16704_p0 = por %p16703_p13, %p16702_p12 }
  0xb6   : > { %p16698_p11 = pneg %p16697_p10 }
  0xb8   : > { %p16705_p1 = pnand %p16704_p0, %p16698_p11 }
  0xba   : > { %16708 = shalt.err (!%p16705_p1)
}
  0xbb   : > { %15886 = dma.hbm_to_vmem [thread:$0]  (%p16003_p3), %s19972_s14, 16, %s17926_s18, [#allocation11]  }
  0xbc   : > { %s17595_s15 = smov [#allocation13]   ;;  %s17596_s1 = smov [#allocation16]  }
  0xbd   : > { %s1339_s26 = sshll.u32 %s17595_s15, 4  ;;  %s1367_s28 = sshll.u32 %s17596_s1, 4  ;;  %s1340_s26 = int_to_ptr.vmem [resolvable:$true] %s1339_s26  ;;  %s17954_s28 = int_to_ptr.vmem [resolvable:$true] %s1367_s28 }
  0xbe   : > { %s16709_s2 = scalar_lea.hbm %s17694_s24, 1536 }
  0xbf   : > { %p16710_p4 = scmp.ne.s32.totalorder %s17694_s24, %s16709_s2  ;;  %p16715_p7 = scmp.lt.u32.totalorder %s16709_s2, %s17694_s24 }
  0xc1   : > { %p16711_p5 = pnand %p16710_p4, %p16003_p3 }
  0xc3   : > { %p16712_p6 = pneg %p16711_p5 }
  0xc5   : > { %p16717_p8 = pnand %p16715_p7, %p16712_p6 }
  0xc7   : > { %16720 = shalt.err (!%p16717_p8)
}
  0xc8   : > { %s16721_s11 = scalar_lea.vmem %s1340_s26, 1536  ;;  %p16728_p12 = scmp.lt.s32.totalorder %s1340_s26, %s1340_s26 }
  0xc9   : > { %p16722_p9 = scmp.ne.s32.totalorder %s1340_s26, %s16721_s11  ;;  %p16729_p13 = scmp.lt.s32.totalorder %s16721_s11, %s16721_s11 }
  0xcb   : > { %p16723_p10 = pnand %p16722_p9, %p16003_p3  ;;  %p16730_p0 = por %p16729_p13, %p16728_p12 }
  0xcd   : > { %p16724_p11 = pneg %p16723_p10 }
  0xcf   : > { %p16731_p1 = pnand %p16730_p0, %p16724_p11 }
  0xd1   : > { %16734 = shalt.err (!%p16731_p1)
}
  0xd2   : > { %15890 = dma.hbm_to_vmem [thread:$0]  (%p16003_p3), %s17694_s24, 1536, %s1340_s26, [#allocation14], %s19903_s7, %s19903_s7, %s19905_s10  }
  0xd3   : > { %s16735_s18 = scalar_lea.hbm %s19973_s12, 16 }
  0xd4   : > { %p16736_p4 = scmp.ne.s32.totalorder %s19973_s12, %s16735_s18  ;;  %p16741_p7 = scmp.lt.u32.totalorder %s16735_s18, %s19973_s12 }
  0xd6   : > { %p16737_p5 = pnand %p16736_p4, %p16003_p3 }
  0xd8   : > { %p16738_p6 = pneg %p16737_p5 }
  0xda   : > { %p16743_p8 = pnand %p16741_p7, %p16738_p6 }
  0xdc   : > { %16746 = shalt.err (!%p16743_p8)
}
  0xdd   : > { %s16747_s16 = scalar_lea.vmem %s17954_s28, 16  ;;  %s16753_s15 = scalar_lea.vmem %s17954_s28, 32 }
  0xde   : > { %p16748_p9 = scmp.ne.s32.totalorder %s17954_s28, %s16747_s16  ;;  %p16754_p12 = scmp.lt.s32.totalorder %s17954_s28, %s17954_s28 }
  0xdf   : > { %p16755_p13 = scmp.lt.s32.totalorder %s16753_s15, %s16747_s16 }
  0xe0   : > { %p16749_p10 = pnand %p16748_p9, %p16003_p3 }
  0xe1   : > { %p16756_p0 = por %p16755_p13, %p16754_p12 }
  0xe2   : > { %p16750_p11 = pneg %p16749_p10 }
  0xe4   : > { %p16757_p1 = pnand %p16756_p0, %p16750_p11 }
  0xe6   : > { %16760 = shalt.err (!%p16757_p1)
}
  0xe7   : > { %15894 = dma.hbm_to_vmem [thread:$0]  (%p16003_p3), %s19973_s12, 16, %s17954_s28, [#allocation17]  }
  0xe8   : > { %s17597_s26 = smov [#allocation19]   ;;  %s17598_s2 = smov [#allocation22]  }
  0xe9   : > { %s1390_s1 = sshll.u32 %s17597_s26, 4  ;;  %s1415_s11 = sshll.u32 %s17598_s2, 4  ;;  %s1391_s1 = int_to_ptr.vmem [resolvable:$true] %s1390_s1  ;;  %s17985_s11 = int_to_ptr.vmem [resolvable:$true] %s1415_s11 }
  0xea   : > { %s16761_s18 = scalar_lea.hbm %s17719_s27, 1536 }
  0xeb   : > { %p16762_p4 = scmp.ne.s32.totalorder %s17719_s27, %s16761_s18  ;;  %p16767_p7 = scmp.lt.u32.totalorder %s16761_s18, %s17719_s27 }
  0xed   : > { %p16763_p5 = pnand %p16762_p4, %p16003_p3 }
  0xef   : > { %p16764_p6 = pneg %p16763_p5 }
  0xf1   : > { %p16769_p8 = pnand %p16767_p7, %p16764_p6 }
  0xf3   : > { %16772 = shalt.err (!%p16769_p8)
}
  0xf4   : > { %s16773_s16 = scalar_lea.vmem %s1391_s1, 1536  ;;  %p16780_p12 = scmp.lt.s32.totalorder %s1391_s1, %s1391_s1 }
  0xf5   : > { %p16774_p9 = scmp.ne.s32.totalorder %s1391_s1, %s16773_s16  ;;  %p16781_p13 = scmp.lt.s32.totalorder %s16773_s16, %s16773_s16 }
  0xf7   : > { %p16775_p10 = pnand %p16774_p9, %p16003_p3  ;;  %p16782_p0 = por %p16781_p13, %p16780_p12 }
  0xf9   : > { %p16776_p11 = pneg %p16775_p10 }
  0xfb   : > { %p16783_p1 = pnand %p16782_p0, %p16776_p11 }
  0xfd   : > { %16786 = shalt.err (!%p16783_p1)
}
  0xfe   : > { %15898 = dma.hbm_to_vmem [thread:$0]  (%p16003_p3), %s17719_s27, 1536, %s1391_s1, [#allocation20], %s19903_s7, %s19903_s7, %s19905_s10  }
  0xff   : > { %s16787_s28 = scalar_lea.hbm %s17729_s30, 16 }
 0x100   : > { %p16788_p4 = scmp.ne.s32.totalorder %s17729_s30, %s16787_s28  ;;  %p16793_p7 = scmp.lt.u32.totalorder %s16787_s28, %s17729_s30 }
 0x102   : > { %p16789_p5 = pnand %p16788_p4, %p16003_p3 }
 0x104   : > { %p16790_p6 = pneg %p16789_p5 }
 0x106   : > { %p16795_p8 = pnand %p16793_p7, %p16790_p6 }
 0x108   : > { %16798 = shalt.err (!%p16795_p8)
}
 0x109   : > { %s16799_s15 = scalar_lea.vmem %s17985_s11, 16  ;;  %s16805_s26 = scalar_lea.vmem %s17985_s11, 32 }
 0x10a   : > { %p16800_p9 = scmp.ne.s32.totalorder %s17985_s11, %s16799_s15  ;;  %p16806_p12 = scmp.lt.s32.totalorder %s17985_s11, %s17985_s11 }
 0x10b   : > { %p16807_p13 = scmp.lt.s32.totalorder %s16805_s26, %s16799_s15 }
 0x10c   : > { %p16801_p10 = pnand %p16800_p9, %p16003_p3 }
 0x10d   : > { %p16808_p0 = por %p16807_p13, %p16806_p12 }
 0x10e   : > { %p16802_p11 = pneg %p16801_p10 }
 0x110   : > { %p16809_p1 = pnand %p16808_p0, %p16802_p11 }
 0x112   : > { %16812 = shalt.err (!%p16809_p1)
}
 0x113   : > { %15902 = dma.hbm_to_vmem [thread:$0]  (%p16003_p3), %s17729_s30, 16, %s17985_s11, [#allocation23]  }
 0x114   : > { %s17599_s1 = smov [#allocation25]   ;;  %s17600_s18 = smov [#allocation28]  }
 0x115   : > { %s1442_s2 = sshll.u32 %s17599_s1, 4  ;;  %s1467_s16 = sshll.u32 %s17600_s18, 4  ;;  %s1443_s2 = int_to_ptr.vmem [resolvable:$true] %s1442_s2  ;;  %s18016_s16 = int_to_ptr.vmem [resolvable:$true] %s1467_s16 }
 0x116   : > { %s16813_s28 = scalar_lea.hbm %s17744_s21, 16 }
 0x117   : > { %p16814_p4 = scmp.ne.s32.totalorder %s17744_s21, %s16813_s28  ;;  %p16819_p7 = scmp.lt.u32.totalorder %s16813_s28, %s17744_s21 }
 0x119   : > { %p16815_p5 = pnand %p16814_p4, %p16003_p3 }
 0x11b   : > { %p16816_p6 = pneg %p16815_p5 }
 0x11d   : > { %p16821_p8 = pnand %p16819_p7, %p16816_p6 }
 0x11f   : > { %16824 = shalt.err (!%p16821_p8)
}
 0x120   : > { %s16825_s15 = scalar_lea.vmem %s1443_s2, 16  ;;  %s16831_s11 = scalar_lea.vmem %s1443_s2, 32 }
 0x121   : > { %p16826_p9 = scmp.ne.s32.totalorder %s1443_s2, %s16825_s15  ;;  %p16832_p12 = scmp.lt.s32.totalorder %s1443_s2, %s1443_s2 }
 0x122   : > { %p16833_p13 = scmp.lt.s32.totalorder %s16831_s11, %s16825_s15 }
 0x123   : > { %p16827_p10 = pnand %p16826_p9, %p16003_p3 }
 0x124   : > { %p16834_p0 = por %p16833_p13, %p16832_p12 }
 0x125   : > { %p16828_p11 = pneg %p16827_p10 }
 0x127   : > { %p16835_p1 = pnand %p16834_p0, %p16828_p11 }
 0x129   : > { %16838 = shalt.err (!%p16835_p1)
}
 0x12a   : > { %15906 = dma.hbm_to_vmem [thread:$0]  (%p16003_p3), %s17744_s21, 16, %s1443_s2, [#allocation26]  }
 0x12b   : > { %s16839_s26 = scalar_lea.hbm %s19974_s9, 16 }
 0x12c   : > { %p16840_p4 = scmp.ne.s32.totalorder %s19974_s9, %s16839_s26  ;;  %p16845_p7 = scmp.lt.u32.totalorder %s16839_s26, %s19974_s9 }
 0x12e   : > { %p16841_p5 = pnand %p16840_p4, %p16003_p3 }
 0x130   : > { %p16842_p6 = pneg %p16841_p5 }
 0x132   : > { %p16847_p8 = pnand %p16845_p7, %p16842_p6 }
 0x134   : > { %16850 = shalt.err (!%p16847_p8)
}
 0x135   : > { %s16851_s1 = scalar_lea.vmem %s18016_s16, 16  ;;  %s16857_s18 = scalar_lea.vmem %s18016_s16, 32 }
 0x136   : > { %p16852_p9 = scmp.ne.s32.totalorder %s18016_s16, %s16851_s1  ;;  %p16858_p12 = scmp.lt.s32.totalorder %s18016_s16, %s18016_s16 }
 0x137   : > { %p16859_p13 = scmp.lt.s32.totalorder %s16857_s18, %s16851_s1 }
 0x138   : > { %p16853_p10 = pnand %p16852_p9, %p16003_p3 }
 0x139   : > { %p16860_p0 = por %p16859_p13, %p16858_p12 }
 0x13a   : > { %p16854_p11 = pneg %p16853_p10 }
 0x13c   : > { %p16861_p1 = pnand %p16860_p0, %p16854_p11 }
 0x13e   : > { %16864 = shalt.err (!%p16861_p1)
}
 0x13f   : > { %15910 = dma.hbm_to_vmem [thread:$0]  (%p16003_p3), %s19974_s9, 16, %s18016_s16, [#allocation29]  }
 0x140   : > { %s17601_s2 = smov [#allocation31]   ;;  %s17602_s15 = smov [#allocation34]  }
 0x141   : > { %s1496_s28 = sshll.u32 %s17601_s2, 4  ;;  %s1521_s11 = sshll.u32 %s17602_s15, 4  ;;  %s1497_s28 = int_to_ptr.vmem [resolvable:$true] %s1496_s28  ;;  %s18044_s11 = int_to_ptr.vmem [resolvable:$true] %s1521_s11 }
 0x142   : > { %s16865_s26 = scalar_lea.hbm %s17779_s20, 3072 }
 0x143   : > { %p16866_p4 = scmp.ne.s32.totalorder %s17779_s20, %s16865_s26  ;;  %p16871_p7 = scmp.lt.u32.totalorder %s16865_s26, %s17779_s20 }
 0x145   : > { %p16867_p5 = pnand %p16866_p4, %p16003_p3 }
 0x147   : > { %p16868_p6 = pneg %p16867_p5 }
 0x149   : > { %p16873_p8 = pnand %p16871_p7, %p16868_p6 }
 0x14b   : > { %16876 = shalt.err (!%p16873_p8)
}
 0x14c   : > { %s16877_s1 = scalar_lea.vmem %s1497_s28, 3072  ;;  %p16884_p12 = scmp.lt.s32.totalorder %s1497_s28, %s1497_s28 }
 0x14d   : > { %p16878_p9 = scmp.ne.s32.totalorder %s1497_s28, %s16877_s1  ;;  %p16885_p13 = scmp.lt.s32.totalorder %s16877_s1, %s16877_s1 }
 0x14f   : > { %p16879_p10 = pnand %p16878_p9, %p16003_p3  ;;  %p16886_p0 = por %p16885_p13, %p16884_p12 }
 0x151   : > { %p16880_p11 = pneg %p16879_p10 }
 0x153   : > { %p16887_p1 = pnand %p16886_p0, %p16880_p11 }
 0x155   : > { %16890 = shalt.err (!%p16887_p1)
}
 0x156   : > { %15914 = dma.hbm_to_vmem [thread:$0]  (%p16003_p3), %s17779_s20, 3072, %s1497_s28, [#allocation32], %s19903_s7, %s19903_s7, %s19905_s10  }
 0x157   : > { %s16891_s16 = scalar_lea.hbm %s19977_s5, 16 }
 0x158   : > { %p16892_p4 = scmp.ne.s32.totalorder %s19977_s5, %s16891_s16  ;;  %p16897_p7 = scmp.lt.u32.totalorder %s16891_s16, %s19977_s5 }
 0x15a   : > { %p16893_p5 = pnand %p16892_p4, %p16003_p3 }
 0x15c   : > { %p16894_p6 = pneg %p16893_p5 }
 0x15e   : > { %p16899_p8 = pnand %p16897_p7, %p16894_p6 }
 0x160   : > { %16902 = shalt.err (!%p16899_p8)
}
 0x161   : > { %s16903_s18 = scalar_lea.vmem %s18044_s11, 16  ;;  %s16909_s2 = scalar_lea.vmem %s18044_s11, 32 }
 0x162   : > { %p16904_p9 = scmp.ne.s32.totalorder %s18044_s11, %s16903_s18  ;;  %p16910_p12 = scmp.lt.s32.totalorder %s18044_s11, %s18044_s11 }
 0x163   : > { %p16911_p13 = scmp.lt.s32.totalorder %s16909_s2, %s16903_s18 }
 0x164   : > { %p16905_p10 = pnand %p16904_p9, %p16003_p3 }
 0x165   : > { %p16912_p0 = por %p16911_p13, %p16910_p12 }
 0x166   : > { %p16906_p11 = pneg %p16905_p10 }
 0x168   : > { %p16913_p1 = pnand %p16912_p0, %p16906_p11 }
 0x16a   : > { %16916 = shalt.err (!%p16913_p1)
}
 0x16b   : > { %15918 = dma.hbm_to_vmem [thread:$0]  (%p16003_p3), %s19977_s5, 16, %s18044_s11, [#allocation35]  }
 0x16c   : > { %s17603_s28 = smov [#allocation37]   ;;  %s17604_s26 = smov [#allocation40]  }
 0x16d   : > { %s1542_s15 = sshll.u32 %s17603_s28, 4  ;;  %s1583_s1 = sshll.u32 %s17604_s26, 4  ;;  %s1543_s15 = int_to_ptr.vmem [resolvable:$true] %s1542_s15  ;;  %s18075_s1 = int_to_ptr.vmem [resolvable:$true] %s1583_s1 }
 0x16e   : > { %s16917_s16 = scalar_lea.hbm %s19976_s6, 512 }
 0x16f   : > { %p16918_p4 = scmp.ne.s32.totalorder %s19976_s6, %s16917_s16  ;;  %p16923_p7 = scmp.lt.u32.totalorder %s16917_s16, %s19976_s6 }
 0x171   : > { %p16919_p5 = pnand %p16918_p4, %p16003_p3 }
 0x173   : > { %p16920_p6 = pneg %p16919_p5 }
 0x175   : > { %p16925_p8 = pnand %p16923_p7, %p16920_p6 }
 0x177   : > { %16928 = shalt.err (!%p16925_p8)
}
 0x178   : > { %s16929_s18 = scalar_lea.vmem %s1543_s15, 512  ;;  %p16936_p12 = scmp.lt.s32.totalorder %s1543_s15, %s1543_s15 }
 0x179   : > { %p16930_p9 = scmp.ne.s32.totalorder %s1543_s15, %s16929_s18  ;;  %p16937_p13 = scmp.lt.s32.totalorder %s16929_s18, %s16929_s18 }
 0x17b   : > { %p16931_p10 = pnand %p16930_p9, %p16003_p3  ;;  %p16938_p0 = por %p16937_p13, %p16936_p12 }
 0x17d   : > { %p16932_p11 = pneg %p16931_p10 }
 0x17f   : > { %p16939_p1 = pnand %p16938_p0, %p16932_p11 }
 0x181   : > { %16942 = shalt.err (!%p16939_p1)
}
 0x182   : > { %15922 = dma.hbm_to_vmem [thread:$0]  (%p16003_p3), %s19976_s6, 512, %s1543_s15, [#allocation38], %s19903_s7, %s19903_s7, %s19905_s10  }
 0x183   : > { %s16943_s11 = scalar_lea.hbm %s19975_s8, 512 }
 0x184   : > { %p16944_p4 = scmp.ne.s32.totalorder %s19975_s8, %s16943_s11  ;;  %p16949_p7 = scmp.lt.u32.totalorder %s16943_s11, %s19975_s8 }
 0x186   : > { %p16945_p5 = pnand %p16944_p4, %p16003_p3 }
 0x188   : > { %p16946_p6 = pneg %p16945_p5 }
 0x18a   : > { %p16951_p8 = pnand %p16949_p7, %p16946_p6 }
 0x18c   : > { %16954 = shalt.err (!%p16951_p8)
}
 0x18d   : > { %s16955_s2 = scalar_lea.vmem %s18075_s1, 512  ;;  %p16962_p12 = scmp.lt.s32.totalorder %s18075_s1, %s18075_s1 }
 0x18e   : > { %p16956_p9 = scmp.ne.s32.totalorder %s18075_s1, %s16955_s2  ;;  %p16963_p13 = scmp.lt.s32.totalorder %s16955_s2, %s16955_s2 }
 0x190   : > { %p16957_p10 = pnand %p16956_p9, %p16003_p3  ;;  %p16964_p0 = por %p16963_p13, %p16962_p12 }
 0x192   : > { %p16958_p11 = pneg %p16957_p10 }
 0x194   : > { %p16965_p1 = pnand %p16964_p0, %p16958_p11 }
 0x196   : > { %16968 = shalt.err (!%p16965_p1)
}
 0x197   : > { %15926 = dma.hbm_to_vmem [thread:$0]  (%p16003_p3), %s19975_s8, 512, %s18075_s1, [#allocation41], %s19903_s7, %s19903_s7, %s19905_s10  }
 0x198   : > { %s17605_s28 = smov [#allocation43]   ;;  %s17606_s26 = smov [#allocation46]  }
 0x199   : > { %s1612_s15 = sshll.u32 %s17605_s28, 4  ;;  %s1647_s16 = sshll.u32 %s17606_s26, 4  ;;  %s1613_s15 = int_to_ptr.vmem [resolvable:$true] %s1612_s15  ;;  %s18108_s16 = int_to_ptr.vmem [resolvable:$true] %s1647_s16 }
 0x19a   : > { %s16969_s18 = scalar_lea.hbm %s17849_s19, 3072 }
 0x19b   : > { %p16970_p4 = scmp.ne.s32.totalorder %s17849_s19, %s16969_s18  ;;  %p16975_p7 = scmp.lt.u32.totalorder %s16969_s18, %s17849_s19 }
 0x19d   : > { %p16971_p5 = pnand %p16970_p4, %p16003_p3 }
 0x19f   : > { %p16972_p6 = pneg %p16971_p5 }
 0x1a1   : > { %p16977_p8 = pnand %p16975_p7, %p16972_p6 }
 0x1a3   : > { %16980 = shalt.err (!%p16977_p8)
}
 0x1a4   : > { %s16981_s11 = scalar_lea.vmem %s1613_s15, 3072  ;;  %p16988_p12 = scmp.lt.s32.totalorder %s1613_s15, %s1613_s15 }
 0x1a5   : > { %p16982_p9 = scmp.ne.s32.totalorder %s1613_s15, %s16981_s11  ;;  %p16989_p13 = scmp.lt.s32.totalorder %s16981_s11, %s16981_s11 }
 0x1a7   : > { %p16983_p10 = pnand %p16982_p9, %p16003_p3  ;;  %p16990_p0 = por %p16989_p13, %p16988_p12 }
 0x1a9   : > { %p16984_p11 = pneg %p16983_p10 }
 0x1ab   : > { %p16991_p1 = pnand %p16990_p0, %p16984_p11 }
 0x1ad   : > { %16994 = shalt.err (!%p16991_p1)
}
 0x1ae   : > { %s19979_s1 = sld [smem:[#allocation107_spill]] }
 0x1af   : > { %15930 = dma.hbm_to_vmem [thread:$0]  (%p16003_p3), %s17849_s19, 3072, %s1613_s15, [#allocation44], %s19903_s7, %s19903_s7, %s19905_s10  }
 0x1b4   : > { %s16995_s2 = scalar_lea.hbm %s19979_s1, 3072 }
 0x1b5   : > { %p16996_p4 = scmp.ne.s32.totalorder %s19979_s1, %s16995_s2  ;;  %p17001_p7 = scmp.lt.u32.totalorder %s16995_s2, %s19979_s1 }
 0x1b7   : > { %p16997_p5 = pnand %p16996_p4, %p16003_p3 }
 0x1b9   : > { %p16998_p6 = pneg %p16997_p5 }
 0x1bb   : > { %p17003_p8 = pnand %p17001_p7, %p16998_p6 }
 0x1bd   : > { %17006 = shalt.err (!%p17003_p8)
}
 0x1be   : > { %s17007_s28 = scalar_lea.vmem %s18108_s16, 3072  ;;  %p17014_p12 = scmp.lt.s32.totalorder %s18108_s16, %s18108_s16 }
 0x1bf   : > { %p17008_p9 = scmp.ne.s32.totalorder %s18108_s16, %s17007_s28  ;;  %p17015_p13 = scmp.lt.s32.totalorder %s17007_s28, %s17007_s28 }
 0x1c1   : > { %p17009_p10 = pnand %p17008_p9, %p16003_p3  ;;  %p17016_p0 = por %p17015_p13, %p17014_p12 }
 0x1c3   : > { %p17010_p11 = pneg %p17009_p10 }
 0x1c5   : > { %p17017_p1 = pnand %p17016_p0, %p17010_p11 }
 0x1c7   : > { %17020 = shalt.err (!%p17017_p1)
}
 0x1c8   : > { %s19980_s15 = sld [smem:[#allocation70_spill]]  ;;  %s17607_s26 = smov [#allocation2]  }
 0x1c9   : > { %15934 = dma.hbm_to_vmem [thread:$0]  (%p16003_p3), %s19979_s1, 3072, %s18108_s16, [#allocation47], %s19903_s7, %s19903_s7, %s19905_s10  }
 0x1ca   : > { %s1253_s18 = sshll.u32 %s17607_s26, 4  ;;  %s17608_s11 = smov [#allocation6]   ;;  %s1254_s18 = int_to_ptr.vmem [resolvable:$true] %s1253_s18 }
 0x1cb   : > { %s1280_s2 = sshll.u32 %s17608_s11, 4  ;;  %s1281_s2 = int_to_ptr.vmem [resolvable:$true] %s1280_s2 }
 0x1ce   : > { %s17021_s28 = scalar_lea.hbm %s19980_s15, 16 }
 0x1cf   : > { %p17022_p4 = scmp.ne.s32.totalorder %s19980_s15, %s17021_s28  ;;  %p17027_p7 = scmp.lt.u32.totalorder %s17021_s28, %s19980_s15 }
 0x1d1   : > { %p17023_p5 = pnand %p17022_p4, %p16003_p3 }
 0x1d3   : > { %p17024_p6 = pneg %p17023_p5 }
 0x1d5   : > { %p17029_p8 = pnand %p17027_p7, %p17024_p6 }
 0x1d7   : > { %17032 = shalt.err (!%p17029_p8)
}
 0x1d8   : > { %s17033_s5 = scalar_lea.vmem %s1254_s18, 16  ;;  %s17039_s16 = scalar_lea.vmem %s1254_s18, 32 }
 0x1d9   : > { %p17034_p9 = scmp.ne.s32.totalorder %s1254_s18, %s17033_s5  ;;  %p17040_p12 = scmp.lt.s32.totalorder %s1254_s18, %s1254_s18 }
 0x1da   : > { %p17041_p13 = scmp.lt.s32.totalorder %s17039_s16, %s17033_s5 }
 0x1db   : > { %p17035_p10 = pnand %p17034_p9, %p16003_p3 }
 0x1dc   : > { %p17042_p0 = por %p17041_p13, %p17040_p12 }
 0x1dd   : > { %p17036_p11 = pneg %p17035_p10 }
 0x1df   : > { %p17043_p1 = pnand %p17042_p0, %p17036_p11 }
 0x1e1   : > { %17046 = shalt.err (!%p17043_p1)
}
 0x1e2   : > { %s19981_s26 = sld [smem:[#allocation72_spill]] }
 0x1e3   : > { %15876 = dma.hbm_to_vmem [thread:$0]  (%p16003_p3), %s19980_s15, 16, %s1254_s18, [#allocation3]  }
 0x1e8   : > { %s17047_s11 = scalar_lea.hbm %s19981_s26, 16 }
 0x1e9   : > { %p17048_p4 = scmp.ne.s32.totalorder %s19981_s26, %s17047_s11  ;;  %p17053_p7 = scmp.lt.u32.totalorder %s17047_s11, %s19981_s26 }
 0x1eb   : > { %p17049_p5 = pnand %p17048_p4, %p16003_p3 }
 0x1ed   : > { %p17050_p6 = pneg %p17049_p5 }
 0x1ef   : > { %p17055_p8 = pnand %p17053_p7, %p17050_p6 }
 0x1f1   : > { %17058 = shalt.err (!%p17055_p8)
}
 0x1f2   : > { %s17059_s5 = scalar_lea.vmem %s1281_s2, 16  ;;  %s17065_s28 = scalar_lea.vmem %s1281_s2, 32 }
 0x1f3   : > { %p17060_p9 = scmp.ne.s32.totalorder %s1281_s2, %s17059_s5  ;;  %p17066_p12 = scmp.lt.s32.totalorder %s1281_s2, %s1281_s2 }
 0x1f4   : > { %p17067_p13 = scmp.lt.s32.totalorder %s17065_s28, %s17059_s5 }
 0x1f5   : > { %p17061_p10 = pnand %p17060_p9, %p16003_p3 }
 0x1f6   : > { %p17068_p0 = por %p17067_p13, %p17066_p12 }
 0x1f7   : > { %p17062_p11 = pneg %p17061_p10 }
 0x1f9   : > { %p17069_p1 = pnand %p17068_p0, %p17062_p11 }
 0x1fb   : > { %17072 = shalt.err (!%p17069_p1)
}
 0x1fc   : > { %s19982_s18 = sld [smem:[#allocation73_spill]]  ;;  %s17609_s16 = smov [#allocation9]  }
 0x1fd   : > { %15880 = dma.hbm_to_vmem [thread:$0]  (%p16003_p3), %s19981_s26, 16, %s1281_s2, [#allocation5]  }
 0x1fe   : > { %s1301_s11 = sshll.u32 %s17609_s16, 4  ;;  %s17610_s7 = smov [#allocation12]   ;;  %s1302_s11 = int_to_ptr.vmem [resolvable:$true] %s1301_s11 }
 0x1ff   : > { %s1329_s10 = sshll.u32 %s17610_s7, 4  ;;  %s1330_s10 = int_to_ptr.vmem [resolvable:$true] %s1329_s10 }
 0x202   : > { %s17073_s1 = scalar_lea.hbm %s19982_s18, 1536 }
 0x203   : > { %p17074_p4 = scmp.ne.s32.totalorder %s19982_s18, %s17073_s1  ;;  %p17079_p7 = scmp.lt.u32.totalorder %s17073_s1, %s19982_s18 }
 0x205   : > { %p17075_p5 = pnand %p17074_p4, %p16003_p3 }
 0x207   : > { %p17076_p6 = pneg %p17075_p5 }
 0x209   : > { %p17081_p8 = pnand %p17079_p7, %p17076_p6 }
 0x20b   : > { %17084 = shalt.err (!%p17081_p8)
}
 0x20c   : > { %s17085_s5 = scalar_lea.vmem %s1302_s11, 1536  ;;  %p17092_p12 = scmp.lt.s32.totalorder %s1302_s11, %s1302_s11 }
 0x20d   : > { %p17086_p9 = scmp.ne.s32.totalorder %s1302_s11, %s17085_s5  ;;  %p17093_p13 = scmp.lt.s32.totalorder %s17085_s5, %s17085_s5 }
 0x20f   : > { %p17087_p10 = pnand %p17086_p9, %p16003_p3  ;;  %p17094_p0 = por %p17093_p13, %p17092_p12 }
 0x211   : > { %p17088_p11 = pneg %p17087_p10 }
 0x213   : > { %p17095_p1 = pnand %p17094_p0, %p17088_p11 }
 0x215   : > { %17098 = shalt.err (!%p17095_p1)
}
 0x216   : > { %s19983_s7 = smov 4   ;;  %s19984_s2 = smov 64  }
 0x217   : > { %s19985_s1 = sld [smem:[#allocation76_spill]] }
 0x218   : > { %15884 = dma.hbm_to_vmem [thread:$0]  (%p16003_p3), %s19982_s18, 1536, %s1302_s11, [#allocation8], %s19984_s2, %s19984_s2, %s19983_s7  }
 0x21d   : > { %s17099_s28 = scalar_lea.hbm %s19985_s1, 16 }
 0x21e   : > { %p17100_p4 = scmp.ne.s32.totalorder %s19985_s1, %s17099_s28  ;;  %p17105_p7 = scmp.lt.u32.totalorder %s17099_s28, %s19985_s1 }
 0x220   : > { %p17101_p5 = pnand %p17100_p4, %p16003_p3 }
 0x222   : > { %p17102_p6 = pneg %p17101_p5 }
 0x224   : > { %p17107_p8 = pnand %p17105_p7, %p17102_p6 }
 0x226   : > { %17110 = shalt.err (!%p17107_p8)
}
 0x227   : > { %s17111_s16 = scalar_lea.vmem %s1330_s10, 16  ;;  %s17117_s5 = scalar_lea.vmem %s1330_s10, 32 }
 0x228   : > { %p17112_p9 = scmp.ne.s32.totalorder %s1330_s10, %s17111_s16  ;;  %p17118_p12 = scmp.lt.s32.totalorder %s1330_s10, %s1330_s10 }
 0x229   : > { %p17119_p13 = scmp.lt.s32.totalorder %s17117_s5, %s17111_s16 }
 0x22a   : > { %p17113_p10 = pnand %p17112_p9, %p16003_p3 }
 0x22b   : > { %p17120_p0 = por %p17119_p13, %p17118_p12 }
 0x22c   : > { %p17114_p11 = pneg %p17113_p10 }
 0x22e   : > { %p17121_p1 = pnand %p17120_p0, %p17114_p11 }
 0x230   : > { %17124 = shalt.err (!%p17121_p1)
}
 0x231   : > { %s19986_s11 = sld [smem:[#allocation78_spill]]  ;;  %s17611_s28 = smov [#allocation15]  }
 0x232   : > { %15888 = dma.hbm_to_vmem [thread:$0]  (%p16003_p3), %s19985_s1, 16, %s1330_s10, [#allocation11]  }
 0x233   : > { %s1356_s6 = sshll.u32 %s17611_s28, 4  ;;  %s17612_s8 = smov [#allocation18]   ;;  %s1357_s6 = int_to_ptr.vmem [resolvable:$true] %s1356_s6 }
 0x234   : > { %s1377_s9 = sshll.u32 %s17612_s8, 4  ;;  %s1378_s9 = int_to_ptr.vmem [resolvable:$true] %s1377_s9 }
 0x237   : > { %s17125_s12 = scalar_lea.hbm %s19986_s11, 16 }
 0x238   : > { %p17126_p4 = scmp.ne.s32.totalorder %s19986_s11, %s17125_s12  ;;  %p17131_p7 = scmp.lt.u32.totalorder %s17125_s12, %s19986_s11 }
 0x23a   : > { %p17127_p5 = pnand %p17126_p4, %p16003_p3 }
 0x23c   : > { %p17128_p6 = pneg %p17127_p5 }
 0x23e   : > { %p17133_p8 = pnand %p17131_p7, %p17128_p6 }
 0x240   : > { %17136 = shalt.err (!%p17133_p8)
}
 0x241   : > { %s17137_s16 = scalar_lea.vmem %s1357_s6, 16  ;;  %s17143_s10 = scalar_lea.vmem %s1357_s6, 32 }
 0x242   : > { %p17138_p9 = scmp.ne.s32.totalorder %s1357_s6, %s17137_s16  ;;  %p17144_p12 = scmp.lt.s32.totalorder %s1357_s6, %s1357_s6 }
 0x243   : > { %p17145_p13 = scmp.lt.s32.totalorder %s17143_s10, %s17137_s16 }
 0x244   : > { %p17139_p10 = pnand %p17138_p9, %p16003_p3 }
 0x245   : > { %p17146_p0 = por %p17145_p13, %p17144_p12 }
 0x246   : > { %p17140_p11 = pneg %p17139_p10 }
 0x248   : > { %p17147_p1 = pnand %p17146_p0, %p17140_p11 }
 0x24a   : > { %17150 = shalt.err (!%p17147_p1)
}
 0x24b   : > { %s19987_s8 = sld [smem:[#allocation80_spill]] }
 0x24c   : > { %15892 = dma.hbm_to_vmem [thread:$0]  (%p16003_p3), %s19986_s11, 16, %s1357_s6, [#allocation14]  }
 0x251   : > { %s17151_s12 = scalar_lea.hbm %s19987_s8, 1536 }
 0x252   : > { %p17152_p4 = scmp.ne.s32.totalorder %s19987_s8, %s17151_s12  ;;  %p17157_p7 = scmp.lt.u32.totalorder %s17151_s12, %s19987_s8 }
 0x254   : > { %p17153_p5 = pnand %p17152_p4, %p16003_p3 }
 0x256   : > { %p17154_p6 = pneg %p17153_p5 }
 0x258   : > { %p17159_p8 = pnand %p17157_p7, %p17154_p6 }
 0x25a   : > { %17162 = shalt.err (!%p17159_p8)
}
 0x25b   : > { %s17163_s5 = scalar_lea.vmem %s1378_s9, 1536  ;;  %p17170_p12 = scmp.lt.s32.totalorder %s1378_s9, %s1378_s9 }
 0x25c   : > { %p17164_p9 = scmp.ne.s32.totalorder %s1378_s9, %s17163_s5  ;;  %p17171_p13 = scmp.lt.s32.totalorder %s17163_s5, %s17163_s5 }
 0x25e   : > { %p17165_p10 = pnand %p17164_p9, %p16003_p3  ;;  %p17172_p0 = por %p17171_p13, %p17170_p12 }
 0x260   : > { %p17166_p11 = pneg %p17165_p10 }
 0x262   : > { %p17173_p1 = pnand %p17172_p0, %p17166_p11 }
 0x264   : > { %17176 = shalt.err (!%p17173_p1)
}
 0x265   : > { %s19988_s6 = sld [smem:[#allocation81_spill]]  ;;  %s17613_s28 = smov [#allocation21]  }
 0x266   : > { %15896 = dma.hbm_to_vmem [thread:$0]  (%p16003_p3), %s19987_s8, 1536, %s1378_s9, [#allocation17], %s19984_s2, %s19984_s2, %s19983_s7  }
 0x267   : > { %s1404_s16 = sshll.u32 %s17613_s28, 4  ;;  %s17614_s10 = smov [#allocation24]   ;;  %s1405_s16 = int_to_ptr.vmem [resolvable:$true] %s1404_s16 }
 0x268   : > { %s1425_s12 = sshll.u32 %s17614_s10, 4  ;;  %s1426_s12 = int_to_ptr.vmem [resolvable:$true] %s1425_s12 }
 0x26b   : > { %s17177_s5 = scalar_lea.hbm %s19988_s6, 16 }
 0x26c   : > { %p17178_p4 = scmp.ne.s32.totalorder %s19988_s6, %s17177_s5  ;;  %p17183_p7 = scmp.lt.u32.totalorder %s17177_s5, %s19988_s6 }
 0x26e   : > { %p17179_p5 = pnand %p17178_p4, %p16003_p3 }
 0x270   : > { %p17180_p6 = pneg %p17179_p5 }
 0x272   : > { %p17185_p8 = pnand %p17183_p7, %p17180_p6 }
 0x274   : > { %17188 = shalt.err (!%p17185_p8)
}
 0x275   : > { %s17189_s1 = scalar_lea.vmem %s1405_s16, 16  ;;  %s17195_s9 = scalar_lea.vmem %s1405_s16, 32 }
 0x276   : > { %p17190_p9 = scmp.ne.s32.totalorder %s1405_s16, %s17189_s1  ;;  %p17196_p12 = scmp.lt.s32.totalorder %s1405_s16, %s1405_s16 }
 0x277   : > { %p17197_p13 = scmp.lt.s32.totalorder %s17195_s9, %s17189_s1 }
 0x278   : > { %p17191_p10 = pnand %p17190_p9, %p16003_p3 }
 0x279   : > { %p17198_p0 = por %p17197_p13, %p17196_p12 }
 0x27a   : > { %p17192_p11 = pneg %p17191_p10 }
 0x27c   : > { %p17199_p1 = pnand %p17198_p0, %p17192_p11 }
 0x27e   : > { %17202 = shalt.err (!%p17199_p1)
}
 0x27f   : > { %s19989_s28 = sld [smem:[#allocation82_spill]] }
 0x280   : > { %15900 = dma.hbm_to_vmem [thread:$0]  (%p16003_p3), %s19988_s6, 16, %s1405_s16, [#allocation20]  }
 0x285   : > { %s17203_s10 = scalar_lea.hbm %s19989_s28, 384 }
 0x286   : > { %p17204_p4 = scmp.ne.s32.totalorder %s19989_s28, %s17203_s10  ;;  %p17209_p7 = scmp.lt.u32.totalorder %s17203_s10, %s19989_s28 }
 0x288   : > { %p17205_p5 = pnand %p17204_p4, %p16003_p3 }
 0x28a   : > { %p17206_p6 = pneg %p17205_p5 }
 0x28c   : > { %p17211_p8 = pnand %p17209_p7, %p17206_p6 }
 0x28e   : > { %17214 = shalt.err (!%p17211_p8)
}
 0x28f   : > { %s17215_s1 = scalar_lea.vmem %s1426_s12, 384  ;;  %p17222_p12 = scmp.lt.s32.totalorder %s1426_s12, %s1426_s12 }
 0x290   : > { %p17216_p9 = scmp.ne.s32.totalorder %s1426_s12, %s17215_s1  ;;  %p17223_p13 = scmp.lt.s32.totalorder %s17215_s1, %s17215_s1 }
 0x292   : > { %p17217_p10 = pnand %p17216_p9, %p16003_p3  ;;  %p17224_p0 = por %p17223_p13, %p17222_p12 }
 0x294   : > { %p17218_p11 = pneg %p17217_p10 }
 0x296   : > { %p17225_p1 = pnand %p17224_p0, %p17218_p11 }
 0x298   : > { %17228 = shalt.err (!%p17225_p1)
}
 0x299   : > { %s19990_s16 = sld [smem:[#allocation85_spill]]  ;;  %s17615_s5 = smov [#allocation27]  }
 0x29a   : > { %15904 = dma.hbm_to_vmem [thread:$0]  (%p16003_p3), %s19989_s28, 384, %s1426_s12, [#allocation23], %s19984_s2, %s19984_s2, %s19983_s7  }
 0x29b   : > { %s1456_s9 = sshll.u32 %s17615_s5, 4  ;;  %s17616_s10 = smov [#allocation30]   ;;  %s1457_s9 = int_to_ptr.vmem [resolvable:$true] %s1456_s9 }
 0x29c   : > { %s1477_s6 = sshll.u32 %s17616_s10, 4  ;;  %s1478_s6 = int_to_ptr.vmem [resolvable:$true] %s1477_s6 }
 0x29f   : > { %s17229_s1 = scalar_lea.hbm %s19990_s16, 16 }
 0x2a0   : > { %p17230_p4 = scmp.ne.s32.totalorder %s19990_s16, %s17229_s1  ;;  %p17235_p7 = scmp.lt.u32.totalorder %s17229_s1, %s19990_s16 }
 0x2a2   : > { %p17231_p5 = pnand %p17230_p4, %p16003_p3 }
 0x2a4   : > { %p17232_p6 = pneg %p17231_p5 }
 0x2a6   : > { %p17237_p8 = pnand %p17235_p7, %p17232_p6 }
 0x2a8   : > { %17240 = shalt.err (!%p17237_p8)
}
 0x2a9   : > { %s17241_s8 = scalar_lea.vmem %s1457_s9, 16  ;;  %s17247_s12 = scalar_lea.vmem %s1457_s9, 32 }
 0x2aa   : > { %p17242_p9 = scmp.ne.s32.totalorder %s1457_s9, %s17241_s8  ;;  %p17248_p12 = scmp.lt.s32.totalorder %s1457_s9, %s1457_s9 }
 0x2ab   : > { %p17249_p13 = scmp.lt.s32.totalorder %s17247_s12, %s17241_s8 }
 0x2ac   : > { %p17243_p10 = pnand %p17242_p9, %p16003_p3 }
 0x2ad   : > { %p17250_p0 = por %p17249_p13, %p17248_p12 }
 0x2ae   : > { %p17244_p11 = pneg %p17243_p10 }
 0x2b0   : > { %p17251_p1 = pnand %p17250_p0, %p17244_p11 }
 0x2b2   : > { %17254 = shalt.err (!%p17251_p1)
}
 0x2b3   : > { %s19991_s5 = sld [smem:[#allocation87_spill]] }
 0x2b4   : > { %15908 = dma.hbm_to_vmem [thread:$0]  (%p16003_p3), %s19990_s16, 16, %s1457_s9, [#allocation26]  }
 0x2b9   : > { %s17255_s10 = scalar_lea.hbm %s19991_s5, 512 }
 0x2ba   : > { %p17256_p4 = scmp.ne.s32.totalorder %s19991_s5, %s17255_s10  ;;  %p17261_p7 = scmp.lt.u32.totalorder %s17255_s10, %s19991_s5 }
 0x2bc   : > { %p17257_p5 = pnand %p17256_p4, %p16003_p3 }
 0x2be   : > { %p17258_p6 = pneg %p17257_p5 }
 0x2c0   : > { %p17263_p8 = pnand %p17261_p7, %p17258_p6 }
 0x2c2   : > { %17266 = shalt.err (!%p17263_p8)
}
 0x2c3   : > { %s17267_s8 = scalar_lea.vmem %s1478_s6, 512  ;;  %p17274_p12 = scmp.lt.s32.totalorder %s1478_s6, %s1478_s6 }
 0x2c4   : > { %p17268_p9 = scmp.ne.s32.totalorder %s1478_s6, %s17267_s8  ;;  %p17275_p13 = scmp.lt.s32.totalorder %s17267_s8, %s17267_s8 }
 0x2c6   : > { %p17269_p10 = pnand %p17268_p9, %p16003_p3  ;;  %p17276_p0 = por %p17275_p13, %p17274_p12 }
 0x2c8   : > { %p17270_p11 = pneg %p17269_p10 }
 0x2ca   : > { %p17277_p1 = pnand %p17276_p0, %p17270_p11 }
 0x2cc   : > { %17280 = shalt.err (!%p17277_p1)
}
 0x2cd   : > { %s19992_s9 = sld [smem:[#allocation90_spill]]  ;;  %s17617_s1 = smov [#allocation33]  }
 0x2ce   : > { %15912 = dma.hbm_to_vmem [thread:$0]  (%p16003_p3), %s19991_s5, 512, %s1478_s6, [#allocation29], %s19984_s2, %s19984_s2, %s19983_s7  }
 0x2cf   : > { %s1510_s12 = sshll.u32 %s17617_s1, 4  ;;  %s17618_s10 = smov [#allocation36]   ;;  %s1511_s12 = int_to_ptr.vmem [resolvable:$true] %s1510_s12 }
 0x2d0   : > { %s1532_s11 = sshll.u32 %s17618_s10, 4  ;;  %s1533_s11 = int_to_ptr.vmem [resolvable:$true] %s1532_s11 }
 0x2d3   : > { %s17281_s8 = scalar_lea.hbm %s19992_s9, 16 }
 0x2d4   : > { %p17282_p4 = scmp.ne.s32.totalorder %s19992_s9, %s17281_s8  ;;  %p17287_p7 = scmp.lt.u32.totalorder %s17281_s8, %s19992_s9 }
 0x2d6   : > { %p17283_p5 = pnand %p17282_p4, %p16003_p3 }
 0x2d8   : > { %p17284_p6 = pneg %p17283_p5 }
 0x2da   : > { %p17289_p8 = pnand %p17287_p7, %p17284_p6 }
 0x2dc   : > { %17292 = shalt.err (!%p17289_p8)
}
 0x2dd   : > { %s17293_s14 = scalar_lea.vmem %s1511_s12, 16  ;;  %s17299_s6 = scalar_lea.vmem %s1511_s12, 32 }
 0x2de   : > { %p17294_p9 = scmp.ne.s32.totalorder %s1511_s12, %s17293_s14  ;;  %p17300_p12 = scmp.lt.s32.totalorder %s1511_s12, %s1511_s12 }
 0x2df   : > { %p17301_p13 = scmp.lt.s32.totalorder %s17299_s6, %s17293_s14 }
 0x2e0   : > { %p17295_p10 = pnand %p17294_p9, %p16003_p3 }
 0x2e1   : > { %p17302_p0 = por %p17301_p13, %p17300_p12 }
 0x2e2   : > { %p17296_p11 = pneg %p17295_p10 }
 0x2e4   : > { %p17303_p1 = pnand %p17302_p0, %p17296_p11 }
 0x2e6   : > { %17306 = shalt.err (!%p17303_p1)
}
 0x2e7   : > { %s19993_s1 = sld [smem:[#allocation92_spill]] }
 0x2e8   : > { %15916 = dma.hbm_to_vmem [thread:$0]  (%p16003_p3), %s19992_s9, 16, %s1511_s12, [#allocation32]  }
 0x2ed   : > { %s17307_s10 = scalar_lea.hbm %s19993_s1, 16 }
 0x2ee   : > { %p17308_p4 = scmp.ne.s32.totalorder %s19993_s1, %s17307_s10  ;;  %p17313_p7 = scmp.lt.u32.totalorder %s17307_s10, %s19993_s1 }
 0x2f0   : > { %p17309_p5 = pnand %p17308_p4, %p16003_p3 }
 0x2f2   : > { %p17310_p6 = pneg %p17309_p5 }
 0x2f4   : > { %p17315_p8 = pnand %p17313_p7, %p17310_p6 }
 0x2f6   : > { %17318 = shalt.err (!%p17315_p8)
}
 0x2f7   : > { %s17319_s14 = scalar_lea.vmem %s1533_s11, 16  ;;  %s17325_s8 = scalar_lea.vmem %s1533_s11, 32 }
 0x2f8   : > { %p17320_p9 = scmp.ne.s32.totalorder %s1533_s11, %s17319_s14  ;;  %p17326_p12 = scmp.lt.s32.totalorder %s1533_s11, %s1533_s11 }
 0x2f9   : > { %p17327_p13 = scmp.lt.s32.totalorder %s17325_s8, %s17319_s14 }
 0x2fa   : > { %p17321_p10 = pnand %p17320_p9, %p16003_p3 }
 0x2fb   : > { %p17328_p0 = por %p17327_p13, %p17326_p12 }
 0x2fc   : > { %p17322_p11 = pneg %p17321_p10 }
 0x2fe   : > { %p17329_p1 = pnand %p17328_p0, %p17322_p11 }
 0x300   : > { %17332 = shalt.err (!%p17329_p1)
}
 0x301   : > { %s19994_s12 = sld [smem:[#allocation96_spill]]  ;;  %s17619_s6 = smov [#allocation39]  }
 0x302   : > { %15920 = dma.hbm_to_vmem [thread:$0]  (%p16003_p3), %s19993_s1, 16, %s1533_s11, [#allocation35]  }
 0x303   : > { %s1561_s10 = sshll.u32 %s17619_s6, 4  ;;  %s17620_s5 = smov [#allocation42]   ;;  %s1562_s10 = int_to_ptr.vmem [resolvable:$true] %s1561_s10 }
 0x304   : > { %s1599_s9 = sshll.u32 %s17620_s5, 4  ;;  %s1600_s9 = int_to_ptr.vmem [resolvable:$true] %s1599_s9 }
 0x307   : > { %s17333_s15 = scalar_lea.hbm %s19994_s12, 3072 }
 0x308   : > { %p17334_p4 = scmp.ne.s32.totalorder %s19994_s12, %s17333_s15  ;;  %p17339_p7 = scmp.lt.u32.totalorder %s17333_s15, %s19994_s12 }
 0x30a   : > { %p17335_p5 = pnand %p17334_p4, %p16003_p3 }
 0x30c   : > { %p17336_p6 = pneg %p17335_p5 }
 0x30e   : > { %p17341_p8 = pnand %p17339_p7, %p17336_p6 }
 0x310   : > { %17344 = shalt.err (!%p17341_p8)
}
 0x311   : > { %s17345_s14 = scalar_lea.vmem %s1562_s10, 3072  ;;  %p17352_p12 = scmp.lt.s32.totalorder %s1562_s10, %s1562_s10 }
 0x312   : > { %p17346_p9 = scmp.ne.s32.totalorder %s1562_s10, %s17345_s14  ;;  %p17353_p13 = scmp.lt.s32.totalorder %s17345_s14, %s17345_s14 }
 0x314   : > { %p17347_p10 = pnand %p17346_p9, %p16003_p3  ;;  %p17354_p0 = por %p17353_p13, %p17352_p12 }
 0x316   : > { %p17348_p11 = pneg %p17347_p10 }
 0x318   : > { %p17355_p1 = pnand %p17354_p0, %p17348_p11 }
 0x31a   : > { %17358 = shalt.err (!%p17355_p1)
}
 0x31b   : > { %s19995_s15 = sld [smem:[#allocation102_spill]] }
 0x31c   : > { %15924 = dma.hbm_to_vmem [thread:$0]  (%p16003_p3), %s19994_s12, 3072, %s1562_s10, [#allocation38], %s19984_s2, %s19984_s2, %s19983_s7  }
 0x321   : > { %s17359_s11 = scalar_lea.hbm %s19995_s15, 3072 }
 0x322   : > { %p17360_p4 = scmp.ne.s32.totalorder %s19995_s15, %s17359_s11  ;;  %p17365_p7 = scmp.lt.u32.totalorder %s17359_s11, %s19995_s15 }
 0x324   : > { %p17361_p5 = pnand %p17360_p4, %p16003_p3 }
 0x326   : > { %p17362_p6 = pneg %p17361_p5 }
 0x328   : > { %p17367_p8 = pnand %p17365_p7, %p17362_p6 }
 0x32a   : > { %17370 = shalt.err (!%p17367_p8)
}
 0x32b   : > { %s17371_s5 = scalar_lea.vmem %s1600_s9, 3072  ;;  %p17378_p12 = scmp.lt.s32.totalorder %s1600_s9, %s1600_s9 }
 0x32c   : > { %p17372_p9 = scmp.ne.s32.totalorder %s1600_s9, %s17371_s5  ;;  %p17379_p13 = scmp.lt.s32.totalorder %s17371_s5, %s17371_s5 }
 0x32e   : > { %p17373_p10 = pnand %p17372_p9, %p16003_p3  ;;  %p17380_p0 = por %p17379_p13, %p17378_p12 }
 0x330   : > { %p17374_p11 = pneg %p17373_p10 }
 0x332   : > { %p17381_p1 = pnand %p17380_p0, %p17374_p11 }
 0x334   : > { %17384 = shalt.err (!%p17381_p1)
}
 0x335   : > { %s19996_s8 = sld [smem:[#allocation106_spill]]  ;;  %s17621_s6 = smov [#allocation45]  }
 0x336   : > { %15928 = dma.hbm_to_vmem [thread:$0]  (%p16003_p3), %s19995_s15, 3072, %s1600_s9, [#allocation41], %s19984_s2, %s19984_s2, %s19983_s7  }
 0x337   : > { %s1634_s10 = sshll.u32 %s17621_s6, 4  ;;  %s17622_s14 = smov [#allocation48]   ;;  %s1635_s10 = int_to_ptr.vmem [resolvable:$true] %s1634_s10 }
 0x338   : > { %s1660_s11 = sshll.u32 %s17622_s14, 4  ;;  %s1661_s11 = int_to_ptr.vmem [resolvable:$true] %s1660_s11 }
 0x33b   : > { %s17385_s5 = scalar_lea.hbm %s19996_s8, 512 }
 0x33c   : > { %p17386_p4 = scmp.ne.s32.totalorder %s19996_s8, %s17385_s5  ;;  %p17391_p7 = scmp.lt.u32.totalorder %s17385_s5, %s19996_s8 }
 0x33e   : > { %p17387_p5 = pnand %p17386_p4, %p16003_p3 }
 0x340   : > { %p17388_p6 = pneg %p17387_p5 }
 0x342   : > { %p17393_p8 = pnand %p17391_p7, %p17388_p6 }
 0x344   : > { %17396 = shalt.err (!%p17393_p8)
}
 0x345   : > { %s17397_s1 = scalar_lea.vmem %s1635_s10, 512  ;;  %p17404_p12 = scmp.lt.s32.totalorder %s1635_s10, %s1635_s10 }
 0x346   : > { %p17398_p9 = scmp.ne.s32.totalorder %s1635_s10, %s17397_s1  ;;  %p17405_p13 = scmp.lt.s32.totalorder %s17397_s1, %s17397_s1 }
 0x348   : > { %p17399_p10 = pnand %p17398_p9, %p16003_p3  ;;  %p17406_p0 = por %p17405_p13, %p17404_p12 }
 0x34a   : > { %p17400_p11 = pneg %p17399_p10 }
 0x34c   : > { %p17407_p1 = pnand %p17406_p0, %p17400_p11 }
 0x34e   : > { %17410 = shalt.err (!%p17407_p1)
}
 0x34f   : > { %15932 = dma.hbm_to_vmem [thread:$0]  (%p16003_p3), %s19996_s8, 512, %s1635_s10, [#allocation44], %s19984_s2, %s19984_s2, %s19983_s7  }
 0x350   : > { %s17411_s9 = scalar_lea.hbm %s19971_s3, 3072 }
 0x351   : > { %p17412_p4 = scmp.ne.s32.totalorder %s19971_s3, %s17411_s9  ;;  %p17417_p7 = scmp.lt.u32.totalorder %s17411_s9, %s19971_s3 }
 0x353   : > { %p17413_p5 = pnand %p17412_p4, %p16003_p3 }
 0x355   : > { %p17414_p6 = pneg %p17413_p5 }
 0x357   : > { %p17419_p8 = pnand %p17417_p7, %p17414_p6 }
 0x359   : > { %17422 = shalt.err (!%p17419_p8)
}
 0x35a   : > { %s17423_s1 = scalar_lea.vmem %s1661_s11, 3072  ;;  %p17430_p12 = scmp.lt.s32.totalorder %s1661_s11, %s1661_s11 }
 0x35b   : > { %p17424_p9 = scmp.ne.s32.totalorder %s1661_s11, %s17423_s1  ;;  %p17431_p13 = scmp.lt.s32.totalorder %s17423_s1, %s17423_s1 }
 0x35d   : > { %p17425_p10 = pnand %p17424_p9, %p16003_p3  ;;  %p17432_p0 = por %p17431_p13, %p17430_p12 }
 0x35f   : > { %p17426_p11 = pneg %p17425_p10 }
 0x361   : > { %p17433_p1 = pnand %p17432_p0, %p17426_p11 }
 0x363   : > { %17436 = shalt.err (!%p17433_p1)
}
 0x364   : > { %15936 = dma.hbm_to_vmem [thread:$0]  (%p16003_p3), %s19971_s3, 3072, %s1661_s11, [#allocation47], %s19984_s2, %s19984_s2, %s19983_s7  }
 0x365   : > { %s17623_s6 = smov [#allocation49]   ;;  %s17437_s14 = scalar_lea.hbm %s17884_s4, 3072 }
 0x366   : > { %s1673_s10 = sshll.u32 %s17623_s6, 4  ;;  %p17438_p4 = scmp.ne.s32.totalorder %s17884_s4, %s17437_s14  ;;  %s1674_s10 = int_to_ptr.vmem [resolvable:$true] %s1673_s10 }
 0x367   : > { %p17443_p7 = scmp.lt.u32.totalorder %s17437_s14, %s17884_s4 }
 0x368   : > { %p17439_p5 = pnand %p17438_p4, %p16003_p3 }
 0x36a   : > { %p17440_p6 = pneg %p17439_p5 }
 0x36c   : > { %p17445_p8 = pnand %p17443_p7, %p17440_p6 }
 0x36e   : > { %17448 = shalt.err (!%p17445_p8)
}
 0x36f   : > { %s17449_s5 = scalar_lea.vmem %s1674_s10, 3072  ;;  %p17456_p12 = scmp.lt.s32.totalorder %s1674_s10, %s1674_s10 }
 0x370   : > { %p17450_p9 = scmp.ne.s32.totalorder %s1674_s10, %s17449_s5  ;;  %p17457_p13 = scmp.lt.s32.totalorder %s17449_s5, %s17449_s5 }
 0x372   : > { %p17451_p10 = pnand %p17450_p9, %p16003_p3  ;;  %p17458_p0 = por %p17457_p13, %p17456_p12 }
 0x374   : > { %p17452_p11 = pneg %p17451_p10 }
 0x376   : > { %p17459_p1 = pnand %p17458_p0, %p17452_p11 }
 0x378   : > { %17462 = shalt.err (!%p17459_p1)
}
 0x379   : > { %15938 = dma.hbm_to_vmem [thread:$0]  (%p16003_p3), %s17884_s4, 3072, %s1674_s10, [#allocation50], %s19984_s2, %s19984_s2, %s19983_s7  }
 0x37a PF: > { %1700 = sbr.rel (%p17906_p2) target bundleno = 13166 (0x336e), region = 224  ;;  %p16035_p4 = scmp.eq.s32.totalorder (!%p17906_p2), %s17902_s0, 0 }
 0x381   : > { %17468 = dma.done.wait (%p16035_p4), [#allocation3], 16  }
 0x382   : > { %17470 = vsyncadd (%p16035_p4), [#allocation3], 4294967280 }
 0x383   : > { %17472 = dma.done.wait (%p16035_p4), [#allocation5], 1552  }
 0x384   : > { %17474 = vsyncadd (%p16035_p4), [#allocation5], 4294965744 }
 0x385   : > { %17476 = dma.done.wait (%p16035_p4), [#allocation8], 1552  }
 0x386   : > { %17478 = vsyncadd (%p16035_p4), [#allocation8], 4294965744 }
 0x387   : > { %17480 = dma.done.wait (%p16035_p4), [#allocation11], 32  }
 0x388   : > { %17482 = vsyncadd (%p16035_p4), [#allocation11], 4294967264 }
 0x389   : > { %17484 = dma.done.wait (%p16035_p4), [#allocation14], 1552  }
 0x38a   : > { %17486 = vsyncadd (%p16035_p4), [#allocation14], 4294965744 }
 0x38b   : > { %17488 = dma.done.wait (%p16035_p4), [#allocation17], 1552  }
 0x38c   : > { %17490 = vsyncadd (%p16035_p4), [#allocation17], 4294965744 }
 0x38d   : > { %17492 = dma.done.wait (%p16035_p4), [#allocation20], 1552  }
 0x38e   : > { %17494 = vsyncadd (%p16035_p4), [#allocation20], 4294965744 }
 0x38f   : > { %17496 = dma.done.wait (%p16035_p4), [#allocation23], 400  }
 0x390   : > { %17498 = vsyncadd (%p16035_p4), [#allocation23], 4294966896 }
 0x391   : > { %17500 = dma.done.wait (%p16035_p4), [#allocation26], 32  }
 0x392   : > { %17502 = vsyncadd (%p16035_p4), [#allocation26], 4294967264 }
 0x393   : > { %17504 = dma.done.wait (%p16035_p4), [#allocation29], 528  }
 0x394   : > { %17506 = vsyncadd (%p16035_p4), [#allocation29], 4294966768 }
 0x395   : > { %17508 = dma.done.wait (%p16035_p4), [#allocation32], 3088  }
 0x396   : > { %17510 = vsyncadd (%p16035_p4), [#allocation32], 4294964208 }
 0x397   : > { %17512 = dma.done.wait (%p16035_p4), [#allocation35], 32  }
 0x398   : > { %17514 = vsyncadd (%p16035_p4), [#allocation35], 4294967264 }
 0x399   : > { %17516 = dma.done.wait (%p16035_p4), [#allocation38], 3584  }
 0x39a   : > { %17518 = vsyncadd (%p16035_p4), [#allocation38], 4294963712 }
 0x39b   : > { %17520 = dma.done.wait (%p16035_p4), [#allocation41], 3584  }
 0x39c   : > { %17522 = vsyncadd (%p16035_p4), [#allocation41], 4294963712 }
 0x39d   : > { %17524 = dma.done.wait (%p16035_p4), [#allocation44], 3584  }
 0x39e   : > { %17526 = vsyncadd (%p16035_p4), [#allocation44], 4294963712 }
 0x39f   : > { %17528 = dma.done.wait (%p16035_p4), [#allocation47], 6144  }
 0x3a0   : > { %17530 = vsyncadd (%p16035_p4), [#allocation47], 4294961152 }
 0x3a1   : > { %17532 = dma.done.wait (%p16035_p4), [#allocation50], 3072  }
 0x3a2   : > { %17534 = vsyncadd (%p16035_p4), [#allocation50], 4294964224  ;;  %s19997_s23 = sld [smem:[#allocation68_spill]]  ;;  %p1944_p2 = scmp.lt.s32.totalorder %s17902_s0, 1  ;;  %v1957_v0 = vlaneseq  ;;  %v17624_v1 = vmov 0.0   ;;  %vm19923_vm3 = vcmask 130048  }
 0x3a3   : > { %13986 = vmatprep.subr.bf16.mxu1 %v17624_v1  ;;  %v16167_v15 = vld [vmem:[#allocation24] sm:$0xff]   ;;  %vm17625_vm4 = vmmov 0   ;;  %v16168_v16 = vld [vmem:[#allocation24 + $0x8] sm:$0xff]   ;;  %vm19922_vm5 = vcmask 1046528   ;;  %vm19921_vm6 = vsmask.f32 7424 }
 0x3a4   : > { %s20037_s0 = smov (!%p1944_p2, %s17902_s0), 1  ;;  %v18414_v2 = vshrl.u32 %v1957_v0, 7  ;;  %v18416_v3 = vand.u32 127, %v1957_v0  ;;  %13988 = vmatprep.mubr.msk.bf16.mxu1 %vm17625_vm4, %v17624_v1  ;;  %13987 = vmatpush3.bf16.msra.mxu1 %v16168_v16  ;;  %s19998_s11 = sld [smem:[#allocation83_spill]]  ;;  %v16169_v30 = vld [vmem:[#allocation24 + $0x10] sm:$0xff]   ;;  %vm17628_vm9 = vmmov 1  }
 0x3a5   : > { %s19926_s7 = sshll.u32 %s20037_s0, 4  ;;  %13998 = vmatprep.subr.bf16.mxu1 %v17624_v1  ;;  %v12339_v50 = vld [vmem:[#allocation21] ss:$0 sm:$0xff]  ;;  %s19999_s9 = sld [smem:[#allocation71_spill]] }
 0x3a6   : > { %v18420_v4 = vadd.s32 8, %v18414_v2  ;;  %v1963_v5 = vadd.s32 1, %v18416_v3  ;;  %v18424_v6 = vadd.s32 16, %v18414_v2  ;;  %s20000_s1 = sld [smem:[#allocation69_spill]]  ;;  %s20001_s6 = sld [smem:[#allocation74_spill]] }
 0x3a7   : > { %s20002_s10 = sld [smem:[#allocation77_spill]]  ;;  %s20003_s14 = sld [smem:[#allocation89_spill]] }
 0x3a8   : > { %s1948_s2 = scalar_lea.vmem %s19997_s23, %s19926_s7  ;;  %vm1964_vm0 = vcmp.eq.s32.totalorder %v18414_v2, %v1963_v5  ;;  %vm1965_vm1 = vcmp.eq.s32.totalorder %v18420_v4, %v1963_v5  ;;  %vm1966_vm2 = vcmp.eq.s32.totalorder %v18424_v6, %v1963_v5  ;;  %s20004_s5 = sld [smem:[#allocation88_spill]] }
 0x3a9   : > { %v1955_v7 = vld [vmem:[%s1948_s2] sm:$0xff]  ;;  %v1956_v8 = vld [vmem:[%s1948_s2 + $0x8] sm:$0xff]  ;;  %v18433_v9 = vsel %vm1964_vm0, 1.0, %v17624_v1  ;;  %v1968_v10 = vsel %vm1965_vm1, 1.0, %v17624_v1  ;;  %v1969_v11 = vsel %vm1966_vm2, 1.0, %v17624_v1  ;;  %s20005_s23 = sld [smem:[#allocation97_spill]] }
 0x3aa   : > { %v1972_v12 = vpack.c.bf16 %v1956_v8, %v1955_v7  ;;  %v18438_v13 = vpack.c.bf16 %v1968_v10, %v18433_v9  ;;  %v18442_v14 = vpack.c.bf16 %v1969_v11, %v1969_v11  ;;  %v16172_v34 = vld [vmem:[%s19998_s11 + $0x40] sm:$0xff]   ;;  %v16174_v35 = vld [vmem:[%s19998_s11 + $0x48] sm:$0xff]   ;;  %v16176_v36 = vld [vmem:[%s19998_s11 + $0x50] sm:$0xff]   ;;  %s20006_s2 = sld [smem:[#allocation95_spill]]  ;;  %s20014_s7 = sld [smem:[#allocation98_spill]] }
 0x3ab   : > { %v16178_v37 = vld [vmem:[%s19998_s11 + $0x58] sm:$0xff]   ;;  %v16180_v38 = vld [vmem:[%s19998_s11 + $0x60] sm:$0xff]   ;;  %v16171_v62 = vld [vmem:[%s19998_s11 + $0x8] sm:$0xff]  }
 0x3ac   : > { %13980 = vmatprep.subr.bf16.mxu0 %v1972_v12  ;;  %13982 = vmatprep.mubr.msk.bf16.mxu0 %vm19923_vm3, %v18438_v13  ;;  %v16170_v61 = vld [vmem:[%s19998_s11] sm:$0xff]   ;;  %v16173_v63 = vld [vmem:[%s19998_s11 + $0x10] sm:$0xff]   ;;  %v16175_v0 = vld [vmem:[%s19998_s11 + $0x18] sm:$0xff]  }
 0x3ad   : > { %13981 = vmatpush3.bf16.msra.mxu0 %v1972_v12  ;;  %v16177_v5 = vld [vmem:[%s19998_s11 + $0x20] sm:$0xff]   ;;  %v16179_v7 = vld [vmem:[%s19998_s11 + $0x28] sm:$0xff]   ;;  %v16181_v8 = vld [vmem:[%s19998_s11 + $0x30] sm:$0xff]  }
 0x3ae   : > { %13992 = vmatprep.subr.bf16.mxu0 %v17624_v1  ;;  %v16182_v10 = vld [vmem:[%s19998_s11 + $0x68] sm:$0xff]   ;;  %v16183_v11 = vld [vmem:[%s19998_s11 + $0x38] sm:$0xff]   ;;  %v16184_v12 = vld [vmem:[%s19998_s11 + $0x70] sm:$0xff]  }
 0x3b0   : > { %13983 = vmatmul.mubr.msk.bf16.vlgmr.msra.gmra.mrb[0].mxu0 %vm19923_vm3, %v18442_v14 }
 0x3b1   : > { %13993 = vmatpush3.bf16.msra.mxu0 %v16167_v15  ;;  %13994 = vmatprep.mubr.msk.bf16.mxu0 %vm17625_vm4, %v17624_v1  ;;  %v16185_v15 = vld [vmem:[%s19998_s11 + $0x78] sm:$0xff]  }
 0x483   : > { %v13984_v17 = vpop.f32.mrb[0].mxu0 }
 0x484   : > { %v2029_v18 = vpack.c.bf16 %v13984_v17, %v13984_v17  ;;  %v2014_v19 = vpop.f32.mrb[1].mxu0 }
 0x485   : > { %v13985_v20 = vpop.f32.mrb[2].mxu0 }
 0x486   : > { %v2044_v21 = vshll.u32 %v2029_v18, 16  ;;  %v2017_v22 = vpop.f32.mrb[3].mxu0  ;;  %v2154_v25 = vrot.slane %v2029_v18, 1 }
 0x487   : > { %v2028_v23 = vpack.c.bf16 %v2017_v22, %v2014_v19 }
 0x488   : > { %v2046_v24 = vrot.slane %v2044_v21, 1 }
 0x489   : > { %v2039_v26 = vshll.u32 %v2028_v23, 16  ;;  %v2153_v27 = vrot.slane %v2028_v23, 1  ;;  %13995 = vmatmul.mubr.msk.bf16.vlgmr.msra.gmra.mrb[4].mxu0 %vm19923_vm3, %v2028_v23  ;;  %v2037_v28 = vshrl.u32 %v2028_v23, 16 }
 0x48a   : > { %14006 = vmatprep.mubr.msk.bf16.mxu0 %vm19923_vm3, %v18438_v13 }
 0x48b   : > { %v2041_v29 = vrot.slane %v2039_v26, 1  ;;  %v2155_v31 = vsel %vm19922_vm5, %v2153_v27, %v2154_v25 }
 0x48d   : > { %v2042_v32 = vor.u32 %v2041_v29, %v2037_v28 }
 0x48f   : > { %v2047_v33 = vsel %vm19921_vm6, %v2042_v32, %v2046_v24 }
 0x490   : > { %13989 = vmatmul.mubr.msk.bf16.vlgmr.msra.gmra.mrb[0].mxu1 %vm19923_vm3, %v2047_v33  ;;  %v16187_v33 = vld [vmem:[%s19998_s11 + $0x88] sm:$0xff]  }
 0x491   : > { %13999 = vmatpush3.bf16.msra.mxu1 %v16169_v30  ;;  %14000 = vmatprep.mubr.msk.bf16.mxu1 %vm17625_vm4, %v17624_v1 }
 0x492   : > { %14010 = vmatprep.subr.bf16.mxu1 %v17624_v1 }
 0x498   : > { %14001 = vmatmul.mubr.msk.bf16.vlgmr.msra.gmra.mrb[4].mxu1 %vm19923_vm3, %v2155_v31  ;;  %v16186_v31 = vld [vmem:[%s19998_s11 + $0x80] sm:$0xff]  }
 0x499   : > { %14026 = vmatprep.mubr.msk.bf16.mxu1 %vm17625_vm4, %v17624_v1  ;;  %14011 = vmatpush3.bf16.msra.mxu1 %v16172_v34  ;;  %v16188_v34 = vld [vmem:[%s19998_s11 + $0x90] sm:$0xff]  }
 0x49a   : > { %14012 = vmatprep.subr.bf16.mxu1 %v17624_v1 }
 0x49d   : > { %14013 = vmatpush3.bf16.msra.mxu1 %v16174_v35  ;;  %v16189_v35 = vld [vmem:[%s19998_s11 + $0x98] sm:$0xff]  }
 0x49e   : > { %14014 = vmatprep.subr.bf16.mxu1 %v17624_v1 }
 0x4a1   : > { %14015 = vmatpush3.bf16.msra.mxu1 %v16176_v36  ;;  %v16190_v36 = vld [vmem:[%s19998_s11 + $0xa0] sm:$0xff]  }
 0x4a2   : > { %14016 = vmatprep.subr.bf16.mxu1 %v17624_v1 }
 0x4a5   : > { %14017 = vmatpush3.bf16.msra.mxu1 %v16178_v37  ;;  %v16191_v37 = vld [vmem:[%s19998_s11 + $0xa8] sm:$0xff]  }
 0x4a6   : > { %14018 = vmatprep.subr.bf16.mxu1 %v17624_v1 }
 0x4a9   : > { %14019 = vmatpush3.bf16.msra.mxu1 %v16180_v38  ;;  %v16192_v38 = vld [vmem:[%s19998_s11 + $0xb0] sm:$0xff]  }
 0x4aa   : > { %14020 = vmatprep.subr.bf16.mxu1 %v17624_v1 }
 0x4ad   : > { %14021 = vmatpush3.bf16.msra.mxu1 %v16182_v10 }
 0x4ae   : > { %14022 = vmatprep.subr.bf16.mxu1 %v17624_v1 }
 0x4b1   : > { %14023 = vmatpush3.bf16.msra.mxu1 %v16184_v12 }
 0x4b2   : > { %14024 = vmatprep.subr.bf16.mxu1 %v17624_v1 }
 0x4b5   : > { %14025 = vmatpush3.bf16.msra.mxu1 %v16185_v15 }
 0x4b6   : > { %14050 = vmatprep.subr.bf16.mxu1 %v17624_v1 }
 0x55c   : > { %v2140_v39 = vpop.f32.mrb[4].mxu0 }
 0x55d   : > { %v13996_v40 = vpop.f32.mrb[5].mxu0 }
 0x55e   : > { %v2143_v41 = vpop.f32.mrb[6].mxu0  ;;  %v17626_v40 = vmov 0.0|0.0  }
 0x55f   : > { %v13997_v42 = vpop.f32.mrb[7].mxu0 }
 0x563   : > { %v2091_v43 = vpop.f32.mrb[0].mxu1 }
 0x564   : > { %v2141_v44 = vadd.f32 %v2140_v39, %v2091_v43  ;;  %v13990_v45 = vpop.f32.mrb[1].mxu1  ;;  %v16193_v39 = vld [vmem:[%s19998_s11 + $0xb8] sm:$0xff]   ;;  %v18530_v43 = vadd.s32 24, %v18414_v2 }
 0x565   : > { %v2094_v46 = vpop.f32.mrb[2].mxu1  ;;  %v17627_v45 = vmov 1.0  }
 0x566   : > { %v2144_v47 = vadd.f32 %v2143_v41, %v2094_v46  ;;  %v13991_v48 = vpop.f32.mrb[3].mxu1  ;;  %v2785_v41 = vand.u32 4294967288, %v18416_v3  ;;  %v18537_v46 = vpack.c.bf16 %v17627_v45, %v17624_v1 }
 0x567   : > { %v18553_v48 = vadd.s32 56, %v18414_v2 }
 0x568   : > { %v18527_v42 = vadd.s32 %v2785_v41, %v18416_v3 }
 0x56b   : > { %v2199_v49 = vpop.f32.mrb[4].mxu1 }
 0x56c   : > { %v2206_v51 = vadd.f32 %v2199_v49, %v2141_v44  ;;  %v14002_v52 = vpop.f32.mrb[5].mxu1  ;;  %v18533_v44 = vadd.s32 8, %v18527_v42  ;;  %v18561_v49 = vadd.s32 72, %v18414_v2 }
 0x56d   : > { %v2202_v53 = vpop.f32.mrb[6].mxu1 }
 0x56e   : > { %v2215_v54 = vadd.f32 %v12339_v50, %v2206_v51  ;;  %v2207_v55 = vadd.f32 %v2202_v53, %v2144_v47  ;;  %v14003_v56 = vpop.f32.mrb[7].mxu1  ;;  %vm2891_vm7 = vcmp.eq.s32.totalorder %v18420_v4, %v18533_v44  ;;  %vm2893_vm8 = vcmp.eq.s32.totalorder %v18530_v43, %v18533_v44 }
 0x56f   : > { %v18544_v47 = vadd.s32 40, %v18414_v2  ;;  %vm15707_vm10 = vmpackc.low %vm2891_vm7, %vm17628_vm9  ;;  %vm2897_vm14 = vcmp.eq.s32.totalorder %v18553_v48, %v18533_v44  ;;  %vm2899_vm0 = vcmp.eq.s32.totalorder %v18561_v49, %v18533_v44 }
 0x570   : > { %v2216_v57 = vadd.f32 %v12339_v50, %v2207_v55  ;;  %v2217_v58 = vmax.f32 %v2215_v54, 0.0  ;;  %vm15711_vm11 = vmpackc.low %vm2893_vm8, %vm17628_vm9  ;;  %v18569_v50 = vadd.s32 88, %v18414_v2 }
 0x571   : > { %vm2895_vm12 = vcmp.eq.s32.totalorder %v18544_v47, %v18533_v44  ;;  %vm15719_vm15 = vmpackc.low %vm2897_vm14, %vm17628_vm9 }
 0x572   : > { %v2218_v59 = vmax.f32 %v2216_v57, 0.0  ;;  %vm15715_vm13 = vmpackc.low %vm2895_vm12, %vm17628_vm9  ;;  %vm2901_vm2 = vcmp.eq.s32.totalorder %v18569_v50, %v18533_v44 }
 0x573   : > { %vm15723_vm1 = vmpackc.low %vm2899_vm0, %vm17628_vm9 }
 0x574   : > { %v2219_v60 = vpack.c.bf16 %v2218_v59, %v2217_v58  ;;  %vm15727_vm7 = vmpackc.low %vm2901_vm2, %vm17628_vm9 }
 0x576   : > { %14004 = vmatprep.subr.bf16.mxu0 %v2219_v60 }
 0x577   : > { %14005 = vmatpush3.bf16.msra.mxu0 %v2219_v60 }
 0x578   : > { %14030 = vmatprep.subr.bf16.mxu0 %v17624_v1 }
 0x57a   : > { %14007 = vmatmul.mubr.msk.bf16.vlgmr.msra.gmra.mrb[8].mxu0 %vm19923_vm3, %v18442_v14 }
 0x57b   : > { %14031 = vmatpush3.bf16.msra.mxu0 %v16170_v61  ;;  %14046 = vmatprep.mubr.msk.bf16.mxu0 %vm17625_vm4, %v17624_v1 }
 0x57c   : > { %14032 = vmatprep.subr.bf16.mxu0 %v17624_v1 }
 0x57f   : > { %14033 = vmatpush3.bf16.msra.mxu0 %v16171_v62  ;;  %v12398_v62 = vld [vmem:[#allocation22] ss:$0 sm:$0xff] }
 0x580   : > { %14034 = vmatprep.subr.bf16.mxu0 %v17624_v1 }
 0x583   : > { %14035 = vmatpush3.bf16.msra.mxu0 %v16173_v63 }
 0x584   : > { %14036 = vmatprep.subr.bf16.mxu0 %v17624_v1 }
 0x587   : > { %14037 = vmatpush3.bf16.msra.mxu0 %v16175_v0 }
 0x588   : > { %14038 = vmatprep.subr.bf16.mxu0 %v17624_v1 }
 0x58b   : > { %14039 = vmatpush3.bf16.msra.mxu0 %v16177_v5 }
 0x58c   : > { %14040 = vmatprep.subr.bf16.mxu0 %v17624_v1 }
 0x58f   : > { %14041 = vmatpush3.bf16.msra.mxu0 %v16179_v7 }
 0x590   : > { %14042 = vmatprep.subr.bf16.mxu0 %v17624_v1 }
 0x593   : > { %14043 = vmatpush3.bf16.msra.mxu0 %v16181_v8 }
 0x594   : > { %14044 = vmatprep.subr.bf16.mxu0 %v17624_v1 }
 0x597   : > { %14045 = vmatpush3.bf16.msra.mxu0 %v16183_v11  ;;  %v2619_v11 = vmul.u32 2, %v18414_v2 }
 0x598   : > { %15671 = vmatprep.subr.bf16.mxu0 %v17626_v40 }
 0x599   : > { %vm2620_vm8 = vcmp.eq.s32.totalorder %v18416_v3, %v2619_v11 }
 0x64d   : > { %v14008_v16 = vpop.f32.mrb[8].mxu0 }
 0x64e   : > { %v2254_v17 = vpop.f32.mrb[9].mxu0  ;;  %v2269_v18 = vpack.c.bf16 %v14008_v16, %v14008_v16 }
 0x64f   : > { %v14009_v19 = vpop.f32.mrb[10].mxu0 }
 0x650   : > { %v2257_v20 = vpop.f32.mrb[11].mxu0  ;;  %v2311_v22 = vshll.u32 %v2269_v18, 16  ;;  %v2514_v23 = vrot.slane %v2269_v18, 1  ;;  %v18587_v19 = vsel %vm2620_vm8, 1.0, %v17624_v1 }
 0x651   : > { %v2268_v21 = vpack.c.bf16 %v2257_v20, %v2254_v17  ;;  %v2695_v17 = vadd.s32 1, %v2619_v11 }
 0x652   : > { %v2313_v29 = vrot.slane %v2311_v22, 1  ;;  %v18608_v22 = vadd.s32 32, %v18414_v2 }
 0x653   : > { %v2306_v24 = vshll.u32 %v2268_v21, 16  ;;  %14047 = vmatmul.mubr.bf16.vlgmr.msra.gmra.mrb[12].mxu0 %v2268_v21  ;;  %v2513_v25 = vrot.slane %v2268_v21, 1  ;;  %v2304_v26 = vshrl.u32 %v2268_v21, 16  ;;  %v15678_v21 = vpack.c.bf16 %v17624_v1, %v17627_v45 }
 0x654   : > { %14074 = vmatprep.mubr.msk.f32.mxu0 %vm17625_vm4, %v17624_v1 }
 0x655   : > { %v2308_v27 = vrot.slane %v2306_v24, 1  ;;  %v2515_v28 = vsel %vm19922_vm5, %v2513_v25, %v2514_v23  ;;  %v18619_v23 = vadd.s32 48, %v18414_v2  ;;  %v18626_v24 = vadd.s32 64, %v18414_v2 }
 0x656   : > { %v18633_v25 = vadd.s32 80, %v18414_v2 }
 0x657   : > { %v2309_v30 = vor.u32 %v2308_v27, %v2304_v26  ;;  %v18643_v26 = vadd.s32 104, %v18414_v2  ;;  %v18648_v27 = vadd.s32 96, %v18414_v2 }
 0x659   : > { %v2314_v32 = vsel %vm19921_vm6, %v2309_v30, %v2313_v29  ;;  %v18664_v29 = vadd.s32 112, %v18414_v2 }
 0x65a   : > { %14027 = vmatmul.mubr.bf16.vlgmr.msra.gmra.mrb[8].mxu1 %v2314_v32 }
 0x65b   : > { %14051 = vmatpush3.bf16.msra.mxu1 %v16186_v31  ;;  %14066 = vmatprep.mubr.msk.bf16.mxu1 %vm17625_vm4, %v17624_v1 }
 0x65c   : > { %14052 = vmatprep.subr.bf16.mxu1 %v17624_v1 }
 0x65f   : > { %14053 = vmatpush3.bf16.msra.mxu1 %v16187_v33 }
 0x660   : > { %14054 = vmatprep.subr.bf16.mxu1 %v17624_v1 }
 0x663   : > { %14055 = vmatpush3.bf16.msra.mxu1 %v16188_v34 }
 0x664   : > { %14056 = vmatprep.subr.bf16.mxu1 %v17624_v1 }
 0x667   : > { %14057 = vmatpush3.bf16.msra.mxu1 %v16189_v35  ;;  %v16194_v35 = vld [vmem:[#allocation4] sm:$0xff]  }
 0x668   : > { %14058 = vmatprep.subr.bf16.mxu1 %v17624_v1 }
 0x66b   : > { %14059 = vmatpush3.bf16.msra.mxu1 %v16190_v36  ;;  %v16195_v36 = vld [vmem:[#allocation4 + $0x8] sm:$0xff]  }
 0x66c   : > { %14060 = vmatprep.subr.bf16.mxu1 %v17624_v1 }
 0x66f   : > { %14061 = vmatpush3.bf16.msra.mxu1 %v16191_v37  ;;  %v16197_v37 = vld [vmem:[#allocation4 + $0x10] sm:$0xff]  }
 0x670   : > { %14062 = vmatprep.subr.bf16.mxu1 %v17624_v1 }
 0x673   : > { %14063 = vmatpush3.bf16.msra.mxu1 %v16192_v38 }
 0x674   : > { %14064 = vmatprep.subr.bf16.mxu1 %v17624_v1 }
 0x677   : > { %14065 = vmatpush3.bf16.msra.mxu1 %v16193_v39 }
 0x678   : > { %15705 = vmatprep.subr.bf16.mxu1 %v17626_v40 }
 0x67a   : > { %14067 = vmatmul.mubr.bf16.vlgmr.msra.gmra.mrb[12].mxu1 %v2515_v28  ;;  %v18655_v28 = vadd.s32 120, %v18414_v2 }
 0x67b   : > { %14149 = vmatprep.mubr.msk.f32.mxu1 %vm17625_vm4, %v17624_v1  ;;  %15708 = vmatpush3.bf16.msk.msra.mxu1 %vm15707_vm10, %v18537_v46  ;;  %vm2696_vm10 = vcmp.eq.s32.totalorder %v18416_v3, %v2695_v17  ;;  %v16214_v17 = vld [vmem:[%s19999_s9 + $0x58] sm:$0xff]  }
 0x67c   : > { %15709 = vmatprep.subr.bf16.mxu1 %v17626_v40  ;;  %v18599_v20 = vsel %vm2696_vm10, 1.0, %v17624_v1  ;;  %vm2797_vm10 = vcmp.eq.s32.totalorder %v18633_v25, %v18527_v42 }
 0x67f   : > { %15712 = vmatpush3.bf16.msk.msra.mxu1 %vm15711_vm11, %v18537_v46  ;;  %vm2787_vm11 = vcmp.eq.s32.totalorder %v18414_v2, %v18527_v42 }
 0x680   : > { %15713 = vmatprep.subr.bf16.mxu1 %v17626_v40  ;;  %vm15679_vm12 = vmpackc.low %vm17628_vm9, %vm2787_vm11 }
 0x681   : > { %vm15699_vm11 = vmpackc.low %vm17628_vm9, %vm2797_vm10 }
 0x683   : > { %15716 = vmatpush3.bf16.msk.msra.mxu1 %vm15715_vm13, %v18537_v46  ;;  %vm2789_vm13 = vcmp.eq.s32.totalorder %v18424_v6, %v18527_v42 }
 0x684   : > { %15717 = vmatprep.subr.bf16.mxu1 %v17626_v40  ;;  %vm15683_vm14 = vmpackc.low %vm17628_vm9, %vm2789_vm13 }
 0x687   : > { %15720 = vmatpush3.bf16.msk.msra.mxu1 %vm15719_vm15, %v18537_v46  ;;  %vm2791_vm15 = vcmp.eq.s32.totalorder %v18608_v22, %v18527_v42 }
 0x688   : > { %15721 = vmatprep.subr.bf16.mxu1 %v17626_v40  ;;  %vm15687_vm0 = vmpackc.low %vm17628_vm9, %vm2791_vm15 }
 0x68b   : > { %15724 = vmatpush3.bf16.msk.msra.mxu1 %vm15723_vm1, %v18537_v46  ;;  %vm2793_vm1 = vcmp.eq.s32.totalorder %v18619_v23, %v18527_v42 }
 0x68c   : > { %15725 = vmatprep.subr.bf16.mxu1 %v17626_v40  ;;  %vm15691_vm2 = vmpackc.low %vm17628_vm9, %vm2793_vm1 }
 0x68f   : > { %15728 = vmatpush3.bf16.msk.msra.mxu1 %vm15727_vm7, %v18537_v46  ;;  %vm2795_vm7 = vcmp.eq.s32.totalorder %v18626_v24, %v18527_v42 }
 0x690   : > { %15729 = vmatprep.subr.bf16.mxu1 %v17626_v40  ;;  %vm15695_vm8 = vmpackc.low %vm17628_vm9, %vm2795_vm7  ;;  %vm19924_vm7 = vcmask 64512  }
 0x726   : > { %v2487_v51 = vpop.f32.mrb[12].mxu0 }
 0x727   : > { %v14048_v52 = vpop.f32.mrb[13].mxu0 }
 0x728   : > { %v2490_v53 = vpop.f32.mrb[14].mxu0  ;;  %v16198_v52 = vld [vmem:[#allocation4 + $0x28] sm:$0xff]  }
 0x729   : > { %v14049_v54 = vpop.f32.mrb[15].mxu0 }
 0x72a   : > { %v16200_v54 = vld [vmem:[#allocation4 + $0x30] sm:$0xff]  }
 0x72d   : > { %v2398_v55 = vpop.f32.mrb[8].mxu1 }
 0x72e   : > { %v2488_v56 = vadd.f32 %v2487_v51, %v2398_v55  ;;  %v14028_v57 = vpop.f32.mrb[9].mxu1  ;;  %v16196_v51 = vld [vmem:[#allocation4 + $0x20] sm:$0xff]   ;;  %v16201_v55 = vld [vmem:[#allocation4 + $0x38] sm:$0xff]  }
 0x72f   : > { %v2401_v58 = vpop.f32.mrb[10].mxu1 }
 0x730   : > { %v2491_v59 = vadd.f32 %v2490_v53, %v2401_v58  ;;  %v14029_v60 = vpop.f32.mrb[11].mxu1  ;;  %v16199_v53 = vld [vmem:[#allocation4 + $0x18] sm:$0xff]  }
 0x74d   : > { %v2599_v61 = vpop.f32.mrb[12].mxu1 }
 0x74e   : > { %v2606_v63 = vadd.f32 %v2599_v61, %v2488_v56  ;;  %v14068_v0 = vpop.f32.mrb[13].mxu1 }
 0x74f   : > { %v2602_v5 = vpop.f32.mrb[14].mxu1  ;;  %v16202_v0 = vld [vmem:[#allocation4 + $0x40] sm:$0xff]  }
 0x750   : > { %v2615_v7 = vadd.f32 %v12398_v62, %v2606_v63  ;;  %v2607_v8 = vadd.f32 %v2602_v5, %v2491_v59  ;;  %v14069_v10 = vpop.f32.mrb[15].mxu1 }
 0x751   : > { %v16205_v10 = vld [vmem:[#allocation4 + $0x58] sm:$0xff]  }
 0x752   : > { %v2616_v12 = vadd.f32 %v12398_v62, %v2607_v8  ;;  %v2617_v15 = vmax.f32 %v2615_v7, 0.0  ;;  %v16203_v7 = vld [vmem:[#allocation4 + $0x48] sm:$0xff]   ;;  %v16204_v8 = vld [vmem:[#allocation4 + $0x50] sm:$0xff]  }
 0x754   : > { %v2618_v16 = vmax.f32 %v2616_v12, 0.0  ;;  %v16208_v12 = vld [vmem:[%s19999_s9 + $0x40] sm:$0xff]  }
 0x756   : > { %v18583_v18 = vpack.c.bf16 %v2618_v16, %v2617_v15  ;;  %v16210_v15 = vld [vmem:[%s19999_s9 + $0x48] sm:$0xff]   ;;  %v16212_v16 = vld [vmem:[%s19999_s9 + $0x50] sm:$0xff]  }
 0x758   : > { %15673 = vmatpush3.bf16.msra.mxu0 %v18583_v18 }
 0x759   : > { %15674 = vmatprep.subr.bf16.mxu0 %v17626_v40 }
 0x75b   : > { %14075 = vmatmul.mubr.msk.f32.vlgmr.msra.gmra.mrb[16].mxu0 %vm19923_vm3, %v18587_v19 }
 0x75c   : > { %15676 = vmatpush3.bf16.msra.mxu0 %v18583_v18  ;;  %14081 = vmatprep.mubr.msk.f32.mxu0 %vm17625_vm4, %v17624_v1 }
 0x75d   : > { %15677 = vmatprep.subr.bf16.mxu0 %v17626_v40 }
 0x75f   : > { %14082 = vmatmul.mubr.msk.f32.vlgmr.msra.gmra.mrb[18].mxu0 %vm19923_vm3, %v18599_v20 }
 0x760   : > { %15680 = vmatpush3.bf16.msk.msra.mxu0 %vm15679_vm12, %v15678_v21  ;;  %14114 = vmatprep.mubr.msk.f32.mxu0 %vm17625_vm4, %v17624_v1  ;;  %vm2903_vm12 = vcmp.eq.s32.totalorder %v18643_v26, %v18533_v44 }
 0x761   : > { %15681 = vmatprep.subr.bf16.mxu0 %v17626_v40  ;;  %vm15731_vm13 = vmpackc.low %vm2903_vm12, %vm17628_vm9 }
 0x762   : > { %15732 = vmatpush3.bf16.msk.msra.mxu1 %vm15731_vm13, %v18537_v46 }
 0x763   : > { %15733 = vmatprep.subr.bf16.mxu1 %v17626_v40 }
 0x764   : > { %15684 = vmatpush3.bf16.msk.msra.mxu0 %vm15683_vm14, %v15678_v21  ;;  %vm2799_vm14 = vcmp.eq.s32.totalorder %v18648_v27, %v18527_v42 }
 0x765   : > { %15685 = vmatprep.subr.bf16.mxu0 %v17626_v40  ;;  %vm15703_vm15 = vmpackc.low %vm17628_vm9, %vm2799_vm14 }
 0x768   : > { %15688 = vmatpush3.bf16.msk.msra.mxu0 %vm15687_vm0, %v15678_v21  ;;  %vm2905_vm0 = vcmp.eq.s32.totalorder %v18655_v28, %v18533_v44 }
 0x769   : > { %15689 = vmatprep.subr.bf16.mxu0 %v17626_v40  ;;  %vm15735_vm1 = vmpackc.low %vm2905_vm0, %vm17628_vm9  ;;  %vm19925_vm9 = vcmask 1043456  }
 0x76a   : > { %15736 = vmatpush3.bf16.msk.msra.mxu1 %vm15735_vm1, %v18537_v46 }
 0x76b   : > { %14170 = vmatprep.subr.bf16.mxu1 %v17624_v1 }
 0x76c   : > { %15692 = vmatpush3.bf16.msk.msra.mxu0 %vm15691_vm2, %v15678_v21  ;;  %vm2801_vm2 = vcmp.eq.s32.totalorder %v18664_v29, %v18527_v42 }
 0x76d   : > { %15693 = vmatprep.subr.bf16.mxu0 %v17626_v40 }
 0x770   : > { %15696 = vmatpush3.bf16.msk.msra.mxu0 %vm15695_vm8, %v15678_v21  ;;  %vm3091_vm8 = vcmask 523264  }
 0x771   : > { %15697 = vmatprep.subr.bf16.mxu0 %v17626_v40 }
 0x774   : > { %15700 = vmatpush3.bf16.msk.msra.mxu0 %vm15699_vm11, %v15678_v21 }
 0x775   : > { %15701 = vmatprep.subr.bf16.mxu0 %v17626_v40 }
 0x778   : > { %15704 = vmatpush3.bf16.msk.msra.mxu0 %vm15703_vm15, %v15678_v21  ;;  %v16216_v21 = vld [vmem:[%s19999_s9 + $0x60] sm:$0xff]  }
 0x779   : > { %14112 = vmatprep.subr.mxu0 %v17624_v1 }
 0x77c   : > { %14113 = vmatpush3.msk.msra.mxu0 %vm2801_vm2, %v17627_v45 }
 0x77d   : > { %14152 = vmatprep.subr.bf16.mxu0 %v17624_v1 }
 0x82e   : > { %v2691_v30 = vpop.f32.mrb[16].mxu0 }
 0x82f   : > { %v14076_v31 = vpop.f32.mrb[17].mxu0 }
 0x832   : > { %v2767_v32 = vpop.f32.mrb[18].mxu0 }
 0x833   : > { %v2771_v33 = vmax.f32 %v2691_v30, %v2767_v32  ;;  %v14083_v34 = vpop.f32.mrb[19].mxu0  ;;  %v16218_v30 = vld [vmem:[%s19999_s9 + $0x68] sm:$0xff]  }
 0x835   : > { %14115 = vmatmul.mubr.f32.vlgmr.msra.gmra.mrb[20].mxu0 %v2771_v33  ;;  %14150 = vmatmul.mubr.f32.vlgmr.msra.gmra.mrb[16].mxu1 %v2771_v33 }
 0x836   : > { %14154 = vmatprep.mubr.msk.bf16.mxu0 %vm17625_vm4, %v17624_v1  ;;  %14178 = vmatprep.mubr.msk.bf16.mxu1 %vm17625_vm4, %v17624_v1 }
 0x837   : > { %14171 = vmatpush3.bf16.msra.mxu1 %v16194_v35 }
 0x838   : > { %14172 = vmatprep.subr.bf16.mxu1 %v17624_v1 }
 0x83b   : > { %14173 = vmatpush3.bf16.msra.mxu1 %v16195_v36 }
 0x83c   : > { %14174 = vmatprep.subr.bf16.mxu1 %v17624_v1 }
 0x83f   : > { %14175 = vmatpush3.bf16.msra.mxu1 %v16197_v37 }
 0x840   : > { %14176 = vmatprep.subr.bf16.mxu1 %v17624_v1 }
 0x843   : > { %14177 = vmatpush3.bf16.msra.mxu1 %v16199_v53 }
 0x844   : > { %14194 = vmatprep.subr.bf16.mxu1 %v17624_v1 }
 0x908   : > { %v2885_v38 = vpop.f32.mrb[20].mxu0  ;;  %v2988_v39 = vpop.f32.mrb[16].mxu1 }
 0x909   : > { %v2992_v41 = vmax.f32 %v2885_v38, %v2988_v39  ;;  %v14116_v42 = vpop.f32.mrb[21].mxu0  ;;  %v14151_v44 = vpop.f32.mrb[17].mxu1 }
 0x90a   : > { %v12433_v42 = vld [vmem:[%s20000_s1] ss:$0 sm:$0xff]  ;;  %s20007_s1 = sld [smem:[#allocation94_spill]] }
 0x90b   : > { %v2993_v45 = vpack.c.bf16 %v2992_v41, %v2992_v41 }
 0x90d   : > { %v2999_v46 = vsel %vm19925_vm9, %v2993_v45, 0 }
 0x90e   : > { %14153 = vmatpush3.bf16.msra.mxu0 %v2999_v46 }
 0x90f   : > { %14158 = vmatprep.subr.bf16.mxu0 %v17624_v1 }
 0x911   : > { %14155 = vmatmul.mubr.msk.bf16.vlgmr.msra.gmra.mrb[24].mxu0 %vm19924_vm7, %v18438_v13 }
 0x912   : > { %14159 = vmatpush3.bf16.msra.mxu0 %v16196_v51  ;;  %14166 = vmatprep.mubr.msk.bf16.mxu0 %vm17625_vm4, %v17624_v1 }
 0x913   : > { %14160 = vmatprep.subr.bf16.mxu0 %v17624_v1 }
 0x916   : > { %14161 = vmatpush3.bf16.msra.mxu0 %v16198_v52 }
 0x917   : > { %14162 = vmatprep.subr.bf16.mxu0 %v17624_v1 }
 0x91a   : > { %14163 = vmatpush3.bf16.msra.mxu0 %v16200_v54 }
 0x91b   : > { %14164 = vmatprep.subr.bf16.mxu0 %v17624_v1 }
 0x91e   : > { %14165 = vmatpush3.bf16.msra.mxu0 %v16201_v55 }
 0x91f   : > { %14182 = vmatprep.subr.bf16.mxu0 %v17624_v1 }
 0x9e4   : > { %v3035_v56 = vpop.f32.mrb[24].mxu0 }
 0x9e5   : > { %v14156_v57 = vpop.f32.mrb[25].mxu0 }
 0x9e6   : > { %v3038_v58 = vpop.f32.mrb[26].mxu0  ;;  %v16207_v57 = vld [vmem:[%s19999_s9 + $0x8] sm:$0xff]  }
 0x9e7   : > { %v3042_v59 = vpack.c.bf16 %v3038_v58, %v3035_v56  ;;  %v14157_v60 = vpop.f32.mrb[27].mxu0  ;;  %v16206_v56 = vld [vmem:[%s19999_s9] sm:$0xff]   ;;  %v16209_v58 = vld [vmem:[%s19999_s9 + $0x10] sm:$0xff]  }
 0x9e8   : > { %v16213_v60 = vld [vmem:[%s19999_s9 + $0x20] sm:$0xff]  }
 0x9e9   : > { %v3063_v61 = vshll.u32 %v3042_v59, 16  ;;  %14179 = vmatmul.mubr.msk.bf16.vlgmr.msra.gmra.mrb[20].mxu1 %vm3091_vm8, %v3042_v59  ;;  %v3061_v62 = vshrl.u32 %v3042_v59, 16  ;;  %v3211_v11 = vrot.slane %v3042_v59, 1  ;;  %v16211_v59 = vld [vmem:[%s19999_s9 + $0x18] sm:$0xff]  }
 0x9ea   : > { %14196 = vmatprep.mubr.msk.bf16.mxu1 %vm17625_vm4, %v17624_v1 }
 0x9eb   : > { %v3065_v63 = vrot.slane %v3063_v61, 1  ;;  %v16215_v61 = vld [vmem:[%s19999_s9 + $0x28] sm:$0xff]  }
 0x9ed   : > { %v3066_v5 = vor.u32 %v3065_v63, %v3061_v62  ;;  %v16217_v62 = vld [vmem:[%s19999_s9 + $0x30] sm:$0xff]   ;;  %v16219_v63 = vld [vmem:[%s19999_s9 + $0x38] sm:$0xff]  }
 0x9ef   : > { %14167 = vmatmul.mubr.msk.bf16.vlgmr.msra.gmra.mrb[28].mxu0 %vm3091_vm8, %v3066_v5  ;;  %v16221_v5 = vld [vmem:[%s19999_s9 + $0x78] sm:$0xff]  }
 0x9f0   : > { %14183 = vmatpush3.bf16.msra.mxu0 %v16202_v0  ;;  %14190 = vmatprep.mubr.msk.bf16.mxu0 %vm17625_vm4, %v17624_v1  ;;  %v16220_v0 = vld [vmem:[%s19999_s9 + $0x70] sm:$0xff]  }
 0x9f1   : > { %14184 = vmatprep.subr.bf16.mxu0 %v17624_v1 }
 0x9f4   : > { %14185 = vmatpush3.bf16.msra.mxu0 %v16203_v7 }
 0x9f5   : > { %14186 = vmatprep.subr.bf16.mxu0 %v17624_v1 }
 0x9f8   : > { %14187 = vmatpush3.bf16.msra.mxu0 %v16204_v8 }
 0x9f9   : > { %14188 = vmatprep.subr.bf16.mxu0 %v17624_v1 }
 0x9fc   : > { %14189 = vmatpush3.bf16.msra.mxu0 %v16205_v10 }
 0x9fd   : > { %14200 = vmatprep.subr.bf16.mxu0 %v17624_v1 }
 0x9ff   : > { %14191 = vmatmul.mubr.msk.bf16.vlgmr.msra.gmra.mrb[32].mxu0 %vm3091_vm8, %v3211_v11 }
 0xa00   : > { %14216 = vmatprep.mubr.msk.bf16.mxu0 %vm17625_vm4, %v17624_v1  ;;  %14201 = vmatpush3.bf16.msra.mxu0 %v16208_v12 }
 0xa01   : > { %14202 = vmatprep.subr.bf16.mxu0 %v17624_v1 }
 0xa04   : > { %14203 = vmatpush3.bf16.msra.mxu0 %v16210_v15 }
 0xa05   : > { %14204 = vmatprep.subr.bf16.mxu0 %v17624_v1 }
 0xa08   : > { %14205 = vmatpush3.bf16.msra.mxu0 %v16212_v16 }
 0xa09   : > { %14206 = vmatprep.subr.bf16.mxu0 %v17624_v1 }
 0xa0c   : > { %14207 = vmatpush3.bf16.msra.mxu0 %v16214_v17 }
 0xa0d   : > { %14208 = vmatprep.subr.bf16.mxu0 %v17624_v1 }
 0xa10   : > { %14209 = vmatpush3.bf16.msra.mxu0 %v16216_v21  ;;  %v16222_v21 = vld [vmem:[%s19999_s9 + $0x80] sm:$0xff]  }
 0xa11   : > { %14210 = vmatprep.subr.bf16.mxu0 %v17624_v1 }
 0xa14   : > { %14211 = vmatpush3.bf16.msra.mxu0 %v16218_v30 }
 0xa15   : > { %14212 = vmatprep.subr.bf16.mxu0 %v17624_v1 }
 0xa18   : > { %14213 = vmatpush3.bf16.msra.mxu0 %v16220_v0 }
 0xa19   : > { %14214 = vmatprep.subr.bf16.mxu0 %v17624_v1 }
 0xa1c   : > { %14215 = vmatpush3.bf16.msra.mxu0 %v16221_v5 }
 0xa1d   : > { %14240 = vmatprep.subr.bf16.mxu0 %v17624_v1 }
 0xabc   : > { %v3195_v31 = vpop.f32.mrb[20].mxu1 }
 0xabd   : > { %v14180_v32 = vpop.f32.mrb[21].mxu1 }
 0xabe   : > { %v3198_v33 = vpop.f32.mrb[22].mxu1  ;;  %v16224_v32 = vld [vmem:[%s19999_s9 + $0x90] sm:$0xff]  }
 0xabf   : > { %v14181_v34 = vpop.f32.mrb[23].mxu1  ;;  %v16225_v33 = vld [vmem:[%s19999_s9 + $0x98] sm:$0xff]  }
 0xac0   : > { %v16226_v34 = vld [vmem:[%s19999_s9 + $0xa0] sm:$0xff]  }
 0xac2   : > { %v3129_v35 = vpop.f32.mrb[28].mxu0 }
 0xac3   : > { %v3196_v36 = vadd.f32 %v3195_v31, %v3129_v35  ;;  %v14168_v37 = vpop.f32.mrb[29].mxu0  ;;  %v16223_v31 = vld [vmem:[%s19999_s9 + $0x88] sm:$0xff]  }
 0xac4   : > { %v3132_v38 = vpop.f32.mrb[30].mxu0  ;;  %v16227_v35 = vld [vmem:[%s19999_s9 + $0xa8] sm:$0xff]   ;;  %v16229_v37 = vld [vmem:[%s19999_s9 + $0xb8] sm:$0xff]  }
 0xac5   : > { %v14169_v39 = vpop.f32.mrb[31].mxu0 }
 0xac6   : > { %v3815_v39 = vand.u32 4294967280, %v18416_v3 }
 0xad2   : > { %v3273_v41 = vpop.f32.mrb[32].mxu0 }
 0xad3   : > { %v3279_v44 = vadd.f32 %v3273_v41, %v3196_v36  ;;  %v14192_v45 = vpop.f32.mrb[33].mxu0  ;;  %v16228_v36 = vld [vmem:[%s19999_s9 + $0xb0] sm:$0xff]   ;;  %v18768_v41 = vadd.s32 %v3815_v39, %v18416_v3  ;;  %v16236_v39 = vld [vmem:[#allocation9 + $0x58] sm:$0xff]  }
 0xad4   : > { %v3276_v46 = vpop.f32.mrb[34].mxu0 }
 0xad5   : > { %v3287_v51 = vadd.f32 %v12433_v42, %v3279_v44  ;;  %v14193_v52 = vpop.f32.mrb[35].mxu0  ;;  %v18771_v42 = vadd.s32 16, %v18768_v41  ;;  %v17629_v44 = vmov 1.0|1.0  }
 0xad7   : > { %v3288_v53 = vmax.f32 %v3287_v51, 0.0  ;;  %vm3922_vm10 = vcmp.eq.s32.totalorder %v18424_v6, %v18771_v42  ;;  %vm3923_vm11 = vcmp.eq.s32.totalorder %v18530_v43, %v18771_v42  ;;  %vm3926_vm13 = vcmp.eq.s32.totalorder %v18619_v23, %v18771_v42 }
 0xad8   : > { %vm15758_vm12 = vmpackc.low %vm3923_vm11, %vm3922_vm10  ;;  %vm3927_vm14 = vcmp.eq.s32.totalorder %v18553_v48, %v18771_v42  ;;  %vm3930_vm0 = vcmp.eq.s32.totalorder %v18633_v25, %v18771_v42  ;;  %vm3931_vm1 = vcmp.eq.s32.totalorder %v18569_v50, %v18771_v42  ;;  %vm3817_vm10 = vcmp.eq.s32.totalorder %v18414_v2, %v18768_v41 }
 0xad9   : > { %v3289_v54 = vpack.c.bf16 %v3288_v53, %v3288_v53  ;;  %vm15763_vm15 = vmpackc.low %vm3927_vm14, %vm3926_vm13  ;;  %vm3818_vm11 = vcmp.eq.s32.totalorder %v18420_v4, %v18768_v41  ;;  %vm3821_vm13 = vcmp.eq.s32.totalorder %v18608_v22, %v18768_v41  ;;  %vm3822_vm14 = vcmp.eq.s32.totalorder %v18544_v47, %v18768_v41 }
 0xada   : > { %vm15768_vm2 = vmpackc.low %vm3931_vm1, %vm3930_vm0  ;;  %vm3825_vm0 = vcmp.eq.s32.totalorder %v18626_v24, %v18768_v41  ;;  %vm3826_vm1 = vcmp.eq.s32.totalorder %v18561_v49, %v18768_v41 }
 0xadb   : > { %v3291_v55 = vsel %vm19925_vm9, %v3289_v54, 0 }
 0xadc   : > { %14195 = vmatpush3.bf16.msra.mxu1 %v3291_v55 }
 0xadd   : > { %14220 = vmatprep.subr.bf16.mxu1 %v17624_v1 }
 0xadf   : > { %14197 = vmatmul.mubr.msk.bf16.vlgmr.msra.gmra.mrb[24].mxu1 %vm19924_vm7, %v18438_v13 }
 0xae0   : > { %14221 = vmatpush3.bf16.msra.mxu1 %v16206_v56  ;;  %14236 = vmatprep.mubr.msk.bf16.mxu1 %vm17625_vm4, %v17624_v1 }
 0xae1   : > { %14222 = vmatprep.subr.bf16.mxu1 %v17624_v1 }
 0xae4   : > { %14223 = vmatpush3.bf16.msra.mxu1 %v16207_v57 }
 0xae5   : > { %14224 = vmatprep.subr.bf16.mxu1 %v17624_v1 }
 0xae8   : > { %14225 = vmatpush3.bf16.msra.mxu1 %v16209_v58 }
 0xae9   : > { %14226 = vmatprep.subr.bf16.mxu1 %v17624_v1 }
 0xaec   : > { %14227 = vmatpush3.bf16.msra.mxu1 %v16211_v59  ;;  %v12491_v59 = vld [vmem:[#allocation2] ss:$0 sm:$0xff] }
 0xaed   : > { %14228 = vmatprep.subr.bf16.mxu1 %v17624_v1 }
 0xaf0   : > { %14229 = vmatpush3.bf16.msra.mxu1 %v16213_v60 }
 0xaf1   : > { %14230 = vmatprep.subr.bf16.mxu1 %v17624_v1 }
 0xaf4   : > { %14231 = vmatpush3.bf16.msra.mxu1 %v16215_v61 }
 0xaf5   : > { %14232 = vmatprep.subr.bf16.mxu1 %v17624_v1 }
 0xaf8   : > { %14233 = vmatpush3.bf16.msra.mxu1 %v16217_v62 }
 0xaf9   : > { %14234 = vmatprep.subr.bf16.mxu1 %v17624_v1 }
 0xafc   : > { %14235 = vmatpush3.bf16.msra.mxu1 %v16219_v63 }
 0xafd   : > { %14260 = vmatprep.subr.mxu1 %v17624_v1 }
 0xbb2   : > { %v3327_v7 = vpop.f32.mrb[24].mxu1 }
 0xbb3   : > { %v14198_v8 = vpop.f32.mrb[25].mxu1 }
 0xbb4   : > { %v3330_v10 = vpop.f32.mrb[26].mxu1 }
 0xbb5   : > { %v3334_v11 = vpack.c.bf16 %v3330_v10, %v3327_v7  ;;  %v14199_v12 = vpop.f32.mrb[27].mxu1 }
 0xbb7   : > { %v3371_v15 = vshll.u32 %v3334_v11, 16  ;;  %14237 = vmatmul.mubr.bf16.vlgmr.msra.gmra.mrb[28].mxu1 %v3334_v11  ;;  %v3369_v16 = vshrl.u32 %v3334_v11, 16  ;;  %v3570_v38 = vrot.slane %v3334_v11, 1 }
 0xbb8   : > { %14262 = vmatprep.mubr.msk.f32.mxu1 %vm17625_vm4, %v17624_v1 }
 0xbb9   : > { %v3373_v17 = vrot.slane %v3371_v15, 1  ;;  %v16230_v15 = vld [vmem:[#allocation9 + $0x40] sm:$0xff]  }
 0xbbb   : > { %v3374_v30 = vor.u32 %v3373_v17, %v3369_v16  ;;  %v16232_v16 = vld [vmem:[#allocation9 + $0x48] sm:$0xff]   ;;  %v16234_v17 = vld [vmem:[#allocation9 + $0x50] sm:$0xff]  }
 0xbbd   : > { %14217 = vmatmul.mubr.bf16.vlgmr.msra.gmra.mrb[36].mxu0 %v3374_v30 }
 0xbbe   : > { %14241 = vmatpush3.bf16.msra.mxu0 %v16222_v21  ;;  %14256 = vmatprep.mubr.msk.bf16.mxu0 %vm17625_vm4, %v17624_v1 }
 0xbbf   : > { %14242 = vmatprep.subr.bf16.mxu0 %v17624_v1 }
 0xbc2   : > { %14243 = vmatpush3.bf16.msra.mxu0 %v16223_v31 }
 0xbc3   : > { %14244 = vmatprep.subr.bf16.mxu0 %v17624_v1 }
 0xbc6   : > { %14245 = vmatpush3.bf16.msra.mxu0 %v16224_v32 }
 0xbc7   : > { %14246 = vmatprep.subr.bf16.mxu0 %v17624_v1 }
 0xbca   : > { %14247 = vmatpush3.bf16.msra.mxu0 %v16225_v33 }
 0xbcb   : > { %14248 = vmatprep.subr.bf16.mxu0 %v17624_v1 }
 0xbce   : > { %14249 = vmatpush3.bf16.msra.mxu0 %v16226_v34 }
 0xbcf   : > { %14250 = vmatprep.subr.bf16.mxu0 %v17624_v1 }
 0xbd2   : > { %14251 = vmatpush3.bf16.msra.mxu0 %v16227_v35  ;;  %v18856_v35 = vpack.c.bf16 %v18433_v9, %v18433_v9  ;;  %v16235_v9 = vld [vmem:[#allocation9 + $0x30] sm:$0xff]  }
 0xbd3   : > { %14252 = vmatprep.subr.bf16.mxu0 %v17624_v1 }
 0xbd6   : > { %14253 = vmatpush3.bf16.msra.mxu0 %v16228_v36 }
 0xbd7   : > { %14254 = vmatprep.subr.bf16.mxu0 %v17624_v1 }
 0xbda   : > { %14255 = vmatpush3.bf16.msra.mxu0 %v16229_v37  ;;  %v16231_v37 = vld [vmem:[#allocation9 + $0x20] sm:$0xff]  }
 0xbdb   : > { %15755 = vmatprep.subr.bf16.mxu0 %v17626_v40 }
 0xbdd   : > { %14257 = vmatmul.mubr.bf16.vlgmr.msra.gmra.mrb[40].mxu0 %v3570_v38  ;;  %v16233_v38 = vld [vmem:[#allocation9 + $0x28] sm:$0xff]  }
 0xbde   : > { %15756 = vmatpush3.bf16.msra.mxu0 %v17626_v40  ;;  %14333 = vmatprep.mubr.msk.f32.mxu0 %vm17625_vm4, %v17624_v1 }
 0xbdf   : > { %15757 = vmatprep.subr.bf16.mxu0 %v17626_v40 }
 0xbe2   : > { %15759 = vmatpush3.bf16.msk.msra.mxu0 %vm15758_vm12, %v17629_v44  ;;  %vm15738_vm12 = vmpackc.low %vm3818_vm11, %vm3817_vm10  ;;  %vm3829_vm10 = vcmp.eq.s32.totalorder %v18648_v27, %v18768_v41  ;;  %vm3830_vm11 = vcmp.eq.s32.totalorder %v18643_v26, %v18768_v41  ;;  %v16237_v41 = vld [vmem:[#allocation9 + $0x38] sm:$0xff]  }
 0xbe3   : > { %15760 = vmatprep.subr.bf16.mxu0 %v17626_v40 }
 0xbe6   : > { %15761 = vmatpush3.bf16.msra.mxu0 %v17626_v40 }
 0xbe7   : > { %15762 = vmatprep.subr.bf16.mxu0 %v17626_v40 }
 0xbea   : > { %15764 = vmatpush3.bf16.msk.msra.mxu0 %vm15763_vm15, %v17629_v44  ;;  %vm15743_vm15 = vmpackc.low %vm3822_vm14, %vm3821_vm13  ;;  %vm3935_vm13 = vcmp.eq.s32.totalorder %v18655_v28, %v18771_v42 }
 0xbeb   : > { %15765 = vmatprep.subr.bf16.mxu0 %v17626_v40  ;;  %vm15753_vm14 = vmpackc.low %vm3830_vm11, %vm3829_vm10 }
 0xbee   : > { %15766 = vmatpush3.bf16.msra.mxu0 %v17626_v40 }
 0xbef   : > { %15767 = vmatprep.subr.bf16.mxu0 %v17626_v40 }
 0xbf2   : > { %15769 = vmatpush3.bf16.msk.msra.mxu0 %vm15768_vm2, %v17629_v44  ;;  %vm15748_vm2 = vmpackc.low %vm3826_vm1, %vm3825_vm0  ;;  %vm4029_vm0 = vcmask 1041408   ;;  %vm4025_vm1 = vcmask 31744  }
 0xbf3   : > { %15770 = vmatprep.subr.bf16.mxu0 %v17626_v40 }
 0xbf6   : > { %15771 = vmatpush3.bf16.msra.mxu0 %v17626_v40 }
 0xbf7   : > { %15772 = vmatprep.subr.bf16.mxu0 %v17626_v40 }
 0xc8a   : > { %v3546_v45 = vpop.f32.mrb[28].mxu1 }
 0xc8b   : > { %v14238_v46 = vpop.f32.mrb[29].mxu1 }
 0xc8c   : > { %v3549_v51 = vpop.f32.mrb[30].mxu1 }
 0xc8d   : > { %v14239_v52 = vpop.f32.mrb[31].mxu1 }
 0xc90   : > { %v3458_v53 = vpop.f32.mrb[36].mxu0 }
 0xc91   : > { %v3547_v54 = vadd.f32 %v3546_v45, %v3458_v53  ;;  %v14218_v55 = vpop.f32.mrb[37].mxu0 }
 0xc92   : > { %v3461_v56 = vpop.f32.mrb[38].mxu0 }
 0xc93   : > { %v14219_v57 = vpop.f32.mrb[39].mxu0 }
 0xc94   : > { %v16238_v57 = vld [vmem:[#allocation9] sm:$0xff]  }
 0xcb0   : > { %v3654_v58 = vpop.f32.mrb[40].mxu0 }
 0xcb1   : > { %v3660_v60 = vadd.f32 %v3654_v58, %v3547_v54  ;;  %v14258_v61 = vpop.f32.mrb[41].mxu0 }
 0xcb2   : > { %v3657_v62 = vpop.f32.mrb[42].mxu0  ;;  %v16241_v61 = vld [vmem:[#allocation9 + $0x18] sm:$0xff]  }
 0xcb3   : > { %v3668_v63 = vadd.f32 %v12491_v59, %v3660_v60  ;;  %v14259_v0 = vpop.f32.mrb[43].mxu0  ;;  %v16239_v59 = vld [vmem:[#allocation9 + $0x8] sm:$0xff]   ;;  %v16240_v60 = vld [vmem:[#allocation9 + $0x10] sm:$0xff]   ;;  %v16244_v62 = vld [vmem:[%s20001_s6 + $0x40] sm:$0xff]  }
 0xcb4   : > { %v16248_v0 = vld [vmem:[%s20001_s6 + $0x50] sm:$0xff]  }
 0xcb5   : > { %v18797_v5 = vmax.f32 %v3668_v63, 0.0  ;;  %v16246_v63 = vld [vmem:[%s20001_s6 + $0x48] sm:$0xff]  }
 0xcb7   : > { %14261 = vmatpush3.msra.mxu1 %v18797_v5 }
 0xcb8   : > { %14263 = vmatmul.mubr.msk.f32.vlgmr.msra.gmra.mrb[18].mxu1 %vm19924_vm7, %v18587_v19  ;;  %14265 = vmatprep.subr.mxu1 %v17624_v1 }
 0xcb9   : > { %14266 = vmatpush3.msra.mxu1 %v18797_v5  ;;  %14267 = vmatprep.mubr.msk.f32.mxu1 %vm17625_vm4, %v17624_v1 }
 0xcba   : > { %15737 = vmatprep.subr.bf16.mxu1 %v17626_v40 }
 0xcbc   : > { %14268 = vmatmul.mubr.msk.f32.vlgmr.msra.gmra.mrb[32].mxu1 %vm19924_vm7, %v18599_v20 }
 0xcbd   : > { %15739 = vmatpush3.bf16.msk.msra.mxu1 %vm15738_vm12, %v17629_v44  ;;  %14298 = vmatprep.mubr.msk.f32.mxu1 %vm17625_vm4, %v17624_v1  ;;  %vm3934_vm12 = vcmp.eq.s32.totalorder %v18664_v29, %v18771_v42 }
 0xcbe   : > { %15740 = vmatprep.subr.bf16.mxu1 %v17626_v40 }
 0xcc1   : > { %15741 = vmatpush3.bf16.msra.mxu1 %v17626_v40 }
 0xcc2   : > { %15742 = vmatprep.subr.bf16.mxu1 %v17626_v40 }
 0xcc5   : > { %15744 = vmatpush3.bf16.msk.msra.mxu1 %vm15743_vm15, %v17629_v44  ;;  %vm15773_vm15 = vmpackc.low %vm3935_vm13, %vm3934_vm12 }
 0xcc6   : > { %15745 = vmatprep.subr.bf16.mxu1 %v17626_v40  ;;  %15774 = vmatpush3.bf16.msk.msra.mxu0 %vm15773_vm15, %v17629_v44 }
 0xcc7   : > { %14366 = vmatprep.subr.bf16.mxu0 %v17624_v1 }
 0xcc9   : > { %15746 = vmatpush3.bf16.msra.mxu1 %v17626_v40 }
 0xcca   : > { %15747 = vmatprep.subr.bf16.mxu1 %v17626_v40 }
 0xccd   : > { %15749 = vmatpush3.bf16.msk.msra.mxu1 %vm15748_vm2, %v17629_v44 }
 0xcce   : > { %15750 = vmatprep.subr.bf16.mxu1 %v17626_v40 }
 0xcd1   : > { %15751 = vmatpush3.bf16.msra.mxu1 %v17626_v40 }
 0xcd2   : > { %15752 = vmatprep.subr.bf16.mxu1 %v17626_v40 }
 0xcd5   : > { %15754 = vmatpush3.bf16.msk.msra.mxu1 %vm15753_vm14, %v17629_v44 }
 0xcd6   : > { %14336 = vmatprep.subr.bf16.mxu1 %v17624_v1 }
 0xd8b   : > { %v3738_v7 = vpop.f32.mrb[18].mxu1 }
 0xd8c   : > { %v14264_v8 = vpop.f32.mrb[19].mxu1 }
 0xd8d   : > { %v16252_v8 = vld [vmem:[%s20001_s6 + $0x60] sm:$0xff]  }
 0xd8f   : > { %v3810_v10 = vpop.f32.mrb[32].mxu1 }
 0xd90   : > { %v3814_v11 = vmax.f32 %v3738_v7, %v3810_v10  ;;  %v14269_v12 = vpop.f32.mrb[33].mxu1  ;;  %v16250_v7 = vld [vmem:[%s20001_s6 + $0x58] sm:$0xff]   ;;  %v16254_v10 = vld [vmem:[%s20001_s6 + $0x68] sm:$0xff]  }
 0xd92   : > { %14299 = vmatmul.mubr.f32.vlgmr.msra.gmra.mrb[34].mxu1 %v3814_v11  ;;  %14334 = vmatmul.mubr.f32.vlgmr.msra.gmra.mrb[22].mxu0 %v3814_v11 }
 0xd93   : > { %14338 = vmatprep.mubr.msk.bf16.mxu1 %vm17625_vm4, %v17624_v1  ;;  %14374 = vmatprep.mubr.msk.bf16.mxu0 %vm17625_vm4, %v17624_v1 }
 0xd94   : > { %14367 = vmatpush3.bf16.msra.mxu0 %v16230_v15 }
 0xd95   : > { %14368 = vmatprep.subr.bf16.mxu0 %v17624_v1 }
 0xd98   : > { %14369 = vmatpush3.bf16.msra.mxu0 %v16232_v16 }
 0xd99   : > { %14370 = vmatprep.subr.bf16.mxu0 %v17624_v1 }
 0xd9c   : > { %14371 = vmatpush3.bf16.msra.mxu0 %v16234_v17 }
 0xd9d   : > { %14372 = vmatprep.subr.bf16.mxu0 %v17624_v1 }
 0xda0   : > { %14373 = vmatpush3.bf16.msra.mxu0 %v16236_v39 }
 0xda1   : > { %14384 = vmatprep.subr.bf16.mxu0 %v17624_v1 }
 0xe65   : > { %v3915_v21 = vpop.f32.mrb[34].mxu1  ;;  %v4018_v30 = vpop.f32.mrb[22].mxu0 }
 0xe66   : > { %v4022_v31 = vmax.f32 %v3915_v21, %v4018_v30  ;;  %v14300_v32 = vpop.f32.mrb[35].mxu1  ;;  %v14335_v33 = vpop.f32.mrb[23].mxu0 }
 0xe68   : > { %v4024_v34 = vpack.c.bf16 %v4022_v31, %v4022_v31 }
 0xe6a   : > { %v4031_v36 = vsel %vm4029_vm0, %v4024_v34, 0 }
 0xe6b   : > { %14337 = vmatpush3.bf16.msra.mxu1 %v4031_v36  ;;  %v12526_v36 = vld [vmem:[#allocation6] ss:$0 sm:$0xff] }
 0xe6c   : > { %14342 = vmatprep.subr.bf16.mxu1 %v17624_v1 }
 0xe6e   : > { %14339 = vmatmul.mubr.msk.bf16.vlgmr.msra.gmra.mrb[36].mxu1 %vm4025_vm1, %v18856_v35 }
 0xe6f   : > { %14343 = vmatpush3.bf16.msra.mxu1 %v16231_v37  ;;  %14350 = vmatprep.mubr.msk.bf16.mxu1 %vm17625_vm4, %v17624_v1 }
 0xe70   : > { %14344 = vmatprep.subr.bf16.mxu1 %v17624_v1 }
 0xe73   : > { %14345 = vmatpush3.bf16.msra.mxu1 %v16233_v38 }
 0xe74   : > { %14346 = vmatprep.subr.bf16.mxu1 %v17624_v1 }
 0xe77   : > { %14347 = vmatpush3.bf16.msra.mxu1 %v16235_v9 }
 0xe78   : > { %14348 = vmatprep.subr.bf16.mxu1 %v17624_v1 }
 0xe7b   : > { %14349 = vmatpush3.bf16.msra.mxu1 %v16237_v41 }
 0xe7c   : > { %14354 = vmatprep.subr.bf16.mxu1 %v17624_v1 }
 0xf41   : > { %v4067_v42 = vpop.f32.mrb[36].mxu1 }
 0xf42   : > { %v4073_v45 = vpack.c.bf16 %v4067_v42, %v4067_v42  ;;  %v14340_v46 = vpop.f32.mrb[37].mxu1 }
 0xf43   : > { %v4070_v51 = vpop.f32.mrb[38].mxu1  ;;  %v16242_v46 = vld [vmem:[%s20001_s6] sm:$0xff]  }
 0xf44   : > { %v4094_v52 = vshll.u32 %v4073_v45, 16  ;;  %v4241_v53 = vrot.slane %v4073_v45, 1  ;;  %v14341_v54 = vpop.f32.mrb[39].mxu1  ;;  %v4092_v55 = vshrl.u32 %v4073_v45, 16  ;;  %v16243_v51 = vld [vmem:[%s20001_s6 + $0x8] sm:$0xff]  }
 0xf45   : > { %v16249_v54 = vld [vmem:[%s20001_s6 + $0x20] sm:$0xff]  }
 0xf46   : > { %v4096_v56 = vrot.slane %v4094_v52, 1  ;;  %14375 = vmatmul.mubr.msk.bf16.vlgmr.msra.gmra.mrb[44].mxu0 %vm3091_vm8, %v4241_v53  ;;  %v16245_v52 = vld [vmem:[%s20001_s6 + $0x10] sm:$0xff]   ;;  %v16247_v53 = vld [vmem:[%s20001_s6 + $0x18] sm:$0xff]  }
 0xf47   : > { %14400 = vmatprep.mubr.msk.bf16.mxu0 %vm17625_vm4, %v17624_v1  ;;  %14385 = vmatpush3.bf16.msra.mxu0 %v16244_v62 }
 0xf48   : > { %v4097_v58 = vor.u32 %v4096_v56, %v4092_v55  ;;  %14386 = vmatprep.subr.bf16.mxu0 %v17624_v1  ;;  %v16251_v55 = vld [vmem:[%s20001_s6 + $0x28] sm:$0xff]   ;;  %v16253_v56 = vld [vmem:[%s20001_s6 + $0x30] sm:$0xff]  }
 0xf4a   : > { %14351 = vmatmul.mubr.msk.bf16.vlgmr.msra.gmra.mrb[40].mxu1 %vm3091_vm8, %v4097_v58  ;;  %v16256_v58 = vld [vmem:[%s20001_s6 + $0x70] sm:$0xff]  }
 0xf4b   : > { %14355 = vmatpush3.bf16.msra.mxu1 %v16238_v57  ;;  %14362 = vmatprep.mubr.msk.bf16.mxu1 %vm17625_vm4, %v17624_v1  ;;  %v16255_v57 = vld [vmem:[%s20001_s6 + $0x38] sm:$0xff]  }
 0xf4c   : > { %14356 = vmatprep.subr.bf16.mxu1 %v17624_v1  ;;  %14387 = vmatpush3.bf16.msra.mxu0 %v16246_v63 }
 0xf4d   : > { %14388 = vmatprep.subr.bf16.mxu0 %v17624_v1 }
 0xf4f   : > { %14357 = vmatpush3.bf16.msra.mxu1 %v16239_v59  ;;  %v16257_v59 = vld [vmem:[%s20001_s6 + $0x78] sm:$0xff]  }
 0xf50   : > { %14358 = vmatprep.subr.bf16.mxu1 %v17624_v1  ;;  %14389 = vmatpush3.bf16.msra.mxu0 %v16248_v0 }
 0xf51   : > { %14390 = vmatprep.subr.bf16.mxu0 %v17624_v1 }
 0xf53   : > { %14359 = vmatpush3.bf16.msra.mxu1 %v16240_v60 }
 0xf54   : > { %14360 = vmatprep.subr.bf16.mxu1 %v17624_v1  ;;  %14391 = vmatpush3.bf16.msra.mxu0 %v16250_v7 }
 0xf55   : > { %14392 = vmatprep.subr.bf16.mxu0 %v17624_v1 }
 0xf57   : > { %14361 = vmatpush3.bf16.msra.mxu1 %v16241_v61 }
 0xf58   : > { %14378 = vmatprep.subr.bf16.mxu1 %v17624_v1  ;;  %14393 = vmatpush3.bf16.msra.mxu0 %v16252_v8 }
 0xf59   : > { %14394 = vmatprep.subr.bf16.mxu0 %v17624_v1 }
 0xf5a   : > { %14363 = vmatmul.mubr.msk.bf16.vlgmr.msra.gmra.mrb[44].mxu1 %vm3091_vm8, %v4073_v45 }
 0xf5b   : > { %14380 = vmatprep.mubr.msk.bf16.mxu1 %vm17625_vm4, %v17624_v1 }
 0xf5c   : > { %14395 = vmatpush3.bf16.msra.mxu0 %v16254_v10 }
 0xf5d   : > { %14396 = vmatprep.subr.bf16.mxu0 %v17624_v1 }
 0xf60   : > { %14397 = vmatpush3.bf16.msra.mxu0 %v16256_v58 }
 0xf61   : > { %14398 = vmatprep.subr.bf16.mxu0 %v17624_v1 }
 0xf64   : > { %14399 = vmatpush3.bf16.msra.mxu0 %v16257_v59 }
 0xf65   : > { %14424 = vmatprep.subr.bf16.mxu0 %v17624_v1 }
0x1019   : > { %v4303_v11 = vpop.f32.mrb[44].mxu0 }
0x101a   : > { %v14376_v12 = vpop.f32.mrb[45].mxu0 }
0x101b   : > { %v4306_v15 = vpop.f32.mrb[46].mxu0 }
0x101c   : > { %v14377_v16 = vpop.f32.mrb[47].mxu0  ;;  %v16259_v15 = vld [vmem:[%s20001_s6 + $0x88] sm:$0xff]  }
0x101d   : > { %v4159_v17 = vpop.f32.mrb[40].mxu1  ;;  %v16260_v16 = vld [vmem:[%s20001_s6 + $0x90] sm:$0xff]  }
0x101e   : > { %v14352_v21 = vpop.f32.mrb[41].mxu1 }
0x101f   : > { %v4162_v30 = vpop.f32.mrb[42].mxu1  ;;  %v16262_v21 = vld [vmem:[%s20001_s6 + $0xa0] sm:$0xff]  }
0x1020   : > { %v14353_v31 = vpop.f32.mrb[43].mxu1  ;;  %v16263_v30 = vld [vmem:[%s20001_s6 + $0xa8] sm:$0xff]  }
0x1021   : > { %v16264_v31 = vld [vmem:[%s20001_s6 + $0xb0] sm:$0xff]  }
0x102d   : > { %v4225_v32 = vpop.f32.mrb[44].mxu1 }
0x102e   : > { %v4226_v33 = vadd.f32 %v4225_v32, %v4159_v17  ;;  %v14364_v34 = vpop.f32.mrb[45].mxu1  ;;  %v16261_v17 = vld [vmem:[%s20001_s6 + $0x98] sm:$0xff]  }
0x102f   : > { %v4228_v37 = vpop.f32.mrb[46].mxu1  ;;  %v16265_v32 = vld [vmem:[%s20001_s6 + $0xb8] sm:$0xff]   ;;  %v4847_v34 = vand.u32 4294967264, %v18416_v3 }
0x1030   : > { %v4309_v38 = vadd.f32 %v4303_v11, %v4226_v33  ;;  %v14365_v9 = vpop.f32.mrb[47].mxu1  ;;  %v16258_v11 = vld [vmem:[%s20001_s6 + $0x80] sm:$0xff]  }
0x1032   : > { %v4317_v39 = vadd.f32 %v12526_v36, %v4309_v38  ;;  %v18948_v36 = vadd.s32 %v4847_v34, %v18416_v3  ;;  %v16271_v34 = vld [vmem:[#allocation13 + $0x30] sm:$0xff]  }
0x1034   : > { %v4318_v41 = vmax.f32 %v4317_v39, 0.0  ;;  %v18951_v37 = vadd.s32 32, %v18948_v36  ;;  %vm4849_vm15 = vcmp.eq.s32.totalorder %v18414_v2, %v18948_v36  ;;  %vm4860_vm6 = vcmp.eq.s32.totalorder %v18569_v50, %v18948_v36 }
0x1036   : > { %v4319_v42 = vpack.c.bf16 %v4318_v41, %v4318_v41  ;;  %vm4956_vm2 = vcmp.eq.s32.totalorder %v18608_v22, %v18951_v37  ;;  %vm4957_vm10 = vcmp.eq.s32.totalorder %v18544_v47, %v18951_v37  ;;  %vm4958_vm11 = vcmp.eq.s32.totalorder %v18619_v23, %v18951_v37 }
0x1037   : > { %vm4959_vm12 = vcmp.eq.s32.totalorder %v18553_v48, %v18951_v37  ;;  %vm15796_vm13 = vmpackc.low %vm4957_vm10, %vm4956_vm2  ;;  %vm4850_vm2 = vcmp.eq.s32.totalorder %v18420_v4, %v18948_v36  ;;  %vm4966_vm5 = vcmp.eq.s32.totalorder %v18664_v29, %v18951_v37 }
0x1038   : > { %v4321_v45 = vsel %vm4029_vm0, %v4319_v42, 0  ;;  %vm15799_vm14 = vmpackc.low %vm4959_vm12, %vm4958_vm11  ;;  %vm4851_vm11 = vcmp.eq.s32.totalorder %v18424_v6, %v18948_v36  ;;  %vm4852_vm12 = vcmp.eq.s32.totalorder %v18530_v43, %v18948_v36 }
0x1039   : > { %14379 = vmatpush3.bf16.msra.mxu1 %v4321_v45  ;;  %vm15776_vm10 = vmpackc.low %vm4850_vm2, %vm4849_vm15  ;;  %vm4858_vm15 = vcmp.eq.s32.totalorder %v18561_v49, %v18948_v36  ;;  %vm4964_vm2 = vcmp.eq.s32.totalorder %v18648_v27, %v18951_v37 }
0x103a   : > { %14404 = vmatprep.subr.bf16.mxu1 %v17624_v1 }
0x103c   : > { %14381 = vmatmul.mubr.msk.bf16.vlgmr.msra.gmra.mrb[48].mxu1 %vm4025_vm1, %v18856_v35 }
0x103d   : > { %14405 = vmatpush3.bf16.msra.mxu1 %v16242_v46  ;;  %14420 = vmatprep.mubr.msk.bf16.mxu1 %vm17625_vm4, %v17624_v1 }
0x103e   : > { %14406 = vmatprep.subr.bf16.mxu1 %v17624_v1 }
0x1041   : > { %14407 = vmatpush3.bf16.msra.mxu1 %v16243_v51 }
0x1042   : > { %14408 = vmatprep.subr.bf16.mxu1 %v17624_v1 }
0x1045   : > { %14409 = vmatpush3.bf16.msra.mxu1 %v16245_v52 }
0x1046   : > { %14410 = vmatprep.subr.bf16.mxu1 %v17624_v1 }
0x1049   : > { %14411 = vmatpush3.bf16.msra.mxu1 %v16247_v53 }
0x104a   : > { %14412 = vmatprep.subr.bf16.mxu1 %v17624_v1 }
0x104d   : > { %14413 = vmatpush3.bf16.msra.mxu1 %v16249_v54  ;;  %v12584_v54 = vld [vmem:[#allocation7] ss:$0 sm:$0xff] }
0x104e   : > { %14414 = vmatprep.subr.bf16.mxu1 %v17624_v1 }
0x1051   : > { %14415 = vmatpush3.bf16.msra.mxu1 %v16251_v55 }
0x1052   : > { %14416 = vmatprep.subr.bf16.mxu1 %v17624_v1 }
0x1055   : > { %14417 = vmatpush3.bf16.msra.mxu1 %v16253_v56 }
0x1056   : > { %14418 = vmatprep.subr.bf16.mxu1 %v17624_v1 }
0x1059   : > { %14419 = vmatpush3.bf16.msra.mxu1 %v16255_v57 }
0x105a   : > { %14444 = vmatprep.subr.mxu1 %v17624_v1 }
0x110f   : > { %v4357_v60 = vpop.f32.mrb[48].mxu1 }
0x1110   : > { %v4363_v61 = vpack.c.bf16 %v4357_v60, %v4357_v60  ;;  %v14382_v62 = vpop.f32.mrb[49].mxu1 }
0x1111   : > { %v4360_v63 = vpop.f32.mrb[50].mxu1 }
0x1112   : > { %v4400_v0 = vshll.u32 %v4363_v61, 16  ;;  %v14383_v7 = vpop.f32.mrb[51].mxu1  ;;  %14421 = vmatmul.mubr.bf16.vlgmr.msra.gmra.mrb[52].mxu1 %v4363_v61  ;;  %v4398_v8 = vshrl.u32 %v4363_v61, 16  ;;  %v4599_v33 = vrot.slane %v4363_v61, 1 }
0x1113   : > { %14446 = vmatprep.mubr.msk.f32.mxu1 %vm17625_vm4, %v17624_v1 }
0x1114   : > { %v4402_v10 = vrot.slane %v4400_v0, 1 }
0x1116   : > { %v4403_v12 = vor.u32 %v4402_v10, %v4398_v8  ;;  %v16266_v8 = vld [vmem:[#allocation13 + $0x40] sm:$0xff]   ;;  %v16268_v10 = vld [vmem:[#allocation13 + $0x48] sm:$0xff]  }
0x1118   : > { %14401 = vmatmul.mubr.bf16.vlgmr.msra.gmra.mrb[48].mxu0 %v4403_v12 }
0x1119   : > { %14425 = vmatpush3.bf16.msra.mxu0 %v16258_v11  ;;  %14440 = vmatprep.mubr.msk.bf16.mxu0 %vm17625_vm4, %v17624_v1  ;;  %v16270_v11 = vld [vmem:[#allocation13 + $0x50] sm:$0xff]  }
0x111a   : > { %14426 = vmatprep.subr.bf16.mxu0 %v17624_v1 }
0x111d   : > { %14427 = vmatpush3.bf16.msra.mxu0 %v16259_v15 }
0x111e   : > { %14428 = vmatprep.subr.bf16.mxu0 %v17624_v1 }
0x1121   : > { %14429 = vmatpush3.bf16.msra.mxu0 %v16260_v16 }
0x1122   : > { %14430 = vmatprep.subr.bf16.mxu0 %v17624_v1 }
0x1125   : > { %14431 = vmatpush3.bf16.msra.mxu0 %v16261_v17 }
0x1126   : > { %14432 = vmatprep.subr.bf16.mxu0 %v17624_v1 }
0x1129   : > { %14433 = vmatpush3.bf16.msra.mxu0 %v16262_v21 }
0x112a   : > { %14434 = vmatprep.subr.bf16.mxu0 %v17624_v1 }
0x112d   : > { %14435 = vmatpush3.bf16.msra.mxu0 %v16263_v30 }
0x112e   : > { %14436 = vmatprep.subr.bf16.mxu0 %v17624_v1 }
0x1131   : > { %14437 = vmatpush3.bf16.msra.mxu0 %v16264_v31 }
0x1132   : > { %14438 = vmatprep.subr.bf16.mxu0 %v17624_v1 }
0x1135   : > { %14439 = vmatpush3.bf16.msra.mxu0 %v16265_v32  ;;  %v16267_v32 = vld [vmem:[#allocation13 + $0x20] sm:$0xff]  }
0x1136   : > { %15791 = vmatprep.subr.bf16.mxu0 %v17626_v40 }
0x1138   : > { %14441 = vmatmul.mubr.bf16.vlgmr.msra.gmra.mrb[52].mxu0 %v4599_v33  ;;  %v16269_v33 = vld [vmem:[#allocation13 + $0x28] sm:$0xff]  }
0x1139   : > { %15792 = vmatpush3.bf16.msra.mxu0 %v17626_v40  ;;  %14513 = vmatprep.mubr.msk.f32.mxu0 %vm17625_vm4, %v17624_v1 }
0x113a   : > { %15793 = vmatprep.subr.bf16.mxu0 %v17626_v40 }
0x113d   : > { %15794 = vmatpush3.bf16.msra.mxu0 %v17626_v40 }
0x113e   : > { %15795 = vmatprep.subr.bf16.mxu0 %v17626_v40 }
0x1141   : > { %15797 = vmatpush3.bf16.msk.msra.mxu0 %vm15796_vm13, %v17629_v44  ;;  %vm15779_vm13 = vmpackc.low %vm4852_vm12, %vm4851_vm11 }
0x1142   : > { %15798 = vmatprep.subr.bf16.mxu0 %v17626_v40 }
0x1145   : > { %15800 = vmatpush3.bf16.msk.msra.mxu0 %vm15799_vm14, %v17629_v44  ;;  %vm4857_vm14 = vcmp.eq.s32.totalorder %v18626_v24, %v18948_v36 }
0x1146   : > { %15801 = vmatprep.subr.bf16.mxu0 %v17626_v40  ;;  %vm15786_vm11 = vmpackc.low %vm4858_vm15, %vm4857_vm14  ;;  %vm4967_vm14 = vcmp.eq.s32.totalorder %v18655_v28, %v18951_v37 }
0x1149   : > { %15802 = vmatpush3.bf16.msra.mxu0 %v17626_v40 }
0x114a   : > { %15803 = vmatprep.subr.bf16.mxu0 %v17626_v40 }
0x114d   : > { %15804 = vmatpush3.bf16.msra.mxu0 %v17626_v40 }
0x114e   : > { %15805 = vmatprep.subr.bf16.mxu0 %v17626_v40 }
0x11e5   : > { %v4575_v38 = vpop.f32.mrb[52].mxu1 }
0x11e6   : > { %v14422_v9 = vpop.f32.mrb[53].mxu1 }
0x11e7   : > { %v4578_v39 = vpop.f32.mrb[54].mxu1 }
0x11e8   : > { %v14423_v41 = vpop.f32.mrb[55].mxu1 }
0x11eb   : > { %v4487_v42 = vpop.f32.mrb[48].mxu0 }
0x11ec   : > { %v4576_v45 = vadd.f32 %v4575_v38, %v4487_v42  ;;  %v14402_v46 = vpop.f32.mrb[49].mxu0 }
0x11ed   : > { %v4490_v51 = vpop.f32.mrb[50].mxu0 }
0x11ee   : > { %v14403_v52 = vpop.f32.mrb[51].mxu0 }
0x120b   : > { %v4683_v53 = vpop.f32.mrb[52].mxu0 }
0x120c   : > { %v4689_v55 = vadd.f32 %v4683_v53, %v4576_v45  ;;  %v14442_v56 = vpop.f32.mrb[53].mxu0  ;;  %v16274_v53 = vld [vmem:[#allocation13] sm:$0xff]  }
0x120d   : > { %v4686_v57 = vpop.f32.mrb[54].mxu0  ;;  %v16276_v56 = vld [vmem:[#allocation13 + $0x10] sm:$0xff]  }
0x120e   : > { %v4697_v58 = vadd.f32 %v12584_v54, %v4689_v55  ;;  %v14443_v59 = vpop.f32.mrb[55].mxu0  ;;  %v16275_v55 = vld [vmem:[#allocation13 + $0x8] sm:$0xff]   ;;  %v16277_v57 = vld [vmem:[#allocation13 + $0x18] sm:$0xff]  }
0x120f   : > { %v16282_v59 = vld [vmem:[%s20002_s10 + $0x48] sm:$0xff]  }
0x1210   : > { %v18969_v60 = vmax.f32 %v4697_v58, 0.0  ;;  %v16280_v58 = vld [vmem:[%s20002_s10 + $0x40] sm:$0xff]  }
0x1212   : > { %14445 = vmatpush3.msk.msra.mxu1 %vm19925_vm9, %v18969_v60 }
0x1213   : > { %14447 = vmatmul.mubr.msk.f32.vlgmr.msra.gmra.mrb[56].mxu1 %vm4025_vm1, %v18587_v19  ;;  %14449 = vmatprep.subr.mxu1 %v17624_v1 }
0x1214   : > { %14450 = vmatpush3.msk.msra.mxu1 %vm19925_vm9, %v18969_v60  ;;  %14451 = vmatprep.mubr.msk.f32.mxu1 %vm17625_vm4, %v17624_v1 }
0x1215   : > { %15775 = vmatprep.subr.bf16.mxu1 %v17626_v40 }
0x1217   : > { %14452 = vmatmul.mubr.msk.f32.vlgmr.msra.gmra.mrb[58].mxu1 %vm4025_vm1, %v18599_v20 }
0x1218   : > { %15777 = vmatpush3.bf16.msk.msra.mxu1 %vm15776_vm10, %v17629_v44  ;;  %14478 = vmatprep.mubr.msk.f32.mxu1 %vm17625_vm4, %v17624_v1  ;;  %vm4965_vm10 = vcmp.eq.s32.totalorder %v18643_v26, %v18951_v37  ;;  %v16273_v37 = vld [vmem:[#allocation13 + $0x38] sm:$0xff]  }
0x1219   : > { %15778 = vmatprep.subr.bf16.mxu1 %v17626_v40  ;;  %vm15806_vm12 = vmpackc.low %vm4965_vm10, %vm4964_vm2 }
0x121a   : > { %15807 = vmatpush3.bf16.msk.msra.mxu0 %vm15806_vm12, %v17629_v44  ;;  %vm15809_vm2 = vmpackc.low %vm4967_vm14, %vm4966_vm5  ;;  %vm5059_vm5 = vcmask 1040384  }
0x121b   : > { %15808 = vmatprep.subr.bf16.mxu0 %v17626_v40 }
0x121c   : > { %15780 = vmatpush3.bf16.msk.msra.mxu1 %vm15779_vm13, %v17629_v44  ;;  %vm4859_vm13 = vcmp.eq.s32.totalorder %v18633_v25, %v18948_v36  ;;  %v16272_v36 = vld [vmem:[#allocation13 + $0x58] sm:$0xff]  }
0x121d   : > { %15781 = vmatprep.subr.bf16.mxu1 %v17626_v40  ;;  %vm15789_vm15 = vmpackc.low %vm4860_vm6, %vm4859_vm13  ;;  %vm5056_vm6 = vcmask 15360  }
0x121e   : > { %15810 = vmatpush3.bf16.msk.msra.mxu0 %vm15809_vm2, %v17629_v44 }
0x121f   : > { %14546 = vmatprep.subr.bf16.mxu0 %v17624_v1 }
0x1220   : > { %15782 = vmatpush3.bf16.msra.mxu1 %v17626_v40 }
0x1221   : > { %15783 = vmatprep.subr.bf16.mxu1 %v17626_v40 }
0x1224   : > { %15784 = vmatpush3.bf16.msra.mxu1 %v17626_v40 }
0x1225   : > { %15785 = vmatprep.subr.bf16.mxu1 %v17626_v40 }
0x1228   : > { %15787 = vmatpush3.bf16.msk.msra.mxu1 %vm15786_vm11, %v17629_v44 }
0x1229   : > { %15788 = vmatprep.subr.bf16.mxu1 %v17626_v40 }
0x122c   : > { %15790 = vmatpush3.bf16.msk.msra.mxu1 %vm15789_vm15, %v17629_v44 }
0x122d   : > { %14516 = vmatprep.subr.bf16.mxu1 %v17624_v1 }
0x12e6   : > { %v4770_v61 = vpop.f32.mrb[56].mxu1 }
0x12e7   : > { %v14448_v62 = vpop.f32.mrb[57].mxu1 }
0x12e8   : > { %v16286_v62 = vld [vmem:[%s20002_s10 + $0x58] sm:$0xff]  }
0x12ea   : > { %v4842_v63 = vpop.f32.mrb[58].mxu1 }
0x12eb   : > { %v4846_v0 = vmax.f32 %v4770_v61, %v4842_v63  ;;  %v14453_v7 = vpop.f32.mrb[59].mxu1  ;;  %v16284_v61 = vld [vmem:[%s20002_s10 + $0x50] sm:$0xff]   ;;  %v16288_v63 = vld [vmem:[%s20002_s10 + $0x60] sm:$0xff]  }
0x12ed   : > { %14479 = vmatmul.mubr.f32.vlgmr.msra.gmra.mrb[60].mxu1 %v4846_v0  ;;  %14514 = vmatmul.mubr.f32.vlgmr.msra.gmra.mrb[56].mxu0 %v4846_v0  ;;  %v16290_v0 = vld [vmem:[%s20002_s10 + $0x68] sm:$0xff]  }
0x12ee   : > { %14518 = vmatprep.mubr.msk.bf16.mxu1 %vm17625_vm4, %v17624_v1  ;;  %14554 = vmatprep.mubr.msk.bf16.mxu0 %vm17625_vm4, %v17624_v1 }
0x12ef   : > { %14547 = vmatpush3.bf16.msra.mxu0 %v16266_v8 }
0x12f0   : > { %14548 = vmatprep.subr.bf16.mxu0 %v17624_v1 }
0x12f3   : > { %14549 = vmatpush3.bf16.msra.mxu0 %v16268_v10 }
0x12f4   : > { %14550 = vmatprep.subr.bf16.mxu0 %v17624_v1 }
0x12f7   : > { %14551 = vmatpush3.bf16.msra.mxu0 %v16270_v11 }
0x12f8   : > { %14552 = vmatprep.subr.bf16.mxu0 %v17624_v1 }
0x12fb   : > { %14553 = vmatpush3.bf16.msra.mxu0 %v16272_v36 }
0x12fc   : > { %14564 = vmatprep.subr.bf16.mxu0 %v17624_v1 }
0x13c0   : > { %v4947_v12 = vpop.f32.mrb[60].mxu1  ;;  %v5050_v15 = vpop.f32.mrb[56].mxu0 }
0x13c1   : > { %v5054_v16 = vmax.f32 %v4947_v12, %v5050_v15  ;;  %v14480_v17 = vpop.f32.mrb[61].mxu1  ;;  %v14515_v21 = vpop.f32.mrb[57].mxu0 }
0x13c3   : > { %v5055_v30 = vpack.c.bf16 %v5054_v16, %v5054_v16 }
0x13c5   : > { %v5061_v31 = vsel %vm5059_vm5, %v5055_v30, 0 }
0x13c6   : > { %14517 = vmatpush3.bf16.msra.mxu1 %v5061_v31 }
0x13c7   : > { %14522 = vmatprep.subr.bf16.mxu1 %v17624_v1 }
0x13c9   : > { %14519 = vmatmul.mubr.msk.bf16.vlgmr.msra.gmra.mrb[64].mxu1 %vm5056_vm6, %v18856_v35 }
0x13ca   : > { %14523 = vmatpush3.bf16.msra.mxu1 %v16267_v32  ;;  %14530 = vmatprep.mubr.msk.bf16.mxu1 %vm17625_vm4, %v17624_v1  ;;  %v12621_v32 = vld [vmem:[#allocation10] ss:$0 sm:$0xff] }
0x13cb   : > { %14524 = vmatprep.subr.bf16.mxu1 %v17624_v1 }
0x13ce   : > { %14525 = vmatpush3.bf16.msra.mxu1 %v16269_v33 }
0x13cf   : > { %14526 = vmatprep.subr.bf16.mxu1 %v17624_v1 }
0x13d2   : > { %14527 = vmatpush3.bf16.msra.mxu1 %v16271_v34 }
0x13d3   : > { %14528 = vmatprep.subr.bf16.mxu1 %v17624_v1 }
0x13d6   : > { %14529 = vmatpush3.bf16.msra.mxu1 %v16273_v37 }
0x13d7   : > { %14534 = vmatprep.subr.bf16.mxu1 %v17624_v1 }
0x149c   : > { %v5097_v38 = vpop.f32.mrb[64].mxu1 }
0x149d   : > { %v5103_v9 = vpack.c.bf16 %v5097_v38, %v5097_v38  ;;  %v14520_v39 = vpop.f32.mrb[65].mxu1 }
0x149e   : > { %v5100_v41 = vpop.f32.mrb[66].mxu1 }
0x149f   : > { %v5124_v42 = vshll.u32 %v5103_v9, 16  ;;  %v5271_v45 = vrot.slane %v5103_v9, 1  ;;  %v14521_v46 = vpop.f32.mrb[67].mxu1  ;;  %v5122_v51 = vshrl.u32 %v5103_v9, 16  ;;  %v16278_v41 = vld [vmem:[%s20002_s10] sm:$0xff]  }
0x14a0   : > { %v16283_v46 = vld [vmem:[%s20002_s10 + $0x18] sm:$0xff]  }
0x14a1   : > { %v5126_v52 = vrot.slane %v5124_v42, 1  ;;  %14555 = vmatmul.mubr.msk.bf16.vlgmr.msra.gmra.mrb[60].mxu0 %vm3091_vm8, %v5271_v45  ;;  %v16279_v42 = vld [vmem:[%s20002_s10 + $0x8] sm:$0xff]   ;;  %v16281_v45 = vld [vmem:[%s20002_s10 + $0x10] sm:$0xff]  }
0x14a2   : > { %14580 = vmatprep.mubr.msk.bf16.mxu0 %vm17625_vm4, %v17624_v1  ;;  %14565 = vmatpush3.bf16.msra.mxu0 %v16280_v58 }
0x14a3   : > { %v5127_v54 = vor.u32 %v5126_v52, %v5122_v51  ;;  %14566 = vmatprep.subr.bf16.mxu0 %v17624_v1  ;;  %v16285_v51 = vld [vmem:[%s20002_s10 + $0x20] sm:$0xff]   ;;  %v16287_v52 = vld [vmem:[%s20002_s10 + $0x28] sm:$0xff]  }
0x14a5   : > { %14531 = vmatmul.mubr.msk.bf16.vlgmr.msra.gmra.mrb[68].mxu1 %vm3091_vm8, %v5127_v54  ;;  %v16291_v54 = vld [vmem:[%s20002_s10 + $0x38] sm:$0xff]  }
0x14a6   : > { %14535 = vmatpush3.bf16.msra.mxu1 %v16274_v53  ;;  %14542 = vmatprep.mubr.msk.bf16.mxu1 %vm17625_vm4, %v17624_v1  ;;  %v16289_v53 = vld [vmem:[%s20002_s10 + $0x30] sm:$0xff]  }
0x14a7   : > { %14536 = vmatprep.subr.bf16.mxu1 %v17624_v1  ;;  %14567 = vmatpush3.bf16.msra.mxu0 %v16282_v59 }
0x14a8   : > { %14568 = vmatprep.subr.bf16.mxu0 %v17624_v1 }
0x14aa   : > { %14537 = vmatpush3.bf16.msra.mxu1 %v16275_v55  ;;  %v16292_v55 = vld [vmem:[%s20002_s10 + $0x70] sm:$0xff]  }
0x14ab   : > { %14538 = vmatprep.subr.bf16.mxu1 %v17624_v1  ;;  %14569 = vmatpush3.bf16.msra.mxu0 %v16284_v61 }
0x14ac   : > { %14570 = vmatprep.subr.bf16.mxu0 %v17624_v1 }
0x14ae   : > { %14539 = vmatpush3.bf16.msra.mxu1 %v16276_v56  ;;  %v16293_v56 = vld [vmem:[%s20002_s10 + $0x78] sm:$0xff]  }
0x14af   : > { %14540 = vmatprep.subr.bf16.mxu1 %v17624_v1  ;;  %14571 = vmatpush3.bf16.msra.mxu0 %v16286_v62 }
0x14b0   : > { %14572 = vmatprep.subr.bf16.mxu0 %v17624_v1 }
0x14b2   : > { %14541 = vmatpush3.bf16.msra.mxu1 %v16277_v57 }
0x14b3   : > { %14558 = vmatprep.subr.bf16.mxu1 %v17624_v1  ;;  %14573 = vmatpush3.bf16.msra.mxu0 %v16288_v63 }
0x14b4   : > { %14574 = vmatprep.subr.bf16.mxu0 %v17624_v1 }
0x14b5   : > { %14543 = vmatmul.mubr.msk.bf16.vlgmr.msra.gmra.mrb[72].mxu1 %vm3091_vm8, %v5103_v9 }
0x14b6   : > { %14560 = vmatprep.mubr.msk.bf16.mxu1 %vm17625_vm4, %v17624_v1 }
0x14b7   : > { %14575 = vmatpush3.bf16.msra.mxu0 %v16290_v0 }
0x14b8   : > { %14576 = vmatprep.subr.bf16.mxu0 %v17624_v1 }
0x14bb   : > { %14577 = vmatpush3.bf16.msra.mxu0 %v16292_v55  ;;  %v16302_v55 = vld [vmem:[#allocation18 + $0x20] sm:$0xff]  }
0x14bc   : > { %14578 = vmatprep.subr.bf16.mxu0 %v17624_v1 }
0x14bf   : > { %14579 = vmatpush3.bf16.msra.mxu0 %v16293_v56  ;;  %v16304_v56 = vld [vmem:[#allocation18 + $0x28] sm:$0xff]  }
0x14c0   : > { %14604 = vmatprep.subr.bf16.mxu0 %v17624_v1 }
0x1574   : > { %v5333_v7 = vpop.f32.mrb[60].mxu0 }
0x1575   : > { %v14556_v8 = vpop.f32.mrb[61].mxu0 }
0x1576   : > { %v5336_v10 = vpop.f32.mrb[62].mxu0  ;;  %v16294_v8 = vld [vmem:[%s20002_s10 + $0x80] sm:$0xff]  }
0x1577   : > { %v14557_v11 = vpop.f32.mrb[63].mxu0 }
0x1578   : > { %v5189_v12 = vpop.f32.mrb[68].mxu1  ;;  %v16295_v11 = vld [vmem:[%s20002_s10 + $0x88] sm:$0xff]  }
0x1579   : > { %v14532_v15 = vpop.f32.mrb[69].mxu1 }
0x157a   : > { %v5192_v16 = vpop.f32.mrb[70].mxu1  ;;  %v16297_v15 = vld [vmem:[%s20002_s10 + $0x98] sm:$0xff]  }
0x157b   : > { %v14533_v17 = vpop.f32.mrb[71].mxu1  ;;  %v16298_v16 = vld [vmem:[%s20002_s10 + $0xa0] sm:$0xff]  }
0x157c   : > { %v16299_v17 = vld [vmem:[%s20002_s10 + $0xa8] sm:$0xff]  }
0x1588   : > { %v5255_v21 = vpop.f32.mrb[72].mxu1 }
0x1589   : > { %v5256_v30 = vadd.f32 %v5255_v21, %v5189_v12  ;;  %v14544_v31 = vpop.f32.mrb[73].mxu1  ;;  %v16296_v12 = vld [vmem:[%s20002_s10 + $0x90] sm:$0xff]  }
0x158a   : > { %v5258_v33 = vpop.f32.mrb[74].mxu1  ;;  %v16300_v21 = vld [vmem:[%s20002_s10 + $0xb0] sm:$0xff]  }
0x158b   : > { %v5339_v34 = vadd.f32 %v5333_v7, %v5256_v30  ;;  %v14545_v36 = vpop.f32.mrb[75].mxu1  ;;  %v16301_v30 = vld [vmem:[%s20002_s10 + $0xb8] sm:$0xff]  }
0x158d   : > { %v5347_v37 = vadd.f32 %v12621_v32, %v5339_v34  ;;  %v5877_v32 = vand.u32 4294967232, %v18416_v3 }
0x158f   : > { %v5348_v38 = vmax.f32 %v5347_v37, 0.0  ;;  %v5878_v33 = vadd.s32 %v5877_v32, %v18416_v3 }
0x1591   : > { %v5349_v9 = vpack.c.bf16 %v5348_v38, %v5348_v38  ;;  %v5981_v34 = vadd.s32 64, %v5878_v33 }
0x1593   : > { %v5351_v39 = vsel %vm5059_vm5, %v5349_v9, 0  ;;  %vm5990_vm10 = vcmp.eq.s32.totalorder %v18626_v24, %v5981_v34  ;;  %vm5991_vm11 = vcmp.eq.s32.totalorder %v18561_v49, %v5981_v34  ;;  %vm5992_vm12 = vcmp.eq.s32.totalorder %v18633_v25, %v5981_v34 }
0x1594   : > { %14559 = vmatpush3.bf16.msra.mxu1 %v5351_v39  ;;  %vm5993_vm13 = vcmp.eq.s32.totalorder %v18569_v50, %v5981_v34  ;;  %vm15832_vm14 = vmpackc.low %vm5991_vm11, %vm5990_vm10  ;;  %vm5994_vm2 = vcmp.eq.s32.totalorder %v18648_v27, %v5981_v34  ;;  %vm5995_vm3 = vcmp.eq.s32.totalorder %v18643_v26, %v5981_v34  ;;  %v12679_v26 = vld [vmem:[#allocation12] ss:$0 sm:$0xff]  ;;  %vm5881_vm11 = vcmp.eq.s32.totalorder %v18424_v6, %v5878_v33 }
0x1595   : > { %14584 = vmatprep.subr.bf16.mxu1 %v17624_v1  ;;  %vm15835_vm15 = vmpackc.low %vm5993_vm13, %vm5992_vm12  ;;  %vm5882_vm12 = vcmp.eq.s32.totalorder %v18530_v43, %v5878_v33 }
0x1596   : > { %vm15838_vm7 = vmpackc.low %vm5995_vm3, %vm5994_vm2  ;;  %vm5879_vm3 = vcmp.eq.s32.totalorder %v18414_v2, %v5878_v33 }
0x1597   : > { %14561 = vmatmul.mubr.msk.bf16.vlgmr.msra.gmra.mrb[76].mxu1 %vm5056_vm6, %v18856_v35  ;;  %vm15815_vm13 = vmpackc.low %vm5882_vm12, %vm5881_vm11  ;;  %vm5997_vm11 = vcmp.eq.s32.totalorder %v18655_v28, %v5981_v34 }
0x1598   : > { %14585 = vmatpush3.bf16.msra.mxu1 %v16278_v41  ;;  %14600 = vmatprep.mubr.msk.bf16.mxu1 %vm17625_vm4, %v17624_v1 }
0x1599   : > { %14586 = vmatprep.subr.bf16.mxu1 %v17624_v1 }
0x159c   : > { %14587 = vmatpush3.bf16.msra.mxu1 %v16279_v42 }
0x159d   : > { %14588 = vmatprep.subr.bf16.mxu1 %v17624_v1 }
0x15a0   : > { %14589 = vmatpush3.bf16.msra.mxu1 %v16281_v45 }
0x15a1   : > { %14590 = vmatprep.subr.bf16.mxu1 %v17624_v1 }
0x15a4   : > { %14591 = vmatpush3.bf16.msra.mxu1 %v16283_v46 }
0x15a5   : > { %14592 = vmatprep.subr.bf16.mxu1 %v17624_v1 }
0x15a8   : > { %14593 = vmatpush3.bf16.msra.mxu1 %v16285_v51 }
0x15a9   : > { %14594 = vmatprep.subr.bf16.mxu1 %v17624_v1 }
0x15ac   : > { %14595 = vmatpush3.bf16.msra.mxu1 %v16287_v52 }
0x15ad   : > { %14596 = vmatprep.subr.bf16.mxu1 %v17624_v1 }
0x15b0   : > { %14597 = vmatpush3.bf16.msra.mxu1 %v16289_v53 }
0x15b1   : > { %14598 = vmatprep.subr.bf16.mxu1 %v17624_v1 }
0x15b4   : > { %14599 = vmatpush3.bf16.msra.mxu1 %v16291_v54 }
0x15b5   : > { %14624 = vmatprep.subr.mxu1 %v17624_v1 }
0x166a   : > { %v5387_v57 = vpop.f32.mrb[76].mxu1 }
0x166b   : > { %v5393_v58 = vpack.c.bf16 %v5387_v57, %v5387_v57  ;;  %v14562_v59 = vpop.f32.mrb[77].mxu1  ;;  %v16306_v57 = vld [vmem:[#allocation18 + $0x30] sm:$0xff]  }
0x166c   : > { %v5390_v61 = vpop.f32.mrb[78].mxu1  ;;  %v16309_v59 = vld [vmem:[#allocation18 + $0x58] sm:$0xff]  }
0x166d   : > { %v5430_v62 = vshll.u32 %v5393_v58, 16  ;;  %v14563_v63 = vpop.f32.mrb[79].mxu1  ;;  %14601 = vmatmul.mubr.bf16.vlgmr.msra.gmra.mrb[80].mxu1 %v5393_v58  ;;  %v5428_v0 = vshrl.u32 %v5393_v58, 16  ;;  %v5629_v31 = vrot.slane %v5393_v58, 1  ;;  %v16308_v58 = vld [vmem:[#allocation18 + $0x38] sm:$0xff]  }
0x166e   : > { %14626 = vmatprep.mubr.msk.f32.mxu1 %vm17625_vm4, %v17624_v1 }
0x166f   : > { %v5432_v7 = vrot.slane %v5430_v62, 1 }
0x1671   : > { %v5433_v10 = vor.u32 %v5432_v7, %v5428_v0  ;;  %v16310_v7 = vld [vmem:[#allocation18] sm:$0xff]  }
0x1673   : > { %14581 = vmatmul.mubr.bf16.vlgmr.msra.gmra.mrb[64].mxu0 %v5433_v10 }
0x1674   : > { %14605 = vmatpush3.bf16.msra.mxu0 %v16294_v8  ;;  %14620 = vmatprep.mubr.msk.bf16.mxu0 %vm17625_vm4, %v17624_v1 }
0x1675   : > { %14606 = vmatprep.subr.bf16.mxu0 %v17624_v1 }
0x1678   : > { %14607 = vmatpush3.bf16.msra.mxu0 %v16295_v11 }
0x1679   : > { %14608 = vmatprep.subr.bf16.mxu0 %v17624_v1 }
0x167c   : > { %14609 = vmatpush3.bf16.msra.mxu0 %v16296_v12  ;;  %v16311_v12 = vld [vmem:[#allocation18 + $0x8] sm:$0xff]  }
0x167d   : > { %14610 = vmatprep.subr.bf16.mxu0 %v17624_v1 }
0x1680   : > { %14611 = vmatpush3.bf16.msra.mxu0 %v16297_v15  ;;  %v16312_v15 = vld [vmem:[#allocation18 + $0x10] sm:$0xff]  }
0x1681   : > { %14612 = vmatprep.subr.bf16.mxu0 %v17624_v1 }
0x1684   : > { %14613 = vmatpush3.bf16.msra.mxu0 %v16298_v16  ;;  %v16313_v16 = vld [vmem:[#allocation18 + $0x18] sm:$0xff]  }
0x1685   : > { %14614 = vmatprep.subr.bf16.mxu0 %v17624_v1 }
0x1688   : > { %14615 = vmatpush3.bf16.msra.mxu0 %v16299_v17  ;;  %v16314_v17 = vld [vmem:[#allocation19] sm:$0xff]  }
0x1689   : > { %14616 = vmatprep.subr.bf16.mxu0 %v17624_v1 }
0x168c   : > { %14617 = vmatpush3.bf16.msra.mxu0 %v16300_v21  ;;  %v16316_v21 = vld [vmem:[#allocation19 + $0x8] sm:$0xff]  }
0x168d   : > { %14618 = vmatprep.subr.bf16.mxu0 %v17624_v1 }
0x1690   : > { %14619 = vmatpush3.bf16.msra.mxu0 %v16301_v30  ;;  %v16318_v30 = vld [vmem:[#allocation19 + $0x10] sm:$0xff]  }
0x1691   : > { %15823 = vmatprep.subr.bf16.mxu0 %v17626_v40 }
0x1693   : > { %14621 = vmatmul.mubr.bf16.vlgmr.msra.gmra.mrb[68].mxu0 %v5629_v31 }
0x1694   : > { %15824 = vmatpush3.bf16.msra.mxu0 %v17626_v40  ;;  %14685 = vmatprep.mubr.msk.f32.mxu0 %vm17625_vm4, %v17624_v1 }
0x1695   : > { %15825 = vmatprep.subr.bf16.mxu0 %v17626_v40 }
0x1698   : > { %15826 = vmatpush3.bf16.msra.mxu0 %v17626_v40 }
0x1699   : > { %15827 = vmatprep.subr.bf16.mxu0 %v17626_v40 }
0x169c   : > { %15828 = vmatpush3.bf16.msra.mxu0 %v17626_v40 }
0x169d   : > { %15829 = vmatprep.subr.bf16.mxu0 %v17626_v40 }
0x16a0   : > { %15830 = vmatpush3.bf16.msra.mxu0 %v17626_v40 }
0x16a1   : > { %15831 = vmatprep.subr.bf16.mxu0 %v17626_v40 }
0x16a4   : > { %15833 = vmatpush3.bf16.msk.msra.mxu0 %vm15832_vm14, %v17629_v44  ;;  %vm5883_vm14 = vcmp.eq.s32.totalorder %v18608_v22, %v5878_v33 }
0x16a5   : > { %15834 = vmatprep.subr.bf16.mxu0 %v17626_v40 }
0x16a8   : > { %15836 = vmatpush3.bf16.msk.msra.mxu0 %vm15835_vm15, %v17629_v44  ;;  %vm5884_vm15 = vcmp.eq.s32.totalorder %v18544_v47, %v5878_v33  ;;  %v16303_v47 = vld [vmem:[#allocation18 + $0x40] sm:$0xff]  }
0x16a9   : > { %15837 = vmatprep.subr.bf16.mxu0 %v17626_v40  ;;  %vm15818_vm2 = vmpackc.low %vm5884_vm15, %vm5883_vm14 }
0x16ac   : > { %15839 = vmatpush3.bf16.msk.msra.mxu0 %vm15838_vm7, %v17629_v44  ;;  %vm5880_vm7 = vcmp.eq.s32.totalorder %v18420_v4, %v5878_v33 }
0x16ad   : > { %15840 = vmatprep.subr.bf16.mxu0 %v17626_v40  ;;  %vm15812_vm10 = vmpackc.low %vm5880_vm7, %vm5879_vm3  ;;  %vm5885_vm3 = vcmp.eq.s32.totalorder %v18619_v23, %v5878_v33  ;;  %vm5886_vm7 = vcmp.eq.s32.totalorder %v18553_v48, %v5878_v33  ;;  %v16305_v48 = vld [vmem:[#allocation18 + $0x48] sm:$0xff]  }
0x16ae   : > { %vm15821_vm12 = vmpackc.low %vm5886_vm7, %vm5885_vm3  ;;  %vm20020_vm3 = vcmask 130048  }
0x16af   : > { %vm20021_vm7 = vmmov %vm20020_vm3 }
0x1740   : > { %v5605_v3 = vpop.f32.mrb[80].mxu1 }
0x1741   : > { %v14602_v49 = vpop.f32.mrb[81].mxu1 }
0x1742   : > { %v5608_v50 = vpop.f32.mrb[82].mxu1 }
0x1743   : > { %v14603_v24 = vpop.f32.mrb[83].mxu1 }
0x1746   : > { %v5517_v25 = vpop.f32.mrb[64].mxu0 }
0x1747   : > { %v5606_v36 = vadd.f32 %v5605_v3, %v5517_v25  ;;  %v14582_v37 = vpop.f32.mrb[65].mxu0 }
0x1748   : > { %v5520_v38 = vpop.f32.mrb[66].mxu0 }
0x1749   : > { %v14583_v27 = vpop.f32.mrb[67].mxu0  ;;  %v6367_v38 = vld [vmem:[#allocation15] sm:$0x1] }
0x1766   : > { %v5713_v9 = vpop.f32.mrb[68].mxu0 }
0x1767   : > { %v5719_v39 = vadd.f32 %v5713_v9, %v5606_v36  ;;  %v14622_v41 = vpop.f32.mrb[69].mxu0 }
0x1768   : > { %v5716_v42 = vpop.f32.mrb[70].mxu0 }
0x1769   : > { %v5727_v45 = vadd.f32 %v12679_v26, %v5719_v39  ;;  %v14623_v46 = vpop.f32.mrb[71].mxu0 }
0x176a   : > { %v16315_v46 = vld [vmem:[#allocation19 + $0x20] sm:$0xff]  }
0x176b   : > { %v19138_v51 = vmax.f32 %v5727_v45, 0.0 }
0x176d   : > { %14625 = vmatpush3.msk.msra.mxu1 %vm4029_vm0, %v19138_v51 }
0x176e   : > { %14627 = vmatmul.mubr.msk.f32.vlgmr.msra.gmra.mrb[62].mxu1 %vm5056_vm6, %v18587_v19  ;;  %14629 = vmatprep.subr.mxu1 %v17624_v1  ;;  %v16307_v19 = vld [vmem:[#allocation18 + $0x50] sm:$0xff]  }
0x176f   : > { %14630 = vmatpush3.msk.msra.mxu1 %vm4029_vm0, %v19138_v51  ;;  %14631 = vmatprep.mubr.msk.f32.mxu1 %vm17625_vm4, %v17624_v1 }
0x1770   : > { %15811 = vmatprep.subr.bf16.mxu1 %v17626_v40 }
0x1772   : > { %14632 = vmatmul.mubr.msk.f32.vlgmr.msra.gmra.mrb[84].mxu1 %vm5056_vm6, %v18599_v20 }
0x1773   : > { %15813 = vmatpush3.bf16.msk.msra.mxu1 %vm15812_vm10, %v17629_v44  ;;  %14650 = vmatprep.mubr.msk.f32.mxu1 %vm17625_vm4, %v17624_v1  ;;  %vm5996_vm10 = vcmp.eq.s32.totalorder %v18664_v29, %v5981_v34 }
0x1774   : > { %15814 = vmatprep.subr.bf16.mxu1 %v17626_v40  ;;  %vm15841_vm9 = vmpackc.low %vm5997_vm11, %vm5996_vm10  ;;  %vm20023_vm10 = vcmask 1046528   ;;  %vm20024_vm11 = vsmask.f32 7424 }
0x1775   : > { %15842 = vmatpush3.bf16.msk.msra.mxu0 %vm15841_vm9, %v17629_v44  ;;  %vm6086_vm9 = vcmask 7168  }
0x1776   : > { %14718 = vmatprep.subr.bf16.mxu0 %v17624_v1 }
0x1777   : > { %15816 = vmatpush3.bf16.msk.msra.mxu1 %vm15815_vm13, %v17629_v44 }
0x1778   : > { %15817 = vmatprep.subr.bf16.mxu1 %v17626_v40 }
0x177b   : > { %15819 = vmatpush3.bf16.msk.msra.mxu1 %vm15818_vm2, %v17629_v44 }
0x177c   : > { %15820 = vmatprep.subr.bf16.mxu1 %v17626_v40 }
0x177f   : > { %15822 = vmatpush3.bf16.msk.msra.mxu1 %vm15821_vm12, %v17629_v44  ;;  %v17630_v44 = vmov 0   ;;  %vm20025_vm12 = vmmov %vm20020_vm3 }
0x1780   : > { %14688 = vmatprep.subr.bf16.mxu1 %v17624_v1  ;;  %v19182_v52 = vsel %vm5059_vm5, 65535, %v17630_v44  ;;  %v16325_v44 = vld [vmem:[#allocation19 + $0x58] sm:$0xff]  }
0x1841   : > { %v5800_v2 = vpop.f32.mrb[62].mxu1 }
0x1842   : > { %v14628_v4 = vpop.f32.mrb[63].mxu1 }
0x1843   : > { %v16319_v4 = vld [vmem:[#allocation19 + $0x30] sm:$0xff]  }
0x1845   : > { %v5872_v6 = vpop.f32.mrb[84].mxu1 }
0x1846   : > { %v5876_v40 = vmax.f32 %v5800_v2, %v5872_v6  ;;  %v14633_v43 = vpop.f32.mrb[85].mxu1  ;;  %v16317_v2 = vld [vmem:[#allocation19 + $0x28] sm:$0xff]   ;;  %v16320_v6 = vld [vmem:[#allocation19 + $0x18] sm:$0xff]  }
0x1848   : > { %14651 = vmatmul.mubr.f32.vlgmr.msra.gmra.mrb[86].mxu1 %v5876_v40  ;;  %14686 = vmatmul.mubr.f32.vlgmr.msra.gmra.mrb[58].mxu0 %v5876_v40  ;;  %v16321_v40 = vld [vmem:[#allocation19 + $0x38] sm:$0xff]  }
0x1849   : > { %14690 = vmatprep.mubr.msk.bf16.mxu1 %vm17625_vm4, %v17624_v1  ;;  %14726 = vmatprep.mubr.msk.bf16.mxu0 %vm17625_vm4, %v17624_v1 }
0x184a   : > { %14719 = vmatpush3.bf16.msra.mxu0 %v16303_v47 }
0x184b   : > { %14720 = vmatprep.subr.bf16.mxu0 %v17624_v1 }
0x184e   : > { %14721 = vmatpush3.bf16.msra.mxu0 %v16305_v48 }
0x184f   : > { %14722 = vmatprep.subr.bf16.mxu0 %v17624_v1 }
0x1852   : > { %14723 = vmatpush3.bf16.msra.mxu0 %v16307_v19 }
0x1853   : > { %14724 = vmatprep.subr.bf16.mxu0 %v17624_v1 }
0x1856   : > { %14725 = vmatpush3.bf16.msra.mxu0 %v16309_v59 }
0x1857   : > { %14748 = vmatprep.subr.bf16.mxu0 %v17624_v1 }
0x191b   : > { %v5977_v20 = vpop.f32.mrb[86].mxu1  ;;  %v6080_v22 = vpop.f32.mrb[58].mxu0 }
0x191c   : > { %v6084_v23 = vmax.f32 %v5977_v20, %v6080_v22  ;;  %v14652_v28 = vpop.f32.mrb[87].mxu1  ;;  %v14687_v29 = vpop.f32.mrb[59].mxu0  ;;  %v16322_v20 = vld [vmem:[#allocation19 + $0x40] sm:$0xff]  }
0x191d   : > { %v16323_v28 = vld [vmem:[#allocation19 + $0x48] sm:$0xff]   ;;  %v16324_v29 = vld [vmem:[#allocation19 + $0x50] sm:$0xff]  }
0x191e   : > { %v6085_v53 = vpack.c.bf16 %v6084_v23, %v6084_v23 }
0x1920   : > { %v6092_v54 = vand.u32 %v19182_v52, %v6085_v53  ;;  %v6774_v53 = vpack.c.bf16 %v19138_v51, %v19138_v51 }
0x1922   : > { %14689 = vmatpush3.bf16.msra.mxu1 %v6092_v54 }
0x1923   : > { %14694 = vmatprep.subr.bf16.mxu1 %v17624_v1 }
0x1925   : > { %14691 = vmatmul.mubr.msk.bf16.vlgmr.msra.gmra.mrb[88].mxu1 %vm6086_vm9, %v18856_v35 }
0x1926   : > { %14695 = vmatpush3.bf16.msra.mxu1 %v16302_v55  ;;  %14702 = vmatprep.mubr.msk.bf16.mxu1 %vm17625_vm4, %v17624_v1  ;;  %v6776_v55 = vsel %vm5059_vm5, %v6774_v53, 0 }
0x1927   : > { %14696 = vmatprep.subr.bf16.mxu1 %v17624_v1 }
0x192a   : > { %14697 = vmatpush3.bf16.msra.mxu1 %v16304_v56 }
0x192b   : > { %14698 = vmatprep.subr.bf16.mxu1 %v17624_v1 }
0x192e   : > { %14699 = vmatpush3.bf16.msra.mxu1 %v16306_v57 }
0x192f   : > { %14700 = vmatprep.subr.bf16.mxu1 %v17624_v1 }
0x1932   : > { %14701 = vmatpush3.bf16.msra.mxu1 %v16308_v58 }
0x1933   : > { %14706 = vmatprep.subr.bf16.mxu1 %v17624_v1 }
0x19f8   : > { %v6128_v61 = vpop.f32.mrb[88].mxu1 }
0x19f9   : > { %v6134_v62 = vpack.c.bf16 %v6128_v61, %v6128_v61  ;;  %v14692_v63 = vpop.f32.mrb[89].mxu1 }
0x19fa   : > { %v6131_v0 = vpop.f32.mrb[90].mxu1 }
0x19fb   : > { %v6153_v8 = vshrl.u32 %v6134_v62, 16  ;;  %v6298_v10 = vrot.slane %v6134_v62, 1  ;;  %v14693_v11 = vpop.f32.mrb[91].mxu1 }
0x19fd   : > { %14703 = vmatmul.mubr.msk.bf16.vlgmr.msra.gmra.mrb[92].mxu1 %vm3091_vm8, %v6153_v8  ;;  %14727 = vmatmul.mubr.msk.bf16.vlgmr.msra.gmra.mrb[72].mxu0 %vm3091_vm8, %v6298_v10  ;;  %v6647_v8 = vld [vmem:[#allocation16] sm:$0x1] }
0x19fe   : > { %14707 = vmatpush3.bf16.msra.mxu1 %v16310_v7  ;;  %14714 = vmatprep.mubr.msk.bf16.mxu1 %vm17625_vm4, %v17624_v1 }
0x19ff   : > { %14708 = vmatprep.subr.bf16.mxu1 %v17624_v1  ;;  %14756 = vmatprep.mubr.msk.bf16.mxu0 %vm17625_vm4, %v17624_v1 }
0x1a00   : > { %14749 = vmatpush3.bf16.msra.mxu0 %v16314_v17 }
0x1a01   : > { %14750 = vmatprep.subr.bf16.mxu0 %v17624_v1 }
0x1a02   : > { %14709 = vmatpush3.bf16.msra.mxu1 %v16311_v12 }
0x1a03   : > { %14710 = vmatprep.subr.bf16.mxu1 %v17624_v1 }
0x1a04   : > { %14751 = vmatpush3.bf16.msra.mxu0 %v16316_v21 }
0x1a05   : > { %14752 = vmatprep.subr.bf16.mxu0 %v17624_v1 }
0x1a06   : > { %14711 = vmatpush3.bf16.msra.mxu1 %v16312_v15 }
0x1a07   : > { %14712 = vmatprep.subr.bf16.mxu1 %v17624_v1 }
0x1a08   : > { %14753 = vmatpush3.bf16.msra.mxu0 %v16318_v30 }
0x1a09   : > { %14754 = vmatprep.subr.bf16.mxu0 %v17624_v1 }
0x1a0a   : > { %14713 = vmatpush3.bf16.msra.mxu1 %v16313_v16 }
0x1a0b   : > { %14730 = vmatprep.subr.bf16.mxu1 %v17624_v1 }
0x1a0c   : > { %14755 = vmatpush3.bf16.msra.mxu0 %v16320_v6  ;;  %v16341_v6 = vld [vmem:[%s20003_s14 + $0x88] sm:$0xff]  }
0x1a0d   : > { %14715 = vmatmul.mubr.msk.bf16.vlgmr.msra.gmra.mrb[96].mxu1 %vm3091_vm8, %v6134_v62  ;;  %14772 = vmatprep.subr.bf16.mxu0 %v17624_v1 }
0x1a0e   : > { %14732 = vmatprep.mubr.msk.bf16.mxu1 %vm17625_vm4, %v17624_v1 }
0x1ad0   : > { %v6216_v31 = vpop.f32.mrb[92].mxu1  ;;  %v6360_v32 = vpop.f32.mrb[72].mxu0 }
0x1ad1   : > { %v14704_v33 = vpop.f32.mrb[93].mxu1  ;;  %v14728_v34 = vpop.f32.mrb[73].mxu0 }
0x1ad2   : > { %v6219_v3 = vpop.f32.mrb[94].mxu1  ;;  %v6363_v49 = vpop.f32.mrb[74].mxu0  ;;  %v16327_v33 = vld [vmem:[#allocation30 + $0x8] sm:$0xff]   ;;  %v16328_v34 = vld [vmem:[#allocation30 + $0x10] sm:$0xff]  }
0x1ad3   : > { %v14705_v50 = vpop.f32.mrb[95].mxu1  ;;  %v14729_v24 = vpop.f32.mrb[75].mxu0  ;;  %v16330_v3 = vld [vmem:[%s20003_s14 + $0x40] sm:$0xff]  }
0x1ad4   : > { %v16331_v24 = vld [vmem:[%s20003_s14 + $0x48] sm:$0xff]  }
0x1ae0   : > { %v6282_v25 = vpop.f32.mrb[96].mxu1 }
0x1ae1   : > { %v6283_v36 = vadd.f32 %v6282_v25, %v6216_v31  ;;  %v14716_v37 = vpop.f32.mrb[97].mxu1  ;;  %v6650_v31 = vld [vmem:[#allocation33] sm:$0x1] }
0x1ae2   : > { %v6285_v27 = vpop.f32.mrb[98].mxu1  ;;  %v16332_v37 = vld [vmem:[%s20003_s14 + $0x50] sm:$0xff]  }
0x1ae3   : > { %v6366_v9 = vadd.f32 %v6360_v32, %v6283_v36  ;;  %v14717_v26 = vpop.f32.mrb[99].mxu1  ;;  %v16326_v32 = vld [vmem:[#allocation30] sm:$0xff]   ;;  %v16334_v27 = vld [vmem:[%s20003_s14 + $0x60] sm:$0xff]  }
0x1ae4   : > { %v16335_v26 = vld [vmem:[%s20003_s14 + $0x68] sm:$0xff]  }
0x1ae5   : > { %v6368_v39 = vadd.f32 %v6367_v38, %v6366_v9  ;;  %v16333_v38 = vld [vmem:[%s20003_s14 + $0x58] sm:$0xff]  }
0x1ae7   : > { %v6369_v41 = vmax.f32 %v6368_v39, 0.0 }
0x1ae9   : > { %v6370_v42 = vpack.c.bf16 %v6369_v41, %v6369_v41  ;;  %v16336_v41 = vld [vmem:[%s20003_s14 + $0x70] sm:$0xff]  }
0x1aeb   : > { %v6372_v45 = vand.u32 %v6370_v42, %v19182_v52 }
0x1aed   : > { %14731 = vmatpush3.bf16.msra.mxu1 %v6372_v45 }
0x1aee   : > { %14736 = vmatprep.subr.bf16.mxu1 %v17624_v1 }
0x1af0   : > { %14733 = vmatmul.mubr.msk.bf16.vlgmr.msra.gmra.mrb[100].mxu1 %vm6086_vm9, %v18856_v35 }
0x1af1   : > { %14737 = vmatpush3.bf16.msra.mxu1 %v16315_v46  ;;  %14744 = vmatprep.mubr.msk.bf16.mxu1 %vm17625_vm4, %v17624_v1  ;;  %v16337_v46 = vld [vmem:[%s20003_s14 + $0x78] sm:$0xff]  }
0x1af2   : > { %14738 = vmatprep.subr.bf16.mxu1 %v17624_v1 }
0x1af5   : > { %14739 = vmatpush3.bf16.msra.mxu1 %v16317_v2 }
0x1af6   : > { %14740 = vmatprep.subr.bf16.mxu1 %v17624_v1 }
0x1af9   : > { %14741 = vmatpush3.bf16.msra.mxu1 %v16319_v4  ;;  %v16339_v4 = vld [vmem:[%s20003_s14 + $0x80] sm:$0xff]  }
0x1afa   : > { %14742 = vmatprep.subr.bf16.mxu1 %v17624_v1 }
0x1afd   : > { %14743 = vmatpush3.bf16.msra.mxu1 %v16321_v40  ;;  %v16343_v40 = vld [vmem:[%s20003_s14 + $0x90] sm:$0xff]  }
0x1afe   : > { %14760 = vmatprep.subr.bf16.mxu1 %v17624_v1 }
0x1bc3   : > { %v6408_v43 = vpop.f32.mrb[100].mxu1 }
0x1bc4   : > { %v6414_v47 = vpack.c.bf16 %v6408_v43, %v6408_v43  ;;  %v14734_v48 = vpop.f32.mrb[101].mxu1  ;;  %v16345_v43 = vld [vmem:[%s20003_s14 + $0x98] sm:$0xff]  }
0x1bc5   : > { %v6411_v19 = vpop.f32.mrb[102].mxu1  ;;  %v16349_v48 = vld [vmem:[%s20003_s14 + $0xa8] sm:$0xff]  }
0x1bc6   : > { %v6433_v22 = vshrl.u32 %v6414_v47, 16  ;;  %v14735_v23 = vpop.f32.mrb[103].mxu1  ;;  %14757 = vmatmul.mubr.msk.bf16.vlgmr.msra.gmra.mrb[76].mxu0 %vm3091_vm8, %v6414_v47  ;;  %v6578_v54 = vrot.slane %v6414_v47, 1  ;;  %v16347_v47 = vld [vmem:[%s20003_s14 + $0xa0] sm:$0xff]   ;;  %v16351_v19 = vld [vmem:[%s20003_s14 + $0xb0] sm:$0xff]  }
0x1bc7   : > { %14774 = vmatprep.mubr.msk.bf16.mxu0 %vm17625_vm4, %v17624_v1  ;;  %v16338_v23 = vld [vmem:[%s20003_s14] sm:$0xff]  }
0x1bc8   : > { %14745 = vmatmul.mubr.msk.bf16.vlgmr.msra.gmra.mrb[104].mxu1 %vm3091_vm8, %v6433_v22 }
0x1bc9   : > { %14761 = vmatpush3.bf16.msra.mxu1 %v16322_v20  ;;  %14768 = vmatprep.mubr.msk.bf16.mxu1 %vm17625_vm4, %v17624_v1  ;;  %v16353_v20 = vld [vmem:[%s20003_s14 + $0xb8] sm:$0xff]  }
0x1bca   : > { %14762 = vmatprep.subr.bf16.mxu1 %v17624_v1 }
0x1bcd   : > { %14763 = vmatpush3.bf16.msra.mxu1 %v16323_v28 }
0x1bce   : > { %14764 = vmatprep.subr.bf16.mxu1 %v17624_v1 }
0x1bd1   : > { %14765 = vmatpush3.bf16.msra.mxu1 %v16324_v29 }
0x1bd2   : > { %14766 = vmatprep.subr.bf16.mxu1 %v17624_v1 }
0x1bd5   : > { %14767 = vmatpush3.bf16.msra.mxu1 %v16325_v44 }
0x1bd6   : > { %14790 = vmatprep.subr.bf16.mxu1 %v17624_v1 }
0x1bd8   : > { %14769 = vmatmul.mubr.msk.bf16.vlgmr.msra.gmra.mrb[108].mxu1 %vm3091_vm8, %v6578_v54  ;;  %v16340_v54 = vld [vmem:[%s20003_s14 + $0x8] sm:$0xff]  }
0x1bd9   : > { %14791 = vmatpush3.bf16.msra.mxu1 %v6776_v55  ;;  %14792 = vmatprep.mubr.msk.bf16.mxu1 %vm17625_vm4, %v17624_v1  ;;  %v16342_v55 = vld [vmem:[%s20003_s14 + $0x10] sm:$0xff]  }
0x1bda   : > { %14796 = vmatprep.subr.bf16.mxu1 %v17624_v1 }
0x1be0   : > { %14793 = vmatmul.mubr.msk.bf16.vlgmr.msra.gmra.mrb[112].mxu1 %vm5056_vm6, %v18856_v35 }
0x1be1   : > { %14812 = vmatprep.mubr.msk.bf16.mxu1 %vm17625_vm4, %v17624_v1  ;;  %14797 = vmatpush3.bf16.msra.mxu1 %v16330_v3  ;;  %v16358_v3 = vld [vmem:[#allocation31 + $0x48] sm:$0xff]  }
0x1be2   : > { %14798 = vmatprep.subr.bf16.mxu1 %v17624_v1 }
0x1be5   : > { %14799 = vmatpush3.bf16.msra.mxu1 %v16331_v24  ;;  %v16364_v24 = vld [vmem:[#allocation31 + $0x60] sm:$0xff]  }
0x1be6   : > { %14800 = vmatprep.subr.bf16.mxu1 %v17624_v1 }
0x1be9   : > { %14801 = vmatpush3.bf16.msra.mxu1 %v16332_v37 }
0x1bea   : > { %14802 = vmatprep.subr.bf16.mxu1 %v17624_v1 }
0x1bed   : > { %14803 = vmatpush3.bf16.msra.mxu1 %v16333_v38 }
0x1bee   : > { %14804 = vmatprep.subr.bf16.mxu1 %v17624_v1 }
0x1bf1   : > { %14805 = vmatpush3.bf16.msra.mxu1 %v16334_v27 }
0x1bf2   : > { %14806 = vmatprep.subr.bf16.mxu1 %v17624_v1 }
0x1bf5   : > { %14807 = vmatpush3.bf16.msra.mxu1 %v16335_v26 }
0x1bf6   : > { %14808 = vmatprep.subr.bf16.mxu1 %v17624_v1 }
0x1bf9   : > { %14809 = vmatpush3.bf16.msra.mxu1 %v16336_v41 }
0x1bfa   : > { %14810 = vmatprep.subr.bf16.mxu1 %v17624_v1 }
0x1bfd   : > { %14811 = vmatpush3.bf16.msra.mxu1 %v16337_v46  ;;  %v16367_v46 = vld [vmem:[#allocation31 + $0x38] sm:$0xff]  }
0x1bfe   : > { %14836 = vmatprep.subr.bf16.mxu1 %v17624_v1 }
0x1c99   : > { %v6562_v51 = vpop.f32.mrb[76].mxu0 }
0x1c9a   : > { %v14758_v56 = vpop.f32.mrb[77].mxu0 }
0x1c9b   : > { %v6496_v57 = vpop.f32.mrb[104].mxu1  ;;  %v6565_v58 = vpop.f32.mrb[78].mxu0  ;;  %v16346_v56 = vld [vmem:[%s20003_s14 + $0x20] sm:$0xff]  }
0x1c9c   : > { %v6563_v59 = vadd.f32 %v6562_v51, %v6496_v57  ;;  %v14746_v61 = vpop.f32.mrb[105].mxu1  ;;  %v14759_v62 = vpop.f32.mrb[79].mxu0  ;;  %v16344_v51 = vld [vmem:[%s20003_s14 + $0x18] sm:$0xff]   ;;  %v16348_v57 = vld [vmem:[%s20003_s14 + $0x28] sm:$0xff]   ;;  %v16350_v58 = vld [vmem:[%s20003_s14 + $0x30] sm:$0xff]  }
0x1c9d   : > { %v6499_v63 = vpop.f32.mrb[106].mxu1  ;;  %v16354_v62 = vld [vmem:[#allocation31] sm:$0xff]  }
0x1c9e   : > { %v14747_v0 = vpop.f32.mrb[107].mxu1  ;;  %v16355_v63 = vld [vmem:[#allocation31 + $0x8] sm:$0xff]  }
0x1c9f   : > { %v16357_v0 = vld [vmem:[#allocation31 + $0x10] sm:$0xff]  }
0x1cab   : > { %v6640_v7 = vpop.f32.mrb[108].mxu1 }
0x1cac   : > { %v6646_v10 = vadd.f32 %v6640_v7, %v6563_v59  ;;  %v14770_v11 = vpop.f32.mrb[109].mxu1  ;;  %v16352_v59 = vld [vmem:[%s20003_s14 + $0x38] sm:$0xff]   ;;  %v16359_v7 = vld [vmem:[#allocation31 + $0x18] sm:$0xff]  }
0x1cad   : > { %v6643_v12 = vpop.f32.mrb[110].mxu1  ;;  %v16363_v11 = vld [vmem:[#allocation31 + $0x28] sm:$0xff]  }
0x1cae   : > { %v6648_v15 = vadd.f32 %v6647_v8, %v6646_v10  ;;  %v14771_v16 = vpop.f32.mrb[111].mxu1  ;;  %v16361_v8 = vld [vmem:[#allocation31 + $0x20] sm:$0xff]  }
0x1cb0   : > { %v6649_v17 = vmax.f32 %v6648_v15, 0.0 }
0x1cb2   : > { %v6651_v21 = vpack.c.bf16 %v6649_v17, %v6649_v17  ;;  %v16365_v17 = vld [vmem:[#allocation31 + $0x30] sm:$0xff]  }
0x1cb3   : > { %v6812_v49 = vpop.f32.mrb[112].mxu1 }
0x1cb4   : > { %v6656_v30 = vand.u32 %v6651_v21, %v19182_v52  ;;  %v16329_v52 = vld [vmem:[#allocation30 + $0x18] sm:$0xff]   ;;  %v14794_v50 = vpop.f32.mrb[113].mxu1  ;;  %v19261_v9 = vpack.c.bf16 %v6812_v49, %v6812_v49  ;;  %v16360_v49 = vld [vmem:[#allocation31 + $0x50] sm:$0xff]  }
0x1cb5   : > { %v6815_v25 = vpop.f32.mrb[114].mxu1  ;;  %v16362_v50 = vld [vmem:[#allocation31 + $0x58] sm:$0xff]  }
0x1cb6   : > { %14773 = vmatpush3.bf16.msra.mxu0 %v6656_v30  ;;  %v14795_v36 = vpop.f32.mrb[115].mxu1  ;;  %v6855_v39 = vshll.u32 %v19261_v9, 16  ;;  %v6853_v42 = vshrl.u32 %v19261_v9, 16  ;;  %v7054_v61 = vrot.slane %v19261_v9, 1  ;;  %v16366_v25 = vld [vmem:[#allocation31 + $0x68] sm:$0xff]  }
0x1cb7   : > { %14778 = vmatprep.subr.bf16.mxu0 %v17624_v1 }
0x1cb8   : > { %v6857_v45 = vrot.slane %v6855_v39, 1 }
0x1cb9   : > { %14775 = vmatmul.mubr.msk.bf16.vlgmr.msra.gmra.mrb[80].mxu0 %vm6086_vm9, %v6650_v31  ;;  %vm20026_vm9 = vmmov %vm20020_vm3 }
0x1cba   : > { %14779 = vmatpush3.bf16.msra.mxu0 %v16326_v32  ;;  %14786 = vmatprep.mubr.msk.bf16.mxu0 %vm17625_vm4, %v17624_v1  ;;  %v6858_v2 = vor.u32 %v6857_v45, %v6853_v42 }
0x1cbb   : > { %14780 = vmatprep.subr.bf16.mxu0 %v17624_v1 }
0x1cbc   : > { %14813 = vmatmul.mubr.bf16.vlgmr.msra.gmra.mrb[116].mxu1 %v6858_v2  ;;  %v16368_v2 = vld [vmem:[#allocation31 + $0x70] sm:$0xff]  }
0x1cbd   : > { %14837 = vmatpush3.bf16.msra.mxu1 %v16339_v4  ;;  %14852 = vmatprep.mubr.msk.bf16.mxu1 %vm17625_vm4, %v17624_v1  ;;  %v16369_v4 = vld [vmem:[#allocation31 + $0x78] sm:$0xff]  }
0x1cbe   : > { %14781 = vmatpush3.bf16.msra.mxu0 %v16327_v33  ;;  %14838 = vmatprep.subr.bf16.mxu1 %v17624_v1 }
0x1cbf   : > { %14782 = vmatprep.subr.bf16.mxu0 %v17624_v1 }
0x1cc1   : > { %14839 = vmatpush3.bf16.msra.mxu1 %v16341_v6 }
0x1cc2   : > { %14783 = vmatpush3.bf16.msra.mxu0 %v16328_v34  ;;  %14840 = vmatprep.subr.bf16.mxu1 %v17624_v1 }
0x1cc3   : > { %14784 = vmatprep.subr.bf16.mxu0 %v17624_v1 }
0x1cc5   : > { %14841 = vmatpush3.bf16.msra.mxu1 %v16343_v40 }
0x1cc6   : > { %14785 = vmatpush3.bf16.msra.mxu0 %v16329_v52  ;;  %14842 = vmatprep.subr.bf16.mxu1 %v17624_v1  ;;  %v16356_v52 = vld [vmem:[#allocation31 + $0x40] sm:$0xff]  }
0x1cc7   : > { %14816 = vmatprep.subr.bf16.mxu0 %v17624_v1 }
0x1cc9   : > { %14843 = vmatpush3.bf16.msra.mxu1 %v16345_v43 }
0x1cca   : > { %14844 = vmatprep.subr.bf16.mxu1 %v17624_v1 }
0x1ccd   : > { %14845 = vmatpush3.bf16.msra.mxu1 %v16347_v47 }
0x1cce   : > { %14846 = vmatprep.subr.bf16.mxu1 %v17624_v1 }
0x1cd1   : > { %14847 = vmatpush3.bf16.msra.mxu1 %v16349_v48 }
0x1cd2   : > { %14848 = vmatprep.subr.bf16.mxu1 %v17624_v1 }
0x1cd5   : > { %14849 = vmatpush3.bf16.msra.mxu1 %v16351_v19 }
0x1cd6   : > { %14850 = vmatprep.subr.bf16.mxu1 %v17624_v1 }
0x1cd9   : > { %14851 = vmatpush3.bf16.msra.mxu1 %v16353_v20 }
0x1cda   : > { %14882 = vmatprep.subr.bf16.mxu1 %v17624_v1 }
0x1cdc   : > { %14853 = vmatmul.mubr.bf16.vlgmr.msra.gmra.mrb[120].mxu1 %v7054_v61  ;;  %v16381_v61 = vld [vmem:[%s20004_s5 + $0x10] sm:$0xff]  }
0x1cdd   : > { %14898 = vmatprep.mubr.msk.bf16.mxu1 %vm17625_vm4, %v17624_v1  ;;  %14883 = vmatpush3.bf16.msra.mxu1 %v16354_v62  ;;  %v16383_v62 = vld [vmem:[%s20004_s5 + $0x18] sm:$0xff]  }
0x1cde   : > { %14884 = vmatprep.subr.bf16.mxu1 %v17624_v1 }
0x1ce1   : > { %14885 = vmatpush3.bf16.msra.mxu1 %v16355_v63  ;;  %v16385_v63 = vld [vmem:[%s20004_s5 + $0x20] sm:$0xff]  }
0x1ce2   : > { %14886 = vmatprep.subr.bf16.mxu1 %v17624_v1 }
0x1ce5   : > { %14887 = vmatpush3.bf16.msra.mxu1 %v16357_v0  ;;  %v16387_v0 = vld [vmem:[%s20004_s5 + $0x28] sm:$0xff]  }
0x1ce6   : > { %14888 = vmatprep.subr.bf16.mxu1 %v17624_v1 }
0x1ce9   : > { %14889 = vmatpush3.bf16.msra.mxu1 %v16359_v7  ;;  %v16389_v7 = vld [vmem:[%s20004_s5 + $0x30] sm:$0xff]  }
0x1cea   : > { %14890 = vmatprep.subr.bf16.mxu1 %v17624_v1 }
0x1ced   : > { %14891 = vmatpush3.bf16.msra.mxu1 %v16361_v8 }
0x1cee   : > { %14892 = vmatprep.subr.bf16.mxu1 %v17624_v1 }
0x1cf1   : > { %14893 = vmatpush3.bf16.msra.mxu1 %v16363_v11 }
0x1cf2   : > { %14894 = vmatprep.subr.bf16.mxu1 %v17624_v1 }
0x1cf5   : > { %14895 = vmatpush3.bf16.msra.mxu1 %v16365_v17 }
0x1cf6   : > { %14896 = vmatprep.subr.bf16.mxu1 %v17624_v1 }
0x1cf9   : > { %14897 = vmatpush3.bf16.msra.mxu1 %v16367_v46 }
0x1cfa   : > { %14922 = vmatprep.subr.bf16.mxu1 %v17624_v1 }
0x1d8c   : > { %v6692_v22 = vpop.f32.mrb[80].mxu0 }
0x1d8d   : > { %v6698_v28 = vpack.c.bf16 %v6692_v22, %v6692_v22  ;;  %v14776_v29 = vpop.f32.mrb[81].mxu0 }
0x1d8e   : > { %v6695_v44 = vpop.f32.mrb[82].mxu0  ;;  %v16371_v29 = vld [vmem:[#allocation31 + $0x88] sm:$0xff]  }
0x1d8f   : > { %v14777_v53 = vpop.f32.mrb[83].mxu0  ;;  %14787 = vmatmul.mubr.msk.bf16.vlgmr.msra.gmra.mrb[84].mxu0 %vm3091_vm8, %v6698_v28  ;;  %v6942_v10 = vpop.f32.mrb[116].mxu1  ;;  %v16372_v44 = vld [vmem:[#allocation31 + $0x90] sm:$0xff]  }
0x1d90   : > { %14817 = vmatpush3.bf16.msra.mxu0 %v16338_v23  ;;  %14832 = vmatprep.mubr.msk.bf16.mxu0 %vm17625_vm4, %v17624_v1  ;;  %v14814_v12 = vpop.f32.mrb[117].mxu1  ;;  %v16370_v23 = vld [vmem:[#allocation31 + $0x80] sm:$0xff]   ;;  %v16373_v53 = vld [vmem:[#allocation31 + $0x98] sm:$0xff]  }
0x1d91   : > { %14818 = vmatprep.subr.bf16.mxu0 %v17624_v1  ;;  %v6945_v15 = vpop.f32.mrb[118].mxu1 }
0x1d92   : > { %v14815_v16 = vpop.f32.mrb[119].mxu1 }
0x1d94   : > { %14819 = vmatpush3.bf16.msra.mxu0 %v16340_v54  ;;  %v16374_v54 = vld [vmem:[#allocation31 + $0xa0] sm:$0xff]  }
0x1d95   : > { %14820 = vmatprep.subr.bf16.mxu0 %v17624_v1 }
0x1d98   : > { %14821 = vmatpush3.bf16.msra.mxu0 %v16342_v55  ;;  %v16375_v55 = vld [vmem:[#allocation31 + $0xa8] sm:$0xff]  }
0x1d99   : > { %14822 = vmatprep.subr.bf16.mxu0 %v17624_v1 }
0x1d9c   : > { %14823 = vmatpush3.bf16.msra.mxu0 %v16344_v51  ;;  %v16376_v51 = vld [vmem:[#allocation31 + $0xb0] sm:$0xff]  }
0x1d9d   : > { %14824 = vmatprep.subr.bf16.mxu0 %v17624_v1 }
0x1da0   : > { %14825 = vmatpush3.bf16.msra.mxu0 %v16346_v56  ;;  %v16377_v56 = vld [vmem:[#allocation31 + $0xb8] sm:$0xff]  }
0x1da1   : > { %14826 = vmatprep.subr.bf16.mxu0 %v17624_v1 }
0x1da4   : > { %14827 = vmatpush3.bf16.msra.mxu0 %v16348_v57 }
0x1da5   : > { %14828 = vmatprep.subr.bf16.mxu0 %v17624_v1 }
0x1da8   : > { %14829 = vmatpush3.bf16.msra.mxu0 %v16350_v58  ;;  %v16378_v58 = vld [vmem:[%s20004_s5] sm:$0xff]  }
0x1da9   : > { %14830 = vmatprep.subr.bf16.mxu0 %v17624_v1 }
0x1dac   : > { %14831 = vmatpush3.bf16.msra.mxu0 %v16352_v59  ;;  %v16379_v59 = vld [vmem:[%s20004_s5 + $0x8] sm:$0xff]  }
0x1dad   : > { %14856 = vmatprep.subr.bf16.mxu0 %v17624_v1 }
0x1daf   : > { %14833 = vmatmul.mubr.bf16.vlgmr.msra.gmra.mrb[88].mxu0 %v19261_v9  ;;  %v7138_v26 = vpop.f32.mrb[120].mxu1 }
0x1db0   : > { %14858 = vmatprep.mubr.msk.bf16.mxu0 %vm17625_vm4, %v17624_v1  ;;  %v14854_v41 = vpop.f32.mrb[121].mxu1 }
0x1db1   : > { %v7141_v42 = vpop.f32.mrb[122].mxu1  ;;  %v16391_v41 = vld [vmem:[%s20004_s5 + $0x38] sm:$0xff]  }
0x1db2   : > { %v14855_v45 = vpop.f32.mrb[123].mxu1  ;;  %v16392_v42 = vld [vmem:[%s20004_s5 + $0x70] sm:$0xff]  }
0x1db3   : > { %v16393_v45 = vld [vmem:[%s20004_s5 + $0x78] sm:$0xff]  }
0x1e62   : > { %v6768_v21 = vpop.f32.mrb[84].mxu0 }
0x1e63   : > { %v7145_v30 = vpack.c.bf16 %v6768_v21, %v6768_v21  ;;  %v14788_v31 = vpop.f32.mrb[85].mxu0 }
0x1e64   : > { %v6771_v32 = vpop.f32.mrb[86].mxu0 }
0x1e65   : > { %v7147_v33 = vsel %vm5059_vm5, %v7145_v30, 0  ;;  %v14789_v34 = vpop.f32.mrb[87].mxu0 }
0x1e66   : > { %14857 = vmatpush3.bf16.msra.mxu0 %v7147_v33  ;;  %v12820_v34 = vld [vmem:[#allocation27] ss:$0 sm:$0xff] }
0x1e67   : > { %14862 = vmatprep.subr.bf16.mxu0 %v17624_v1 }
0x1e69   : > { %14859 = vmatmul.mubr.msk.bf16.vlgmr.msra.gmra.mrb[92].mxu0 %vm5056_vm6, %v18856_v35 }
0x1e6a   : > { %14863 = vmatpush3.bf16.msra.mxu0 %v16356_v52  ;;  %14878 = vmatprep.mubr.msk.bf16.mxu0 %vm17625_vm4, %v17624_v1 }
0x1e6b   : > { %14864 = vmatprep.subr.bf16.mxu0 %v17624_v1 }
0x1e6e   : > { %14865 = vmatpush3.bf16.msra.mxu0 %v16358_v3 }
0x1e6f   : > { %14866 = vmatprep.subr.bf16.mxu0 %v17624_v1 }
0x1e72   : > { %14867 = vmatpush3.bf16.msra.mxu0 %v16360_v49 }
0x1e73   : > { %14868 = vmatprep.subr.bf16.mxu0 %v17624_v1 }
0x1e76   : > { %14869 = vmatpush3.bf16.msra.mxu0 %v16362_v50 }
0x1e77   : > { %14870 = vmatprep.subr.bf16.mxu0 %v17624_v1 }
0x1e7a   : > { %14871 = vmatpush3.bf16.msra.mxu0 %v16364_v24 }
0x1e7b   : > { %14872 = vmatprep.subr.bf16.mxu0 %v17624_v1 }
0x1e7e   : > { %14873 = vmatpush3.bf16.msra.mxu0 %v16366_v25 }
0x1e7f   : > { %14874 = vmatprep.subr.bf16.mxu0 %v17624_v1 }
0x1e82   : > { %v7030_v36 = vpop.f32.mrb[88].mxu0  ;;  %14875 = vmatpush3.bf16.msra.mxu0 %v16368_v2 }
0x1e83   : > { %v7031_v37 = vadd.f32 %v7030_v36, %v6942_v10  ;;  %v14834_v38 = vpop.f32.mrb[89].mxu0  ;;  %14876 = vmatprep.subr.bf16.mxu0 %v17624_v1 }
0x1e84   : > { %v7033_v27 = vpop.f32.mrb[90].mxu0  ;;  %v16382_v38 = vld [vmem:[%s20004_s5 + $0x48] sm:$0xff]  }
0x1e85   : > { %v14835_v9 = vpop.f32.mrb[91].mxu0  ;;  %v19334_v39 = vadd.f32 %v7138_v26, %v7031_v37  ;;  %v16380_v37 = vld [vmem:[%s20004_s5 + $0x40] sm:$0xff]   ;;  %v16384_v27 = vld [vmem:[%s20004_s5 + $0x50] sm:$0xff]  }
0x1e86   : > { %14877 = vmatpush3.bf16.msra.mxu0 %v16369_v4  ;;  %v16386_v9 = vld [vmem:[%s20004_s5 + $0x58] sm:$0xff]   ;;  %v16388_v26 = vld [vmem:[%s20004_s5 + $0x60] sm:$0xff]  }
0x1e87   : > { %14902 = vmatprep.subr.bf16.mxu0 %v17624_v1 }
0x1f3c   : > { %v7183_v6 = vpop.f32.mrb[92].mxu0 }
0x1f3d   : > { %v7189_v40 = vpack.c.bf16 %v7183_v6, %v7183_v6  ;;  %v14860_v43 = vpop.f32.mrb[93].mxu0 }
0x1f3e   : > { %v7186_v47 = vpop.f32.mrb[94].mxu0 }
0x1f3f   : > { %v7226_v48 = vshll.u32 %v7189_v40, 16  ;;  %v14861_v19 = vpop.f32.mrb[95].mxu0  ;;  %14899 = vmatmul.mubr.bf16.vlgmr.msra.gmra.mrb[124].mxu1 %v7189_v40  ;;  %v7224_v20 = vshrl.u32 %v7189_v40, 16  ;;  %v7425_v57 = vrot.slane %v7189_v40, 1 }
0x1f40   : > { %14924 = vmatprep.mubr.msk.bf16.mxu1 %vm17625_vm4, %v17624_v1  ;;  %v16394_v19 = vld [vmem:[%s20004_s5 + $0x80] sm:$0xff]  }
0x1f41   : > { %v7228_v22 = vrot.slane %v7226_v48, 1 }
0x1f43   : > { %v7229_v28 = vor.u32 %v7228_v22, %v7224_v20  ;;  %v16395_v22 = vld [vmem:[%s20004_s5 + $0x88] sm:$0xff]  }
0x1f45   : > { %14879 = vmatmul.mubr.bf16.vlgmr.msra.gmra.mrb[96].mxu0 %v7229_v28  ;;  %v16397_v28 = vld [vmem:[%s20004_s5 + $0x98] sm:$0xff]  }
0x1f46   : > { %14903 = vmatpush3.bf16.msra.mxu0 %v16370_v23  ;;  %14918 = vmatprep.mubr.msk.bf16.mxu0 %vm17625_vm4, %v17624_v1  ;;  %v16396_v23 = vld [vmem:[%s20004_s5 + $0x90] sm:$0xff]  }
0x1f47   : > { %14904 = vmatprep.subr.bf16.mxu0 %v17624_v1 }
0x1f4a   : > { %14905 = vmatpush3.bf16.msra.mxu0 %v16371_v29  ;;  %v16398_v29 = vld [vmem:[%s20004_s5 + $0xa0] sm:$0xff]  }
0x1f4b   : > { %14906 = vmatprep.subr.bf16.mxu0 %v17624_v1 }
0x1f4e   : > { %14907 = vmatpush3.bf16.msra.mxu0 %v16372_v44  ;;  %v16399_v44 = vld [vmem:[%s20004_s5 + $0xa8] sm:$0xff]  }
0x1f4f   : > { %14908 = vmatprep.subr.bf16.mxu0 %v17624_v1 }
0x1f52   : > { %14909 = vmatpush3.bf16.msra.mxu0 %v16373_v53  ;;  %v16400_v53 = vld [vmem:[%s20004_s5 + $0xb0] sm:$0xff]  }
0x1f53   : > { %14910 = vmatprep.subr.bf16.mxu0 %v17624_v1 }
0x1f56   : > { %14911 = vmatpush3.bf16.msra.mxu0 %v16374_v54  ;;  %v16401_v54 = vld [vmem:[%s20004_s5 + $0xb8] sm:$0xff]  }
0x1f57   : > { %14912 = vmatprep.subr.bf16.mxu0 %v17624_v1 }
0x1f5a   : > { %14913 = vmatpush3.bf16.msra.mxu0 %v16375_v55 }
0x1f5b   : > { %14914 = vmatprep.subr.bf16.mxu0 %v17624_v1 }
0x1f5e   : > { %14915 = vmatpush3.bf16.msra.mxu0 %v16376_v51 }
0x1f5f   : > { %14916 = vmatprep.subr.bf16.mxu0 %v17624_v1 }
0x1f62   : > { %14917 = vmatpush3.bf16.msra.mxu0 %v16377_v56 }
0x1f63   : > { %14948 = vmatprep.subr.bf16.mxu0 %v17624_v1 }
0x1f65   : > { %14919 = vmatmul.mubr.bf16.vlgmr.msra.gmra.mrb[100].mxu0 %v7425_v57 }
0x1f66   : > { %14964 = vmatprep.mubr.msk.bf16.mxu0 %vm17625_vm4, %v17624_v1  ;;  %14949 = vmatpush3.bf16.msra.mxu0 %v16378_v58 }
0x1f67   : > { %14950 = vmatprep.subr.bf16.mxu0 %v17624_v1 }
0x1f6a   : > { %14951 = vmatpush3.bf16.msra.mxu0 %v16379_v59 }
0x1f6b   : > { %14952 = vmatprep.subr.bf16.mxu0 %v17624_v1 }
0x1f6e   : > { %14953 = vmatpush3.bf16.msra.mxu0 %v16381_v61 }
0x1f6f   : > { %14954 = vmatprep.subr.bf16.mxu0 %v17624_v1 }
0x1f72   : > { %14955 = vmatpush3.bf16.msra.mxu0 %v16383_v62 }
0x1f73   : > { %14956 = vmatprep.subr.bf16.mxu0 %v17624_v1 }
0x1f76   : > { %14957 = vmatpush3.bf16.msra.mxu0 %v16385_v63 }
0x1f77   : > { %14958 = vmatprep.subr.bf16.mxu0 %v17624_v1 }
0x1f7a   : > { %14959 = vmatpush3.bf16.msra.mxu0 %v16387_v0 }
0x1f7b   : > { %14960 = vmatprep.subr.bf16.mxu0 %v17624_v1 }
0x1f7e   : > { %14961 = vmatpush3.bf16.msra.mxu0 %v16389_v7 }
0x1f7f   : > { %14962 = vmatprep.subr.bf16.mxu0 %v17624_v1 }
0x1f82   : > { %14963 = vmatpush3.bf16.msra.mxu0 %v16391_v41  ;;  %v16409_v41 = vld [vmem:[%s20006_s2 + $0x10] sm:$0xff]  }
0x1f83   : > { %14988 = vmatprep.subr.bf16.mxu0 %v17624_v1 }
0x2012   : > { %v7401_v8 = vpop.f32.mrb[124].mxu1 }
0x2013   : > { %v14900_v10 = vpop.f32.mrb[125].mxu1 }
0x2014   : > { %v7404_v11 = vpop.f32.mrb[126].mxu1 }
0x2015   : > { %v14901_v12 = vpop.f32.mrb[127].mxu1 }
0x2018   : > { %v7313_v15 = vpop.f32.mrb[96].mxu0 }
0x2019   : > { %v7402_v16 = vadd.f32 %v7401_v8, %v7313_v15  ;;  %v14880_v17 = vpop.f32.mrb[97].mxu0  ;;  %v12878_v8 = vld [vmem:[#allocation28] ss:$0 sm:$0xff] }
0x201a   : > { %v7316_v21 = vpop.f32.mrb[98].mxu0 }
0x201b   : > { %v14881_v30 = vpop.f32.mrb[99].mxu0 }
0x2038   : > { %v7509_v31 = vpop.f32.mrb[100].mxu0 }
0x2039   : > { %v7515_v32 = vadd.f32 %v7509_v31, %v7402_v16  ;;  %v14920_v33 = vpop.f32.mrb[101].mxu0  ;;  %v7906_v31 = vld [vmem:[%s20005_s23] sm:$0x3]  ;;  %s20008_s23 = sld [smem:[#allocation103_spill]] }
0x203a   : > { %v7512_v52 = vpop.f32.mrb[102].mxu0  ;;  %v16403_v33 = vld [vmem:[#allocation37 + $0x8] sm:$0xff]  }
0x203b   : > { %v7516_v3 = vadd.f32 %v7515_v32, %v19334_v39  ;;  %v14921_v49 = vpop.f32.mrb[103].mxu0  ;;  %v16390_v39 = vld [vmem:[%s20004_s5 + $0x68] sm:$0xff]   ;;  %v16402_v32 = vld [vmem:[#allocation37] sm:$0xff]  }
0x203c   : > { %v16405_v52 = vld [vmem:[#allocation37 + $0x18] sm:$0xff]  }
0x203d   : > { %v7524_v50 = vadd.f32 %v12820_v34, %v7516_v3  ;;  %v16404_v34 = vld [vmem:[#allocation37 + $0x10] sm:$0xff]  }
0x203e   : > { %v16408_v3 = vld [vmem:[%s20006_s2 + $0x40] sm:$0xff]   ;;  %v16410_v49 = vld [vmem:[%s20006_s2 + $0x48] sm:$0xff]  }
0x203f   : > { %v7525_v24 = vmax.f32 %v7524_v50, 0.0  ;;  %v16412_v50 = vld [vmem:[%s20006_s2 + $0x50] sm:$0xff]  }
0x2041   : > { %v7526_v25 = vpack.c.bf16 %v7525_v24, %v7525_v24  ;;  %v16414_v24 = vld [vmem:[%s20006_s2 + $0x58] sm:$0xff]  }
0x2043   : > { %v7528_v36 = vsel %vm5059_vm5, %v7526_v25, 0  ;;  %v8030_v25 = vpack.c.bf16 %v18969_v60, %v18969_v60  ;;  %v16407_v60 = vld [vmem:[%s20006_s2 + $0x8] sm:$0xff]  }
0x2044   : > { %14923 = vmatpush3.bf16.msra.mxu1 %v7528_v36 }
0x2045   : > { %14928 = vmatprep.subr.bf16.mxu1 %v17624_v1 }
0x2047   : > { %14925 = vmatmul.mubr.msk.bf16.vlgmr.msra.gmra.mrb[128].mxu1 %vm5056_vm6, %v18856_v35 }
0x2048   : > { %14929 = vmatpush3.bf16.msra.mxu1 %v16380_v37  ;;  %14944 = vmatprep.mubr.msk.bf16.mxu1 %vm17625_vm4, %v17624_v1 }
0x2049   : > { %14930 = vmatprep.subr.bf16.mxu1 %v17624_v1 }
0x204c   : > { %14931 = vmatpush3.bf16.msra.mxu1 %v16382_v38 }
0x204d   : > { %14932 = vmatprep.subr.bf16.mxu1 %v17624_v1 }
0x2050   : > { %14933 = vmatpush3.bf16.msra.mxu1 %v16384_v27 }
0x2051   : > { %14934 = vmatprep.subr.bf16.mxu1 %v17624_v1 }
0x2054   : > { %14935 = vmatpush3.bf16.msra.mxu1 %v16386_v9 }
0x2055   : > { %14936 = vmatprep.subr.bf16.mxu1 %v17624_v1 }
0x2058   : > { %14937 = vmatpush3.bf16.msra.mxu1 %v16388_v26  ;;  %v8032_v26 = vsel %vm4029_vm0, %v8030_v25, 0  ;;  %v16445_v25 = vld [vmem:[#allocation39 + $0x78] sm:$0xff]  }
0x2059   : > { %14938 = vmatprep.subr.bf16.mxu1 %v17624_v1 }
0x205c   : > { %14939 = vmatpush3.bf16.msra.mxu1 %v16390_v39  ;;  %v16406_v39 = vld [vmem:[%s20006_s2] sm:$0xff]  }
0x205d   : > { %14940 = vmatprep.subr.bf16.mxu1 %v17624_v1 }
0x2060   : > { %14941 = vmatpush3.bf16.msra.mxu1 %v16392_v42  ;;  %v16411_v42 = vld [vmem:[%s20006_s2 + $0x18] sm:$0xff]  }
0x2061   : > { %14942 = vmatprep.subr.bf16.mxu1 %v17624_v1 }
0x2064   : > { %14943 = vmatpush3.bf16.msra.mxu1 %v16393_v45  ;;  %v16413_v45 = vld [vmem:[%s20006_s2 + $0x20] sm:$0xff]  }
0x2065   : > { %14968 = vmatprep.subr.bf16.mxu1 %v17624_v1 }
0x211a   : > { %v7564_v46 = vpop.f32.mrb[128].mxu1 }
0x211b   : > { %v7570_v2 = vpack.c.bf16 %v7564_v46, %v7564_v46  ;;  %v14926_v4 = vpop.f32.mrb[129].mxu1  ;;  %v16415_v46 = vld [vmem:[%s20006_s2 + $0x28] sm:$0xff]  }
0x211c   : > { %v7567_v6 = vpop.f32.mrb[130].mxu1  ;;  %v16417_v4 = vld [vmem:[%s20006_s2 + $0x30] sm:$0xff]  }
0x211d   : > { %v7607_v40 = vshll.u32 %v7570_v2, 16  ;;  %v14927_v43 = vpop.f32.mrb[131].mxu1  ;;  %14965 = vmatmul.mubr.bf16.vlgmr.msra.gmra.mrb[104].mxu0 %v7570_v2  ;;  %v7605_v47 = vshrl.u32 %v7570_v2, 16  ;;  %v7806_v55 = vrot.slane %v7570_v2, 1  ;;  %v16416_v2 = vld [vmem:[%s20006_s2 + $0x60] sm:$0xff]   ;;  %v16418_v6 = vld [vmem:[%s20006_s2 + $0x68] sm:$0xff]  }
0x211e   : > { %14990 = vmatprep.mubr.msk.bf16.mxu0 %vm17625_vm4, %v17624_v1  ;;  %v16420_v43 = vld [vmem:[%s20006_s2 + $0x70] sm:$0xff]  }
0x211f   : > { %v7609_v48 = vrot.slane %v7607_v40, 1  ;;  %v16419_v40 = vld [vmem:[%s20006_s2 + $0x38] sm:$0xff]  }
0x2121   : > { %v7610_v20 = vor.u32 %v7609_v48, %v7605_v47  ;;  %v16421_v47 = vld [vmem:[%s20006_s2 + $0x78] sm:$0xff]  }
0x2123   : > { %14945 = vmatmul.mubr.bf16.vlgmr.msra.gmra.mrb[132].mxu1 %v7610_v20 }
0x2124   : > { %14969 = vmatpush3.bf16.msra.mxu1 %v16394_v19  ;;  %14984 = vmatprep.mubr.msk.bf16.mxu1 %vm17625_vm4, %v17624_v1 }
0x2125   : > { %14970 = vmatprep.subr.bf16.mxu1 %v17624_v1 }
0x2128   : > { %14971 = vmatpush3.bf16.msra.mxu1 %v16395_v22 }
0x2129   : > { %14972 = vmatprep.subr.bf16.mxu1 %v17624_v1 }
0x212c   : > { %14973 = vmatpush3.bf16.msra.mxu1 %v16396_v23 }
0x212d   : > { %14974 = vmatprep.subr.bf16.mxu1 %v17624_v1 }
0x2130   : > { %14975 = vmatpush3.bf16.msra.mxu1 %v16397_v28 }
0x2131   : > { %14976 = vmatprep.subr.bf16.mxu1 %v17624_v1 }
0x2134   : > { %14977 = vmatpush3.bf16.msra.mxu1 %v16398_v29 }
0x2135   : > { %14978 = vmatprep.subr.bf16.mxu1 %v17624_v1 }
0x2138   : > { %14979 = vmatpush3.bf16.msra.mxu1 %v16399_v44 }
0x2139   : > { %14980 = vmatprep.subr.bf16.mxu1 %v17624_v1 }
0x213c   : > { %14981 = vmatpush3.bf16.msra.mxu1 %v16400_v53 }
0x213d   : > { %14982 = vmatprep.subr.bf16.mxu1 %v17624_v1 }
0x2140   : > { %14983 = vmatpush3.bf16.msra.mxu1 %v16401_v54 }
0x2141   : > { %15012 = vmatprep.subr.bf16.mxu1 %v17624_v1 }
0x2143   : > { %14985 = vmatmul.mubr.bf16.vlgmr.msra.gmra.mrb[136].mxu1 %v7806_v55 }
0x2144   : > { %15028 = vmatprep.mubr.msk.bf16.mxu1 %vm17625_vm4, %v17624_v1  ;;  %15013 = vmatpush3.bf16.msra.mxu1 %v16408_v3  ;;  %v16441_v3 = vld [vmem:[#allocation39 + $0x30] sm:$0xff]  }
0x2145   : > { %15014 = vmatprep.subr.bf16.mxu1 %v17624_v1 }
0x2148   : > { %15015 = vmatpush3.bf16.msra.mxu1 %v16410_v49  ;;  %v16442_v49 = vld [vmem:[#allocation39 + $0x68] sm:$0xff]  }
0x2149   : > { %15016 = vmatprep.subr.bf16.mxu1 %v17624_v1 }
0x214c   : > { %15017 = vmatpush3.bf16.msra.mxu1 %v16412_v50  ;;  %v16443_v50 = vld [vmem:[#allocation39 + $0x38] sm:$0xff]  }
0x214d   : > { %15018 = vmatprep.subr.bf16.mxu1 %v17624_v1 }
0x2150   : > { %15019 = vmatpush3.bf16.msra.mxu1 %v16414_v24  ;;  %v16444_v24 = vld [vmem:[#allocation39 + $0x70] sm:$0xff]  }
0x2151   : > { %15020 = vmatprep.subr.bf16.mxu1 %v17624_v1 }
0x2154   : > { %15021 = vmatpush3.bf16.msra.mxu1 %v16416_v2 }
0x2155   : > { %15022 = vmatprep.subr.bf16.mxu1 %v17624_v1 }
0x2158   : > { %15023 = vmatpush3.bf16.msra.mxu1 %v16418_v6 }
0x2159   : > { %15024 = vmatprep.subr.bf16.mxu1 %v17624_v1 }
0x215c   : > { %15025 = vmatpush3.bf16.msra.mxu1 %v16420_v43 }
0x215d   : > { %15026 = vmatprep.subr.bf16.mxu1 %v17624_v1 }
0x2160   : > { %15027 = vmatpush3.bf16.msra.mxu1 %v16421_v47  ;;  %v16446_v47 = vld [vmem:[#allocation39 + $0x80] sm:$0xff]  }
0x2161   : > { %15052 = vmatprep.subr.bf16.mxu1 %v17624_v1 }
0x21f0   : > { %v7782_v51 = vpop.f32.mrb[104].mxu0 }
0x21f1   : > { %v14966_v56 = vpop.f32.mrb[105].mxu0 }
0x21f2   : > { %v7785_v57 = vpop.f32.mrb[106].mxu0 }
0x21f3   : > { %v14967_v58 = vpop.f32.mrb[107].mxu0 }
0x21f4   : > { %v16422_v58 = vld [vmem:[%s20006_s2 + $0x80] sm:$0xff]  }
0x21f6   : > { %v7694_v59 = vpop.f32.mrb[132].mxu1 }
0x21f7   : > { %v7783_v61 = vadd.f32 %v7782_v51, %v7694_v59  ;;  %v14946_v62 = vpop.f32.mrb[133].mxu1 }
0x21f8   : > { %v7697_v63 = vpop.f32.mrb[134].mxu1  ;;  %v16423_v62 = vld [vmem:[%s20006_s2 + $0x88] sm:$0xff]  }
0x21f9   : > { %v14947_v0 = vpop.f32.mrb[135].mxu1  ;;  %v16434_v63 = vld [vmem:[#allocation39 + $0x48] sm:$0xff]  }
0x21fa   : > { %v16424_v0 = vld [vmem:[%s20006_s2 + $0x90] sm:$0xff]  }
0x2216   : > { %v7890_v7 = vpop.f32.mrb[136].mxu1 }
0x2217   : > { %v7896_v10 = vadd.f32 %v7890_v7, %v7783_v61  ;;  %v14986_v11 = vpop.f32.mrb[137].mxu1  ;;  %v16432_v61 = vld [vmem:[#allocation39 + $0x40] sm:$0xff]   ;;  %v16436_v7 = vld [vmem:[#allocation39 + $0x50] sm:$0xff]  }
0x2218   : > { %v7893_v12 = vpop.f32.mrb[138].mxu1  ;;  %v16426_v11 = vld [vmem:[%s20006_s2 + $0xa0] sm:$0xff]  }
0x2219   : > { %v7904_v15 = vadd.f32 %v12878_v8, %v7896_v10  ;;  %v14987_v16 = vpop.f32.mrb[139].mxu1  ;;  %v16425_v8 = vld [vmem:[%s20006_s2 + $0x98] sm:$0xff]   ;;  %v16438_v10 = vld [vmem:[#allocation39 + $0x58] sm:$0xff]  }
0x221a   : > { %v16427_v12 = vld [vmem:[%s20006_s2 + $0xa8] sm:$0xff]   ;;  %v16429_v16 = vld [vmem:[%s20006_s2 + $0xb8] sm:$0xff]  }
0x221b   : > { %v7905_v17 = vmax.f32 %v7904_v15, 0.0  ;;  %v16428_v15 = vld [vmem:[%s20006_s2 + $0xb0] sm:$0xff]   ;;  %s20035_s2 = sshll.u32 %s20037_s0, 4 }
0x221c   : > { %s1953_s3 = scalar_lea.vmem %s17894_s25, %s20035_s2 }
0x221d   : > { %v7907_v21 = vpack.c.bf16 %v7905_v17, %v7905_v17  ;;  %v16430_v17 = vld [vmem:[#allocation39] sm:$0xff]  }
0x221f   : > { %v7912_v30 = vsel %vm5059_vm5, %v7907_v21, 0 }
0x2220   : > { %14989 = vmatpush3.bf16.msra.mxu0 %v7912_v30  ;;  %v16431_v30 = vld [vmem:[#allocation39 + $0x8] sm:$0xff]  }
0x2221   : > { %14994 = vmatprep.subr.bf16.mxu0 %v17624_v1 }
0x2223   : > { %14991 = vmatmul.mubr.msk.bf16.vlgmr.msra.gmra.mrb[108].mxu0 %vm5056_vm6, %v7906_v31  ;;  %v16433_v31 = vld [vmem:[#allocation39 + $0x10] sm:$0xff]  }
0x2224   : > { %14995 = vmatpush3.bf16.msra.mxu0 %v16402_v32  ;;  %15002 = vmatprep.mubr.msk.bf16.mxu0 %vm17625_vm4, %v17624_v1  ;;  %v16435_v32 = vld [vmem:[#allocation39 + $0x18] sm:$0xff]  }
0x2225   : > { %14996 = vmatprep.subr.bf16.mxu0 %v17624_v1 }
0x2228   : > { %14997 = vmatpush3.bf16.msra.mxu0 %v16403_v33  ;;  %v16437_v33 = vld [vmem:[#allocation39 + $0x20] sm:$0xff]  }
0x2229   : > { %14998 = vmatprep.subr.bf16.mxu0 %v17624_v1 }
0x222c   : > { %14999 = vmatpush3.bf16.msra.mxu0 %v16404_v34  ;;  %v16439_v34 = vld [vmem:[#allocation39 + $0x28] sm:$0xff]  }
0x222d   : > { %15000 = vmatprep.subr.bf16.mxu0 %v17624_v1 }
0x2230   : > { %15001 = vmatpush3.bf16.msra.mxu0 %v16405_v52  ;;  %v16440_v52 = vld [vmem:[#allocation39 + $0x60] sm:$0xff]  }
0x2231   : > { %15006 = vmatprep.subr.bf16.mxu0 %v17624_v1 }
0x22f6   : > { %v7948_v36 = vpop.f32.mrb[108].mxu0 }
0x22f7   : > { %v7954_v37 = vpack.c.bf16 %v7948_v36, %v7948_v36  ;;  %v14992_v38 = vpop.f32.mrb[109].mxu0 }
0x22f8   : > { %v7951_v27 = vpop.f32.mrb[110].mxu0 }
0x22f9   : > { %v14993_v9 = vpop.f32.mrb[111].mxu0  ;;  %15003 = vmatmul.mubr.msk.bf16.vlgmr.msra.gmra.mrb[112].mxu0 %vm3091_vm8, %v7954_v37 }
0x22fa   : > { %15007 = vmatpush3.bf16.msra.mxu0 %v8032_v26  ;;  %15008 = vmatprep.mubr.msk.bf16.mxu0 %vm17625_vm4, %v17624_v1 }
0x22fb   : > { %15032 = vmatprep.subr.bf16.mxu0 %v17624_v1 }
0x2301   : > { %15009 = vmatmul.mubr.msk.bf16.vlgmr.msra.gmra.mrb[116].mxu0 %vm4025_vm1, %v18856_v35 }
0x2302   : > { %15033 = vmatpush3.bf16.msra.mxu0 %v16406_v39  ;;  %15048 = vmatprep.mubr.msk.bf16.mxu0 %vm17625_vm4, %v17624_v1 }
0x2303   : > { %15034 = vmatprep.subr.bf16.mxu0 %v17624_v1 }
0x2306   : > { %15035 = vmatpush3.bf16.msra.mxu0 %v16407_v60 }
0x2307   : > { %15036 = vmatprep.subr.bf16.mxu0 %v17624_v1 }
0x230a   : > { %15037 = vmatpush3.bf16.msra.mxu0 %v16409_v41 }
0x230b   : > { %15038 = vmatprep.subr.bf16.mxu0 %v17624_v1 }
0x230e   : > { %15039 = vmatpush3.bf16.msra.mxu0 %v16411_v42 }
0x230f   : > { %15040 = vmatprep.subr.bf16.mxu0 %v17624_v1 }
0x2312   : > { %15041 = vmatpush3.bf16.msra.mxu0 %v16413_v45 }
0x2313   : > { %15042 = vmatprep.subr.bf16.mxu0 %v17624_v1 }
0x2316   : > { %15043 = vmatpush3.bf16.msra.mxu0 %v16415_v46 }
0x2317   : > { %15044 = vmatprep.subr.bf16.mxu0 %v17624_v1 }
0x231a   : > { %15045 = vmatpush3.bf16.msra.mxu0 %v16417_v4 }
0x231b   : > { %15046 = vmatprep.subr.bf16.mxu0 %v17624_v1 }
0x231e   : > { %15047 = vmatpush3.bf16.msra.mxu0 %v16419_v40 }
0x231f   : > { %15072 = vmatprep.subr.bf16.mxu0 %v17624_v1 }
0x23cc   : > { %v8024_v48 = vpop.f32.mrb[112].mxu0 }
0x23cd   : > { %v15004_v19 = vpop.f32.mrb[113].mxu0  ;;  %v8401_v23 = vpack.c.bf16 %v8024_v48, %v8024_v48 }
0x23ce   : > { %v8027_v20 = vpop.f32.mrb[114].mxu0  ;;  %v16447_v19 = vld [vmem:[#allocation39 + $0x88] sm:$0xff]  }
0x23cf   : > { %v15005_v22 = vpop.f32.mrb[115].mxu0  ;;  %v8403_v54 = vsel %vm4029_vm0, %v8401_v23, 0  ;;  %v16448_v20 = vld [vmem:[#allocation39 + $0x90] sm:$0xff]   ;;  %v16450_v23 = vld [vmem:[#allocation39 + $0xa0] sm:$0xff]  }
0x23d0   : > { %v16449_v22 = vld [vmem:[#allocation39 + $0x98] sm:$0xff]  }
0x23d4   : > { %v8068_v28 = vpop.f32.mrb[116].mxu0 }
0x23d5   : > { %v8074_v29 = vpack.c.bf16 %v8068_v28, %v8068_v28  ;;  %v15010_v44 = vpop.f32.mrb[117].mxu0  ;;  %v16451_v28 = vld [vmem:[#allocation39 + $0xa8] sm:$0xff]  }
0x23d6   : > { %v8071_v53 = vpop.f32.mrb[118].mxu0  ;;  %v16452_v44 = vld [vmem:[#allocation39 + $0xb0] sm:$0xff]  }
0x23d7   : > { %v8111_v55 = vshll.u32 %v8074_v29, 16  ;;  %v15011_v51 = vpop.f32.mrb[119].mxu0  ;;  %15049 = vmatmul.mubr.bf16.vlgmr.msra.gmra.mrb[120].mxu0 %v8074_v29  ;;  %v8109_v56 = vshrl.u32 %v8074_v29, 16  ;;  %v8310_v21 = vrot.slane %v8074_v29, 1 }
0x23d8   : > { %15073 = vmatpush3.bf16.msra.mxu0 %v8403_v54  ;;  %15074 = vmatprep.mubr.msk.bf16.mxu0 %vm17625_vm4, %v17624_v1 }
0x23d9   : > { %v8113_v57 = vrot.slane %v8111_v55, 1  ;;  %15078 = vmatprep.subr.bf16.mxu0 %v17624_v1 }
0x23db   : > { %v8114_v59 = vor.u32 %v8113_v57, %v8109_v56  ;;  %v16453_v56 = vld [vmem:[#allocation39 + $0xb8] sm:$0xff]  }
0x23dd   : > { %15029 = vmatmul.mubr.bf16.vlgmr.msra.gmra.mrb[140].mxu1 %v8114_v59  ;;  %v16455_v59 = vld [vmem:[%s20007_s1 + $0x8] sm:$0xff]  }
0x23de   : > { %15053 = vmatpush3.bf16.msra.mxu1 %v16422_v58  ;;  %15068 = vmatprep.mubr.msk.bf16.mxu1 %vm17625_vm4, %v17624_v1  ;;  %v16454_v58 = vld [vmem:[%s20007_s1] sm:$0xff]  }
0x23df   : > { %15075 = vmatmul.mubr.msk.bf16.vlgmr.msra.gmra.mrb[124].mxu0 %vm4025_vm1, %v18856_v35  ;;  %15054 = vmatprep.subr.bf16.mxu1 %v17624_v1 }
0x23e0   : > { %15079 = vmatpush3.bf16.msra.mxu0 %v16432_v61  ;;  %15094 = vmatprep.mubr.msk.bf16.mxu0 %vm17625_vm4, %v17624_v1  ;;  %v16457_v61 = vld [vmem:[%s20007_s1 + $0x10] sm:$0xff]  }
0x23e1   : > { %15080 = vmatprep.subr.bf16.mxu0 %v17624_v1 }
0x23e2   : > { %15055 = vmatpush3.bf16.msra.mxu1 %v16423_v62  ;;  %v16459_v62 = vld [vmem:[%s20007_s1 + $0x18] sm:$0xff]  }
0x23e3   : > { %15056 = vmatprep.subr.bf16.mxu1 %v17624_v1 }
0x23e4   : > { %15081 = vmatpush3.bf16.msra.mxu0 %v16434_v63  ;;  %v16461_v63 = vld [vmem:[%s20007_s1 + $0x20] sm:$0xff]  }
0x23e5   : > { %15082 = vmatprep.subr.bf16.mxu0 %v17624_v1 }
0x23e6   : > { %15057 = vmatpush3.bf16.msra.mxu1 %v16424_v0  ;;  %v16463_v0 = vld [vmem:[%s20007_s1 + $0x28] sm:$0xff]  }
0x23e7   : > { %15058 = vmatprep.subr.bf16.mxu1 %v17624_v1 }
0x23e8   : > { %15083 = vmatpush3.bf16.msra.mxu0 %v16436_v7  ;;  %v16465_v7 = vld [vmem:[%s20007_s1 + $0x30] sm:$0xff]  }
0x23e9   : > { %15084 = vmatprep.subr.bf16.mxu0 %v17624_v1 }
0x23ea   : > { %15059 = vmatpush3.bf16.msra.mxu1 %v16425_v8 }
0x23eb   : > { %15060 = vmatprep.subr.bf16.mxu1 %v17624_v1 }
0x23ec   : > { %15085 = vmatpush3.bf16.msra.mxu0 %v16438_v10 }
0x23ed   : > { %15086 = vmatprep.subr.bf16.mxu0 %v17624_v1 }
0x23ee   : > { %15061 = vmatpush3.bf16.msra.mxu1 %v16426_v11 }
0x23ef   : > { %15062 = vmatprep.subr.bf16.mxu1 %v17624_v1 }
0x23f0   : > { %15087 = vmatpush3.bf16.msra.mxu0 %v16440_v52 }
0x23f1   : > { %15088 = vmatprep.subr.bf16.mxu0 %v17624_v1 }
0x23f2   : > { %15063 = vmatpush3.bf16.msra.mxu1 %v16427_v12 }
0x23f3   : > { %15064 = vmatprep.subr.bf16.mxu1 %v17624_v1 }
0x23f4   : > { %15089 = vmatpush3.bf16.msra.mxu0 %v16442_v49 }
0x23f5   : > { %15090 = vmatprep.subr.bf16.mxu0 %v17624_v1 }
0x23f6   : > { %15065 = vmatpush3.bf16.msra.mxu1 %v16428_v15 }
0x23f7   : > { %15066 = vmatprep.subr.bf16.mxu1 %v17624_v1 }
0x23f8   : > { %15091 = vmatpush3.bf16.msra.mxu0 %v16444_v24 }
0x23f9   : > { %15092 = vmatprep.subr.bf16.mxu0 %v17624_v1 }
0x23fa   : > { %15067 = vmatpush3.bf16.msra.mxu1 %v16429_v16 }
0x23fb   : > { %15098 = vmatprep.subr.bf16.mxu1 %v17624_v1 }
0x23fc   : > { %15093 = vmatpush3.bf16.msra.mxu0 %v16445_v25 }
0x23fd   : > { %15069 = vmatmul.mubr.bf16.vlgmr.msra.gmra.mrb[144].mxu1 %v8310_v21  ;;  %15118 = vmatprep.subr.bf16.mxu0 %v17624_v1 }
0x23fe   : > { %15099 = vmatpush3.bf16.msra.mxu1 %v16430_v17  ;;  %15114 = vmatprep.mubr.msk.bf16.mxu1 %vm17625_vm4, %v17624_v1 }
0x23ff   : > { %15100 = vmatprep.subr.bf16.mxu1 %v17624_v1 }
0x2402   : > { %15101 = vmatpush3.bf16.msra.mxu1 %v16431_v30 }
0x2403   : > { %15102 = vmatprep.subr.bf16.mxu1 %v17624_v1 }
0x2406   : > { %15103 = vmatpush3.bf16.msra.mxu1 %v16433_v31 }
0x2407   : > { %15104 = vmatprep.subr.bf16.mxu1 %v17624_v1 }
0x240a   : > { %15105 = vmatpush3.bf16.msra.mxu1 %v16435_v32 }
0x240b   : > { %15106 = vmatprep.subr.bf16.mxu1 %v17624_v1 }
0x240e   : > { %15107 = vmatpush3.bf16.msra.mxu1 %v16437_v33 }
0x240f   : > { %15108 = vmatprep.subr.bf16.mxu1 %v17624_v1 }
0x2412   : > { %15109 = vmatpush3.bf16.msra.mxu1 %v16439_v34  ;;  %v12967_v34 = vld [vmem:[#allocation34] ss:$0 sm:$0xff] }
0x2413   : > { %15110 = vmatprep.subr.bf16.mxu1 %v17624_v1 }
0x2416   : > { %15111 = vmatpush3.bf16.msra.mxu1 %v16441_v3 }
0x2417   : > { %15112 = vmatprep.subr.bf16.mxu1 %v17624_v1 }
0x241a   : > { %15113 = vmatpush3.bf16.msra.mxu1 %v16443_v50 }
0x241b   : > { %15138 = vmatprep.subr.bf16.mxu1 %v17624_v1 }
0x24aa   : > { %v8286_v36 = vpop.f32.mrb[120].mxu0 }
0x24ab   : > { %v15050_v37 = vpop.f32.mrb[121].mxu0 }
0x24ac   : > { %v8289_v38 = vpop.f32.mrb[122].mxu0  ;;  %v16456_v37 = vld [vmem:[%s20007_s1 + $0x40] sm:$0xff]  }
0x24ad   : > { %v15051_v27 = vpop.f32.mrb[123].mxu0  ;;  %v16458_v38 = vld [vmem:[%s20007_s1 + $0x48] sm:$0xff]  }
0x24ae   : > { %v16460_v27 = vld [vmem:[%s20007_s1 + $0x50] sm:$0xff]  }
0x24b0   : > { %v8198_v9 = vpop.f32.mrb[140].mxu1 }
0x24b1   : > { %v8287_v26 = vadd.f32 %v8286_v36, %v8198_v9  ;;  %v15030_v39 = vpop.f32.mrb[141].mxu1  ;;  %v16462_v9 = vld [vmem:[%s20007_s1 + $0x58] sm:$0xff]  }
0x24b2   : > { %v8201_v60 = vpop.f32.mrb[142].mxu1  ;;  %v8439_v41 = vpop.f32.mrb[124].mxu0  ;;  %v16467_v39 = vld [vmem:[%s20007_s1 + $0x38] sm:$0xff]  }
0x24b3   : > { %v8445_v42 = vpack.c.bf16 %v8439_v41, %v8439_v41  ;;  %v15031_v45 = vpop.f32.mrb[143].mxu1  ;;  %v15076_v46 = vpop.f32.mrb[125].mxu0  ;;  %v16468_v60 = vld [vmem:[%s20007_s1 + $0x70] sm:$0xff]   ;;  %v16469_v41 = vld [vmem:[%s20007_s1 + $0x78] sm:$0xff]  }
0x24b4   : > { %v8442_v2 = vpop.f32.mrb[126].mxu0 }
0x24b5   : > { %v8482_v4 = vshll.u32 %v8445_v42, 16  ;;  %v15077_v6 = vpop.f32.mrb[127].mxu0  ;;  %15115 = vmatmul.mubr.bf16.vlgmr.msra.gmra.mrb[148].mxu1 %v8445_v42  ;;  %v8480_v40 = vshrl.u32 %v8445_v42, 16  ;;  %v8681_v57 = vrot.slane %v8445_v42, 1 }
0x24b6   : > { %15140 = vmatprep.mubr.msk.bf16.mxu1 %vm17625_vm4, %v17624_v1 }
0x24b7   : > { %v8484_v43 = vrot.slane %v8482_v4, 1 }
0x24b9   : > { %v8485_v48 = vor.u32 %v8484_v43, %v8480_v40 }
0x24bb   : > { %15095 = vmatmul.mubr.bf16.vlgmr.msra.gmra.mrb[128].mxu0 %v8485_v48 }
0x24bc   : > { %15119 = vmatpush3.bf16.msra.mxu0 %v16446_v47  ;;  %15134 = vmatprep.mubr.msk.bf16.mxu0 %vm17625_vm4, %v17624_v1  ;;  %v16470_v47 = vld [vmem:[%s20007_s1 + $0x80] sm:$0xff]  }
0x24bd   : > { %15120 = vmatprep.subr.bf16.mxu0 %v17624_v1 }
0x24c0   : > { %15121 = vmatpush3.bf16.msra.mxu0 %v16447_v19  ;;  %v16471_v19 = vld [vmem:[%s20007_s1 + $0x88] sm:$0xff]  }
0x24c1   : > { %15122 = vmatprep.subr.bf16.mxu0 %v17624_v1 }
0x24c4   : > { %15123 = vmatpush3.bf16.msra.mxu0 %v16448_v20  ;;  %v16472_v20 = vld [vmem:[%s20007_s1 + $0x90] sm:$0xff]  }
0x24c5   : > { %15124 = vmatprep.subr.bf16.mxu0 %v17624_v1 }
0x24c8   : > { %15125 = vmatpush3.bf16.msra.mxu0 %v16449_v22  ;;  %v16473_v22 = vld [vmem:[%s20007_s1 + $0x98] sm:$0xff]  }
0x24c9   : > { %15126 = vmatprep.subr.bf16.mxu0 %v17624_v1 }
0x24cc   : > { %15127 = vmatpush3.bf16.msra.mxu0 %v16450_v23  ;;  %v16474_v23 = vld [vmem:[%s20007_s1 + $0xa0] sm:$0xff]  }
0x24cd   : > { %15128 = vmatprep.subr.bf16.mxu0 %v17624_v1 }
0x24d0   : > { %v8394_v29 = vpop.f32.mrb[144].mxu1  ;;  %15129 = vmatpush3.bf16.msra.mxu0 %v16451_v28  ;;  %v16475_v28 = vld [vmem:[%s20007_s1 + $0xa8] sm:$0xff]  }
0x24d1   : > { %v8400_v53 = vadd.f32 %v8394_v29, %v8287_v26  ;;  %v15070_v54 = vpop.f32.mrb[145].mxu1  ;;  %15130 = vmatprep.subr.bf16.mxu0 %v17624_v1  ;;  %v16466_v26 = vld [vmem:[%s20007_s1 + $0x68] sm:$0xff]   ;;  %v16476_v29 = vld [vmem:[%s20007_s1 + $0xb0] sm:$0xff]  }
0x24d2   : > { %v8397_v55 = vpop.f32.mrb[146].mxu1 }
0x24d3   : > { %v15071_v51 = vpop.f32.mrb[147].mxu1 }
0x24d4   : > { %15131 = vmatpush3.bf16.msra.mxu0 %v16452_v44  ;;  %v16477_v44 = vld [vmem:[%s20007_s1 + $0xb8] sm:$0xff]  }
0x24d5   : > { %15132 = vmatprep.subr.bf16.mxu0 %v17624_v1 }
0x24d8   : > { %15133 = vmatpush3.bf16.msra.mxu0 %v16453_v56 }
0x24d9   : > { %15164 = vmatprep.subr.bf16.mxu0 %v17624_v1 }
0x24db   : > { %15135 = vmatmul.mubr.bf16.vlgmr.msra.gmra.mrb[132].mxu0 %v8681_v57 }
0x24dc   : > { %15180 = vmatprep.mubr.msk.bf16.mxu0 %vm17625_vm4, %v17624_v1  ;;  %15165 = vmatpush3.bf16.msra.mxu0 %v16454_v58 }
0x24dd   : > { %15166 = vmatprep.subr.bf16.mxu0 %v17624_v1 }
0x24e0   : > { %15167 = vmatpush3.bf16.msra.mxu0 %v16455_v59 }
0x24e1   : > { %15168 = vmatprep.subr.bf16.mxu0 %v17624_v1 }
0x24e4   : > { %15169 = vmatpush3.bf16.msra.mxu0 %v16457_v61 }
0x24e5   : > { %15170 = vmatprep.subr.bf16.mxu0 %v17624_v1 }
0x24e8   : > { %15171 = vmatpush3.bf16.msra.mxu0 %v16459_v62 }
0x24e9   : > { %15172 = vmatprep.subr.bf16.mxu0 %v17624_v1 }
0x24ec   : > { %15173 = vmatpush3.bf16.msra.mxu0 %v16461_v63 }
0x24ed   : > { %15174 = vmatprep.subr.bf16.mxu0 %v17624_v1 }
0x24f0   : > { %15175 = vmatpush3.bf16.msra.mxu0 %v16463_v0  ;;  %v13025_v0 = vld [vmem:[#allocation36] ss:$0 sm:$0xff] }
0x24f1   : > { %15176 = vmatprep.subr.bf16.mxu0 %v17624_v1 }
0x24f4   : > { %15177 = vmatpush3.bf16.msra.mxu0 %v16465_v7 }
0x24f5   : > { %15178 = vmatprep.subr.bf16.mxu0 %v17624_v1 }
0x24f8   : > { %15179 = vmatpush3.bf16.msra.mxu0 %v16467_v39  ;;  %v16489_v39 = vld [vmem:[#allocation42 + $0x20] sm:$0xff]  }
0x24f9   : > { %15204 = vmatprep.subr.bf16.mxu0 %v17624_v1 }
0x2588   : > { %v8657_v8 = vpop.f32.mrb[148].mxu1 }
0x2589   : > { %v15116_v10 = vpop.f32.mrb[149].mxu1 }
0x258a   : > { %v8660_v11 = vpop.f32.mrb[150].mxu1 }
0x258b   : > { %v15117_v12 = vpop.f32.mrb[151].mxu1 }
0x258e   : > { %v8569_v15 = vpop.f32.mrb[128].mxu0 }
0x258f   : > { %v8658_v16 = vadd.f32 %v8657_v8, %v8569_v15  ;;  %v15096_v17 = vpop.f32.mrb[129].mxu0 }
0x2590   : > { %v8572_v21 = vpop.f32.mrb[130].mxu0 }
0x2591   : > { %v15097_v30 = vpop.f32.mrb[131].mxu0  ;;  %v9162_v21 = vld [vmem:[%s20008_s23] sm:$0xf]  ;;  %s20013_s23 = sld [smem:[#allocation101_spill]] }
0x2592   : > { %v16478_v30 = vld [vmem:[#allocation40] sm:$0xff]  }
0x25ae   : > { %v8765_v31 = vpop.f32.mrb[132].mxu0 }
0x25af   : > { %v8771_v32 = vadd.f32 %v8765_v31, %v8658_v16  ;;  %v15136_v33 = vpop.f32.mrb[133].mxu0  ;;  %v16479_v31 = vld [vmem:[#allocation40 + $0x8] sm:$0xff]  }
0x25b0   : > { %v8768_v52 = vpop.f32.mrb[134].mxu0  ;;  %v16481_v33 = vld [vmem:[#allocation40 + $0x18] sm:$0xff]  }
0x25b1   : > { %v8772_v3 = vadd.f32 %v8771_v32, %v8400_v53  ;;  %v15137_v49 = vpop.f32.mrb[135].mxu0  ;;  %v16480_v32 = vld [vmem:[#allocation40 + $0x10] sm:$0xff]   ;;  %v16486_v52 = vld [vmem:[#allocation42 + $0x48] sm:$0xff]  }
0x25b2   : > { %v16490_v49 = vld [vmem:[#allocation42 + $0x58] sm:$0xff]  }
0x25b3   : > { %v8780_v50 = vadd.f32 %v12967_v34, %v8772_v3  ;;  %v16484_v34 = vld [vmem:[#allocation42 + $0x40] sm:$0xff]   ;;  %v16488_v3 = vld [vmem:[#allocation42 + $0x50] sm:$0xff]  }
0x25b5   : > { %v8781_v24 = vmax.f32 %v8780_v50, 0.0  ;;  %v9286_v50 = vpack.c.bf16 %v18797_v5, %v18797_v5  ;;  %v16483_v5 = vld [vmem:[#allocation42 + $0x8] sm:$0xff]  }
0x25b7   : > { %v8782_v25 = vpack.c.bf16 %v8781_v24, %v8781_v24 }
0x25b9   : > { %v8784_v36 = vsel %vm4029_vm0, %v8782_v25, 0 }
0x25ba   : > { %15139 = vmatpush3.bf16.msra.mxu1 %v8784_v36 }
0x25bb   : > { %15144 = vmatprep.subr.bf16.mxu1 %v17624_v1 }
0x25bd   : > { %15141 = vmatmul.mubr.msk.bf16.vlgmr.msra.gmra.mrb[152].mxu1 %vm4025_vm1, %v18856_v35  ;;  %v16464_v35 = vld [vmem:[%s20007_s1 + $0x60] sm:$0xff]   ;;  %s20034_s1 = sld [smem:[#allocation105_spill]] }
0x25be   : > { %15145 = vmatpush3.bf16.msra.mxu1 %v16456_v37  ;;  %15160 = vmatprep.mubr.msk.bf16.mxu1 %vm17625_vm4, %v17624_v1 }
0x25bf   : > { %15146 = vmatprep.subr.bf16.mxu1 %v17624_v1 }
0x25c2   : > { %15147 = vmatpush3.bf16.msra.mxu1 %v16458_v38 }
0x25c3   : > { %15148 = vmatprep.subr.bf16.mxu1 %v17624_v1 }
0x25c6   : > { %15149 = vmatpush3.bf16.msra.mxu1 %v16460_v27 }
0x25c7   : > { %15150 = vmatprep.subr.bf16.mxu1 %v17624_v1 }
0x25ca   : > { %15151 = vmatpush3.bf16.msra.mxu1 %v16462_v9  ;;  %v16482_v9 = vld [vmem:[#allocation42] sm:$0xff]  }
0x25cb   : > { %15152 = vmatprep.subr.bf16.mxu1 %v17624_v1 }
0x25ce   : > { %15153 = vmatpush3.bf16.msra.mxu1 %v16464_v35  ;;  %v16485_v35 = vld [vmem:[#allocation42 + $0x10] sm:$0xff]  }
0x25cf   : > { %15154 = vmatprep.subr.bf16.mxu1 %v17624_v1 }
0x25d2   : > { %15155 = vmatpush3.bf16.msra.mxu1 %v16466_v26  ;;  %v16487_v26 = vld [vmem:[#allocation42 + $0x18] sm:$0xff]  }
0x25d3   : > { %15156 = vmatprep.subr.bf16.mxu1 %v17624_v1 }
0x25d6   : > { %15157 = vmatpush3.bf16.msra.mxu1 %v16468_v60  ;;  %v16491_v60 = vld [vmem:[#allocation42 + $0x28] sm:$0xff]  }
0x25d7   : > { %15158 = vmatprep.subr.bf16.mxu1 %v17624_v1 }
0x25da   : > { %15159 = vmatpush3.bf16.msra.mxu1 %v16469_v41  ;;  %v16492_v41 = vld [vmem:[#allocation42 + $0x60] sm:$0xff]  }
0x25db   : > { %15184 = vmatprep.subr.bf16.mxu1 %v17624_v1 }
0x2690   : > { %v8820_v42 = vpop.f32.mrb[152].mxu1 }
0x2691   : > { %v8826_v45 = vpack.c.bf16 %v8820_v42, %v8820_v42  ;;  %v15142_v46 = vpop.f32.mrb[153].mxu1  ;;  %v16493_v42 = vld [vmem:[#allocation42 + $0x30] sm:$0xff]  }
0x2692   : > { %v8823_v2 = vpop.f32.mrb[154].mxu1  ;;  %v16495_v46 = vld [vmem:[#allocation42 + $0x38] sm:$0xff]  }
0x2693   : > { %v8863_v4 = vshll.u32 %v8826_v45, 16  ;;  %v15143_v6 = vpop.f32.mrb[155].mxu1  ;;  %15181 = vmatmul.mubr.bf16.vlgmr.msra.gmra.mrb[136].mxu0 %v8826_v45  ;;  %v8861_v40 = vshrl.u32 %v8826_v45, 16  ;;  %v9062_v53 = vrot.slane %v8826_v45, 1  ;;  %v16494_v45 = vld [vmem:[#allocation42 + $0x68] sm:$0xff]   ;;  %v16496_v2 = vld [vmem:[#allocation42 + $0x70] sm:$0xff]  }
0x2694   : > { %15206 = vmatprep.mubr.msk.bf16.mxu0 %vm17625_vm4, %v17624_v1 }
0x2695   : > { %v8865_v43 = vrot.slane %v8863_v4, 1  ;;  %v16497_v4 = vld [vmem:[#allocation42 + $0x78] sm:$0xff]  }
0x2697   : > { %v8866_v48 = vor.u32 %v8865_v43, %v8861_v40 }
0x2699   : > { %15161 = vmatmul.mubr.bf16.vlgmr.msra.gmra.mrb[156].mxu1 %v8866_v48 }
0x269a   : > { %15185 = vmatpush3.bf16.msra.mxu1 %v16470_v47  ;;  %15200 = vmatprep.mubr.msk.bf16.mxu1 %vm17625_vm4, %v17624_v1 }
0x269b   : > { %15186 = vmatprep.subr.bf16.mxu1 %v17624_v1 }
0x269e   : > { %15187 = vmatpush3.bf16.msra.mxu1 %v16471_v19 }
0x269f   : > { %15188 = vmatprep.subr.bf16.mxu1 %v17624_v1 }
0x26a2   : > { %15189 = vmatpush3.bf16.msra.mxu1 %v16472_v20 }
0x26a3   : > { %15190 = vmatprep.subr.bf16.mxu1 %v17624_v1 }
0x26a6   : > { %15191 = vmatpush3.bf16.msra.mxu1 %v16473_v22 }
0x26a7   : > { %15192 = vmatprep.subr.bf16.mxu1 %v17624_v1 }
0x26aa   : > { %15193 = vmatpush3.bf16.msra.mxu1 %v16474_v23 }
0x26ab   : > { %15194 = vmatprep.subr.bf16.mxu1 %v17624_v1 }
0x26ae   : > { %15195 = vmatpush3.bf16.msra.mxu1 %v16475_v28 }
0x26af   : > { %15196 = vmatprep.subr.bf16.mxu1 %v17624_v1 }
0x26b2   : > { %15197 = vmatpush3.bf16.msra.mxu1 %v16476_v29 }
0x26b3   : > { %15198 = vmatprep.subr.bf16.mxu1 %v17624_v1 }
0x26b6   : > { %15199 = vmatpush3.bf16.msra.mxu1 %v16477_v44 }
0x26b7   : > { %15228 = vmatprep.subr.bf16.mxu1 %v17624_v1 }
0x26b9   : > { %15201 = vmatmul.mubr.bf16.vlgmr.msra.gmra.mrb[160].mxu1 %v9062_v53 }
0x26ba   : > { %15244 = vmatprep.mubr.msk.bf16.mxu1 %vm17625_vm4, %v17624_v1  ;;  %15229 = vmatpush3.bf16.msra.mxu1 %v16484_v34  ;;  %v16519_v34 = vld [vmem:[#allocation43 + $0x38] sm:$0xff]  }
0x26bb   : > { %15230 = vmatprep.subr.bf16.mxu1 %v17624_v1 }
0x26be   : > { %15231 = vmatpush3.bf16.msra.mxu1 %v16486_v52  ;;  %v16520_v52 = vld [vmem:[#allocation43 + $0x70] sm:$0xff]  }
0x26bf   : > { %15232 = vmatprep.subr.bf16.mxu1 %v17624_v1 }
0x26c2   : > { %15233 = vmatpush3.bf16.msra.mxu1 %v16488_v3  ;;  %v16521_v3 = vld [vmem:[#allocation43 + $0x78] sm:$0xff]  }
0x26c3   : > { %15234 = vmatprep.subr.bf16.mxu1 %v17624_v1 }
0x26c6   : > { %15235 = vmatpush3.bf16.msra.mxu1 %v16490_v49 }
0x26c7   : > { %15236 = vmatprep.subr.bf16.mxu1 %v17624_v1 }
0x26ca   : > { %15237 = vmatpush3.bf16.msra.mxu1 %v16492_v41 }
0x26cb   : > { %15238 = vmatprep.subr.bf16.mxu1 %v17624_v1 }
0x26ce   : > { %15239 = vmatpush3.bf16.msra.mxu1 %v16494_v45 }
0x26cf   : > { %15240 = vmatprep.subr.bf16.mxu1 %v17624_v1 }
0x26d2   : > { %15241 = vmatpush3.bf16.msra.mxu1 %v16496_v2 }
0x26d3   : > { %15242 = vmatprep.subr.bf16.mxu1 %v17624_v1 }
0x26d6   : > { %15243 = vmatpush3.bf16.msra.mxu1 %v16497_v4  ;;  %v16523_v4 = vld [vmem:[#allocation43 + $0x88] sm:$0xff]  }
0x26d7   : > { %15268 = vmatprep.subr.bf16.mxu1 %v17624_v1 }
0x2766   : > { %v9038_v54 = vpop.f32.mrb[136].mxu0 }
0x2767   : > { %v15182_v55 = vpop.f32.mrb[137].mxu0 }
0x2768   : > { %v9041_v51 = vpop.f32.mrb[138].mxu0  ;;  %v16498_v55 = vld [vmem:[#allocation42 + $0x80] sm:$0xff]  }
0x2769   : > { %v15183_v56 = vpop.f32.mrb[139].mxu0 }
0x276a   : > { %v16508_v56 = vld [vmem:[#allocation43 + $0x40] sm:$0xff]  }
0x276c   : > { %v8950_v57 = vpop.f32.mrb[156].mxu1 }
0x276d   : > { %v9039_v58 = vadd.f32 %v9038_v54, %v8950_v57  ;;  %v15162_v59 = vpop.f32.mrb[157].mxu1  ;;  %v16499_v57 = vld [vmem:[#allocation42 + $0x88] sm:$0xff]  }
0x276e   : > { %v8953_v61 = vpop.f32.mrb[158].mxu1  ;;  %v16500_v59 = vld [vmem:[#allocation42 + $0x90] sm:$0xff]  }
0x276f   : > { %v15163_v62 = vpop.f32.mrb[159].mxu1  ;;  %v16512_v61 = vld [vmem:[#allocation43 + $0x50] sm:$0xff]  }
0x2770   : > { %v16501_v62 = vld [vmem:[#allocation42 + $0x98] sm:$0xff]  }
0x278c   : > { %v9146_v63 = vpop.f32.mrb[160].mxu1 }
0x278d   : > { %v9152_v7 = vadd.f32 %v9146_v63, %v9039_v58  ;;  %v15202_v8 = vpop.f32.mrb[161].mxu1  ;;  %v16510_v58 = vld [vmem:[#allocation43 + $0x48] sm:$0xff]   ;;  %v16514_v63 = vld [vmem:[#allocation43 + $0x58] sm:$0xff]  }
0x278e   : > { %v9149_v10 = vpop.f32.mrb[162].mxu1  ;;  %v16504_v8 = vld [vmem:[#allocation42 + $0xb0] sm:$0xff]  }
0x278f   : > { %v9160_v11 = vadd.f32 %v13025_v0, %v9152_v7  ;;  %v15203_v12 = vpop.f32.mrb[163].mxu1  ;;  %v16502_v0 = vld [vmem:[#allocation42 + $0xa0] sm:$0xff]   ;;  %v16503_v7 = vld [vmem:[#allocation42 + $0xa8] sm:$0xff]   ;;  %v16505_v10 = vld [vmem:[#allocation42 + $0xb8] sm:$0xff]  }
0x2791   : > { %v9161_v15 = vmax.f32 %v9160_v11, 0.0  ;;  %v16506_v11 = vld [vmem:[#allocation43] sm:$0xff]  }
0x2793   : > { %v9163_v16 = vpack.c.bf16 %v9161_v15, %v9161_v15  ;;  %v16507_v15 = vld [vmem:[#allocation43 + $0x8] sm:$0xff]  }
0x2795   : > { %v9168_v17 = vsel %vm4029_vm0, %v9163_v16, 0  ;;  %vm20009_vm0 = vcmask 1043456   ;;  %v16509_v16 = vld [vmem:[#allocation43 + $0x10] sm:$0xff]  }
0x2796   : > { %15205 = vmatpush3.bf16.msra.mxu0 %v9168_v17  ;;  %v9288_v27 = vsel %vm20009_vm0, %v9286_v50, 0  ;;  %vm20011_vm5 = vmmov %vm20009_vm0  ;;  %v16511_v17 = vld [vmem:[#allocation43 + $0x18] sm:$0xff]  }
0x2797   : > { %15210 = vmatprep.subr.bf16.mxu0 %v17624_v1  ;;  %vm20015_vm13 = vmmov %vm20009_vm0 }
0x2798   : > { %vm20018_vm15 = vmmov %vm20009_vm0 }
0x2799   : > { %15207 = vmatmul.mubr.msk.bf16.vlgmr.msra.gmra.mrb[140].mxu0 %vm4025_vm1, %v9162_v21  ;;  %vm20010_vm1 = vcmask 64512   ;;  %v16513_v21 = vld [vmem:[#allocation43 + $0x20] sm:$0xff]   ;;  %vm20027_vm0 = vmmov %vm20023_vm10 }
0x279a   : > { %15211 = vmatpush3.bf16.msra.mxu0 %v16478_v30  ;;  %15218 = vmatprep.mubr.msk.bf16.mxu0 %vm17625_vm4, %v17624_v1  ;;  %vm20012_vm6 = vmmov %vm20010_vm1  ;;  %v16515_v30 = vld [vmem:[#allocation43 + $0x28] sm:$0xff]  }
0x279b   : > { %15212 = vmatprep.subr.bf16.mxu0 %v17624_v1  ;;  %vm20016_vm14 = vmmov %vm20010_vm1 }
0x279c   : > { %vm20019_vm2 = vmmov %vm20010_vm1 }
0x279e   : > { %15213 = vmatpush3.bf16.msra.mxu0 %v16479_v31  ;;  %v16516_v31 = vld [vmem:[#allocation43 + $0x60] sm:$0xff]  }
0x279f   : > { %15214 = vmatprep.subr.bf16.mxu0 %v17624_v1 }
0x27a2   : > { %15215 = vmatpush3.bf16.msra.mxu0 %v16480_v32  ;;  %v16517_v32 = vld [vmem:[#allocation43 + $0x30] sm:$0xff]  }
0x27a3   : > { %15216 = vmatprep.subr.bf16.mxu0 %v17624_v1 }
0x27a6   : > { %15217 = vmatpush3.bf16.msra.mxu0 %v16481_v33  ;;  %v16518_v33 = vld [vmem:[#allocation43 + $0x68] sm:$0xff]  }
0x27a7   : > { %15222 = vmatprep.subr.bf16.mxu0 %v17624_v1 }
0x286c   : > { %v9204_v24 = vpop.f32.mrb[140].mxu0 }
0x286d   : > { %v9210_v25 = vpack.c.bf16 %v9204_v24, %v9204_v24  ;;  %v15208_v36 = vpop.f32.mrb[141].mxu0 }
0x286e   : > { %v9207_v37 = vpop.f32.mrb[142].mxu0 }
0x286f   : > { %v15209_v38 = vpop.f32.mrb[143].mxu0  ;;  %15219 = vmatmul.mubr.msk.bf16.vlgmr.msra.gmra.mrb[144].mxu0 %vm3091_vm8, %v9210_v25 }
0x2870   : > { %15223 = vmatpush3.bf16.msra.mxu0 %v9288_v27  ;;  %15224 = vmatprep.mubr.msk.bf16.mxu0 %vm17625_vm4, %v17624_v1 }
0x2871   : > { %15248 = vmatprep.subr.bf16.mxu0 %v17624_v1 }
0x2877   : > { %15225 = vmatmul.mubr.msk.bf16.vlgmr.msra.gmra.mrb[148].mxu0 %vm20010_vm1, %v18438_v13  ;;  %vm20028_vm1 = vmmov %vm20024_vm11 }
0x2878   : > { %15249 = vmatpush3.bf16.msra.mxu0 %v16482_v9  ;;  %15264 = vmatprep.mubr.msk.bf16.mxu0 %vm17625_vm4, %v17624_v1 }
0x2879   : > { %15250 = vmatprep.subr.bf16.mxu0 %v17624_v1 }
0x287c   : > { %15251 = vmatpush3.bf16.msra.mxu0 %v16483_v5 }
0x287d   : > { %15252 = vmatprep.subr.bf16.mxu0 %v17624_v1 }
0x2880   : > { %15253 = vmatpush3.bf16.msra.mxu0 %v16485_v35 }
0x2881   : > { %15254 = vmatprep.subr.bf16.mxu0 %v17624_v1 }
0x2884   : > { %15255 = vmatpush3.bf16.msra.mxu0 %v16487_v26 }
0x2885   : > { %15256 = vmatprep.subr.bf16.mxu0 %v17624_v1 }
0x2888   : > { %15257 = vmatpush3.bf16.msra.mxu0 %v16489_v39 }
0x2889   : > { %15258 = vmatprep.subr.bf16.mxu0 %v17624_v1 }
0x288c   : > { %15259 = vmatpush3.bf16.msra.mxu0 %v16491_v60 }
0x288d   : > { %15260 = vmatprep.subr.bf16.mxu0 %v17624_v1 }
0x2890   : > { %15261 = vmatpush3.bf16.msra.mxu0 %v16493_v42 }
0x2891   : > { %15262 = vmatprep.subr.bf16.mxu0 %v17624_v1 }
0x2894   : > { %15263 = vmatpush3.bf16.msra.mxu0 %v16495_v46  ;;  %v16522_v46 = vld [vmem:[#allocation43 + $0x80] sm:$0xff]  }
0x2895   : > { %15288 = vmatprep.subr.bf16.mxu0 %v17624_v1 }
0x2942   : > { %v9280_v6 = vpop.f32.mrb[144].mxu0 }
0x2943   : > { %v15220_v40 = vpop.f32.mrb[145].mxu0  ;;  %v9658_v19 = vpack.c.bf16 %v9280_v6, %v9280_v6  ;;  %v16524_v6 = vld [vmem:[#allocation43 + $0x90] sm:$0xff]  }
0x2944   : > { %v9283_v43 = vpop.f32.mrb[146].mxu0  ;;  %v16525_v40 = vld [vmem:[#allocation43 + $0x98] sm:$0xff]  }
0x2945   : > { %v15221_v47 = vpop.f32.mrb[147].mxu0  ;;  %v9660_v29 = vsel %vm20011_vm5, %v9658_v19, 0  ;;  %v16526_v43 = vld [vmem:[#allocation43 + $0xa0] sm:$0xff]   ;;  %vm20030_vm5 = vmmov %vm20020_vm3 }
0x2946   : > { %v16527_v47 = vld [vmem:[#allocation43 + $0xa8] sm:$0xff]  }
0x294a   : > { %v9324_v48 = vpop.f32.mrb[148].mxu0 }
0x294b   : > { %v15226_v20 = vpop.f32.mrb[149].mxu0 }
0x294c   : > { %v9327_v22 = vpop.f32.mrb[150].mxu0 }
0x294d   : > { %v9331_v23 = vpack.c.bf16 %v9327_v22, %v9324_v48  ;;  %v15227_v28 = vpop.f32.mrb[151].mxu0 }
0x294f   : > { %v9368_v44 = vshll.u32 %v9331_v23, 16  ;;  %15265 = vmatmul.mubr.bf16.vlgmr.msra.gmra.mrb[152].mxu0 %v9331_v23  ;;  %v9366_v53 = vshrl.u32 %v9331_v23, 16  ;;  %v9567_v12 = vrot.slane %v9331_v23, 1  ;;  %v16528_v23 = vld [vmem:[#allocation43 + $0xb0] sm:$0xff]  }
0x2950   : > { %15289 = vmatpush3.bf16.msra.mxu0 %v9660_v29  ;;  %15290 = vmatprep.mubr.msk.bf16.mxu0 %vm17625_vm4, %v17624_v1  ;;  %v16529_v29 = vld [vmem:[#allocation43 + $0xb8] sm:$0xff]  }
0x2951   : > { %v9370_v54 = vrot.slane %v9368_v44, 1  ;;  %15294 = vmatprep.subr.bf16.mxu0 %v17624_v1 }
0x2953   : > { %v9371_v51 = vor.u32 %v9370_v54, %v9366_v53  ;;  %v16530_v53 = vld [vmem:[%s20013_s23] sm:$0xff]   ;;  %v16531_v54 = vld [vmem:[%s20013_s23 + $0x8] sm:$0xff]  }
0x2955   : > { %15245 = vmatmul.mubr.bf16.vlgmr.msra.gmra.mrb[164].mxu1 %v9371_v51  ;;  %v16535_v51 = vld [vmem:[%s20013_s23 + $0x18] sm:$0xff]  }
0x2956   : > { %15269 = vmatpush3.bf16.msra.mxu1 %v16498_v55  ;;  %15284 = vmatprep.mubr.msk.bf16.mxu1 %vm17625_vm4, %v17624_v1  ;;  %v16533_v55 = vld [vmem:[%s20013_s23 + $0x10] sm:$0xff]  }
0x2957   : > { %15291 = vmatmul.mubr.msk.bf16.vlgmr.msra.gmra.mrb[156].mxu0 %vm20012_vm6, %v18438_v13  ;;  %15270 = vmatprep.subr.bf16.mxu1 %v17624_v1  ;;  %vm20031_vm6 = vmmov %vm20027_vm0 }
0x2958   : > { %15295 = vmatpush3.bf16.msra.mxu0 %v16508_v56  ;;  %15310 = vmatprep.mubr.msk.bf16.mxu0 %vm17625_vm4, %v17624_v1  ;;  %v16537_v56 = vld [vmem:[%s20013_s23 + $0x20] sm:$0xff]  }
0x2959   : > { %15296 = vmatprep.subr.bf16.mxu0 %v17624_v1 }
0x295a   : > { %15271 = vmatpush3.bf16.msra.mxu1 %v16499_v57  ;;  %v16539_v57 = vld [vmem:[%s20013_s23 + $0x28] sm:$0xff]  }
0x295b   : > { %15272 = vmatprep.subr.bf16.mxu1 %v17624_v1 }
0x295c   : > { %15297 = vmatpush3.bf16.msra.mxu0 %v16510_v58  ;;  %v16541_v58 = vld [vmem:[%s20013_s23 + $0x30] sm:$0xff]  }
0x295d   : > { %15298 = vmatprep.subr.bf16.mxu0 %v17624_v1 }
0x295e   : > { %15273 = vmatpush3.bf16.msra.mxu1 %v16500_v59 }
0x295f   : > { %15274 = vmatprep.subr.bf16.mxu1 %v17624_v1 }
0x2960   : > { %15299 = vmatpush3.bf16.msra.mxu0 %v16512_v61 }
0x2961   : > { %15300 = vmatprep.subr.bf16.mxu0 %v17624_v1 }
0x2962   : > { %15275 = vmatpush3.bf16.msra.mxu1 %v16501_v62 }
0x2963   : > { %15276 = vmatprep.subr.bf16.mxu1 %v17624_v1 }
0x2964   : > { %15301 = vmatpush3.bf16.msra.mxu0 %v16514_v63 }
0x2965   : > { %15302 = vmatprep.subr.bf16.mxu0 %v17624_v1 }
0x2966   : > { %15277 = vmatpush3.bf16.msra.mxu1 %v16502_v0 }
0x2967   : > { %15278 = vmatprep.subr.bf16.mxu1 %v17624_v1 }
0x2968   : > { %15303 = vmatpush3.bf16.msra.mxu0 %v16516_v31 }
0x2969   : > { %15304 = vmatprep.subr.bf16.mxu0 %v17624_v1 }
0x296a   : > { %15279 = vmatpush3.bf16.msra.mxu1 %v16503_v7 }
0x296b   : > { %15280 = vmatprep.subr.bf16.mxu1 %v17624_v1 }
0x296c   : > { %15305 = vmatpush3.bf16.msra.mxu0 %v16518_v33 }
0x296d   : > { %15306 = vmatprep.subr.bf16.mxu0 %v17624_v1 }
0x296e   : > { %15281 = vmatpush3.bf16.msra.mxu1 %v16504_v8 }
0x296f   : > { %15282 = vmatprep.subr.bf16.mxu1 %v17624_v1 }
0x2970   : > { %15307 = vmatpush3.bf16.msra.mxu0 %v16520_v52 }
0x2971   : > { %15308 = vmatprep.subr.bf16.mxu0 %v17624_v1 }
0x2972   : > { %15283 = vmatpush3.bf16.msra.mxu1 %v16505_v10 }
0x2973   : > { %15314 = vmatprep.subr.bf16.mxu1 %v17624_v1 }
0x2974   : > { %15309 = vmatpush3.bf16.msra.mxu0 %v16521_v3  ;;  %v16532_v3 = vld [vmem:[%s20013_s23 + $0x40] sm:$0xff]  }
0x2975   : > { %15285 = vmatmul.mubr.bf16.vlgmr.msra.gmra.mrb[168].mxu1 %v9567_v12  ;;  %15334 = vmatprep.subr.bf16.mxu0 %v17624_v1 }
0x2976   : > { %15315 = vmatpush3.bf16.msra.mxu1 %v16506_v11  ;;  %15330 = vmatprep.mubr.msk.bf16.mxu1 %vm17625_vm4, %v17624_v1 }
0x2977   : > { %15316 = vmatprep.subr.bf16.mxu1 %v17624_v1 }
0x297a   : > { %15317 = vmatpush3.bf16.msra.mxu1 %v16507_v15 }
0x297b   : > { %15318 = vmatprep.subr.bf16.mxu1 %v17624_v1 }
0x297e   : > { %15319 = vmatpush3.bf16.msra.mxu1 %v16509_v16 }
0x297f   : > { %15320 = vmatprep.subr.bf16.mxu1 %v17624_v1 }
0x2982   : > { %15321 = vmatpush3.bf16.msra.mxu1 %v16511_v17  ;;  %v13082_v17 = vld [vmem:[%s20014_s7] ss:$0 sm:$0xff]  ;;  %s20017_s7 = sld [smem:[#allocation99_spill]] }
0x2983   : > { %15322 = vmatprep.subr.bf16.mxu1 %v17624_v1 }
0x2986   : > { %15323 = vmatpush3.bf16.msra.mxu1 %v16513_v21 }
0x2987   : > { %15324 = vmatprep.subr.bf16.mxu1 %v17624_v1 }
0x298a   : > { %15325 = vmatpush3.bf16.msra.mxu1 %v16515_v30 }
0x298b   : > { %15326 = vmatprep.subr.bf16.mxu1 %v17624_v1 }
0x298e   : > { %15327 = vmatpush3.bf16.msra.mxu1 %v16517_v32 }
0x298f   : > { %15328 = vmatprep.subr.bf16.mxu1 %v17624_v1 }
0x2992   : > { %15329 = vmatpush3.bf16.msra.mxu1 %v16519_v34 }
0x2993   : > { %15354 = vmatprep.subr.bf16.mxu1 %v17624_v1 }
0x2a22   : > { %v9543_v49 = vpop.f32.mrb[152].mxu0 }
0x2a23   : > { %v15266_v50 = vpop.f32.mrb[153].mxu0 }
0x2a24   : > { %v9546_v24 = vpop.f32.mrb[154].mxu0  ;;  %v16536_v50 = vld [vmem:[%s20013_s23 + $0x50] sm:$0xff]  }
0x2a25   : > { %v15267_v25 = vpop.f32.mrb[155].mxu0  ;;  %v16538_v24 = vld [vmem:[%s20013_s23 + $0x58] sm:$0xff]  }
0x2a26   : > { %v16540_v25 = vld [vmem:[%s20013_s23 + $0x60] sm:$0xff]  }
0x2a28   : > { %v9455_v36 = vpop.f32.mrb[164].mxu1 }
0x2a29   : > { %v9544_v37 = vadd.f32 %v9543_v49, %v9455_v36  ;;  %v15246_v38 = vpop.f32.mrb[165].mxu1  ;;  %v16534_v49 = vld [vmem:[%s20013_s23 + $0x48] sm:$0xff]  }
0x2a2a   : > { %v9458_v27 = vpop.f32.mrb[166].mxu1  ;;  %v9696_v9 = vpop.f32.mrb[156].mxu0  ;;  %v16542_v36 = vld [vmem:[%s20013_s23 + $0x68] sm:$0xff]   ;;  %v16544_v38 = vld [vmem:[%s20013_s23 + $0x70] sm:$0xff]  }
0x2a2b   : > { %v15247_v5 = vpop.f32.mrb[167].mxu1  ;;  %v15292_v35 = vpop.f32.mrb[157].mxu0  ;;  %v16545_v27 = vld [vmem:[%s20013_s23 + $0x78] sm:$0xff]  }
0x2a2c   : > { %v9699_v26 = vpop.f32.mrb[158].mxu0 }
0x2a2d   : > { %v9703_v39 = vpack.c.bf16 %v9699_v26, %v9696_v9  ;;  %v15293_v60 = vpop.f32.mrb[159].mxu0 }
0x2a2f   : > { %v9740_v41 = vshll.u32 %v9703_v39, 16  ;;  %15331 = vmatmul.mubr.bf16.vlgmr.msra.gmra.mrb[172].mxu1 %v9703_v39  ;;  %v9738_v42 = vshrl.u32 %v9703_v39, 16  ;;  %v9939_v44 = vrot.slane %v9703_v39, 1 }
0x2a30   : > { %15356 = vmatprep.mubr.msk.bf16.mxu1 %vm17625_vm4, %v17624_v1 }
0x2a31   : > { %v9742_v45 = vrot.slane %v9740_v41, 1 }
0x2a33   : > { %v9743_v2 = vor.u32 %v9742_v45, %v9738_v42  ;;  %v16546_v45 = vld [vmem:[%s20013_s23 + $0x80] sm:$0xff]  }
0x2a35   : > { %15311 = vmatmul.mubr.bf16.vlgmr.msra.gmra.mrb[160].mxu0 %v9743_v2  ;;  %v16547_v2 = vld [vmem:[%s20013_s23 + $0x88] sm:$0xff]  }
0x2a36   : > { %15335 = vmatpush3.bf16.msra.mxu0 %v16522_v46  ;;  %15350 = vmatprep.mubr.msk.bf16.mxu0 %vm17625_vm4, %v17624_v1 }
0x2a37   : > { %15336 = vmatprep.subr.bf16.mxu0 %v17624_v1 }
0x2a3a   : > { %15337 = vmatpush3.bf16.msra.mxu0 %v16523_v4  ;;  %v16548_v4 = vld [vmem:[%s20013_s23 + $0x90] sm:$0xff]  }
0x2a3b   : > { %15338 = vmatprep.subr.bf16.mxu0 %v17624_v1 }
0x2a3e   : > { %15339 = vmatpush3.bf16.msra.mxu0 %v16524_v6  ;;  %v16549_v6 = vld [vmem:[%s20013_s23 + $0x98] sm:$0xff]  }
0x2a3f   : > { %15340 = vmatprep.subr.bf16.mxu0 %v17624_v1 }
0x2a42   : > { %15341 = vmatpush3.bf16.msra.mxu0 %v16525_v40  ;;  %v16550_v40 = vld [vmem:[%s20013_s23 + $0xa0] sm:$0xff]  }
0x2a43   : > { %15342 = vmatprep.subr.bf16.mxu0 %v17624_v1 }
0x2a46   : > { %15343 = vmatpush3.bf16.msra.mxu0 %v16526_v43  ;;  %v16551_v43 = vld [vmem:[%s20013_s23 + $0xa8] sm:$0xff]  }
0x2a47   : > { %15344 = vmatprep.subr.bf16.mxu0 %v17624_v1 }
0x2a48   : > { %v9651_v48 = vpop.f32.mrb[168].mxu1 }
0x2a49   : > { %v9657_v19 = vadd.f32 %v9651_v48, %v9544_v37  ;;  %v15286_v20 = vpop.f32.mrb[169].mxu1  ;;  %v16543_v37 = vld [vmem:[%s20013_s23 + $0x38] sm:$0xff]  }
0x2a4a   : > { %v9654_v22 = vpop.f32.mrb[170].mxu1  ;;  %15345 = vmatpush3.bf16.msra.mxu0 %v16527_v47  ;;  %v16552_v47 = vld [vmem:[%s20013_s23 + $0xb0] sm:$0xff]   ;;  %v16553_v48 = vld [vmem:[%s20013_s23 + $0xb8] sm:$0xff]  }
0x2a4b   : > { %v15287_v28 = vpop.f32.mrb[171].mxu1  ;;  %15346 = vmatprep.subr.bf16.mxu0 %v17624_v1 }
0x2a4e   : > { %15347 = vmatpush3.bf16.msra.mxu0 %v16528_v23 }
0x2a4f   : > { %15348 = vmatprep.subr.bf16.mxu0 %v17624_v1 }
0x2a52   : > { %15349 = vmatpush3.bf16.msra.mxu0 %v16529_v29 }
0x2a53   : > { %15380 = vmatprep.subr.bf16.mxu0 %v17624_v1 }
0x2a55   : > { %15351 = vmatmul.mubr.bf16.vlgmr.msra.gmra.mrb[164].mxu0 %v9939_v44 }
0x2a56   : > { %15396 = vmatprep.mubr.msk.bf16.mxu0 %vm17625_vm4, %v17624_v1  ;;  %15381 = vmatpush3.bf16.msra.mxu0 %v16530_v53 }
0x2a57   : > { %15382 = vmatprep.subr.bf16.mxu0 %v17624_v1 }
0x2a5a   : > { %15383 = vmatpush3.bf16.msra.mxu0 %v16531_v54 }
0x2a5b   : > { %15384 = vmatprep.subr.bf16.mxu0 %v17624_v1 }
0x2a5e   : > { %15385 = vmatpush3.bf16.msra.mxu0 %v16533_v55 }
0x2a5f   : > { %15386 = vmatprep.subr.bf16.mxu0 %v17624_v1 }
0x2a62   : > { %15387 = vmatpush3.bf16.msra.mxu0 %v16535_v51 }
0x2a63   : > { %15388 = vmatprep.subr.bf16.mxu0 %v17624_v1 }
0x2a66   : > { %15389 = vmatpush3.bf16.msra.mxu0 %v16537_v56  ;;  %v13140_v56 = vld [vmem:[%s20017_s7] ss:$0 sm:$0xff]  ;;  %s20029_s7 = sld [smem:[#allocation104_spill]] }
0x2a67   : > { %15390 = vmatprep.subr.bf16.mxu0 %v17624_v1 }
0x2a6a   : > { %15391 = vmatpush3.bf16.msra.mxu0 %v16539_v57 }
0x2a6b   : > { %15392 = vmatprep.subr.bf16.mxu0 %v17624_v1 }
0x2a6e   : > { %15393 = vmatpush3.bf16.msra.mxu0 %v16541_v58 }
0x2a6f   : > { %15394 = vmatprep.subr.bf16.mxu0 %v17624_v1 }
0x2a72   : > { %15395 = vmatpush3.bf16.msra.mxu0 %v16543_v37  ;;  %v16570_v37 = vld [vmem:[#allocation48 + $0x38] sm:$0xff]  }
0x2a73   : > { %15420 = vmatprep.subr.bf16.mxu0 %v17624_v1 }
0x2b02   : > { %v9915_v59 = vpop.f32.mrb[172].mxu1 }
0x2b03   : > { %v15332_v61 = vpop.f32.mrb[173].mxu1 }
0x2b04   : > { %v9918_v62 = vpop.f32.mrb[174].mxu1 }
0x2b05   : > { %v15333_v63 = vpop.f32.mrb[175].mxu1 }
0x2b08   : > { %v9827_v0 = vpop.f32.mrb[160].mxu0 }
0x2b09   : > { %v9916_v7 = vadd.f32 %v9915_v59, %v9827_v0  ;;  %v15312_v8 = vpop.f32.mrb[161].mxu0 }
0x2b0a   : > { %v9830_v10 = vpop.f32.mrb[162].mxu0  ;;  %v16554_v8 = vld [vmem:[%s17889_s13] sm:$0xff]  }
0x2b0b   : > { %v15313_v11 = vpop.f32.mrb[163].mxu0  ;;  %v16555_v10 = vld [vmem:[#allocation45] sm:$0xff]  }
0x2b0c   : > { %v16556_v11 = vld [vmem:[#allocation45 + $0x8] sm:$0xff]  }
0x2b28   : > { %v10023_v12 = vpop.f32.mrb[164].mxu0 }
0x2b29   : > { %v10029_v15 = vadd.f32 %v10023_v12, %v9916_v7  ;;  %v15352_v16 = vpop.f32.mrb[165].mxu0  ;;  %v16557_v12 = vld [vmem:[#allocation45 + $0x10] sm:$0xff]  }
0x2b2a   : > { %v10026_v21 = vpop.f32.mrb[166].mxu0  ;;  %v16563_v16 = vld [vmem:[#allocation48 + $0x40] sm:$0xff]  }
0x2b2b   : > { %v10030_v30 = vadd.f32 %v10029_v15, %v9657_v19  ;;  %v15353_v31 = vpop.f32.mrb[167].mxu0  ;;  %v16558_v15 = vld [vmem:[#allocation45 + $0x18] sm:$0xff]   ;;  %v16567_v21 = vld [vmem:[#allocation48 + $0x50] sm:$0xff]  }
0x2b2d   : > { %v10038_v32 = vadd.f32 %v13082_v17, %v10030_v30  ;;  %v16565_v17 = vld [vmem:[#allocation48 + $0x48] sm:$0xff]  }
0x2b2f   : > { %v10039_v33 = vmax.f32 %v10038_v32, 0.0 }
0x2b31   : > { %v10040_v34 = vpack.c.bf16 %v10039_v33, %v10039_v33 }
0x2b33   : > { %v10042_v52 = vsel %vm20015_vm13, %v10040_v34, 0  ;;  %vm20032_vm13 = vmmov %vm20028_vm1 }
0x2b34   : > { %15355 = vmatpush3.bf16.msra.mxu1 %v10042_v52  ;;  %v16559_v52 = vld [vmem:[#allocation48] sm:$0xff]  }
0x2b35   : > { %15360 = vmatprep.subr.bf16.mxu1 %v17624_v1 }
0x2b37   : > { %15357 = vmatmul.mubr.msk.bf16.vlgmr.msra.gmra.mrb[176].mxu1 %vm20016_vm14, %v18438_v13 }
0x2b38   : > { %15361 = vmatpush3.bf16.msra.mxu1 %v16532_v3  ;;  %15376 = vmatprep.mubr.msk.bf16.mxu1 %vm17625_vm4, %v17624_v1  ;;  %v16560_v3 = vld [vmem:[#allocation48 + $0x8] sm:$0xff]  }
0x2b39   : > { %15362 = vmatprep.subr.bf16.mxu1 %v17624_v1 }
0x2b3c   : > { %15363 = vmatpush3.bf16.msra.mxu1 %v16534_v49  ;;  %v16561_v49 = vld [vmem:[#allocation48 + $0x10] sm:$0xff]  }
0x2b3d   : > { %15364 = vmatprep.subr.bf16.mxu1 %v17624_v1 }
0x2b40   : > { %15365 = vmatpush3.bf16.msra.mxu1 %v16536_v50  ;;  %v16564_v50 = vld [vmem:[#allocation48 + $0x20] sm:$0xff]  }
0x2b41   : > { %15366 = vmatprep.subr.bf16.mxu1 %v17624_v1 }
0x2b44   : > { %15367 = vmatpush3.bf16.msra.mxu1 %v16538_v24  ;;  %v16566_v24 = vld [vmem:[#allocation48 + $0x28] sm:$0xff]  }
0x2b45   : > { %15368 = vmatprep.subr.bf16.mxu1 %v17624_v1 }
0x2b48   : > { %15369 = vmatpush3.bf16.msra.mxu1 %v16540_v25  ;;  %v16568_v25 = vld [vmem:[#allocation48 + $0x30] sm:$0xff]  }
0x2b49   : > { %15370 = vmatprep.subr.bf16.mxu1 %v17624_v1 }
0x2b4c   : > { %15371 = vmatpush3.bf16.msra.mxu1 %v16542_v36  ;;  %v16569_v36 = vld [vmem:[#allocation48 + $0x58] sm:$0xff]  }
0x2b4d   : > { %15372 = vmatprep.subr.bf16.mxu1 %v17624_v1 }
0x2b50   : > { %15373 = vmatpush3.bf16.msra.mxu1 %v16544_v38  ;;  %v16571_v38 = vld [vmem:[#allocation48 + $0x60] sm:$0xff]  }
0x2b51   : > { %15374 = vmatprep.subr.bf16.mxu1 %v17624_v1 }
0x2b54   : > { %15375 = vmatpush3.bf16.msra.mxu1 %v16545_v27  ;;  %v16572_v27 = vld [vmem:[#allocation48 + $0x68] sm:$0xff]  }
0x2b55   : > { %15400 = vmatprep.subr.bf16.mxu1 %v17624_v1 }
0x2c0a   : > { %v10078_v9 = vpop.f32.mrb[176].mxu1 }
0x2c0b   : > { %v15358_v5 = vpop.f32.mrb[177].mxu1 }
0x2c0c   : > { %v10081_v35 = vpop.f32.mrb[178].mxu1  ;;  %v16574_v5 = vld [vmem:[#allocation48 + $0x78] sm:$0xff]  }
0x2c0d   : > { %v10085_v26 = vpack.c.bf16 %v10081_v35, %v10078_v9  ;;  %v15359_v39 = vpop.f32.mrb[179].mxu1  ;;  %v16573_v9 = vld [vmem:[#allocation48 + $0x70] sm:$0xff]  }
0x2c0f   : > { %v10122_v60 = vshll.u32 %v10085_v26, 16  ;;  %15397 = vmatmul.mubr.bf16.vlgmr.msra.gmra.mrb[168].mxu0 %v10085_v26  ;;  %v10120_v41 = vshrl.u32 %v10085_v26, 16  ;;  %v10321_v19 = vrot.slane %v10085_v26, 1 }
0x2c10   : > { %15422 = vmatprep.mubr.msk.bf16.mxu0 %vm17625_vm4, %v17624_v1 }
0x2c11   : > { %v10124_v42 = vrot.slane %v10122_v60, 1 }
0x2c13   : > { %v10125_v46 = vor.u32 %v10124_v42, %v10120_v41 }
0x2c15   : > { %15377 = vmatmul.mubr.bf16.vlgmr.msra.gmra.mrb[180].mxu1 %v10125_v46 }
0x2c16   : > { %15401 = vmatpush3.bf16.msra.mxu1 %v16546_v45  ;;  %15416 = vmatprep.mubr.msk.bf16.mxu1 %vm17625_vm4, %v17624_v1 }
0x2c17   : > { %15402 = vmatprep.subr.bf16.mxu1 %v17624_v1 }
0x2c1a   : > { %15403 = vmatpush3.bf16.msra.mxu1 %v16547_v2 }
0x2c1b   : > { %15404 = vmatprep.subr.bf16.mxu1 %v17624_v1 }
0x2c1e   : > { %15405 = vmatpush3.bf16.msra.mxu1 %v16548_v4 }
0x2c1f   : > { %15406 = vmatprep.subr.bf16.mxu1 %v17624_v1 }
0x2c22   : > { %15407 = vmatpush3.bf16.msra.mxu1 %v16549_v6 }
0x2c23   : > { %15408 = vmatprep.subr.bf16.mxu1 %v17624_v1 }
0x2c26   : > { %15409 = vmatpush3.bf16.msra.mxu1 %v16550_v40 }
0x2c27   : > { %15410 = vmatprep.subr.bf16.mxu1 %v17624_v1 }
0x2c2a   : > { %15411 = vmatpush3.bf16.msra.mxu1 %v16551_v43 }
0x2c2b   : > { %15412 = vmatprep.subr.bf16.mxu1 %v17624_v1 }
0x2c2e   : > { %15413 = vmatpush3.bf16.msra.mxu1 %v16552_v47 }
0x2c2f   : > { %15414 = vmatprep.subr.bf16.mxu1 %v17624_v1 }
0x2c32   : > { %15415 = vmatpush3.bf16.msra.mxu1 %v16553_v48 }
0x2c33   : > { %15444 = vmatprep.subr.bf16.mxu1 %v17624_v1 }
0x2c35   : > { %15417 = vmatmul.mubr.bf16.vlgmr.msra.gmra.mrb[184].mxu1 %v10321_v19 }
0x2c36   : > { %15460 = vmatprep.mubr.msk.bf16.mxu1 %vm17625_vm4, %v17624_v1  ;;  %15445 = vmatpush3.bf16.msra.mxu1 %v16563_v16  ;;  %v16594_v16 = vld [vmem:[#allocation49 + $0x30] sm:$0xff]  }
0x2c37   : > { %15446 = vmatprep.subr.bf16.mxu1 %v17624_v1 }
0x2c3a   : > { %15447 = vmatpush3.bf16.msra.mxu1 %v16565_v17  ;;  %v16595_v17 = vld [vmem:[#allocation49 + $0x68] sm:$0xff]  }
0x2c3b   : > { %15448 = vmatprep.subr.bf16.mxu1 %v17624_v1 }
0x2c3e   : > { %15449 = vmatpush3.bf16.msra.mxu1 %v16567_v21  ;;  %v16596_v21 = vld [vmem:[#allocation49 + $0x38] sm:$0xff]  }
0x2c3f   : > { %15450 = vmatprep.subr.bf16.mxu1 %v17624_v1 }
0x2c42   : > { %15451 = vmatpush3.bf16.msra.mxu1 %v16569_v36 }
0x2c43   : > { %15452 = vmatprep.subr.bf16.mxu1 %v17624_v1 }
0x2c46   : > { %15453 = vmatpush3.bf16.msra.mxu1 %v16571_v38 }
0x2c47   : > { %15454 = vmatprep.subr.bf16.mxu1 %v17624_v1 }
0x2c4a   : > { %15455 = vmatpush3.bf16.msra.mxu1 %v16572_v27 }
0x2c4b   : > { %15456 = vmatprep.subr.bf16.mxu1 %v17624_v1 }
0x2c4e   : > { %15457 = vmatpush3.bf16.msra.mxu1 %v16573_v9 }
0x2c4f   : > { %15458 = vmatprep.subr.bf16.mxu1 %v17624_v1 }
0x2c52   : > { %15459 = vmatpush3.bf16.msra.mxu1 %v16574_v5 }
0x2c53   : > { %15484 = vmatprep.subr.bf16.mxu1 %v17624_v1 }
0x2ce2   : > { %v10297_v20 = vpop.f32.mrb[168].mxu0 }
0x2ce3   : > { %v15398_v22 = vpop.f32.mrb[169].mxu0 }
0x2ce4   : > { %v10300_v23 = vpop.f32.mrb[170].mxu0 }
0x2ce5   : > { %v15399_v28 = vpop.f32.mrb[171].mxu0 }
0x2ce8   : > { %v10209_v29 = vpop.f32.mrb[180].mxu1 }
0x2ce9   : > { %v10298_v44 = vadd.f32 %v10297_v20, %v10209_v29  ;;  %v15378_v53 = vpop.f32.mrb[181].mxu1  ;;  %v16575_v29 = vld [vmem:[#allocation48 + $0x80] sm:$0xff]  }
0x2cea   : > { %v10212_v54 = vpop.f32.mrb[182].mxu1  ;;  %v16585_v53 = vld [vmem:[#allocation49 + $0x40] sm:$0xff]  }
0x2ceb   : > { %v15379_v55 = vpop.f32.mrb[183].mxu1  ;;  %v16576_v54 = vld [vmem:[#allocation48 + $0x88] sm:$0xff]  }
0x2cec   : > { %v16587_v55 = vld [vmem:[#allocation49 + $0x48] sm:$0xff]  }
0x2d08   : > { %v10405_v51 = vpop.f32.mrb[184].mxu1 }
0x2d09   : > { %v10411_v57 = vadd.f32 %v10405_v51, %v10298_v44  ;;  %v15418_v58 = vpop.f32.mrb[185].mxu1  ;;  %v16577_v51 = vld [vmem:[#allocation48 + $0x90] sm:$0xff]  }
0x2d0a   : > { %v10408_v59 = vpop.f32.mrb[186].mxu1  ;;  %v16579_v58 = vld [vmem:[#allocation48 + $0xa0] sm:$0xff]  }
0x2d0b   : > { %v10419_v61 = vadd.f32 %v13140_v56, %v10411_v57  ;;  %v15419_v62 = vpop.f32.mrb[187].mxu1  ;;  %v16589_v56 = vld [vmem:[#allocation49 + $0x50] sm:$0xff]   ;;  %v16578_v57 = vld [vmem:[#allocation48 + $0x98] sm:$0xff]   ;;  %v16580_v59 = vld [vmem:[#allocation48 + $0xa8] sm:$0xff]  }
0x2d0c   : > { %v16582_v62 = vld [vmem:[#allocation48 + $0xb8] sm:$0xff]  }
0x2d0d   : > { %v10420_v63 = vmax.f32 %v10419_v61, 0.0  ;;  %v16581_v61 = vld [vmem:[#allocation48 + $0xb0] sm:$0xff]  }
0x2d0f   : > { %v10423_v0 = vpack.c.bf16 %v10420_v63, %v10420_v63  ;;  %v16583_v63 = vld [vmem:[#allocation49] sm:$0xff]  }
0x2d11   : > { %v10433_v7 = vsel %vm20018_vm15, %v10423_v0, 0  ;;  %v16584_v0 = vld [vmem:[#allocation49 + $0x8] sm:$0xff]  }
0x2d12   : > { %15421 = vmatpush3.bf16.msra.mxu0 %v10433_v7  ;;  %v16586_v7 = vld [vmem:[#allocation49 + $0x10] sm:$0xff]  }
0x2d13   : > { %15426 = vmatprep.subr.bf16.mxu0 %v17624_v1 }
0x2d15   : > { %15423 = vmatmul.mubr.msk.bf16.vlgmr.msra.gmra.mrb[172].mxu0 %vm20019_vm2, %v16554_v8  ;;  %v16588_v8 = vld [vmem:[#allocation49 + $0x18] sm:$0xff]  }
0x2d16   : > { %15427 = vmatpush3.bf16.msra.mxu0 %v16555_v10  ;;  %15434 = vmatprep.mubr.msk.bf16.mxu0 %vm17625_vm4, %v17624_v1  ;;  %v16590_v10 = vld [vmem:[#allocation49 + $0x20] sm:$0xff]  }
0x2d17   : > { %15428 = vmatprep.subr.bf16.mxu0 %v17624_v1 }
0x2d1a   : > { %15429 = vmatpush3.bf16.msra.mxu0 %v16556_v11  ;;  %v16591_v11 = vld [vmem:[#allocation49 + $0x58] sm:$0xff]  }
0x2d1b   : > { %15430 = vmatprep.subr.bf16.mxu0 %v17624_v1 }
0x2d1e   : > { %15431 = vmatpush3.bf16.msra.mxu0 %v16557_v12  ;;  %v16592_v12 = vld [vmem:[#allocation49 + $0x28] sm:$0xff]  }
0x2d1f   : > { %15432 = vmatprep.subr.bf16.mxu0 %v17624_v1 }
0x2d22   : > { %15433 = vmatpush3.bf16.msra.mxu0 %v16558_v15  ;;  %v16593_v15 = vld [vmem:[#allocation49 + $0x60] sm:$0xff]  }
0x2d23   : > { %15438 = vmatprep.subr.bf16.mxu0 %v18583_v18 }
0x2de8   : > { %v10469_v30 = vpop.f32.mrb[172].mxu0 }
0x2de9   : > { %v15424_v31 = vpop.f32.mrb[173].mxu0 }
0x2dea   : > { %v10472_v32 = vpop.f32.mrb[174].mxu0  ;;  %v16598_v31 = vld [vmem:[#allocation49 + $0x78] sm:$0xff]  }
0x2deb   : > { %v10476_v33 = vpack.c.bf16 %v10472_v32, %v10469_v30  ;;  %v15425_v34 = vpop.f32.mrb[175].mxu0  ;;  %v16597_v30 = vld [vmem:[#allocation49 + $0x70] sm:$0xff]  }
0x2ded   : > { %15435 = vmatmul.mubr.msk.bf16.vlgmr.msra.gmra.mrb[176].mxu0 %vm3091_vm8, %v10476_v33  ;;  %vm20022_vm8 = vmmov %vm20020_vm3 }
0x2dee   : > { %15439 = vmatpush3.bf16.msra.mxu0 %v18583_v18  ;;  %15440 = vmatprep.mubr.msk.bf16.mxu0 %vm20020_vm3, %v18438_v13  ;;  %v16562_v18 = vld [vmem:[#allocation48 + $0x18] sm:$0xff]  }
0x2def   : > { %15464 = vmatprep.subr.bf16.mxu0 %v17624_v1 }
0x2df5   : > { %15441 = vmatmul.mubr.msk.bf16.vlgmr.msra.gmra.mrb[180].mxu0 %vm20021_vm7, %v18442_v14 }
0x2df6   : > { %15465 = vmatpush3.bf16.msra.mxu0 %v16559_v52  ;;  %15480 = vmatprep.mubr.msk.bf16.mxu0 %vm17625_vm4, %v17624_v1 }
0x2df7   : > { %15466 = vmatprep.subr.bf16.mxu0 %v17624_v1 }
0x2dfa   : > { %15467 = vmatpush3.bf16.msra.mxu0 %v16560_v3 }
0x2dfb   : > { %15468 = vmatprep.subr.bf16.mxu0 %v17624_v1 }
0x2dfe   : > { %15469 = vmatpush3.bf16.msra.mxu0 %v16561_v49 }
0x2dff   : > { %15470 = vmatprep.subr.bf16.mxu0 %v17624_v1 }
0x2e02   : > { %15471 = vmatpush3.bf16.msra.mxu0 %v16562_v18 }
0x2e03   : > { %15472 = vmatprep.subr.bf16.mxu0 %v17624_v1 }
0x2e06   : > { %15473 = vmatpush3.bf16.msra.mxu0 %v16564_v50 }
0x2e07   : > { %15474 = vmatprep.subr.bf16.mxu0 %v17624_v1 }
0x2e0a   : > { %15475 = vmatpush3.bf16.msra.mxu0 %v16566_v24 }
0x2e0b   : > { %15476 = vmatprep.subr.bf16.mxu0 %v17624_v1 }
0x2e0e   : > { %15477 = vmatpush3.bf16.msra.mxu0 %v16568_v25 }
0x2e0f   : > { %15478 = vmatprep.subr.bf16.mxu0 %v17624_v1 }
0x2e12   : > { %15479 = vmatpush3.bf16.msra.mxu0 %v16570_v37 }
0x2ec0   : > { %v10546_v35 = vpop.f32.mrb[176].mxu0 }
0x2ec1   : > { %v15436_v26 = vpop.f32.mrb[177].mxu0 }
0x2ec2   : > { %v10549_v39 = vpop.f32.mrb[178].mxu0 }
0x2ec3   : > { %v10942_v60 = vpack.c.bf16 %v10549_v39, %v10546_v35  ;;  %v15437_v41 = vpop.f32.mrb[179].mxu0 }
0x2ec5   : > { %15504 = vmatprep.subr.bf16.mxu0 %v10942_v60 }
0x2ec8   : > { %v15442_v42 = vpop.f32.mrb[180].mxu0 }
0x2ec9   : > { %v10588_v45 = vpop.f32.mrb[181].mxu0  ;;  %v10603_v46 = vpack.c.bf16 %v15442_v42, %v15442_v42 }
0x2eca   : > { %v15443_v2 = vpop.f32.mrb[182].mxu0 }
0x2ecb   : > { %v10591_v4 = vpop.f32.mrb[183].mxu0  ;;  %v10645_v40 = vshll.u32 %v10603_v46, 16  ;;  %v10848_v43 = vrot.slane %v10603_v46, 1 }
0x2ecc   : > { %v10602_v6 = vpack.c.bf16 %v10591_v4, %v10588_v45  ;;  %v16599_v4 = vld [vmem:[#allocation49 + $0x80] sm:$0xff]  }
0x2ecd   : > { %v10647_v23 = vrot.slane %v10645_v40, 1  ;;  %v16600_v40 = vld [vmem:[#allocation49 + $0x88] sm:$0xff]  }
0x2ece   : > { %v10640_v47 = vshll.u32 %v10602_v6, 16  ;;  %15481 = vmatmul.mubr.bf16.vlgmr.msra.gmra.mrb[184].mxu0 %v10602_v6  ;;  %v10847_v48 = vrot.slane %v10602_v6, 1  ;;  %v10638_v19 = vshrl.u32 %v10602_v6, 16 }
0x2ecf   : > { %15505 = vmatpush3.bf16.msra.mxu0 %v10942_v60  ;;  %15506 = vmatprep.mubr.msk.bf16.mxu0 %vm20022_vm8, %v18438_v13 }
0x2ed0   : > { %v10642_v20 = vrot.slane %v10640_v47, 1  ;;  %v10849_v22 = vsel %vm20023_vm10, %v10847_v48, %v10848_v43  ;;  %15510 = vmatprep.subr.bf16.mxu0 %v17624_v1  ;;  %v16601_v43 = vld [vmem:[#allocation49 + $0x90] sm:$0xff]   ;;  %v16603_v47 = vld [vmem:[#allocation49 + $0xa0] sm:$0xff]   ;;  %v16604_v48 = vld [vmem:[#allocation49 + $0xa8] sm:$0xff]  }
0x2ed2   : > { %v10643_v28 = vor.u32 %v10642_v20, %v10638_v19 }
0x2ed4   : > { %v10648_v44 = vsel %vm20024_vm11, %v10643_v28, %v10647_v23 }
0x2ed5   : > { %15461 = vmatmul.mubr.bf16.vlgmr.msra.gmra.mrb[188].mxu1 %v10648_v44  ;;  %v16605_v44 = vld [vmem:[#allocation49 + $0xb0] sm:$0xff]  }
0x2ed6   : > { %15485 = vmatpush3.bf16.msra.mxu1 %v16575_v29  ;;  %15507 = vmatmul.mubr.msk.bf16.vlgmr.msra.gmra.mrb[188].mxu0 %vm20025_vm12, %v18442_v14 }
0x2ed7   : > { %15486 = vmatprep.subr.bf16.mxu1 %v17624_v1  ;;  %15500 = vmatprep.mubr.msk.bf16.mxu1 %vm17625_vm4, %v17624_v1 }
0x2ed8   : > { %15511 = vmatpush3.bf16.msra.mxu0 %v16585_v53  ;;  %15526 = vmatprep.mubr.msk.bf16.mxu0 %vm17625_vm4, %v17624_v1  ;;  %v16606_v53 = vld [vmem:[#allocation49 + $0xb8] sm:$0xff]  }
0x2ed9   : > { %15512 = vmatprep.subr.bf16.mxu0 %v17624_v1 }
0x2eda   : > { %15487 = vmatpush3.bf16.msra.mxu1 %v16576_v54  ;;  %v16607_v54 = vld [vmem:[#allocation46] sm:$0xff]  }
0x2edb   : > { %15488 = vmatprep.subr.bf16.mxu1 %v17624_v1 }
0x2edc   : > { %15513 = vmatpush3.bf16.msra.mxu0 %v16587_v55  ;;  %v16608_v55 = vld [vmem:[#allocation46 + $0x8] sm:$0xff]  }
0x2edd   : > { %15514 = vmatprep.subr.bf16.mxu0 %v17624_v1 }
0x2ede   : > { %15489 = vmatpush3.bf16.msra.mxu1 %v16577_v51  ;;  %v16610_v51 = vld [vmem:[#allocation46 + $0x10] sm:$0xff]  }
0x2edf   : > { %15490 = vmatprep.subr.bf16.mxu1 %v17624_v1 }
0x2ee0   : > { %15515 = vmatpush3.bf16.msra.mxu0 %v16589_v56  ;;  %v16612_v56 = vld [vmem:[#allocation46 + $0x18] sm:$0xff]  }
0x2ee1   : > { %15516 = vmatprep.subr.bf16.mxu0 %v17624_v1 }
0x2ee2   : > { %15491 = vmatpush3.bf16.msra.mxu1 %v16578_v57  ;;  %v16614_v57 = vld [vmem:[#allocation46 + $0x20] sm:$0xff]  }
0x2ee3   : > { %15492 = vmatprep.subr.bf16.mxu1 %v17624_v1 }
0x2ee4   : > { %15517 = vmatpush3.bf16.msra.mxu0 %v16591_v11 }
0x2ee5   : > { %15518 = vmatprep.subr.bf16.mxu0 %v17624_v1 }
0x2ee6   : > { %15493 = vmatpush3.bf16.msra.mxu1 %v16579_v58  ;;  %v16616_v58 = vld [vmem:[#allocation46 + $0x28] sm:$0xff]  }
0x2ee7   : > { %15494 = vmatprep.subr.bf16.mxu1 %v17624_v1 }
0x2ee8   : > { %15519 = vmatpush3.bf16.msra.mxu0 %v16593_v15 }
0x2ee9   : > { %15520 = vmatprep.subr.bf16.mxu0 %v17624_v1 }
0x2eea   : > { %15495 = vmatpush3.bf16.msra.mxu1 %v16580_v59 }
0x2eeb   : > { %15496 = vmatprep.subr.bf16.mxu1 %v17624_v1 }
0x2eec   : > { %15521 = vmatpush3.bf16.msra.mxu0 %v16595_v17 }
0x2eed   : > { %15522 = vmatprep.subr.bf16.mxu0 %v17624_v1 }
0x2eee   : > { %15497 = vmatpush3.bf16.msra.mxu1 %v16581_v61 }
0x2eef   : > { %15498 = vmatprep.subr.bf16.mxu1 %v17624_v1 }
0x2ef0   : > { %15523 = vmatpush3.bf16.msra.mxu0 %v16597_v30 }
0x2ef1   : > { %15524 = vmatprep.subr.bf16.mxu0 %v17624_v1 }
0x2ef2   : > { %15499 = vmatpush3.bf16.msra.mxu1 %v16582_v62 }
0x2ef3   : > { %15530 = vmatprep.subr.bf16.mxu1 %v17624_v1 }
0x2ef4   : > { %15525 = vmatpush3.bf16.msra.mxu0 %v16598_v31 }
0x2ef5   : > { %15501 = vmatmul.mubr.bf16.vlgmr.msra.gmra.mrb[192].mxu1 %v10849_v22  ;;  %15550 = vmatprep.subr.bf16.mxu0 %v17624_v1 }
0x2ef6   : > { %15531 = vmatpush3.bf16.msra.mxu1 %v16583_v63  ;;  %15546 = vmatprep.mubr.msk.bf16.mxu1 %vm17625_vm4, %v17624_v1 }
0x2ef7   : > { %15532 = vmatprep.subr.bf16.mxu1 %v17624_v1 }
0x2efa   : > { %15533 = vmatpush3.bf16.msra.mxu1 %v16584_v0 }
0x2efb   : > { %15534 = vmatprep.subr.bf16.mxu1 %v17624_v1 }
0x2efe   : > { %15535 = vmatpush3.bf16.msra.mxu1 %v16586_v7 }
0x2eff   : > { %15536 = vmatprep.subr.bf16.mxu1 %v17624_v1 }
0x2f02   : > { %15537 = vmatpush3.bf16.msra.mxu1 %v16588_v8 }
0x2f03   : > { %15538 = vmatprep.subr.bf16.mxu1 %v17624_v1 }
0x2f06   : > { %15539 = vmatpush3.bf16.msra.mxu1 %v16590_v10 }
0x2f07   : > { %15540 = vmatprep.subr.bf16.mxu1 %v17624_v1 }
0x2f0a   : > { %15541 = vmatpush3.bf16.msra.mxu1 %v16592_v12 }
0x2f0b   : > { %15542 = vmatprep.subr.bf16.mxu1 %v17624_v1 }
0x2f0e   : > { %15543 = vmatpush3.bf16.msra.mxu1 %v16594_v16 }
0x2f0f   : > { %15544 = vmatprep.subr.bf16.mxu1 %v17624_v1 }
0x2f12   : > { %15545 = vmatpush3.bf16.msra.mxu1 %v16596_v21  ;;  %v13200_v21 = vld [vmem:[%s20029_s7] ss:$0 sm:$0xff]  ;;  %s20033_s7 = sld [smem:[#allocation84_spill]] }
0x2fa1   : > { %v10821_v32 = vpop.f32.mrb[184].mxu0 }
0x2fa2   : > { %v15482_v33 = vpop.f32.mrb[185].mxu0 }
0x2fa3   : > { %v10824_v34 = vpop.f32.mrb[186].mxu0 }
0x2fa4   : > { %v15483_v52 = vpop.f32.mrb[187].mxu0 }
0x2fa8   : > { %v10732_v3 = vpop.f32.mrb[188].mxu1 }
0x2fa9   : > { %v10822_v49 = vadd.f32 %v10821_v32, %v10732_v3  ;;  %v15462_v18 = vpop.f32.mrb[189].mxu1  ;;  %v15508_v50 = vpop.f32.mrb[188].mxu0 }
0x2faa   : > { %v10735_v24 = vpop.f32.mrb[190].mxu1  ;;  %v10977_v25 = vpop.f32.mrb[189].mxu0  ;;  %v10992_v36 = vpack.c.bf16 %v15508_v50, %v15508_v50 }
0x2fab   : > { %v10825_v37 = vadd.f32 %v10824_v34, %v10735_v24  ;;  %v15463_v38 = vpop.f32.mrb[191].mxu1  ;;  %v15509_v27 = vpop.f32.mrb[190].mxu0  ;;  %v16609_v24 = vld [vmem:[#allocation46 + $0x40] sm:$0xff]  }
0x2fac   : > { %v10980_v9 = vpop.f32.mrb[191].mxu0  ;;  %v11034_v35 = vshll.u32 %v10992_v36, 16  ;;  %v11237_v26 = vrot.slane %v10992_v36, 1  ;;  %v16613_v36 = vld [vmem:[#allocation46 + $0x50] sm:$0xff]   ;;  %v16617_v38 = vld [vmem:[#allocation46 + $0x60] sm:$0xff]   ;;  %v16619_v27 = vld [vmem:[#allocation46 + $0x68] sm:$0xff]  }
0x2fad   : > { %v10991_v5 = vpack.c.bf16 %v10980_v9, %v10977_v25  ;;  %v16611_v25 = vld [vmem:[#allocation46 + $0x48] sm:$0xff]   ;;  %v16620_v9 = vld [vmem:[#allocation46 + $0x38] sm:$0xff]  }
0x2fae   : > { %v11036_v46 = vrot.slane %v11034_v35, 1  ;;  %v16622_v35 = vld [vmem:[#allocation46 + $0x78] sm:$0xff]  }
0x2faf   : > { %v11029_v39 = vshll.u32 %v10991_v5, 16  ;;  %15547 = vmatmul.mubr.bf16.vlgmr.msra.gmra.mrb[196].mxu1 %v10991_v5  ;;  %v11236_v60 = vrot.slane %v10991_v5, 1  ;;  %v11027_v41 = vshrl.u32 %v10991_v5, 16  ;;  %v16621_v5 = vld [vmem:[#allocation46 + $0x70] sm:$0xff]  }
0x2fb0   : > { %15572 = vmatprep.mubr.msk.bf16.mxu1 %vm20026_vm9, %v18438_v13  ;;  %v16602_v13 = vld [vmem:[#allocation49 + $0x98] sm:$0xff]  }
0x2fb1   : > { %v11031_v42 = vrot.slane %v11029_v39, 1  ;;  %v11238_v45 = vsel %vm20027_vm0, %v11236_v60, %v11237_v26 }
0x2fb3   : > { %v11032_v2 = vor.u32 %v11031_v42, %v11027_v41 }
0x2fb5   : > { %v11037_v6 = vsel %vm20028_vm1, %v11032_v2, %v11036_v46 }
0x2fb6   : > { %15527 = vmatmul.mubr.bf16.vlgmr.msra.gmra.mrb[192].mxu0 %v11037_v6 }
0x2fb7   : > { %15551 = vmatpush3.bf16.msra.mxu0 %v16599_v4  ;;  %15566 = vmatprep.mubr.msk.bf16.mxu0 %vm17625_vm4, %v17624_v1 }
0x2fb8   : > { %15552 = vmatprep.subr.bf16.mxu0 %v17624_v1 }
0x2fbb   : > { %15553 = vmatpush3.bf16.msra.mxu0 %v16600_v40 }
0x2fbc   : > { %15554 = vmatprep.subr.bf16.mxu0 %v17624_v1 }
0x2fbf   : > { %15555 = vmatpush3.bf16.msra.mxu0 %v16601_v43 }
0x2fc0   : > { %15556 = vmatprep.subr.bf16.mxu0 %v17624_v1 }
0x2fc3   : > { %15557 = vmatpush3.bf16.msra.mxu0 %v16602_v13 }
0x2fc4   : > { %15558 = vmatprep.subr.bf16.mxu0 %v17624_v1 }
0x2fc7   : > { %15559 = vmatpush3.bf16.msra.mxu0 %v16603_v47 }
0x2fc8   : > { %v10933_v19 = vpop.f32.mrb[192].mxu1  ;;  %15560 = vmatprep.subr.bf16.mxu0 %v17624_v1 }
0x2fc9   : > { %v10940_v20 = vadd.f32 %v10933_v19, %v10822_v49  ;;  %v15502_v22 = vpop.f32.mrb[193].mxu1  ;;  %v16623_v19 = vld [vmem:[#allocation46 + $0x80] sm:$0xff]  }
0x2fca   : > { %v10936_v23 = vpop.f32.mrb[194].mxu1  ;;  %v16624_v22 = vld [vmem:[#allocation46 + $0x88] sm:$0xff]  }
0x2fcb   : > { %v10941_v28 = vadd.f32 %v10936_v23, %v10825_v37  ;;  %v15503_v29 = vpop.f32.mrb[195].mxu1  ;;  %15561 = vmatpush3.bf16.msra.mxu0 %v16604_v48  ;;  %v16615_v37 = vld [vmem:[#allocation46 + $0x58] sm:$0xff]   ;;  %v16625_v23 = vld [vmem:[#allocation46 + $0x90] sm:$0xff]  }
0x2fcc   : > { %15562 = vmatprep.subr.bf16.mxu0 %v17624_v1  ;;  %v16627_v29 = vld [vmem:[#allocation46 + $0xa0] sm:$0xff]  }
0x2fcf   : > { %15563 = vmatpush3.bf16.msra.mxu0 %v16605_v44  ;;  %v16628_v44 = vld [vmem:[#allocation46 + $0xa8] sm:$0xff]  }
0x2fd0   : > { %15564 = vmatprep.subr.bf16.mxu0 %v17624_v1 }
0x2fd3   : > { %15565 = vmatpush3.bf16.msra.mxu0 %v16606_v53  ;;  %v16629_v53 = vld [vmem:[#allocation46 + $0xb0] sm:$0xff]  }
0x2fd4   : > { %15596 = vmatprep.subr.bf16.mxu0 %v17624_v1 }
0x2fd6   : > { %15567 = vmatmul.mubr.bf16.vlgmr.msra.gmra.mrb[196].mxu0 %v11238_v45 }
0x2fd7   : > { %15612 = vmatprep.mubr.msk.bf16.mxu0 %vm17625_vm4, %v17624_v1  ;;  %15597 = vmatpush3.bf16.msra.mxu0 %v16607_v54  ;;  %v16630_v54 = vld [vmem:[#allocation46 + $0xb8] sm:$0xff]  }
0x2fd8   : > { %15598 = vmatprep.subr.bf16.mxu0 %v17624_v1 }
0x2fdb   : > { %15599 = vmatpush3.bf16.msra.mxu0 %v16608_v55  ;;  %v11744_v55 = vld [vmem:[%s20033_s7] sm:$0xff] }
0x2fdc   : > { %15600 = vmatprep.subr.bf16.mxu0 %v17624_v1 }
0x2fdf   : > { %15601 = vmatpush3.bf16.msra.mxu0 %v16610_v51  ;;  %v11745_v51 = vld [vmem:[%s20033_s7 + $0x8] sm:$0xff] }
0x2fe0   : > { %15602 = vmatprep.subr.bf16.mxu0 %v17624_v1 }
0x2fe3   : > { %15603 = vmatpush3.bf16.msra.mxu0 %v16612_v56  ;;  %v11746_v56 = vld [vmem:[%s20033_s7 + $0x10] sm:$0xff] }
0x2fe4   : > { %15604 = vmatprep.subr.bf16.mxu0 %v17624_v1 }
0x2fe7   : > { %15605 = vmatpush3.bf16.msra.mxu0 %v16614_v57  ;;  %v15843_v57 = vpack.c.bf16 %v11745_v51, %v11744_v55 }
0x2fe8   : > { %15606 = vmatprep.subr.bf16.mxu0 %v17624_v1 }
0x2feb   : > { %15607 = vmatpush3.bf16.msra.mxu0 %v16616_v58  ;;  %v11747_v58 = vld [vmem:[%s20033_s7 + $0x18] sm:$0xff] }
0x2fec   : > { %15608 = vmatprep.subr.bf16.mxu0 %v17624_v1 }
0x3082   : > { %v11210_v59 = vpop.f32.mrb[196].mxu1 }
0x3083   : > { %v15548_v61 = vpop.f32.mrb[197].mxu1 }
0x3084   : > { %v11213_v62 = vpop.f32.mrb[198].mxu1  ;;  %v11748_v61 = vld [vmem:[%s20033_s7 + $0x20] sm:$0xff] }
0x3085   : > { %v15549_v63 = vpop.f32.mrb[199].mxu1 }
0x3089   : > { %v11121_v0 = vpop.f32.mrb[192].mxu0 }
0x308a   : > { %v11211_v7 = vadd.f32 %v11210_v59, %v11121_v0  ;;  %v15528_v8 = vpop.f32.mrb[193].mxu0  ;;  %v15847_v59 = vpack.c.bf16 %v11747_v58, %v11746_v56  ;;  %v11751_v0 = vld [vmem:[%s20033_s7 + $0x38] sm:$0xff] }
0x308b   : > { %v11124_v10 = vpop.f32.mrb[194].mxu0  ;;  %v11752_v8 = vld [vmem:[%s20033_s7 + $0x40] sm:$0xff] }
0x308c   : > { %v11214_v11 = vadd.f32 %v11213_v62, %v11124_v10  ;;  %v15529_v12 = vpop.f32.mrb[195].mxu0  ;;  %v11749_v62 = vld [vmem:[%s20033_s7 + $0x28] sm:$0xff] }
0x308d   : > { %v15851_v63 = vpack.c.bf16 %v11749_v62, %v11748_v61  ;;  %v11753_v10 = vld [vmem:[%s20033_s7 + $0x48] sm:$0xff]  ;;  %v11754_v12 = vld [vmem:[%s20033_s7 + $0x50] sm:$0xff] }
0x30a9   : > { %v11322_v15 = vpop.f32.mrb[196].mxu0 }
0x30aa   : > { %v11329_v16 = vadd.f32 %v11322_v15, %v11211_v7  ;;  %v15568_v17 = vpop.f32.mrb[197].mxu0  ;;  %v11755_v15 = vld [vmem:[%s20033_s7 + $0x58] sm:$0xff] }
0x30ab   : > { %v11325_v30 = vpop.f32.mrb[198].mxu0  ;;  %v11756_v17 = vld [vmem:[%s20033_s7 + $0x60] sm:$0xff] }
0x30ac   : > { %v11331_v31 = vadd.f32 %v11329_v16, %v10940_v20  ;;  %v11330_v32 = vadd.f32 %v11325_v30, %v11214_v11  ;;  %v15569_v33 = vpop.f32.mrb[199].mxu0  ;;  %v15859_v11 = vpack.c.bf16 %v11753_v10, %v11752_v8  ;;  %v15863_v16 = vpack.c.bf16 %v11755_v15, %v11754_v12 }
0x30ae   : > { %v11340_v34 = vadd.f32 %v13200_v21, %v11331_v31  ;;  %v11332_v52 = vadd.f32 %v11330_v32, %v10941_v28  ;;  %v16626_v28 = vld [vmem:[#allocation46 + $0x98] sm:$0xff]   ;;  %v11759_v32 = vld [vmem:[%s20033_s7 + $0x78] sm:$0xff] }
0x30af   : > { %v11758_v31 = vld [vmem:[%s20033_s7 + $0x70] sm:$0xff] }
0x30b0   : > { %v11341_v3 = vadd.f32 %v13200_v21, %v11332_v52  ;;  %v11342_v49 = vmax.f32 %v11340_v34, 0.0  ;;  %v11757_v21 = vld [vmem:[%s20033_s7 + $0x68] sm:$0xff]  ;;  %v15871_v33 = vpack.c.bf16 %v11759_v32, %v11758_v31 }
0x30b1   : > { %v15867_v30 = vpack.c.bf16 %v11757_v21, %v11756_v17 }
0x30b2   : > { %v11343_v18 = vmax.f32 %v11341_v3, 0.0 }
0x30b4   : > { %v11344_v50 = vpack.c.bf16 %v11343_v18, %v11342_v49 }
0x30b6   : > { %15570 = vmatprep.subr.bf16.mxu1 %v11344_v50 }
0x30b7   : > { %15571 = vmatpush3.bf16.msra.mxu1 %v11344_v50 }
0x30b8   : > { %15576 = vmatprep.subr.bf16.mxu1 %v17624_v1 }
0x30ba   : > { %15573 = vmatmul.mubr.msk.bf16.vlgmr.msra.gmra.mrb[200].mxu1 %vm20030_vm5, %v18442_v14  ;;  %v16618_v14 = vld [vmem:[#allocation46 + $0x30] sm:$0xff]  }
0x30bb   : > { %15577 = vmatpush3.bf16.msra.mxu1 %v16609_v24  ;;  %15592 = vmatprep.mubr.msk.bf16.mxu1 %vm17625_vm4, %v17624_v1 }
0x30bc   : > { %15578 = vmatprep.subr.bf16.mxu1 %v17624_v1  ;;  %15609 = vmatpush3.bf16.msra.mxu0 %v16618_v14  ;;  %v13227_v14 = vld [vmem:[%s20034_s1] ss:$0 sm:$0xff] }
0x30bd   : > { %15610 = vmatprep.subr.bf16.mxu0 %v17624_v1 }
0x30bf   : > { %15579 = vmatpush3.bf16.msra.mxu1 %v16611_v25 }
0x30c0   : > { %15580 = vmatprep.subr.bf16.mxu1 %v17624_v1  ;;  %15611 = vmatpush3.bf16.msra.mxu0 %v16620_v9 }
0x30c1   : > { %15844 = vmatprep.subr.bf16.mxu0 %v15843_v57 }
0x30c3   : > { %15581 = vmatpush3.bf16.msra.mxu1 %v16613_v36 }
0x30c4   : > { %15582 = vmatprep.subr.bf16.mxu1 %v17624_v1 }
0x30c7   : > { %15583 = vmatpush3.bf16.msra.mxu1 %v16615_v37 }
0x30c8   : > { %15584 = vmatprep.subr.bf16.mxu1 %v17624_v1 }
0x30cb   : > { %15585 = vmatpush3.bf16.msra.mxu1 %v16617_v38 }
0x30cc   : > { %15586 = vmatprep.subr.bf16.mxu1 %v17624_v1 }
0x30cf   : > { %15587 = vmatpush3.bf16.msra.mxu1 %v16619_v27 }
0x30d0   : > { %15588 = vmatprep.subr.bf16.mxu1 %v17624_v1 }
0x30d3   : > { %15589 = vmatpush3.bf16.msra.mxu1 %v16621_v5 }
0x30d4   : > { %15590 = vmatprep.subr.bf16.mxu1 %v17624_v1 }
0x30d7   : > { %15591 = vmatpush3.bf16.msra.mxu1 %v16622_v35 }
0x30d8   : > { %15616 = vmatprep.subr.bf16.mxu1 %v17624_v1 }
0x318d   : > { %v15574_v26 = vpop.f32.mrb[200].mxu1 }
0x318e   : > { %v11379_v39 = vpop.f32.mrb[201].mxu1  ;;  %v11394_v60 = vpack.c.bf16 %v15574_v26, %v15574_v26 }
0x318f   : > { %v15575_v41 = vpop.f32.mrb[202].mxu1 }
0x3190   : > { %v11382_v42 = vpop.f32.mrb[203].mxu1  ;;  %v11436_v46 = vshll.u32 %v11394_v60, 16  ;;  %v11639_v2 = vrot.slane %v11394_v60, 1 }
0x3191   : > { %v11393_v45 = vpack.c.bf16 %v11382_v42, %v11379_v39 }
0x3192   : > { %v11438_v47 = vrot.slane %v11436_v46, 1 }
0x3193   : > { %v11431_v4 = vshll.u32 %v11393_v45, 16  ;;  %15613 = vmatmul.mubr.bf16.vlgmr.msra.gmra.mrb[200].mxu0 %v11393_v45  ;;  %v11638_v6 = vrot.slane %v11393_v45, 1  ;;  %v11429_v40 = vshrl.u32 %v11393_v45, 16  ;;  %v13228_v45 = vld [vmem:[#allocation25] ss:$0 sm:$0xff] }
0x3194   : > { %15846 = vmatpush3.bf16.msra.mxu0 %v15843_v57 }
0x3195   : > { %v11433_v43 = vrot.slane %v11431_v4, 1  ;;  %v11640_v13 = vsel %vm20031_vm6, %v11638_v6, %v11639_v2  ;;  %15848 = vmatprep.subr.bf16.mxu0 %v15847_v59 }
0x3197   : > { %v11434_v48 = vor.u32 %v11433_v43, %v11429_v40 }
0x3198   : > { %15850 = vmatpush3.bf16.msra.mxu0 %v15847_v59 }
0x3199   : > { %v11439_v20 = vsel %vm20032_vm13, %v11434_v48, %v11438_v47  ;;  %15852 = vmatprep.subr.bf16.mxu0 %v15851_v63 }
0x319a   : > { %15593 = vmatmul.mubr.bf16.vlgmr.msra.gmra.mrb[204].mxu1 %v11439_v20 }
0x319b   : > { %15617 = vmatpush3.bf16.msra.mxu1 %v16623_v19  ;;  %15632 = vmatprep.mubr.msk.bf16.mxu1 %vm17625_vm4, %v17624_v1  ;;  %vm11842_vm4 = vcmask 261120  }
0x319c   : > { %15618 = vmatprep.subr.bf16.mxu1 %v17624_v1  ;;  %15854 = vmatpush3.bf16.msra.mxu0 %v15851_v63 }
0x319f   : > { %15619 = vmatpush3.bf16.msra.mxu1 %v16624_v22 }
0x31a0   : > { %15620 = vmatprep.subr.bf16.mxu1 %v17624_v1 }
0x31a3   : > { %15621 = vmatpush3.bf16.msra.mxu1 %v16625_v23 }
0x31a4   : > { %15622 = vmatprep.subr.bf16.mxu1 %v17624_v1 }
0x31a7   : > { %15623 = vmatpush3.bf16.msra.mxu1 %v16626_v28 }
0x31a8   : > { %15624 = vmatprep.subr.bf16.mxu1 %v17624_v1 }
0x31ab   : > { %15625 = vmatpush3.bf16.msra.mxu1 %v16627_v29 }
0x31ac   : > { %15626 = vmatprep.subr.bf16.mxu1 %v17624_v1 }
0x31af   : > { %15627 = vmatpush3.bf16.msra.mxu1 %v16628_v44 }
0x31b0   : > { %15628 = vmatprep.subr.bf16.mxu1 %v17624_v1 }
0x31b3   : > { %15629 = vmatpush3.bf16.msra.mxu1 %v16629_v53 }
0x31b4   : > { %15630 = vmatprep.subr.bf16.mxu1 %v17624_v1  ;;  %v11750_v1 = vld [vmem:[%s20033_s7 + $0x30] sm:$0xff] }
0x31b5   : > { %v15855_v7 = vpack.c.bf16 %v11751_v0, %v11750_v1 }
0x31b7   : > { %15631 = vmatpush3.bf16.msra.mxu1 %v16630_v54  ;;  %15856 = vmatprep.subr.bf16.mxu0 %v15855_v7 }
0x31b8   : > { %15858 = vmatpush3.bf16.msra.mxu0 %v15855_v7 }
0x31b9   : > { %15860 = vmatprep.subr.bf16.mxu0 %v15859_v11 }
0x31ba   : > { %15633 = vmatmul.mubr.bf16.vlgmr.msra.gmra.mrb[208].mxu1 %v11640_v13 }
0x31bc   : > { %15862 = vmatpush3.bf16.msra.mxu0 %v15859_v11 }
0x31bd   : > { %15864 = vmatprep.subr.bf16.mxu0 %v15863_v16 }
0x31c0   : > { %15866 = vmatpush3.bf16.msra.mxu0 %v15863_v16 }
0x31c1   : > { %15868 = vmatprep.subr.bf16.mxu0 %v15867_v30 }
0x31c4   : > { %15870 = vmatpush3.bf16.msra.mxu0 %v15867_v30 }
0x31c5   : > { %15872 = vmatprep.subr.bf16.mxu0 %v15871_v33 }
0x31c8   : > { %15874 = vmatpush3.bf16.msra.mxu0 %v15871_v33 }
0x3266   : > { %v11612_v34 = vpop.f32.mrb[200].mxu0 }
0x3267   : > { %v15614_v52 = vpop.f32.mrb[201].mxu0 }
0x3268   : > { %v11615_v3 = vpop.f32.mrb[202].mxu0 }
0x3269   : > { %v15615_v49 = vpop.f32.mrb[203].mxu0 }
0x326d   : > { %v11523_v18 = vpop.f32.mrb[204].mxu1 }
0x326e   : > { %v11613_v50 = vadd.f32 %v11612_v34, %v11523_v18  ;;  %v15594_v24 = vpop.f32.mrb[205].mxu1 }
0x326f   : > { %v11526_v25 = vpop.f32.mrb[206].mxu1 }
0x3270   : > { %v11616_v36 = vadd.f32 %v11615_v3, %v11526_v25  ;;  %v15595_v37 = vpop.f32.mrb[207].mxu1 }
0x328d   : > { %v11724_v38 = vpop.f32.mrb[208].mxu1 }
0x328e   : > { %v11731_v27 = vadd.f32 %v11724_v38, %v11613_v50  ;;  %v15634_v9 = vpop.f32.mrb[209].mxu1 }
0x328f   : > { %v11727_v5 = vpop.f32.mrb[210].mxu1 }
0x3290   : > { %v11740_v35 = vadd.f32 %v13227_v14, %v11731_v27  ;;  %v11732_v26 = vadd.f32 %v11727_v5, %v11616_v36  ;;  %v15635_v39 = vpop.f32.mrb[211].mxu1 }
0x3292   : > { %v11742_v60 = vmax.f32 %v11740_v35, 0.0  ;;  %v11741_v41 = vadd.f32 %v13227_v14, %v11732_v26 }
0x3294   : > { %v11743_v42 = vmax.f32 %v11741_v41, 0.0  ;;  %15668 = vmatprep.mubr.f32.mxu0 %v11742_v60 }
0x3296   : > { %15669 = vmatmul.mubr.f32.vlgmr.msra.gmra.mrb[204].mxu0 %v11743_v42 }
0x3369   : > { %v15670_v46 = vpop.f32.mrb[204].mxu0 }
0x336a   : > { %v11839_v2 = vadd.f32 %v15670_v46, %v13228_v45  ;;  %v11833_v4 = vpop.f32.mrb[205].mxu0 }
0x336b   : > { %v11834_v6 = vadd.f32 %v13228_v45, %v11833_v4 }
0x336c   : > { %11844 = vst.msk [vmem:[%s1953_s3 + $0x8] sm:$0xff] %vm11842_vm4, %v11839_v2 }
0x336d   : > { %11843 = vst.msk [vmem:[%s1953_s3] sm:$0xff] %vm11842_vm4, %v11834_v6 }
0x336e PF: > { %s130_s22 = sadd.s32 1, %s17537_s22  }
0x336f   : > { %p127_p3 = scmp.ge.s32.totalorder %s130_s22, 4  }
0x3371   :  { %129 = sbr.rel (!%p127_p3) target bundleno = 113 (0x71), region = 478 }
0x3378   :  { %11866 = vsyncpa [#allocation3], 1 }
0x3379   :  { %11868 = vsyncpa [#allocation3 + $0x1], 1 }
0x337a   :  { %11869 = vsyncpa [#allocation5], 1 }
0x337b   :  { %11870 = vsyncpa [#allocation8], 1 }
0x337c   :  { %11871 = vsyncpa [#allocation11], 1 }
0x337d   :  { %11872 = vsyncpa [#allocation14], 1 }
0x337e   :  { %11873 = vsyncpa [#allocation17], 1 }
0x337f   :  { %11874 = vsyncpa [#allocation20], 1 }
0x3380   :  { %11875 = vsyncpa [#allocation23], 1 }
0x3381   :  { %11876 = vsyncpa [#allocation26], 1 }
0x3382   :  { %11877 = vsyncpa [#allocation29], 1 }
0x3383   :  { %11878 = vsyncpa [#allocation32], 1 }
0x3384   :  { %11879 = vsyncpa [#allocation35], 1 }
0x3385   :  { %11880 = vsyncpa [#allocation38], 1 }
0x3386   :  { %11881 = vsyncpa [#allocation41], 1 }
0x3387   :  { %11882 = vsyncpa [#allocation44], 1 }
0x3388   :  { %11883 = vsyncpa [#allocation47], 1 }
0x3389   :  { %11884 = vsyncpa [#allocation50], 1 }

</bundles_post_ra>
